<compile_context>
chip_gen: v7x
topology: tpu7x:2x2x1
jax: 0.10.0
libtpu: 0.0.40
codegen_flags: <defaults>
</compile_context>

<pallas_src>
import functools

import jax
import jax.numpy as jnp
from jax.experimental import pallas as pl
from jax.experimental.pallas import tpu as pltpu

NC = 3
NDF = 64
BN_EPS = 1e-5
LEAKY_SLOPE = 0.2


def _default_vmem_limit():
    cap = 128 * 1024 * 1024
    try:
        info = pltpu.get_tpu_info()
        cap = int(getattr(info, "vmem_capacity_bytes", cap))
    except Exception:
        pass
    # ~48 MiB on v7x (64 MiB physical), ~96 MiB on v5e/v6e (128 MiB physical).
    return max(32 * 1024 * 1024, min(100 * 1024 * 1024, (cap * 3) // 4))


def _default_tn_max():
    try:
        kind = jax.devices()[0].device_kind.lower()
    except Exception:
        return 256
    return 256 if ("v6" in kind or "v7" in kind) else 128


VMEM_LIMIT = _default_vmem_limit()
TN_MAX = _default_tn_max()


def _pick_block_rows(total, target):
    # Largest divisor of `total` <= target with (8 | d) or d == total,
    # preferring >= 2 grid blocks (megacore).
    divs = [d for d in range(1, total + 1) if total % d == 0]
    cands = [d for d in divs if total // d >= 2] or divs
    fit = [d for d in cands if d <= target and (d % 8 == 0 or d == total)]
    if not fit:
        fit = [d for d in cands if d % 8 == 0 or d == total] or [total]
    return fit[-1]


def _pick_bblk(batch, rows_per_img, target_rows=512):
    # Images per conv block: keep >= 2 M-tiles when possible, ~target rows/block.
    divs = [d for d in range(1, batch + 1) if batch % d == 0]
    cands = [d for d in divs if batch // d >= 2] or divs
    fit = [d for d in cands if d * rows_per_img <= target_rows] or [cands[0]]
    return fit[-1]


# ---------------------------------------------------------------------------
# Layer 0: Conv2d(3, 64, 4, 2, 1) + LeakyReLU as a single K=48 matmul
# ---------------------------------------------------------------------------
def _matmul_lrelu_kernel(x_ref, w_ref, o_ref):
    acc = jnp.dot(x_ref[...], w_ref[...], preferred_element_type=jnp.float32)
    o_ref[...] = jnp.where(acc > 0, acc, LEAKY_SLOPE * acc).astype(o_ref.dtype)


def _layer0(x0, w0):
    M, K = x0.shape
    N = w0.shape[-1]
    tm = _pick_block_rows(M, 1024)
    # TODO(synk): N=64 output is not 128-lane-dense (masked stores); packing two
    # output pixels per 128-lane row would make the stores unmasked.
    return pl.pallas_call(
        _matmul_lrelu_kernel,
        out_shape=jax.ShapeDtypeStruct((M, N), jnp.bfloat16),
        grid=(M // tm,),
        in_specs=[pl.BlockSpec((tm, K), lambda i: (i, 0)),
                  pl.BlockSpec((K, N), lambda i: (0, 0))],
        out_specs=pl.BlockSpec((tm, N), lambda i: (i, 0)),
        compiler_params=pltpu.CompilerParams(
            dimension_semantics=("parallel",),
            vmem_limit_bytes=VMEM_LIMIT),
    )(x0, w0)


# ---------------------------------------------------------------------------
# BN layers, pass 1: 4x4/stride-2 conv with taps fused along K (K = 16*C)
#                    + per-block channel sum / sum-of-squares side output
# ---------------------------------------------------------------------------
def _conv_stats_kernel(x_ref, w_ref, o_ref, s_ref, *, bblk, oh, ow):
    # x_ref: (4, bblk, oh+1, ow+1, C) parity-split padded input, bf16
    #        plane pq = 2*p + q holds x_pad[:, p::2, q::2, :]
    # w_ref: (16*C, tn) packed tap weights, bf16
    # o_ref: (bblk*oh*ow, tn) pre-BN conv output, bf16
    # s_ref: (1, 2, tn) per-block channel [sum, sumsq] of the f32 accumulator
    c = x_ref.shape[-1]
    m = bblk * oh * ow

    windows = []
    for pq in range(4):                            # parity plane index 2*p + q
        plane = x_ref[pq]                          # (bblk, oh+1, ow+1, c)
        for di in (0, 1):
            for dj in (0, 1):
                windows.append(plane[:, di:di + oh, dj:dj + ow, :])
    # VMEM im2col slab: one deep MXU matmul instead of 16 shallow ones.
    slab = jnp.concatenate(windows, axis=-1).reshape(m, 16 * c)
    acc = jnp.dot(slab, w_ref[...], preferred_element_type=jnp.float32)

    o_ref[...] = acc.astype(o_ref.dtype)
    ssum = jnp.sum(acc, axis=0, keepdims=True)          # (1, tn)
    ssq = jnp.sum(acc * acc, axis=0, keepdims=True)     # (1, tn)
    s_ref[...] = jnp.concatenate([ssum, ssq], axis=0)[None]


def _conv_stats_layer(x_par, w_packed, *, bblk, tn):
    _, B, Hh, Wh, C = x_par.shape
    oh, ow = Hh - 1, Wh - 1
    N = w_packed.shape[-1]
    M = B * oh * ow
    mrows = bblk * oh * ow
    m_tiles, n_tiles = B // bblk, N // tn

    kernel = functools.partial(_conv_stats_kernel, bblk=bblk, oh=oh, ow=ow)
    out_shape = (jax.ShapeDtypeStruct((M, N), jnp.bfloat16),
                 jax.ShapeDtypeStruct((m_tiles, 2, N), jnp.float32))
    return pl.pallas_call(
        kernel,
        out_shape=out_shape,
        grid=(m_tiles, n_tiles),
        in_specs=[
            pl.BlockSpec((4, bblk, Hh, Wh, C), lambda mi, ni: (0, mi, 0, 0, 0)),
            pl.BlockSpec((16 * C, tn), lambda mi, ni: (0, ni)),
        ],
        out_specs=(
            pl.BlockSpec((mrows, tn), lambda mi, ni: (mi, ni)),
            pl.BlockSpec((1, 2, tn), lambda mi, ni: (mi, 0, ni)),
        ),
        compiler_params=pltpu.CompilerParams(
            dimension_semantics=("parallel", "parallel"),
            vmem_limit_bytes=VMEM_LIMIT),
    )(x_par, w_packed)


# ---------------------------------------------------------------------------
# BN layers, pass 2: y = x * scale + shift, then LeakyReLU(0.2), tiled (M, N)
# ---------------------------------------------------------------------------
def _bn_lrelu_kernel(x_ref, scale_ref, shift_ref, o_ref):
    y = x_ref[...].astype(jnp.float32) * scale_ref[...] + shift_ref[...]
    o_ref[...] = jnp.where(y > 0, y, LEAKY_SLOPE * y).astype(o_ref.dtype)


def _bn_lrelu_layer(pre, scale, shift):
    M, N = pre.shape
    tm = _pick_block_rows(M, 512)
    tn = min(N, TN_MAX)
    return pl.pallas_call(
        _bn_lrelu_kernel,
        out_shape=jax.ShapeDtypeStruct((M, N), jnp.bfloat16),
        grid=(M // tm, N // tn),
        in_specs=[
            pl.BlockSpec((tm, tn), lambda i, j: (i, j)),
            pl.BlockSpec((1, tn), lambda i, j: (0, j)),
            pl.BlockSpec((1, tn), lambda i, j: (0, j)),
        ],
        out_specs=pl.BlockSpec((tm, tn), lambda i, j: (i, j)),
        compiler_params=pltpu.CompilerParams(
            dimension_semantics=("parallel", "parallel"),
            vmem_limit_bytes=VMEM_LIMIT),
    )(pre, scale, shift)


# ---------------------------------------------------------------------------
# Final Conv2d(ndf*8, 1, 4, 1, 0) + Sigmoid as a VPU multiply-reduce (N=1)
# ---------------------------------------------------------------------------
def _final_sigmoid_kernel(x_ref, w_ref, o_ref):
    x = x_ref[...].astype(jnp.float32)
    logit = jnp.sum(x * w_ref[...], axis=1, keepdims=True)
    o_ref[...] = jax.nn.sigmoid(logit)


def _final_layer(x2d, w_row):
    B = x2d.shape[0]
    return pl.pallas_call(
        _final_sigmoid_kernel,
        out_shape=jax.ShapeDtypeStruct((B, 1), jnp.float32),
        in_specs=[pl.BlockSpec(memory_space=pltpu.MemorySpace.VMEM),
                  pl.BlockSpec(memory_space=pltpu.MemorySpace.VMEM)],
        out_specs=pl.BlockSpec(memory_space=pltpu.MemorySpace.VMEM),
    )(x2d, w_row)


# ---------------------------------------------------------------------------
# Plain-JAX glue (cheap layout ops, ~1x activation size)
# ---------------------------------------------------------------------------
def _im2col_layer0(x_nhwc):
    # (B, H, W, 3) -> (B*OH*OW, 48) bf16, K ordered (i, j, c).
    B, H, W, C = x_nhwc.shape
    xp = jnp.pad(x_nhwc, ((0, 0), (1, 1), (1, 1), (0, 0)))
    oh, ow = H // 2, W // 2
    cols = [xp[:, i:i + 2 * oh:2, j:j + 2 * ow:2, :]
            for i in range(4) for j in range(4)]
    patches = jnp.concatenate(cols, axis=-1)               # (B, OH, OW, 48)
    return patches.reshape(B * oh * ow, 16 * C).astype(jnp.bfloat16), oh, ow


def _pad_parity_split(h2d, B, H, W, C):
    # (B*H*W, C) bf16 -> (4, B, H//2 + 1, W//2 + 1, C); plane index = 2*p + q.
    xp = jnp.pad(h2d.reshape(B, H, W, C), ((0, 0), (1, 1), (1, 1), (0, 0)))
    Hp, Wp = H + 2, W + 2
    xr = xp.reshape(B, Hp // 2, 2, Wp // 2, 2, C).transpose(2, 4, 0, 1, 3, 5)
    return xr.reshape(4, B, Hp // 2, Wp // 2, C)


def _pack_conv_weight(w):
    # (OC, C, 4, 4) -> (16*C, OC) with K ordered (p, q, di, dj, c), matching the
    # in-kernel slab order: tap (i, j) = (2*di + p, 2*dj + q).
    w_t = jnp.transpose(w, (2, 3, 1, 0)).astype(jnp.bfloat16)   # (KH, KW, C, OC)
    parts = []
    for p in (0, 1):
        for q in (0, 1):
            for di in (0, 1):
                for dj in (0, 1):
                    parts.append(w_t[2 * di + p, 2 * dj + q])   # (C, OC)
    return jnp.concatenate(parts, axis=0)                       # (16*C, OC)


# ---------------------------------------------------------------------------
# Discriminator forward
# ---------------------------------------------------------------------------
_LAYER_CFG = (
    # (out_channels, use_bn) — all 4x4, stride 2, pad 1, bias=False
    (NDF, False),
    (NDF * 2, True),
    (NDF * 4, True),
    (NDF * 8, True),
)


def init_params(key):
    params = {}
    in_ch = NC
    for li, (oc, use_bn) in enumerate(_LAYER_CFG):
        key, wk = jax.random.split(key)
        params[f"w{li}"] = 0.02 * jax.random.normal(
            wk, (oc, in_ch, 4, 4), dtype=jnp.float32)           # PyTorch (OC, C, KH, KW)
        if use_bn:
            params[f"gamma{li}"] = jnp.ones((oc,), jnp.float32)
            params[f"beta{li}"] = jnp.zeros((oc,), jnp.float32)
        in_ch = oc
    key, wk = jax.random.split(key)
    params["w4"] = 0.02 * jax.random.normal(wk, (1, in_ch, 4, 4), dtype=jnp.float32)
    return params


@jax.jit
def discriminator_forward(x, params):
    B, C, H, W = x.shape
    h_nhwc = jnp.transpose(x, (0, 2, 3, 1))                     # boundary NCHW -> NHWC

    # Layer 0: Conv2d(3, 64, 4, 2, 1) + LeakyReLU via a K=48 im2col matmul.
    x0, oh, ow = _im2col_layer0(h_nhwc)
    w0 = jnp.transpose(params["w0"], (2, 3, 1, 0)).reshape(16 * C, NDF)
    h = _layer0(x0, w0.astype(jnp.bfloat16))                    # (B*32*32, 64) bf16
    H, W, C = oh, ow, NDF

    # Layers 1-3: Conv2d(4,2,1) + BatchNorm2d (training-mode stats) + LeakyReLU.
    for li in (1, 2, 3):
        oc, _ = _LAYER_CFG[li]
        oh, ow = H // 2, W // 2
        x_par = _pad_parity_split(h, B, H, W, C)
        w_packed = _pack_conv_weight(params[f"w{li}"])
        bblk = _pick_bblk(B, oh * ow)
        tn = min(oc, TN_MAX)
        pre, stats = _conv_stats_layer(x_par, w_packed, bblk=bblk, tn=tn)

        # Tiny per-channel reduction + affine fold (exact batch stats, f32).
        s = jnp.sum(stats, axis=0)                              # (2, OC)
        m_total = float(B * oh * ow)
        mean = s[0] / m_total
        var = jnp.maximum(s[1] / m_total - mean * mean, 0.0)    # biased variance
        scale = params[f"gamma{li}"] * jax.lax.rsqrt(var + BN_EPS)
        shift = params[f"beta{li}"] - mean * scale
        # TODO(synk): BatchNorm running_mean/running_var momentum updates (module
        # state) are not produced; only the forward output is computed.
        h = _bn_lrelu_layer(pre, scale.reshape(1, -1), shift.reshape(1, -1))
        H, W, C = oh, ow, oc

    # Final Conv2d(ndf*8, 1, 4, 1, 0) + Sigmoid: full (h, w, c) reduce per image.
    x4 = h.reshape(B, H * W * C)                                          # (B, 8192)
    w4 = jnp.transpose(params["w4"], (0, 2, 3, 1)).reshape(1, H * W * C)  # (1, 8192) f32
    y = _final_layer(x4, w4)                                              # (B, 1) f32
    return y.reshape(B, 1, 1, 1)


if __name__ == "__main__":
    key = jax.random.PRNGKey(0)
    pkey, xkey = jax.random.split(key)
    params = init_params(pkey)
    # DCGAN discriminator expects 64x64 spatial input (3 channels); batch = 2.
    x = jax.random.normal(xkey, (2, NC, 64, 64), dtype=jnp.float32)

    y = discriminator_forward(x, params)
    y = jax.block_until_ready(y)
    assert y.shape == (2, 1, 1, 1)
    assert bool(jnp.all((y >= 0.0) & (y <= 1.0)))
    print("KERNEL_OK")
</pallas_src>

<mosaic_0001>
module attributes {stable_mosaic.version = 11 : i64} {
  func.func @_matmul_lrelu_kernel(%arg0: i32, %arg1: memref<1024x48xbf16, #tpu.memory_space<vmem>>, %arg2: memref<48x64xbf16, #tpu.memory_space<vmem>>, %arg3: memref<1024x64xbf16, #tpu.memory_space<vmem>>) attributes {dimension_semantics = [#tpu.dimension_semantics<parallel>], iteration_bounds = array<i64: 2>, scalar_prefetch = 0 : i64, scratch_operands = 0 : i64, tpu.core_type = #tpu.core_type<tc>, window_params = [{transform_indices = @transform_0, window_bounds = array<i64: 1024, 48>}, {pipeline_mode = #tpu.pipeline_mode<synchronous>, transform_indices = @transform_1, window_bounds = array<i64: 48, 64>}, {transform_indices = @transform_2, window_bounds = array<i64: 1024, 64>}]} {
    %c0 = arith.constant 0 : index
    %c0_0 = arith.constant 0 : index
    %0 = vector.load %arg1[%c0, %c0_0] : memref<1024x48xbf16, #tpu.memory_space<vmem>>, vector<1024x48xbf16>
    %c0_1 = arith.constant 0 : index
    %c0_2 = arith.constant 0 : index
    %1 = vector.load %arg2[%c0_1, %c0_2] : memref<48x64xbf16, #tpu.memory_space<vmem>>, vector<48x64xbf16>
    %cst = arith.constant dense<0.000000e+00> : vector<1024x64xf32>
    %2 = tpu.matmul %0, %1, %cst {dimension_numbers = #tpu.dot_dimension_numbers<[1], [0], [0], [1], [0, 0, 1, 1], [], []>} : vector<1024x48xbf16>, vector<48x64xbf16>, vector<1024x64xf32> -> vector<1024x64xf32>
    %cst_3 = arith.constant 0.000000e+00 : f32
    %3 = vector.broadcast %cst_3 : f32 to vector<1024x64xf32>
    %4 = arith.cmpf ogt, %2, %3 : vector<1024x64xf32>
    %cst_4 = arith.constant 2.000000e-01 : f32
    %5 = vector.broadcast %cst_4 : f32 to vector<1024x64xf32>
    %6 = arith.mulf %5, %2 : vector<1024x64xf32>
    %7 = arith.select %4, %2, %6 : vector<1024x64xi1>, vector<1024x64xf32>
    %8 = arith.truncf %7 : vector<1024x64xf32> to vector<1024x64xbf16>
    %c0_5 = arith.constant 0 : index
    %c0_6 = arith.constant 0 : index
    %9 = vector.load %arg3[%c0_5, %c0_6] : memref<1024x64xbf16, #tpu.memory_space<vmem>>, vector<1024x64xbf16>
    tpu.vector_store %arg3[%c0_5, %c0_6], %8 {strides = array<i32>} : memref<1024x64xbf16, #tpu.memory_space<vmem>>, vector<1024x64xbf16>,
    return
  }
  func.func @transform_0(%arg0: i32) -> (i32, i32) {
    %c0_i32 = arith.constant 0 : i32
    %c0_i32_0 = arith.constant 0 : i32
    return %arg0, %c0_i32 : i32, i32
  }
  func.func @transform_1(%arg0: i32) -> (i32, i32) {
    %c0_i32 = arith.constant 0 : i32
    %c0_i32_0 = arith.constant 0 : i32
    %c0_i32_1 = arith.constant 0 : i32
    return %c0_i32, %c0_i32_0 : i32, i32
  }
  func.func @transform_2(%arg0: i32) -> (i32, i32) {
    %c0_i32 = arith.constant 0 : i32
    %c0_i32_0 = arith.constant 0 : i32
    return %arg0, %c0_i32 : i32, i32
  }
}

module attributes {stable_mosaic.version = 11 : i64} {
  func.func @_bn_lrelu_kernel(%arg0: i32, %arg1: i32, %arg2: memref<256x128xbf16, #tpu.memory_space<vmem>>, %arg3: memref<1x128xf32, #tpu.memory_space<vmem>>, %arg4: memref<1x128xf32, #tpu.memory_space<vmem>>, %arg5: memref<256x128xbf16, #tpu.memory_space<vmem>>) attributes {dimension_semantics = [#tpu.dimension_semantics<parallel>, #tpu.dimension_semantics<parallel>], iteration_bounds = array<i64: 2, 1>, scalar_prefetch = 0 : i64, scratch_operands = 0 : i64, tpu.core_type = #tpu.core_type<tc>, window_params = [{transform_indices = @transform_0, window_bounds = array<i64: 256, 128>}, {transform_indices = @transform_1, window_bounds = array<i64: 1, 128>}, {transform_indices = @transform_2, window_bounds = array<i64: 1, 128>}, {transform_indices = @transform_3, window_bounds = array<i64: 256, 128>}]} {
    %c0 = arith.constant 0 : index
    %c0_0 = arith.constant 0 : index
    %0 = vector.load %arg2[%c0, %c0_0] : memref<256x128xbf16, #tpu.memory_space<vmem>>, vector<256x128xbf16>
    %1 = arith.extf %0 : vector<256x128xbf16> to vector<256x128xf32>
    %c0_1 = arith.constant 0 : index
    %c0_2 = arith.constant 0 : index
    %2 = vector.load %arg3[%c0_1, %c0_2] : memref<1x128xf32, #tpu.memory_space<vmem>>, vector<1x128xf32>
    %3 = vector.broadcast %2 : vector<1x128xf32> to vector<256x128xf32>
    %4 = arith.mulf %1, %3 : vector<256x128xf32>
    %c0_3 = arith.constant 0 : index
    %c0_4 = arith.constant 0 : index
    %5 = vector.load %arg4[%c0_3, %c0_4] : memref<1x128xf32, #tpu.memory_space<vmem>>, vector<1x128xf32>
    %6 = vector.broadcast %5 : vector<1x128xf32> to vector<256x128xf32>
    %7 = arith.addf %4, %6 : vector<256x128xf32>
    %cst = arith.constant 0.000000e+00 : f32
    %8 = vector.broadcast %cst : f32 to vector<256x128xf32>
    %9 = arith.cmpf ogt, %7, %8 : vector<256x128xf32>
    %cst_5 = arith.constant 2.000000e-01 : f32
    %10 = vector.broadcast %cst_5 : f32 to vector<256x128xf32>
    %11 = arith.mulf %10, %7 : vector<256x128xf32>
    %12 = arith.select %9, %7, %11 : vector<256x128xi1>, vector<256x128xf32>
    %13 = arith.truncf %12 : vector<256x128xf32> to vector<256x128xbf16>
    %c0_6 = arith.constant 0 : index
    %c0_7 = arith.constant 0 : index
    %14 = vector.load %arg5[%c0_6, %c0_7] : memref<256x128xbf16, #tpu.memory_space<vmem>>, vector<256x128xbf16>
    tpu.vector_store %arg5[%c0_6, %c0_7], %13 {strides = array<i32>} : memref<256x128xbf16, #tpu.memory_space<vmem>>, vector<256x128xbf16>,
    return
  }
  func.func @transform_0(%arg0: i32, %arg1: i32) -> (i32, i32) {
    %c0_i32 = arith.constant 0 : i32
    return %arg0, %arg1 : i32, i32
  }
  func.func @transform_1(%arg0: i32, %arg1: i32) -> (i32, i32) {
    %c0_i32 = arith.constant 0 : i32
    %c0_i32_0 = arith.constant 0 : i32
    return %c0_i32, %arg1 : i32, i32
  }
  func.func @transform_2(%arg0: i32, %arg1: i32) -> (i32, i32) {
    %c0_i32 = arith.constant 0 : i32
    %c0_i32_0 = arith.constant 0 : i32
    return %c0_i32, %arg1 : i32, i32
  }
  func.func @transform_3(%arg0: i32, %arg1: i32) -> (i32, i32) {
    %c0_i32 = arith.constant 0 : i32
    return %arg0, %arg1 : i32, i32
  }
}

module attributes {stable_mosaic.version = 11 : i64} {
  func.func @_conv_stats_kernel(%arg0: i32, %arg1: i32, %arg2: memref<4x1x17x17x64xbf16, #tpu.memory_space<vmem>>, %arg3: memref<1024x128xbf16, #tpu.memory_space<vmem>>, %arg4: memref<256x128xbf16, #tpu.memory_space<vmem>>, %arg5: memref<1x2x128xf32, #tpu.memory_space<vmem>>) attributes {dimension_semantics = [#tpu.dimension_semantics<parallel>, #tpu.dimension_semantics<parallel>], iteration_bounds = array<i64: 2, 1>, scalar_prefetch = 0 : i64, scratch_operands = 0 : i64, tpu.core_type = #tpu.core_type<tc>, window_params = [{transform_indices = @transform_0, window_bounds = array<i64: 4, 1, 17, 17, 64>}, {transform_indices = @transform_1, window_bounds = array<i64: 1024, 128>}, {transform_indices = @transform_2, window_bounds = array<i64: 256, 128>}, {transform_indices = @transform_3, window_bounds = array<i64: 1, 2, 128>}]} {
    %c0 = arith.constant 0 : index
    %c0_0 = arith.constant 0 : index
    %c0_1 = arith.constant 0 : index
    %c0_2 = arith.constant 0 : index
    %c0_3 = arith.constant 0 : index
    %0 = vector.load %arg2[%c0, %c0_0, %c0_1, %c0_2, %c0_3] : memref<4x1x17x17x64xbf16, #tpu.memory_space<vmem>>, vector<1x1x17x17x64xbf16>
    %1 = vector.shape_cast %0 : vector<1x1x17x17x64xbf16> to vector<1x17x17x64xbf16>
    %2 = vector.extract_strided_slice %1 {offsets = [0, 0, 0, 0], sizes = [1, 16, 16, 64], strides = [1, 1, 1, 1]} : vector<1x17x17x64xbf16> to vector<1x16x16x64xbf16>
    %3 = vector.extract_strided_slice %1 {offsets = [0, 0, 1, 0], sizes = [1, 16, 16, 64], strides = [1, 1, 1, 1]} : vector<1x17x17x64xbf16> to vector<1x16x16x64xbf16>
    %4 = vector.extract_strided_slice %1 {offsets = [0, 1, 0, 0], sizes = [1, 16, 16, 64], strides = [1, 1, 1, 1]} : vector<1x17x17x64xbf16> to vector<1x16x16x64xbf16>
    %5 = vector.extract_strided_slice %1 {offsets = [0, 1, 1, 0], sizes = [1, 16, 16, 64], strides = [1, 1, 1, 1]} : vector<1x17x17x64xbf16> to vector<1x16x16x64xbf16>
    %c1 = arith.constant 1 : index
    %c0_4 = arith.constant 0 : index
    %c0_5 = arith.constant 0 : index
    %c0_6 = arith.constant 0 : index
    %c0_7 = arith.constant 0 : index
    %6 = vector.load %arg2[%c1, %c0_4, %c0_5, %c0_6, %c0_7] : memref<4x1x17x17x64xbf16, #tpu.memory_space<vmem>>, vector<1x1x17x17x64xbf16>
    %7 = vector.shape_cast %6 : vector<1x1x17x17x64xbf16> to vector<1x17x17x64xbf16>
    %8 = vector.extract_strided_slice %7 {offsets = [0, 0, 0, 0], sizes = [1, 16, 16, 64], strides = [1, 1, 1, 1]} : vector<1x17x17x64xbf16> to vector<1x16x16x64xbf16>
    %9 = vector.extract_strided_slice %7 {offsets = [0, 0, 1, 0], sizes = [1, 16, 16, 64], strides = [1, 1, 1, 1]} : vector<1x17x17x64xbf16> to vector<1x16x16x64xbf16>
    %10 = vector.extract_strided_slice %7 {offsets = [0, 1, 0, 0], sizes = [1, 16, 16, 64], strides = [1, 1, 1, 1]} : vector<1x17x17x64xbf16> to vector<1x16x16x64xbf16>
    %11 = vector.extract_strided_slice %7 {offsets = [0, 1, 1, 0], sizes = [1, 16, 16, 64], strides = [1, 1, 1, 1]} : vector<1x17x17x64xbf16> to vector<1x16x16x64xbf16>
    %c2 = arith.constant 2 : index
    %c0_8 = arith.constant 0 : index
    %c0_9 = arith.constant 0 : index
    %c0_10 = arith.constant 0 : index
    %c0_11 = arith.constant 0 : index
    %12 = vector.load %arg2[%c2, %c0_8, %c0_9, %c0_10, %c0_11] : memref<4x1x17x17x64xbf16, #tpu.memory_space<vmem>>, vector<1x1x17x17x64xbf16>
    %13 = vector.shape_cast %12 : vector<1x1x17x17x64xbf16> to vector<1x17x17x64xbf16>
    %14 = vector.extract_strided_slice %13 {offsets = [0, 0, 0, 0], sizes = [1, 16, 16, 64], strides = [1, 1, 1, 1]} : vector<1x17x17x64xbf16> to vector<1x16x16x64xbf16>
    %15 = vector.extract_strided_slice %13 {offsets = [0, 0, 1, 0], sizes = [1, 16, 16, 64], strides = [1, 1, 1, 1]} : vector<1x17x17x64xbf16> to vector<1x16x16x64xbf16>
    %16 = vector.extract_strided_slice %13 {offsets = [0, 1, 0, 0], sizes = [1, 16, 16, 64], strides = [1, 1, 1, 1]} : vector<1x17x17x64xbf16> to vector<1x16x16x64xbf16>
    %17 = vector.extract_strided_slice %13 {offsets = [0, 1, 1, 0], sizes = [1, 16, 16, 64], strides = [1, 1, 1, 1]} : vector<1x17x17x64xbf16> to vector<1x16x16x64xbf16>
    %c3 = arith.constant 3 : index
    %c0_12 = arith.constant 0 : index
    %c0_13 = arith.constant 0 : index
    %c0_14 = arith.constant 0 : index
    %c0_15 = arith.constant 0 : index
    %18 = vector.load %arg2[%c3, %c0_12, %c0_13, %c0_14, %c0_15] : memref<4x1x17x17x64xbf16, #tpu.memory_space<vmem>>, vector<1x1x17x17x64xbf16>
    %19 = vector.shape_cast %18 : vector<1x1x17x17x64xbf16> to vector<1x17x17x64xbf16>
    %20 = vector.extract_strided_slice %19 {offsets = [0, 0, 0, 0], sizes = [1, 16, 16, 64], strides = [1, 1, 1, 1]} : vector<1x17x17x64xbf16> to vector<1x16x16x64xbf16>
    %21 = vector.extract_strided_slice %19 {offsets = [0, 0, 1, 0], sizes = [1, 16, 16, 64], strides = [1, 1, 1, 1]} : vector<1x17x17x64xbf16> to vector<1x16x16x64xbf16>
    %22 = vector.extract_strided_slice %19 {offsets = [0, 1, 0, 0], sizes = [1, 16, 16, 64], strides = [1, 1, 1, 1]} : vector<1x17x17x64xbf16> to vector<1x16x16x64xbf16>
    %23 = vector.extract_strided_slice %19 {offsets = [0, 1, 1, 0], sizes = [1, 16, 16, 64], strides = [1, 1, 1, 1]} : vector<1x17x17x64xbf16> to vector<1x16x16x64xbf16>
    %24 = tpu.concatenate %2, %3, %4, %5, %8, %9, %10, %11, %14, %15, %16, %17, %20, %21, %22, %23 in 3 : vector<1x16x16x64xbf16>, vector<1x16x16x64xbf16>, vector<1x16x16x64xbf16>, vector<1x16x16x64xbf16>, vector<1x16x16x64xbf16>, vector<1x16x16x64xbf16>, vector<1x16x16x64xbf16>, vector<1x16x16x64xbf16>, vector<1x16x16x64xbf16>, vector<1x16x16x64xbf16>, vector<1x16x16x64xbf16>, vector<1x16x16x64xbf16>, vector<1x16x16x64xbf16>, vector<1x16x16x64xbf16>, vector<1x16x16x64xbf16>, vector<1x16x16x64xbf16> -> vector<1x16x16x1024xbf16>
    %25 = vector.shape_cast %24 : vector<1x16x16x1024xbf16> to vector<256x1024xbf16>
    %c0_16 = arith.constant 0 : index
    %c0_17 = arith.constant 0 : index
    %26 = vector.load %arg3[%c0_16, %c0_17] : memref<1024x128xbf16, #tpu.memory_space<vmem>>, vector<1024x128xbf16>
    %cst = arith.constant dense<0.000000e+00> : vector<256x128xf32>
    %27 = tpu.matmul %25, %26, %cst {dimension_numbers = #tpu.dot_dimension_numbers<[1], [0], [0], [1], [0, 0, 1, 1], [], []>} : vector<256x1024xbf16>, vector<1024x128xbf16>, vector<256x128xf32> -> vector<256x128xf32>
    %28 = arith.truncf %27 : vector<256x128xf32> to vector<256x128xbf16>
    %c0_18 = arith.constant 0 : index
    %c0_19 = arith.constant 0 : index
    %29 = vector.load %arg4[%c0_18, %c0_19] : memref<256x128xbf16, #tpu.memory_space<vmem>>, vector<256x128xbf16>
    tpu.vector_store %arg4[%c0_18, %c0_19], %28 {strides = array<i32>} : memref<256x128xbf16, #tpu.memory_space<vmem>>, vector<256x128xbf16>,
    %cst_20 = arith.constant dense<0.000000e+00> : vector<128xf32>
    %30 = vector.multi_reduction <add>, %27, %cst_20 [0] : vector<256x128xf32> to vector<128xf32>
    %31 = vector.shape_cast %30 : vector<128xf32> to vector<1x128xf32>
    %32 = arith.mulf %27, %27 : vector<256x128xf32>
    %cst_21 = arith.constant dense<0.000000e+00> : vector<128xf32>
    %33 = vector.multi_reduction <add>, %32, %cst_21 [0] : vector<256x128xf32> to vector<128xf32>
    %34 = vector.shape_cast %33 : vector<128xf32> to vector<1x128xf32>
    %35 = tpu.concatenate %31, %34 in 0 : vector<1x128xf32>, vector<1x128xf32> -> vector<2x128xf32>
    %36 = vector.shape_cast %35 : vector<2x128xf32> to vector<1x2x128xf32>
    %c0_22 = arith.constant 0 : index
    %c0_23 = arith.constant 0 : index
    %c0_24 = arith.constant 0 : index
    %37 = vector.load %arg5[%c0_22, %c0_23, %c0_24] : memref<1x2x128xf32, #tpu.memory_space<vmem>>, vector<1x2x128xf32>
    tpu.vector_store %arg5[%c0_22, %c0_23, %c0_24], %36 {strides = array<i32>} : memref<1x2x128xf32, #tpu.memory_space<vmem>>, vector<1x2x128xf32>,
    return
  }
  func.func @transform_0(%arg0: i32, %arg1: i32) -> (i32, i32, i32, i32, i32) {
    %c0_i32 = arith.constant 0 : i32
    %c0_i32_0 = arith.constant 0 : i32
    %c0_i32_1 = arith.constant 0 : i32
    %c0_i32_2 = arith.constant 0 : i32
    %c0_i32_3 = arith.constant 0 : i32
    return %c0_i32, %arg0, %c0_i32_0, %c0_i32_1, %c0_i32_2 : i32, i32, i32, i32, i32
  }
  func.func @transform_1(%arg0: i32, %arg1: i32) -> (i32, i32) {
    %c0_i32 = arith.constant 0 : i32
    %c0_i32_0 = arith.constant 0 : i32
    return %c0_i32, %arg1 : i32, i32
  }
  func.func @transform_2(%arg0: i32, %arg1: i32) -> (i32, i32) {
    %c0_i32 = arith.constant 0 : i32
    return %arg0, %arg1 : i32, i32
  }
  func.func @transform_3(%arg0: i32, %arg1: i32) -> (i32, i32, i32) {
    %c0_i32 = arith.constant 0 : i32
    %c0_i32_0 = arith.constant 0 : i32
    return %arg0, %c0_i32, %arg1 : i32, i32, i32
  }
}

module attributes {stable_mosaic.version = 11 : i64} {
  func.func @_conv_stats_kernel(%arg0: i32, %arg1: i32, %arg2: memref<4x1x9x9x128xbf16, #tpu.memory_space<vmem>>, %arg3: memref<2048x128xbf16, #tpu.memory_space<vmem>>, %arg4: memref<64x128xbf16, #tpu.memory_space<vmem>>, %arg5: memref<1x2x128xf32, #tpu.memory_space<vmem>>) attributes {dimension_semantics = [#tpu.dimension_semantics<parallel>, #tpu.dimension_semantics<parallel>], iteration_bounds = array<i64: 2, 2>, scalar_prefetch = 0 : i64, scratch_operands = 0 : i64, tpu.core_type = #tpu.core_type<tc>, window_params = [{transform_indices = @transform_0, window_bounds = array<i64: 4, 1, 9, 9, 128>}, {transform_indices = @transform_1, window_bounds = array<i64: 2048, 128>}, {transform_indices = @transform_2, window_bounds = array<i64: 64, 128>}, {transform_indices = @transform_3, window_bounds = array<i64: 1, 2, 128>}]} {
    %c0 = arith.constant 0 : index
    %c0_0 = arith.constant 0 : index
    %c0_1 = arith.constant 0 : index
    %c0_2 = arith.constant 0 : index
    %c0_3 = arith.constant 0 : index
    %0 = vector.load %arg2[%c0, %c0_0, %c0_1, %c0_2, %c0_3] : memref<4x1x9x9x128xbf16, #tpu.memory_space<vmem>>, vector<1x1x9x9x128xbf16>
    %1 = vector.shape_cast %0 : vector<1x1x9x9x128xbf16> to vector<1x9x9x128xbf16>
    %2 = vector.extract_strided_slice %1 {offsets = [0, 0, 0, 0], sizes = [1, 8, 8, 128], strides = [1, 1, 1, 1]} : vector<1x9x9x128xbf16> to vector<1x8x8x128xbf16>
    %3 = vector.extract_strided_slice %1 {offsets = [0, 0, 1, 0], sizes = [1, 8, 8, 128], strides = [1, 1, 1, 1]} : vector<1x9x9x128xbf16> to vector<1x8x8x128xbf16>
    %4 = vector.extract_strided_slice %1 {offsets = [0, 1, 0, 0], sizes = [1, 8, 8, 128], strides = [1, 1, 1, 1]} : vector<1x9x9x128xbf16> to vector<1x8x8x128xbf16>
    %5 = vector.extract_strided_slice %1 {offsets = [0, 1, 1, 0], sizes = [1, 8, 8, 128], strides = [1, 1, 1, 1]} : vector<1x9x9x128xbf16> to vector<1x8x8x128xbf16>
    %c1 = arith.constant 1 : index
    %c0_4 = arith.constant 0 : index
    %c0_5 = arith.constant 0 : index
    %c0_6 = arith.constant 0 : index
    %c0_7 = arith.constant 0 : index
    %6 = vector.load %arg2[%c1, %c0_4, %c0_5, %c0_6, %c0_7] : memref<4x1x9x9x128xbf16, #tpu.memory_space<vmem>>, vector<1x1x9x9x128xbf16>
    %7 = vector.shape_cast %6 : vector<1x1x9x9x128xbf16> to vector<1x9x9x128xbf16>
    %8 = vector.extract_strided_slice %7 {offsets = [0, 0, 0, 0], sizes = [1, 8, 8, 128], strides = [1, 1, 1, 1]} : vector<1x9x9x128xbf16> to vector<1x8x8x128xbf16>
    %9 = vector.extract_strided_slice %7 {offsets = [0, 0, 1, 0], sizes = [1, 8, 8, 128], strides = [1, 1, 1, 1]} : vector<1x9x9x128xbf16> to vector<1x8x8x128xbf16>
    %10 = vector.extract_strided_slice %7 {offsets = [0, 1, 0, 0], sizes = [1, 8, 8, 128], strides = [1, 1, 1, 1]} : vector<1x9x9x128xbf16> to vector<1x8x8x128xbf16>
    %11 = vector.extract_strided_slice %7 {offsets = [0, 1, 1, 0], sizes = [1, 8, 8, 128], strides = [1, 1, 1, 1]} : vector<1x9x9x128xbf16> to vector<1x8x8x128xbf16>
    %c2 = arith.constant 2 : index
    %c0_8 = arith.constant 0 : index
    %c0_9 = arith.constant 0 : index
    %c0_10 = arith.constant 0 : index
    %c0_11 = arith.constant 0 : index
    %12 = vector.load %arg2[%c2, %c0_8, %c0_9, %c0_10, %c0_11] : memref<4x1x9x9x128xbf16, #tpu.memory_space<vmem>>, vector<1x1x9x9x128xbf16>
    %13 = vector.shape_cast %12 : vector<1x1x9x9x128xbf16> to vector<1x9x9x128xbf16>
    %14 = vector.extract_strided_slice %13 {offsets = [0, 0, 0, 0], sizes = [1, 8, 8, 128], strides = [1, 1, 1, 1]} : vector<1x9x9x128xbf16> to vector<1x8x8x128xbf16>
    %15 = vector.extract_strided_slice %13 {offsets = [0, 0, 1, 0], sizes = [1, 8, 8, 128], strides = [1, 1, 1, 1]} : vector<1x9x9x128xbf16> to vector<1x8x8x128xbf16>
    %16 = vector.extract_strided_slice %13 {offsets = [0, 1, 0, 0], sizes = [1, 8, 8, 128], strides = [1, 1, 1, 1]} : vector<1x9x9x128xbf16> to vector<1x8x8x128xbf16>
    %17 = vector.extract_strided_slice %13 {offsets = [0, 1, 1, 0], sizes = [1, 8, 8, 128], strides = [1, 1, 1, 1]} : vector<1x9x9x128xbf16> to vector<1x8x8x128xbf16>
    %c3 = arith.constant 3 : index
    %c0_12 = arith.constant 0 : index
    %c0_13 = arith.constant 0 : index
    %c0_14 = arith.constant 0 : index
    %c0_15 = arith.constant 0 : index
    %18 = vector.load %arg2[%c3, %c0_12, %c0_13, %c0_14, %c0_15] : memref<4x1x9x9x128xbf16, #tpu.memory_space<vmem>>, vector<1x1x9x9x128xbf16>
    %19 = vector.shape_cast %18 : vector<1x1x9x9x128xbf16> to vector<1x9x9x128xbf16>
    %20 = vector.extract_strided_slice %19 {offsets = [0, 0, 0, 0], sizes = [1, 8, 8, 128], strides = [1, 1, 1, 1]} : vector<1x9x9x128xbf16> to vector<1x8x8x128xbf16>
    %21 = vector.extract_strided_slice %19 {offsets = [0, 0, 1, 0], sizes = [1, 8, 8, 128], strides = [1, 1, 1, 1]} : vector<1x9x9x128xbf16> to vector<1x8x8x128xbf16>
    %22 = vector.extract_strided_slice %19 {offsets = [0, 1, 0, 0], sizes = [1, 8, 8, 128], strides = [1, 1, 1, 1]} : vector<1x9x9x128xbf16> to vector<1x8x8x128xbf16>
    %23 = vector.extract_strided_slice %19 {offsets = [0, 1, 1, 0], sizes = [1, 8, 8, 128], strides = [1, 1, 1, 1]} : vector<1x9x9x128xbf16> to vector<1x8x8x128xbf16>
    %24 = tpu.concatenate %2, %3, %4, %5, %8, %9, %10, %11, %14, %15, %16, %17, %20, %21, %22, %23 in 3 : vector<1x8x8x128xbf16>, vector<1x8x8x128xbf16>, vector<1x8x8x128xbf16>, vector<1x8x8x128xbf16>, vector<1x8x8x128xbf16>, vector<1x8x8x128xbf16>, vector<1x8x8x128xbf16>, vector<1x8x8x128xbf16>, vector<1x8x8x128xbf16>, vector<1x8x8x128xbf16>, vector<1x8x8x128xbf16>, vector<1x8x8x128xbf16>, vector<1x8x8x128xbf16>, vector<1x8x8x128xbf16>, vector<1x8x8x128xbf16>, vector<1x8x8x128xbf16> -> vector<1x8x8x2048xbf16>
    %25 = vector.shape_cast %24 : vector<1x8x8x2048xbf16> to vector<64x2048xbf16>
    %c0_16 = arith.constant 0 : index
    %c0_17 = arith.constant 0 : index
    %26 = vector.load %arg3[%c0_16, %c0_17] : memref<2048x128xbf16, #tpu.memory_space<vmem>>, vector<2048x128xbf16>
    %cst = arith.constant dense<0.000000e+00> : vector<64x128xf32>
    %27 = tpu.matmul %25, %26, %cst {dimension_numbers = #tpu.dot_dimension_numbers<[1], [0], [0], [1], [0, 0, 1, 1], [], []>} : vector<64x2048xbf16>, vector<2048x128xbf16>, vector<64x128xf32> -> vector<64x128xf32>
    %28 = arith.truncf %27 : vector<64x128xf32> to vector<64x128xbf16>
    %c0_18 = arith.constant 0 : index
    %c0_19 = arith.constant 0 : index
    %29 = vector.load %arg4[%c0_18, %c0_19] : memref<64x128xbf16, #tpu.memory_space<vmem>>, vector<64x128xbf16>
    tpu.vector_store %arg4[%c0_18, %c0_19], %28 {strides = array<i32>} : memref<64x128xbf16, #tpu.memory_space<vmem>>, vector<64x128xbf16>,
    %cst_20 = arith.constant dense<0.000000e+00> : vector<128xf32>
    %30 = vector.multi_reduction <add>, %27, %cst_20 [0] : vector<64x128xf32> to vector<128xf32>
    %31 = vector.shape_cast %30 : vector<128xf32> to vector<1x128xf32>
    %32 = arith.mulf %27, %27 : vector<64x128xf32>
    %cst_21 = arith.constant dense<0.000000e+00> : vector<128xf32>
    %33 = vector.multi_reduction <add>, %32, %cst_21 [0] : vector<64x128xf32> to vector<128xf32>
    %34 = vector.shape_cast %33 : vector<128xf32> to vector<1x128xf32>
    %35 = tpu.concatenate %31, %34 in 0 : vector<1x128xf32>, vector<1x128xf32> -> vector<2x128xf32>
    %36 = vector.shape_cast %35 : vector<2x128xf32> to vector<1x2x128xf32>
    %c0_22 = arith.constant 0 : index
    %c0_23 = arith.constant 0 : index
    %c0_24 = arith.constant 0 : index
    %37 = vector.load %arg5[%c0_22, %c0_23, %c0_24] : memref<1x2x128xf32, #tpu.memory_space<vmem>>, vector<1x2x128xf32>
    tpu.vector_store %arg5[%c0_22, %c0_23, %c0_24], %36 {strides = array<i32>} : memref<1x2x128xf32, #tpu.memory_space<vmem>>, vector<1x2x128xf32>,
    return
  }
  func.func @transform_0(%arg0: i32, %arg1: i32) -> (i32, i32, i32, i32, i32) {
    %c0_i32 = arith.constant 0 : i32
    %c0_i32_0 = arith.constant 0 : i32
    %c0_i32_1 = arith.constant 0 : i32
    %c0_i32_2 = arith.constant 0 : i32
    %c0_i32_3 = arith.constant 0 : i32
    return %c0_i32, %arg0, %c0_i32_0, %c0_i32_1, %c0_i32_2 : i32, i32, i32, i32, i32
  }
  func.func @transform_1(%arg0: i32, %arg1: i32) -> (i32, i32) {
    %c0_i32 = arith.constant 0 : i32
    %c0_i32_0 = arith.constant 0 : i32
    return %c0_i32, %arg1 : i32, i32
  }
  func.func @transform_2(%arg0: i32, %arg1: i32) -> (i32, i32) {
    %c0_i32 = arith.constant 0 : i32
    return %arg0, %arg1 : i32, i32
  }
  func.func @transform_3(%arg0: i32, %arg1: i32) -> (i32, i32, i32) {
    %c0_i32 = arith.constant 0 : i32
    %c0_i32_0 = arith.constant 0 : i32
    return %arg0, %c0_i32, %arg1 : i32, i32, i32
  }
}

module attributes {stable_mosaic.version = 11 : i64} {
  func.func @_bn_lrelu_kernel(%arg0: i32, %arg1: i32, %arg2: memref<64x128xbf16, #tpu.memory_space<vmem>>, %arg3: memref<1x128xf32, #tpu.memory_space<vmem>>, %arg4: memref<1x128xf32, #tpu.memory_space<vmem>>, %arg5: memref<64x128xbf16, #tpu.memory_space<vmem>>) attributes {dimension_semantics = [#tpu.dimension_semantics<parallel>, #tpu.dimension_semantics<parallel>], iteration_bounds = array<i64: 2, 2>, scalar_prefetch = 0 : i64, scratch_operands = 0 : i64, tpu.core_type = #tpu.core_type<tc>, window_params = [{transform_indices = @transform_0, window_bounds = array<i64: 64, 128>}, {transform_indices = @transform_1, window_bounds = array<i64: 1, 128>}, {transform_indices = @transform_2, window_bounds = array<i64: 1, 128>}, {transform_indices = @transform_3, window_bounds = array<i64: 64, 128>}]} {
    %c0 = arith.constant 0 : index
    %c0_0 = arith.constant 0 : index
    %0 = vector.load %arg2[%c0, %c0_0] : memref<64x128xbf16, #tpu.memory_space<vmem>>, vector<64x128xbf16>
    %1 = arith.extf %0 : vector<64x128xbf16> to vector<64x128xf32>
    %c0_1 = arith.constant 0 : index
    %c0_2 = arith.constant 0 : index
    %2 = vector.load %arg3[%c0_1, %c0_2] : memref<1x128xf32, #tpu.memory_space<vmem>>, vector<1x128xf32>
    %3 = vector.broadcast %2 : vector<1x128xf32> to vector<64x128xf32>
    %4 = arith.mulf %1, %3 : vector<64x128xf32>
    %c0_3 = arith.constant 0 : index
    %c0_4 = arith.constant 0 : index
    %5 = vector.load %arg4[%c0_3, %c0_4] : memref<1x128xf32, #tpu.memory_space<vmem>>, vector<1x128xf32>
    %6 = vector.broadcast %5 : vector<1x128xf32> to vector<64x128xf32>
    %7 = arith.addf %4, %6 : vector<64x128xf32>
    %cst = arith.constant 0.000000e+00 : f32
    %8 = vector.broadcast %cst : f32 to vector<64x128xf32>
    %9 = arith.cmpf ogt, %7, %8 : vector<64x128xf32>
    %cst_5 = arith.constant 2.000000e-01 : f32
    %10 = vector.broadcast %cst_5 : f32 to vector<64x128xf32>
    %11 = arith.mulf %10, %7 : vector<64x128xf32>
    %12 = arith.select %9, %7, %11 : vector<64x128xi1>, vector<64x128xf32>
    %13 = arith.truncf %12 : vector<64x128xf32> to vector<64x128xbf16>
    %c0_6 = arith.constant 0 : index
    %c0_7 = arith.constant 0 : index
    %14 = vector.load %arg5[%c0_6, %c0_7] : memref<64x128xbf16, #tpu.memory_space<vmem>>, vector<64x128xbf16>
    tpu.vector_store %arg5[%c0_6, %c0_7], %13 {strides = array<i32>} : memref<64x128xbf16, #tpu.memory_space<vmem>>, vector<64x128xbf16>,
    return
  }
  func.func @transform_0(%arg0: i32, %arg1: i32) -> (i32, i32) {
    %c0_i32 = arith.constant 0 : i32
    return %arg0, %arg1 : i32, i32
  }
  func.func @transform_1(%arg0: i32, %arg1: i32) -> (i32, i32) {
    %c0_i32 = arith.constant 0 : i32
    %c0_i32_0 = arith.constant 0 : i32
    return %c0_i32, %arg1 : i32, i32
  }
  func.func @transform_2(%arg0: i32, %arg1: i32) -> (i32, i32) {
    %c0_i32 = arith.constant 0 : i32
    %c0_i32_0 = arith.constant 0 : i32
    return %c0_i32, %arg1 : i32, i32
  }
  func.func @transform_3(%arg0: i32, %arg1: i32) -> (i32, i32) {
    %c0_i32 = arith.constant 0 : i32
    return %arg0, %arg1 : i32, i32
  }
}

module attributes {stable_mosaic.version = 11 : i64} {
  func.func @_conv_stats_kernel(%arg0: i32, %arg1: i32, %arg2: memref<4x1x5x5x256xbf16, #tpu.memory_space<vmem>>, %arg3: memref<4096x128xbf16, #tpu.memory_space<vmem>>, %arg4: memref<16x128xbf16, #tpu.memory_space<vmem>>, %arg5: memref<1x2x128xf32, #tpu.memory_space<vmem>>) attributes {dimension_semantics = [#tpu.dimension_semantics<parallel>, #tpu.dimension_semantics<parallel>], iteration_bounds = array<i64: 2, 4>, scalar_prefetch = 0 : i64, scratch_operands = 0 : i64, tpu.core_type = #tpu.core_type<tc>, window_params = [{transform_indices = @transform_0, window_bounds = array<i64: 4, 1, 5, 5, 256>}, {transform_indices = @transform_1, window_bounds = array<i64: 4096, 128>}, {transform_indices = @transform_2, window_bounds = array<i64: 16, 128>}, {transform_indices = @transform_3, window_bounds = array<i64: 1, 2, 128>}]} {
    %c0 = arith.constant 0 : index
    %c0_0 = arith.constant 0 : index
    %c0_1 = arith.constant 0 : index
    %c0_2 = arith.constant 0 : index
    %c0_3 = arith.constant 0 : index
    %0 = vector.load %arg2[%c0, %c0_0, %c0_1, %c0_2, %c0_3] : memref<4x1x5x5x256xbf16, #tpu.memory_space<vmem>>, vector<1x1x5x5x256xbf16>
    %1 = vector.shape_cast %0 : vector<1x1x5x5x256xbf16> to vector<1x5x5x256xbf16>
    %2 = vector.extract_strided_slice %1 {offsets = [0, 0, 0, 0], sizes = [1, 4, 4, 256], strides = [1, 1, 1, 1]} : vector<1x5x5x256xbf16> to vector<1x4x4x256xbf16>
    %3 = vector.extract_strided_slice %1 {offsets = [0, 0, 1, 0], sizes = [1, 4, 4, 256], strides = [1, 1, 1, 1]} : vector<1x5x5x256xbf16> to vector<1x4x4x256xbf16>
    %4 = vector.extract_strided_slice %1 {offsets = [0, 1, 0, 0], sizes = [1, 4, 4, 256], strides = [1, 1, 1, 1]} : vector<1x5x5x256xbf16> to vector<1x4x4x256xbf16>
    %5 = vector.extract_strided_slice %1 {offsets = [0, 1, 1, 0], sizes = [1, 4, 4, 256], strides = [1, 1, 1, 1]} : vector<1x5x5x256xbf16> to vector<1x4x4x256xbf16>
    %c1 = arith.constant 1 : index
    %c0_4 = arith.constant 0 : index
    %c0_5 = arith.constant 0 : index
    %c0_6 = arith.constant 0 : index
    %c0_7 = arith.constant 0 : index
    %6 = vector.load %arg2[%c1, %c0_4, %c0_5, %c0_6, %c0_7] : memref<4x1x5x5x256xbf16, #tpu.memory_space<vmem>>, vector<1x1x5x5x256xbf16>
    %7 = vector.shape_cast %6 : vector<1x1x5x5x256xbf16> to vector<1x5x5x256xbf16>
    %8 = vector.extract_strided_slice %7 {offsets = [0, 0, 0, 0], sizes = [1, 4, 4, 256], strides = [1, 1, 1, 1]} : vector<1x5x5x256xbf16> to vector<1x4x4x256xbf16>
    %9 = vector.extract_strided_slice %7 {offsets = [0, 0, 1, 0], sizes = [1, 4, 4, 256], strides = [1, 1, 1, 1]} : vector<1x5x5x256xbf16> to vector<1x4x4x256xbf16>
    %10 = vector.extract_strided_slice %7 {offsets = [0, 1, 0, 0], sizes = [1, 4, 4, 256], strides = [1, 1, 1, 1]} : vector<1x5x5x256xbf16> to vector<1x4x4x256xbf16>
    %11 = vector.extract_strided_slice %7 {offsets = [0, 1, 1, 0], sizes = [1, 4, 4, 256], strides = [1, 1, 1, 1]} : vector<1x5x5x256xbf16> to vector<1x4x4x256xbf16>
    %c2 = arith.constant 2 : index
    %c0_8 = arith.constant 0 : index
    %c0_9 = arith.constant 0 : index
    %c0_10 = arith.constant 0 : index
    %c0_11 = arith.constant 0 : index
    %12 = vector.load %arg2[%c2, %c0_8, %c0_9, %c0_10, %c0_11] : memref<4x1x5x5x256xbf16, #tpu.memory_space<vmem>>, vector<1x1x5x5x256xbf16>
    %13 = vector.shape_cast %12 : vector<1x1x5x5x256xbf16> to vector<1x5x5x256xbf16>
    %14 = vector.extract_strided_slice %13 {offsets = [0, 0, 0, 0], sizes = [1, 4, 4, 256], strides = [1, 1, 1, 1]} : vector<1x5x5x256xbf16> to vector<1x4x4x256xbf16>
    %15 = vector.extract_strided_slice %13 {offsets = [0, 0, 1, 0], sizes = [1, 4, 4, 256], strides = [1, 1, 1, 1]} : vector<1x5x5x256xbf16> to vector<1x4x4x256xbf16>
    %16 = vector.extract_strided_slice %13 {offsets = [0, 1, 0, 0], sizes = [1, 4, 4, 256], strides = [1, 1, 1, 1]} : vector<1x5x5x256xbf16> to vector<1x4x4x256xbf16>
    %17 = vector.extract_strided_slice %13 {offsets = [0, 1, 1, 0], sizes = [1, 4, 4, 256], strides = [1, 1, 1, 1]} : vector<1x5x5x256xbf16> to vector<1x4x4x256xbf16>
    %c3 = arith.constant 3 : index
    %c0_12 = arith.constant 0 : index
    %c0_13 = arith.constant 0 : index
    %c0_14 = arith.constant 0 : index
    %c0_15 = arith.constant 0 : index
    %18 = vector.load %arg2[%c3, %c0_12, %c0_13, %c0_14, %c0_15] : memref<4x1x5x5x256xbf16, #tpu.memory_space<vmem>>, vector<1x1x5x5x256xbf16>
    %19 = vector.shape_cast %18 : vector<1x1x5x5x256xbf16> to vector<1x5x5x256xbf16>
    %20 = vector.extract_strided_slice %19 {offsets = [0, 0, 0, 0], sizes = [1, 4, 4, 256], strides = [1, 1, 1, 1]} : vector<1x5x5x256xbf16> to vector<1x4x4x256xbf16>
    %21 = vector.extract_strided_slice %19 {offsets = [0, 0, 1, 0], sizes = [1, 4, 4, 256], strides = [1, 1, 1, 1]} : vector<1x5x5x256xbf16> to vector<1x4x4x256xbf16>
    %22 = vector.extract_strided_slice %19 {offsets = [0, 1, 0, 0], sizes = [1, 4, 4, 256], strides = [1, 1, 1, 1]} : vector<1x5x5x256xbf16> to vector<1x4x4x256xbf16>
    %23 = vector.extract_strided_slice %19 {offsets = [0, 1, 1, 0], sizes = [1, 4, 4, 256], strides = [1, 1, 1, 1]} : vector<1x5x5x256xbf16> to vector<1x4x4x256xbf16>
    %24 = tpu.concatenate %2, %3, %4, %5, %8, %9, %10, %11, %14, %15, %16, %17, %20, %21, %22, %23 in 3 : vector<1x4x4x256xbf16>, vector<1x4x4x256xbf16>, vector<1x4x4x256xbf16>, vector<1x4x4x256xbf16>, vector<1x4x4x256xbf16>, vector<1x4x4x256xbf16>, vector<1x4x4x256xbf16>, vector<1x4x4x256xbf16>, vector<1x4x4x256xbf16>, vector<1x4x4x256xbf16>, vector<1x4x4x256xbf16>, vector<1x4x4x256xbf16>, vector<1x4x4x256xbf16>, vector<1x4x4x256xbf16>, vector<1x4x4x256xbf16>, vector<1x4x4x256xbf16> -> vector<1x4x4x4096xbf16>
    %25 = vector.shape_cast %24 : vector<1x4x4x4096xbf16> to vector<16x4096xbf16>
    %c0_16 = arith.constant 0 : index
    %c0_17 = arith.constant 0 : index
    %26 = vector.load %arg3[%c0_16, %c0_17] : memref<4096x128xbf16, #tpu.memory_space<vmem>>, vector<4096x128xbf16>
    %cst = arith.constant dense<0.000000e+00> : vector<16x128xf32>
    %27 = tpu.matmul %25, %26, %cst {dimension_numbers = #tpu.dot_dimension_numbers<[1], [0], [0], [1], [0, 0, 1, 1], [], []>} : vector<16x4096xbf16>, vector<4096x128xbf16>, vector<16x128xf32> -> vector<16x128xf32>
    %28 = arith.truncf %27 : vector<16x128xf32> to vector<16x128xbf16>
    %c0_18 = arith.constant 0 : index
    %c0_19 = arith.constant 0 : index
    %29 = vector.load %arg4[%c0_18, %c0_19] : memref<16x128xbf16, #tpu.memory_space<vmem>>, vector<16x128xbf16>
    tpu.vector_store %arg4[%c0_18, %c0_19], %28 {strides = array<i32>} : memref<16x128xbf16, #tpu.memory_space<vmem>>, vector<16x128xbf16>,
    %cst_20 = arith.constant dense<0.000000e+00> : vector<128xf32>
    %30 = vector.multi_reduction <add>, %27, %cst_20 [0] : vector<16x128xf32> to vector<128xf32>
    %31 = vector.shape_cast %30 : vector<128xf32> to vector<1x128xf32>
    %32 = arith.mulf %27, %27 : vector<16x128xf32>
    %cst_21 = arith.constant dense<0.000000e+00> : vector<128xf32>
    %33 = vector.multi_reduction <add>, %32, %cst_21 [0] : vector<16x128xf32> to vector<128xf32>
    %34 = vector.shape_cast %33 : vector<128xf32> to vector<1x128xf32>
    %35 = tpu.concatenate %31, %34 in 0 : vector<1x128xf32>, vector<1x128xf32> -> vector<2x128xf32>
    %36 = vector.shape_cast %35 : vector<2x128xf32> to vector<1x2x128xf32>
    %c0_22 = arith.constant 0 : index
    %c0_23 = arith.constant 0 : index
    %c0_24 = arith.constant 0 : index
    %37 = vector.load %arg5[%c0_22, %c0_23, %c0_24] : memref<1x2x128xf32, #tpu.memory_space<vmem>>, vector<1x2x128xf32>
    tpu.vector_store %arg5[%c0_22, %c0_23, %c0_24], %36 {strides = array<i32>} : memref<1x2x128xf32, #tpu.memory_space<vmem>>, vector<1x2x128xf32>,
    return
  }
  func.func @transform_0(%arg0: i32, %arg1: i32) -> (i32, i32, i32, i32, i32) {
    %c0_i32 = arith.constant 0 : i32
    %c0_i32_0 = arith.constant 0 : i32
    %c0_i32_1 = arith.constant 0 : i32
    %c0_i32_2 = arith.constant 0 : i32
    %c0_i32_3 = arith.constant 0 : i32
    return %c0_i32, %arg0, %c0_i32_0, %c0_i32_1, %c0_i32_2 : i32, i32, i32, i32, i32
  }
  func.func @transform_1(%arg0: i32, %arg1: i32) -> (i32, i32) {
    %c0_i32 = arith.constant 0 : i32
    %c0_i32_0 = arith.constant 0 : i32
    return %c0_i32, %arg1 : i32, i32
  }
  func.func @transform_2(%arg0: i32, %arg1: i32) -> (i32, i32) {
    %c0_i32 = arith.constant 0 : i32
    return %arg0, %arg1 : i32, i32
  }
  func.func @transform_3(%arg0: i32, %arg1: i32) -> (i32, i32, i32) {
    %c0_i32 = arith.constant 0 : i32
    %c0_i32_0 = arith.constant 0 : i32
    return %arg0, %c0_i32, %arg1 : i32, i32, i32
  }
}

module attributes {stable_mosaic.version = 11 : i64} {
  func.func @_bn_lrelu_kernel(%arg0: i32, %arg1: i32, %arg2: memref<16x128xbf16, #tpu.memory_space<vmem>>, %arg3: memref<1x128xf32, #tpu.memory_space<vmem>>, %arg4: memref<1x128xf32, #tpu.memory_space<vmem>>, %arg5: memref<16x128xbf16, #tpu.memory_space<vmem>>) attributes {dimension_semantics = [#tpu.dimension_semantics<parallel>, #tpu.dimension_semantics<parallel>], iteration_bounds = array<i64: 2, 4>, scalar_prefetch = 0 : i64, scratch_operands = 0 : i64, tpu.core_type = #tpu.core_type<tc>, window_params = [{transform_indices = @transform_0, window_bounds = array<i64: 16, 128>}, {transform_indices = @transform_1, window_bounds = array<i64: 1, 128>}, {transform_indices = @transform_2, window_bounds = array<i64: 1, 128>}, {transform_indices = @transform_3, window_bounds = array<i64: 16, 128>}]} {
    %c0 = arith.constant 0 : index
    %c0_0 = arith.constant 0 : index
    %0 = vector.load %arg2[%c0, %c0_0] : memref<16x128xbf16, #tpu.memory_space<vmem>>, vector<16x128xbf16>
    %1 = arith.extf %0 : vector<16x128xbf16> to vector<16x128xf32>
    %c0_1 = arith.constant 0 : index
    %c0_2 = arith.constant 0 : index
    %2 = vector.load %arg3[%c0_1, %c0_2] : memref<1x128xf32, #tpu.memory_space<vmem>>, vector<1x128xf32>
    %3 = vector.broadcast %2 : vector<1x128xf32> to vector<16x128xf32>
    %4 = arith.mulf %1, %3 : vector<16x128xf32>
    %c0_3 = arith.constant 0 : index
    %c0_4 = arith.constant 0 : index
    %5 = vector.load %arg4[%c0_3, %c0_4] : memref<1x128xf32, #tpu.memory_space<vmem>>, vector<1x128xf32>
    %6 = vector.broadcast %5 : vector<1x128xf32> to vector<16x128xf32>
    %7 = arith.addf %4, %6 : vector<16x128xf32>
    %cst = arith.constant 0.000000e+00 : f32
    %8 = vector.broadcast %cst : f32 to vector<16x128xf32>
    %9 = arith.cmpf ogt, %7, %8 : vector<16x128xf32>
    %cst_5 = arith.constant 2.000000e-01 : f32
    %10 = vector.broadcast %cst_5 : f32 to vector<16x128xf32>
    %11 = arith.mulf %10, %7 : vector<16x128xf32>
    %12 = arith.select %9, %7, %11 : vector<16x128xi1>, vector<16x128xf32>
    %13 = arith.truncf %12 : vector<16x128xf32> to vector<16x128xbf16>
    %c0_6 = arith.constant 0 : index
    %c0_7 = arith.constant 0 : index
    %14 = vector.load %arg5[%c0_6, %c0_7] : memref<16x128xbf16, #tpu.memory_space<vmem>>, vector<16x128xbf16>
    tpu.vector_store %arg5[%c0_6, %c0_7], %13 {strides = array<i32>} : memref<16x128xbf16, #tpu.memory_space<vmem>>, vector<16x128xbf16>,
    return
  }
  func.func @transform_0(%arg0: i32, %arg1: i32) -> (i32, i32) {
    %c0_i32 = arith.constant 0 : i32
    return %arg0, %arg1 : i32, i32
  }
  func.func @transform_1(%arg0: i32, %arg1: i32) -> (i32, i32) {
    %c0_i32 = arith.constant 0 : i32
    %c0_i32_0 = arith.constant 0 : i32
    return %c0_i32, %arg1 : i32, i32
  }
  func.func @transform_2(%arg0: i32, %arg1: i32) -> (i32, i32) {
    %c0_i32 = arith.constant 0 : i32
    %c0_i32_0 = arith.constant 0 : i32
    return %c0_i32, %arg1 : i32, i32
  }
  func.func @transform_3(%arg0: i32, %arg1: i32) -> (i32, i32) {
    %c0_i32 = arith.constant 0 : i32
    return %arg0, %arg1 : i32, i32
  }
}

module attributes {stable_mosaic.version = 11 : i64} {
  func.func @_final_sigmoid_kernel(%arg0: memref<2x8192xbf16, #tpu.memory_space<vmem>>, %arg1: memref<1x8192xf32, #tpu.memory_space<vmem>>, %arg2: memref<2x1xf32, #tpu.memory_space<vmem>>) attributes {dimension_semantics = [], scalar_prefetch = 0 : i64, scratch_operands = 0 : i64, tpu.core_type = #tpu.core_type<tc>} {
    %c0 = arith.constant 0 : index
    %c0_0 = arith.constant 0 : index
    %0 = vector.load %arg0[%c0, %c0_0] : memref<2x8192xbf16, #tpu.memory_space<vmem>>, vector<2x8192xbf16>
    %1 = arith.extf %0 : vector<2x8192xbf16> to vector<2x8192xf32>
    %c0_1 = arith.constant 0 : index
    %c0_2 = arith.constant 0 : index
    %2 = vector.load %arg1[%c0_1, %c0_2] : memref<1x8192xf32, #tpu.memory_space<vmem>>, vector<1x8192xf32>
    %3 = vector.broadcast %2 : vector<1x8192xf32> to vector<2x8192xf32>
    %4 = arith.mulf %1, %3 : vector<2x8192xf32>
    %cst = arith.constant dense<0.000000e+00> : vector<2xf32>
    %5 = vector.multi_reduction <add>, %4, %cst [1] : vector<2x8192xf32> to vector<2xf32>
    %6 = vector.shape_cast %5 : vector<2xf32> to vector<2x1xf32>
    %7 = arith.negf %6 : vector<2x1xf32>
    %8 = math.exp %7 : vector<2x1xf32>
    %cst_3 = arith.constant 1.000000e+00 : f32
    %9 = vector.broadcast %cst_3 : f32 to vector<2x1xf32>
    %10 = arith.addf %9, %8 : vector<2x1xf32>
    %11 = arith.divf %9, %10 : vector<2x1xf32>
    %c0_4 = arith.constant 0 : index
    %c0_5 = arith.constant 0 : index
    %12 = vector.load %arg2[%c0_4, %c0_5] : memref<2x1xf32, #tpu.memory_space<vmem>>, vector<2x1xf32>
    tpu.vector_store %arg2[%c0_4, %c0_5], %11 {strides = array<i32>} : memref<2x1xf32, #tpu.memory_space<vmem>>, vector<2x1xf32>,
    return
  }
}

</mosaic_0001>

<bundles_post_ra>
// kernel: discriminator_forward.8
= control target key start
LH: loop header
LB: loop body
LE: loop exit
PB: predicated region body
PF: predicated region fallthrough
CT: control target
= control target key end

     0   :  { %7 = vsyncpa [#allocation3], 0  ;;  %s4005_s0 = inlined_call_operand.hbm [shape: bf16[2048,48], index: 0, kind: input, shape index: {}]   ;;  %s4006_s1 = inlined_call_operand.hbm [shape: bf16[48,64], index: 1, kind: input, shape index: {}]   ;;  %s4007_s2 = inlined_call_operand.hbm [shape: bf16[2048,64], index: 2, kind: output, shape index: {}]  }
   0x1   :  { %9 = vsyncpa [#allocation3 + $0x1], 0 }
   0x2   :  { %10 = vsyncpa [#allocation6], 0 }
   0x3   :  { %11 = vsyncpa [#allocation4], 0 }
   0x4   :  { %13 = vsyncpa [#allocation4 + $0x1], 0  ;;  %s3404_s9 = smov 0   ;;  %s3406_s10 = smov 0  }
   0x5   :  { %s3408_s11 = smov 0   ;;  %s3410_s12 = smov 0  }
   0x6 LB: > { %s3425_s13 = sadd.s32 4294967295, %s3380_s12   ;;  %s2512_s14 = sadd.s32 4294967294, %s3380_s12   ;;  %s3380_s12 = sphi %s3410_s12, %s4027_s12   ;;  %s3376_s11 = sphi %s3408_s11, %s4026_s11   ;;  %s3372_s10 = sphi %s3406_s10, %s4025_s10   ;;  %s3368_s9 = sphi %s3404_s9, %s4024_s9  }
   0x7   : > { %p39_p0 = scmp.ne.s32.totalorder %s3372_s10, %s3368_s9  ;;  %p4008_p1 = scmp.eq.s32.totalorder %s3425_s13, 0 }
   0x8   : > { %p90_p3 = scmp.eq.s32.totalorder %s2512_s14, 1  ;;  %p2513_p5 = scmp.ge.s32.totalorder %s3380_s12, 1 }
   0x9   : > { %p3434_p4 = por %p4008_p1, %p39_p0  ;;  %p97_p7 = scmp.lt.s32.totalorder %s3380_s12, 3 }
   0xa   : > { %p3439_p6 = por %p90_p3, %p39_p0  ;;  %s3382_s18 = smov [#allocation5]  }
   0xb   : > { %s4011_s15 = scalar_select %p3434_p4, 1, 0 }
   0xc   : > { %s4012_s16 = scalar_select %p3439_p6, 1, 0 }
   0xd   : > { %p3444_p8 = pnand %p2513_p5, %p97_p7  ;;  %s109_s19 = sshll.u32 %s3382_s18, 4  ;;  %s3448_s19 = int_to_ptr.vmem [resolvable:$true] %s109_s19 }
   0xe   : > { %s3460_s21 = sadd.s32 1, %s3380_s12   ;;  %s26_s22 = sadd.s32 1, %s3376_s11 }
   0xf   : > { %s4013_s17 = scalar_select %p3444_p8, 1, 0 }
  0x10   : > { %p3132_p9 = pneg %p3444_p8  ;;  %s23_s23 = ssub.s32 %s3380_s12, %s3460_s21 }
  0x11   : > { %s3252_s26 = scalar_lea.hbm %s4006_s1, 384 }
  0x12   : > { %p3455_p11 = pnand %p3132_p9, %p4008_p1  ;;  %p3253_p12 = scmp.ne.s32.totalorder %s4006_s1, %s3252_s26 }
  0x13   : > { %p3259_p5 = scmp.lt.u32.totalorder %s3252_s26, %s4006_s1 }
  0x14   : > { %p3254_p13 = pneg %p3455_p11 }
  0x16   : > { %p3255_p0 = pnand %p3254_p13, %p3253_p12 }
  0x18   : > { %p3256_p3 = pneg %p3255_p0 }
  0x1a   : > { %p3261_p7 = pnand %p3259_p5, %p3256_p3 }
  0x1c   : > { %3264 = shalt.err (!%p3261_p7)
}
  0x1d   : > { %s3265_s3 = scalar_lea.vmem %s3448_s19, 384  ;;  %p3273_p2 = scmp.lt.s32.totalorder %s3448_s19, %s3448_s19 }
  0x1e   : > { %p3266_p9 = scmp.ne.s32.totalorder %s3448_s19, %s3265_s3  ;;  %p3274_p6 = scmp.lt.s32.totalorder %s3265_s3, %s3265_s3 }
  0x20   : > { %p3268_p10 = pnand %p3266_p9, %p3254_p13  ;;  %p3275_p4 = por %p3274_p6, %p3273_p2 }
  0x22   : > { %p3269_p1 = pneg %p3268_p10 }
  0x24   : > { %p3276_p8 = pnand %p3275_p4, %p3269_p1 }
  0x26   : > { %3279 = shalt.err (!%p3276_p8)
}
  0x27   : > { %s3383_s4 = smov 64   ;;  %s3384_s5 = smov 4  }
  0x28   : > { %3135 = dma.hbm_to_vmem [thread:$0]  (!%p3455_p11), %s4006_s1, 384, %s3448_s19, [#allocation6], %s3383_s4, %s3383_s4, %s3384_s5  }
  0x29   : > { %p24_p1 = scmp.eq.s32.totalorder %s23_s23, 0  ;;  %p33_p2 = scmp.ne.s32.totalorder %s3376_s11, %s3372_s10 }
  0x2a   : > { %p34_p4 = scmp.eq.s32.totalorder %s3380_s12, 0  ;;  %p3145_p6 = scmp.lt.s32.totalorder %s3380_s12, 2 }
  0x2b   : > { %s3494_s8 = scalar_select %p24_p1, %s3376_s11, %s26_s22  }
  0x2c   : > { %p35_p8 = por %p34_p4, %p33_p2  ;;  %p4015_p10 = scmp.eq.s32.totalorder %s3425_s13, 1 }
  0x2d   : > { %s123_s18 = sand.u32 1, %s3376_s11   ;;  %s2787_s20 = sshll.u32 %s3380_s12, 13 }
  0x2e   : > { %p3498_p12 = por %p4015_p10, %p33_p2  ;;  %s2516_s24 = sshll.u32 %s123_s18, 9 }
  0x2f   : > { %s3507_s27 = scalar_lea.hbm %s4005_s0, %s2787_s20  ;;  %s127_s19 = scalar_lea.vmem [#allocation2], %s2516_s24 }
  0x30   : > { %s134_s22 = sshll.u32 %s127_s19, 4  ;;  %p3509_p11 = pnand %p3145_p6, %p35_p8  ;;  %s3513_s22 = int_to_ptr.vmem [resolvable:$true] %s134_s22 }
  0x31   : > { %s3515_s28 = scalar_lea.sflag [#allocation3], %s123_s18  ;;  %s3280_s29 = scalar_lea.hbm %s3507_s27, 8192 }
  0x32   : > { %p3281_p13 = scmp.ne.s32.totalorder %s3507_s27, %s3280_s29  ;;  %p3282_p0 = pneg %p3509_p11 }
  0x33   : > { %s3285_s6 = scalar_lea.hbm %s4005_s0, 16384  ;;  %p3286_p7 = scmp.lt.u32.totalorder %s3507_s27, %s4005_s0 }
  0x34   : > { %p3283_p3 = pnand %p3282_p0, %p3281_p13  ;;  %p3287_p9 = scmp.lt.u32.totalorder %s3285_s6, %s3280_s29 }
  0x35   : > { %p3289_p2 = scmp.lt.u32.totalorder %s3280_s29, %s3507_s27 }
  0x36   : > { %p3284_p5 = pneg %p3283_p3  ;;  %p3288_p1 = por %p3287_p9, %p3286_p7 }
  0x38   : > { %p3290_p4 = por %p3289_p2, %p3288_p1 }
  0x3a   : > { %p3291_p6 = pnand %p3290_p4, %p3284_p5 }
  0x3c   : > { %3294 = shalt.err (!%p3291_p6)
}
  0x3d   : > { %s3295_s18 = scalar_lea.vmem %s3513_s22, 8192  ;;  %s3385_s24 = smov [#allocation2]  }
  0x3e   : > { %p3296_p8 = scmp.ne.s32.totalorder %s3513_s22, %s3295_s18  ;;  %s3300_s25 = sshll.u32 %s3385_s24, 4  ;;  %s3301_s25 = int_to_ptr.vmem [resolvable:$false] %s3300_s25 }
  0x3f   : > { %s3302_s26 = scalar_lea.vmem %s3301_s25, 16384  ;;  %p3303_p3 = scmp.lt.s32.totalorder %s3513_s22, %s3301_s25 }
  0x40   : > { %p3298_p10 = pnand %p3296_p8, %p3282_p0  ;;  %p3304_p7 = scmp.lt.s32.totalorder %s3302_s26, %s3295_s18 }
  0x42   : > { %p3299_p13 = pneg %p3298_p10  ;;  %p3305_p9 = por %p3304_p7, %p3303_p3 }
  0x44   : > { %p3306_p1 = pnand %p3305_p9, %p3299_p13 }
  0x46   : > { %3309 = shalt.err (!%p3306_p1)
}
  0x47   : > { %3139 = dma.hbm_to_vmem [thread:$0]  (!%p3509_p11), %s3507_s27, 8192, %s3513_s22, %s3515_s28, %s3383_s4, %s3383_s4, %s3384_s5  }
  0x48   : > { %p4018_p0 = scmp.ne.s32.totalorder %s4013_s17, 0 }
  0x49   : > { %s3549_s19 = sand.u32 (!%p4018_p0), 1, %s3372_s10   ;;  %p4019_p5 = scmp.ne.s32.totalorder (!%p4018_p0), %s4011_s15, 0 }
  0x4a   : > { %146 = sbr.rel (%p4018_p0) target bundleno = 460 (0x1cc), region = 28  ;;  %s2520_s29 = sshll.u32 (!%p4018_p0), %s3549_s19, 9 }
  0x4b   : > { %s149_s30 = scalar_lea.sflag (!%p4018_p0), [#allocation3], %s3549_s19  ;;  %s3555_s23 = scalar_lea.vmem (!%p4018_p0), [#allocation2], %s2520_s29 }
  0x51   : > { %3355 = dma.done.wait (%p4019_p5), %s149_s30, 8192  }
  0x52   : > { %3357 = vsyncadd (%p4019_p5), %s149_s30, 4294959104  ;;  %p4020_p11 = scmp.eq.s32.totalorder %s3425_s13, 0 }
  0x54   : > { %3359 = dma.done.wait (%p4020_p11), [#allocation6], 384   ;;  %p4021_p2 = pmov %p4020_p11 }
  0x55   : > { %v3185_v0 = vld [vmem:[#allocation5] sm:$0xff]   ;;  %v3186_v1 = vld [vmem:[#allocation5 + $0x8] sm:$0xff]   ;;  %v3187_v2 = vld [vmem:[#allocation5 + $0x10] sm:$0xff]   ;;  %vm652_vm0 = vcmask 392192   ;;  %vm2286_vm3 = vcmask 519168   ;;  %s3695_s15 = scalar_lea.vmem [#allocation7], %s2520_s29 }
  0x56   : > { %3361 = vsyncadd (%p4021_p2), [#allocation6], 4294966912  ;;  %2984 = vmatprep.subr.bf16.mxu0 %v3185_v0  ;;  %3118 = vmatprep.subr.bf16.mxu1 %v3185_v0  ;;  %v3188_v3 = vld [vmem:[%s3555_s23] sm:$0xff]   ;;  %v3190_v5 = vld [vmem:[%s3555_s23 + $0x8] sm:$0xff]   ;;  %s2916_s17 = sshll.u32 %s3425_s13, 13  ;;  %s2429_s4 = sshll.u32 %s3695_s15, 4  ;;  %s3957_s4 = int_to_ptr.vmem [resolvable:$true] %s2429_s4 }
  0x57   : > { %2985 = vmatpush3.bf16.msra.mxu0 %v3185_v0  ;;  %3121 = vmatpush3.bf16.msra.mxu1 %v3185_v0  ;;  %v3189_v4 = vld [vmem:[%s3555_s23 + $0x100] sm:$0xff]   ;;  %v3191_v6 = vld [vmem:[%s3555_s23 + $0x108] sm:$0xff]   ;;  %v3192_v7 = vld [vmem:[%s3555_s23 + $0x10] sm:$0xff]   ;;  %s3953_s27 = scalar_lea.hbm %s4007_s2, %s2916_s17  ;;  %s2416_s22 = scalar_lea.sflag [#allocation4], %s3549_s19 }
  0x58   : > { %2986 = vmatprep.subr.bf16.mxu0 %v3186_v1  ;;  %3119 = vmatprep.subr.bf16.mxu1 %v3186_v1  ;;  %v3193_v8 = vld [vmem:[%s3555_s23 + $0x110] sm:$0xff]   ;;  %v3194_v9 = vld [vmem:[%s3555_s23 + $0x18] sm:$0xff]   ;;  %v3196_v11 = vld [vmem:[%s3555_s23 + $0x20] sm:$0xff]   ;;  %s3310_s28 = scalar_lea.vmem %s3957_s4, 8192  ;;  %s3386_s3 = smov [#allocation7]  }
  0x59   : > { %2990 = vmatprep.mubr.msk.bf16.mxu0 %vm652_vm0, %v3188_v3  ;;  %3054 = vmatprep.mubr.msk.bf16.mxu1 %vm652_vm0, %v3189_v4  ;;  %v3195_v10 = vld [vmem:[%s3555_s23 + $0x118] sm:$0xff]   ;;  %v3197_v12 = vld [vmem:[%s3555_s23 + $0x120] sm:$0xff]   ;;  %v3198_v13 = vld [vmem:[%s3555_s23 + $0x28] sm:$0xff]   ;;  %p3311_p4 = scmp.ne.s32.totalorder %s3957_s4, %s3310_s28  ;;  %s3314_s6 = sshll.u32 %s3386_s3, 4  ;;  %s3315_s6 = int_to_ptr.vmem [resolvable:$false] %s3314_s6 }
  0x5a   : > { %v3199_v14 = vld [vmem:[%s3555_s23 + $0x128] sm:$0xff]   ;;  %v3200_v15 = vld [vmem:[%s3555_s23 + $0x30] sm:$0xff]   ;;  %v3202_v17 = vld [vmem:[%s3555_s23 + $0x38] sm:$0xff]   ;;  %s3316_s7 = scalar_lea.vmem %s3315_s6, 16384  ;;  %p3317_p10 = scmp.lt.s32.totalorder %s3957_s4, %s3315_s6 }
  0x5b   : > { %2987 = vmatpush3.bf16.msra.mxu0 %v3186_v1  ;;  %3122 = vmatpush3.bf16.msra.mxu1 %v3186_v1  ;;  %v3201_v16 = vld [vmem:[%s3555_s23 + $0x130] sm:$0xff]   ;;  %v3203_v18 = vld [vmem:[%s3555_s23 + $0x138] sm:$0xff]   ;;  %v3204_v19 = vld [vmem:[%s3555_s23 + $0x40] sm:$0xff]   ;;  %p3312_p6 = pnand %p3311_p4, %p3498_p12  ;;  %p3318_p13 = scmp.lt.s32.totalorder %s3316_s7, %s3310_s28 }
  0x5c   : > { %2988 = vmatprep.subr.bf16.mxu0 %v3187_v2  ;;  %3120 = vmatprep.subr.bf16.mxu1 %v3187_v2  ;;  %v3205_v20 = vld [vmem:[%s3555_s23 + $0x140] sm:$0xff]   ;;  %v3206_v21 = vld [vmem:[%s3555_s23 + $0x48] sm:$0xff]   ;;  %v3208_v23 = vld [vmem:[%s3555_s23 + $0x50] sm:$0xff]  }
  0x5d   : > { %v3207_v22 = vld [vmem:[%s3555_s23 + $0x148] sm:$0xff]   ;;  %v3209_v24 = vld [vmem:[%s3555_s23 + $0x150] sm:$0xff]   ;;  %v3210_v25 = vld [vmem:[%s3555_s23 + $0x58] sm:$0xff]   ;;  %p3313_p8 = pneg %p3312_p6  ;;  %p3319_p3 = por %p3318_p13, %p3317_p10 }
  0x5e   : > { %v3211_v26 = vld [vmem:[%s3555_s23 + $0x158] sm:$0xff]   ;;  %v3212_v27 = vld [vmem:[%s3555_s23 + $0x60] sm:$0xff]   ;;  %v3214_v29 = vld [vmem:[%s3555_s23 + $0x68] sm:$0xff]  }
  0x5f   : > { %2989 = vmatpush3.bf16.msra.mxu0 %v3187_v2  ;;  %3123 = vmatpush3.bf16.msra.mxu1 %v3187_v2  ;;  %v3213_v28 = vld [vmem:[%s3555_s23 + $0x160] sm:$0xff]   ;;  %v3215_v30 = vld [vmem:[%s3555_s23 + $0x168] sm:$0xff]   ;;  %v3216_v31 = vld [vmem:[%s3555_s23 + $0x70] sm:$0xff]   ;;  %p3320_p7 = pnand %p3319_p3, %p3313_p8 }
  0x60   : > { %v3217_v32 = vld [vmem:[%s3555_s23 + $0x170] sm:$0xff]   ;;  %v3218_v33 = vld [vmem:[%s3555_s23 + $0x78] sm:$0xff]   ;;  %v3220_v35 = vld [vmem:[%s3555_s23 + $0x80] sm:$0xff]  }
  0x61   : > { %v3219_v34 = vld [vmem:[%s3555_s23 + $0x178] sm:$0xff]   ;;  %v3221_v36 = vld [vmem:[%s3555_s23 + $0x180] sm:$0xff]   ;;  %v3222_v37 = vld [vmem:[%s3555_s23 + $0x88] sm:$0xff]  }
  0x62   : > { %2991 = vmatmul.mubr.msk.bf16.vlgmr.msra.gmra.mrb[0].mxu0 %vm652_vm0, %v3190_v5  ;;  %3055 = vmatmul.mubr.msk.bf16.vlgmr.msra.gmra.mrb[0].mxu1 %vm652_vm0, %v3191_v6  ;;  %v3223_v38 = vld [vmem:[%s3555_s23 + $0x188] sm:$0xff]   ;;  %v3224_v39 = vld [vmem:[%s3555_s23 + $0x90] sm:$0xff]   ;;  %v3226_v41 = vld [vmem:[%s3555_s23 + $0x98] sm:$0xff]  }
  0x63   : > { %2994 = vmatprep.mubr.msk.bf16.mxu0 %vm652_vm0, %v3192_v7  ;;  %3058 = vmatprep.mubr.msk.bf16.mxu1 %vm652_vm0, %v3193_v8  ;;  %v3225_v40 = vld [vmem:[%s3555_s23 + $0x190] sm:$0xff]   ;;  %v3227_v42 = vld [vmem:[%s3555_s23 + $0x198] sm:$0xff]   ;;  %v3228_v43 = vld [vmem:[%s3555_s23 + $0xa0] sm:$0xff]  }
  0x64   : > { %v3229_v44 = vld [vmem:[%s3555_s23 + $0x1a0] sm:$0xff]   ;;  %v3230_v45 = vld [vmem:[%s3555_s23 + $0xa8] sm:$0xff]   ;;  %v3232_v47 = vld [vmem:[%s3555_s23 + $0xb0] sm:$0xff]  }
  0x65   : > { %v3231_v46 = vld [vmem:[%s3555_s23 + $0x1a8] sm:$0xff]   ;;  %v3233_v48 = vld [vmem:[%s3555_s23 + $0x1b0] sm:$0xff]   ;;  %v3234_v49 = vld [vmem:[%s3555_s23 + $0xb8] sm:$0xff]  }
  0x66   : > { %v3235_v50 = vld [vmem:[%s3555_s23 + $0x1b8] sm:$0xff]   ;;  %v3236_v51 = vld [vmem:[%s3555_s23 + $0xc0] sm:$0xff]   ;;  %v3238_v53 = vld [vmem:[%s3555_s23 + $0xc8] sm:$0xff]  }
  0x67   : > { %v3237_v52 = vld [vmem:[%s3555_s23 + $0x1c0] sm:$0xff]   ;;  %v3239_v54 = vld [vmem:[%s3555_s23 + $0x1c8] sm:$0xff]   ;;  %v3240_v55 = vld [vmem:[%s3555_s23 + $0xd0] sm:$0xff]  }
  0x68   : > { %v3241_v56 = vld [vmem:[%s3555_s23 + $0x1d0] sm:$0xff]   ;;  %v3242_v57 = vld [vmem:[%s3555_s23 + $0xd8] sm:$0xff]   ;;  %v3244_v59 = vld [vmem:[%s3555_s23 + $0xe0] sm:$0xff]  }
  0x69   : > { %v3243_v58 = vld [vmem:[%s3555_s23 + $0x1d8] sm:$0xff]   ;;  %v3245_v60 = vld [vmem:[%s3555_s23 + $0x1e0] sm:$0xff]   ;;  %v3246_v61 = vld [vmem:[%s3555_s23 + $0xe8] sm:$0xff]  }
  0x6a   : > { %2995 = vmatmul.mubr.msk.bf16.gmra.mrb[4].mxu0 %vm652_vm0, %v3194_v9  ;;  %3059 = vmatmul.mubr.msk.bf16.gmra.mrb[4].mxu1 %vm652_vm0, %v3195_v10  ;;  %v3247_v62 = vld [vmem:[%s3555_s23 + $0x1e8] sm:$0xff]   ;;  %v3248_v63 = vld [vmem:[%s3555_s23 + $0xf0] sm:$0xff]   ;;  %v3250_v1 = vld [vmem:[%s3555_s23 + $0xf8] sm:$0xff]  }
  0x6b   : > { %2998 = vmatprep.mubr.msk.bf16.mxu0 %vm652_vm0, %v3196_v11  ;;  %3062 = vmatprep.mubr.msk.bf16.mxu1 %vm652_vm0, %v3197_v12  ;;  %v3249_v0 = vld [vmem:[%s3555_s23 + $0x1f0] sm:$0xff]   ;;  %v3251_v2 = vld [vmem:[%s3555_s23 + $0x1f8] sm:$0xff]  }
  0x72   : > { %2999 = vmatmul.mubr.msk.bf16.gmra.mrb[8].mxu0 %vm652_vm0, %v3198_v13  ;;  %3063 = vmatmul.mubr.msk.bf16.gmra.mrb[8].mxu1 %vm652_vm0, %v3199_v14 }
  0x73   : > { %3002 = vmatprep.mubr.msk.bf16.mxu0 %vm652_vm0, %v3200_v15  ;;  %3066 = vmatprep.mubr.msk.bf16.mxu1 %vm652_vm0, %v3201_v16 }
  0x7a   : > { %3003 = vmatmul.mubr.msk.bf16.gmra.mrb[12].mxu0 %vm652_vm0, %v3202_v17  ;;  %3067 = vmatmul.mubr.msk.bf16.gmra.mrb[12].mxu1 %vm652_vm0, %v3203_v18 }
  0x7b   : > { %3006 = vmatprep.mubr.msk.bf16.mxu0 %vm652_vm0, %v3204_v19  ;;  %3070 = vmatprep.mubr.msk.bf16.mxu1 %vm652_vm0, %v3205_v20 }
  0x82   : > { %3007 = vmatmul.mubr.msk.bf16.gmra.mrb[16].mxu0 %vm652_vm0, %v3206_v21  ;;  %3071 = vmatmul.mubr.msk.bf16.gmra.mrb[16].mxu1 %vm652_vm0, %v3207_v22 }
  0x83   : > { %3010 = vmatprep.mubr.msk.bf16.mxu0 %vm652_vm0, %v3208_v23  ;;  %3074 = vmatprep.mubr.msk.bf16.mxu1 %vm652_vm0, %v3209_v24 }
  0x8a   : > { %3011 = vmatmul.mubr.msk.bf16.gmra.mrb[20].mxu0 %vm652_vm0, %v3210_v25  ;;  %3075 = vmatmul.mubr.msk.bf16.gmra.mrb[20].mxu1 %vm652_vm0, %v3211_v26 }
  0x8b   : > { %3014 = vmatprep.mubr.msk.bf16.mxu0 %vm652_vm0, %v3212_v27  ;;  %3078 = vmatprep.mubr.msk.bf16.mxu1 %vm652_vm0, %v3213_v28 }
  0x92   : > { %3015 = vmatmul.mubr.msk.bf16.gmra.mrb[24].mxu0 %vm652_vm0, %v3214_v29  ;;  %3079 = vmatmul.mubr.msk.bf16.gmra.mrb[24].mxu1 %vm652_vm0, %v3215_v30 }
  0x93   : > { %3018 = vmatprep.mubr.msk.bf16.mxu0 %vm652_vm0, %v3216_v31  ;;  %3082 = vmatprep.mubr.msk.bf16.mxu1 %vm652_vm0, %v3217_v32 }
  0x9a   : > { %3019 = vmatmul.mubr.msk.bf16.gmra.mrb[28].mxu0 %vm652_vm0, %v3218_v33  ;;  %3083 = vmatmul.mubr.msk.bf16.gmra.mrb[28].mxu1 %vm652_vm0, %v3219_v34 }
  0x9b   : > { %3022 = vmatprep.mubr.msk.bf16.mxu0 %vm652_vm0, %v3220_v35  ;;  %3086 = vmatprep.mubr.msk.bf16.mxu1 %vm652_vm0, %v3221_v36 }
  0xa2   : > { %3023 = vmatmul.mubr.msk.bf16.gmra.mrb[32].mxu0 %vm652_vm0, %v3222_v37  ;;  %3087 = vmatmul.mubr.msk.bf16.gmra.mrb[32].mxu1 %vm652_vm0, %v3223_v38 }
  0xa3   : > { %3026 = vmatprep.mubr.msk.bf16.mxu0 %vm652_vm0, %v3224_v39  ;;  %3090 = vmatprep.mubr.msk.bf16.mxu1 %vm652_vm0, %v3225_v40 }
  0xaa   : > { %3027 = vmatmul.mubr.msk.bf16.gmra.mrb[36].mxu0 %vm652_vm0, %v3226_v41  ;;  %3091 = vmatmul.mubr.msk.bf16.gmra.mrb[36].mxu1 %vm652_vm0, %v3227_v42 }
  0xab   : > { %3030 = vmatprep.mubr.msk.bf16.mxu0 %vm652_vm0, %v3228_v43  ;;  %3094 = vmatprep.mubr.msk.bf16.mxu1 %vm652_vm0, %v3229_v44 }
  0xb2   : > { %3031 = vmatmul.mubr.msk.bf16.gmra.mrb[40].mxu0 %vm652_vm0, %v3230_v45  ;;  %3095 = vmatmul.mubr.msk.bf16.gmra.mrb[40].mxu1 %vm652_vm0, %v3231_v46 }
  0xb3   : > { %3034 = vmatprep.mubr.msk.bf16.mxu0 %vm652_vm0, %v3232_v47  ;;  %3098 = vmatprep.mubr.msk.bf16.mxu1 %vm652_vm0, %v3233_v48 }
  0xba   : > { %3035 = vmatmul.mubr.msk.bf16.gmra.mrb[44].mxu0 %vm652_vm0, %v3234_v49  ;;  %3099 = vmatmul.mubr.msk.bf16.gmra.mrb[44].mxu1 %vm652_vm0, %v3235_v50 }
  0xbb   : > { %3038 = vmatprep.mubr.msk.bf16.mxu0 %vm652_vm0, %v3236_v51  ;;  %3102 = vmatprep.mubr.msk.bf16.mxu1 %vm652_vm0, %v3237_v52 }
  0xc2   : > { %3039 = vmatmul.mubr.msk.bf16.gmra.mrb[48].mxu0 %vm652_vm0, %v3238_v53  ;;  %3103 = vmatmul.mubr.msk.bf16.gmra.mrb[48].mxu1 %vm652_vm0, %v3239_v54 }
  0xc3   : > { %3042 = vmatprep.mubr.msk.bf16.mxu0 %vm652_vm0, %v3240_v55  ;;  %3106 = vmatprep.mubr.msk.bf16.mxu1 %vm652_vm0, %v3241_v56 }
  0xca   : > { %3043 = vmatmul.mubr.msk.bf16.gmra.mrb[52].mxu0 %vm652_vm0, %v3242_v57  ;;  %3107 = vmatmul.mubr.msk.bf16.gmra.mrb[52].mxu1 %vm652_vm0, %v3243_v58 }
  0xcb   : > { %3046 = vmatprep.mubr.msk.bf16.mxu0 %vm652_vm0, %v3244_v59  ;;  %3110 = vmatprep.mubr.msk.bf16.mxu1 %vm652_vm0, %v3245_v60 }
  0xd2   : > { %3047 = vmatmul.mubr.msk.bf16.gmra.mrb[56].mxu0 %vm652_vm0, %v3246_v61  ;;  %3111 = vmatmul.mubr.msk.bf16.gmra.mrb[56].mxu1 %vm652_vm0, %v3247_v62 }
  0xd3   : > { %3050 = vmatprep.mubr.msk.bf16.mxu0 %vm652_vm0, %v3248_v63  ;;  %3114 = vmatprep.mubr.msk.bf16.mxu1 %vm652_vm0, %v3249_v0 }
  0xda   : > { %3051 = vmatmul.mubr.msk.bf16.gmra.mrb[60].mxu0 %vm652_vm0, %v3250_v1  ;;  %3115 = vmatmul.mubr.msk.bf16.gmra.mrb[60].mxu1 %vm652_vm0, %v3251_v2 }
 0x135   : > { %v2992_v3 = vpop.f32.mrb[0].mxu0  ;;  %v3056_v4 = vpop.f32.mrb[0].mxu1 }
 0x136   : > { %vm1392_vm1 = vcmp.gt.f32.partialorder %v2992_v3, 0.0  ;;  %v1520_v5 = vmul.f32 0.2, %v2992_v3  ;;  %vm1456_vm2 = vcmp.gt.f32.partialorder %v3056_v4, 0.0  ;;  %v1584_v6 = vmul.f32 0.2, %v3056_v4 }
 0x137   : > { %v879_v7 = vpop.f32.mrb[1].mxu0  ;;  %v1135_v8 = vpop.f32.mrb[1].mxu1 }
 0x138   : > { %v1648_v9 = vsel %vm1392_vm1, %v2992_v3, %v1520_v5  ;;  %v1712_v10 = vsel %vm1456_vm2, %v3056_v4, %v1584_v6  ;;  %vm1390_vm4 = vcmp.gt.f32.partialorder %v879_v7, 0.0  ;;  %v1518_v11 = vmul.f32 0.2, %v879_v7  ;;  %v2993_v12 = vpop.f32.mrb[2].mxu0  ;;  %v3057_v13 = vpop.f32.mrb[2].mxu1 }
 0x139   : > { %v2790_v14 = vpack.c.bf16 %v1648_v9, %v1648_v9  ;;  %v2854_v15 = vpack.c.bf16 %v1712_v10, %v1712_v10  ;;  %vm1454_vm5 = vcmp.gt.f32.partialorder %v1135_v8, 0.0  ;;  %v1582_v16 = vmul.f32 0.2, %v1135_v8  ;;  %v882_v17 = vpop.f32.mrb[3].mxu0  ;;  %v1138_v18 = vpop.f32.mrb[3].mxu1 }
 0x13a   : > { %v1646_v19 = vsel %vm1390_vm4, %v879_v7, %v1518_v11  ;;  %vm1393_vm6 = vcmp.gt.f32.partialorder %v2993_v12, 0.0  ;;  %v1521_v20 = vmul.f32 0.2, %v2993_v12  ;;  %vm1457_vm7 = vcmp.gt.f32.partialorder %v3057_v13, 0.0 }
 0x13b   : > { %2289 = vst.msk [vmem:[%s3695_s15 + $0x8] sm:$0xf] %vm2286_vm3, %v2790_v14  ;;  %2353 = vst.msk [vmem:[%s3695_s15 + $0x108] sm:$0xf] %vm2286_vm3, %v2854_v15  ;;  %v2788_v21 = vpack.c.bf16 %v1646_v19, %v1646_v19  ;;  %v1710_v22 = vsel %vm1454_vm5, %v1135_v8, %v1582_v16  ;;  %v1585_v23 = vmul.f32 0.2, %v3057_v13 }
 0x13c   : > { %vm1391_vm8 = vcmp.gt.f32.partialorder %v882_v17, 0.0  ;;  %v2852_v24 = vpack.c.bf16 %v1710_v22, %v1710_v22  ;;  %v1649_v25 = vsel %vm1393_vm6, %v2993_v12, %v1521_v20  ;;  %v1519_v26 = vmul.f32 0.2, %v882_v17 }
 0x13d   : > { %vm1455_vm9 = vcmp.gt.f32.partialorder %v1138_v18, 0.0  ;;  %2287 = vst.msk [vmem:[%s3695_s15] sm:$0xf] %vm2286_vm3, %v2788_v21  ;;  %v2791_v27 = vpack.c.bf16 %v1649_v25, %v1649_v25  ;;  %v1713_v28 = vsel %vm1457_vm7, %v3057_v13, %v1585_v23  ;;  %v1583_v29 = vmul.f32 0.2, %v1138_v18  ;;  %v2996_v30 = vpop.f32.mrb[4].mxu0 }
 0x13e   : > { %v3060_v31 = vpop.f32.mrb[4].mxu1  ;;  %2351 = vst.msk [vmem:[%s3695_s15 + $0x100] sm:$0xf] %vm2286_vm3, %v2852_v24  ;;  %v2855_v32 = vpack.c.bf16 %v1713_v28, %v1713_v28  ;;  %v1647_v33 = vsel %vm1391_vm8, %v882_v17, %v1519_v26  ;;  %vm1396_vm10 = vcmp.gt.f32.partialorder %v2996_v30, 0.0  ;;  %v1524_v34 = vmul.f32 0.2, %v2996_v30 }
 0x13f   : > { %v895_v35 = vpop.f32.mrb[5].mxu0  ;;  %v1151_v36 = vpop.f32.mrb[5].mxu1  ;;  %2290 = vst.msk [vmem:[%s3695_s15 + $0xc] sm:$0xf] %vm2286_vm3, %v2791_v27  ;;  %v2789_v37 = vpack.c.bf16 %v1647_v33, %v1647_v33  ;;  %v1711_v38 = vsel %vm1455_vm9, %v1138_v18, %v1583_v29  ;;  %vm1460_vm11 = vcmp.gt.f32.partialorder %v3060_v31, 0.0 }
 0x140   : > { %v1588_v39 = vmul.f32 0.2, %v3060_v31  ;;  %v2997_v40 = vpop.f32.mrb[6].mxu0  ;;  %v3061_v41 = vpop.f32.mrb[6].mxu1  ;;  %2354 = vst.msk [vmem:[%s3695_s15 + $0x10c] sm:$0xf] %vm2286_vm3, %v2855_v32  ;;  %v2853_v42 = vpack.c.bf16 %v1711_v38, %v1711_v38  ;;  %v1652_v43 = vsel %vm1396_vm10, %v2996_v30, %v1524_v34 }
 0x141   : > { %vm1394_vm12 = vcmp.gt.f32.partialorder %v895_v35, 0.0  ;;  %v1522_v44 = vmul.f32 0.2, %v895_v35  ;;  %v898_v45 = vpop.f32.mrb[7].mxu0  ;;  %v1154_v46 = vpop.f32.mrb[7].mxu1  ;;  %v2794_v47 = vpack.c.bf16 %v1652_v43, %v1652_v43  ;;  %vm1458_vm13 = vcmp.gt.f32.partialorder %v1151_v36, 0.0 }
 0x142   : > { %2288 = vst.msk [vmem:[%s3695_s15 + $0x4] sm:$0xf] %vm2286_vm3, %v2789_v37  ;;  %v1716_v48 = vsel %vm1460_vm11, %v3060_v31, %v1588_v39  ;;  %v1586_v49 = vmul.f32 0.2, %v1151_v36  ;;  %2352 = vst.msk [vmem:[%s3695_s15 + $0x104] sm:$0xf] %vm2286_vm3, %v2853_v42 }
 0x143   : > { %v2858_v50 = vpack.c.bf16 %v1716_v48, %v1716_v48  ;;  %v1650_v51 = vsel %vm1394_vm12, %v895_v35, %v1522_v44  ;;  %vm1397_vm14 = vcmp.gt.f32.partialorder %v2997_v40, 0.0  ;;  %v1525_v52 = vmul.f32 0.2, %v2997_v40  ;;  %2293 = vst.msk [vmem:[%s3695_s15 + $0x18] sm:$0xf] %vm2286_vm3, %v2794_v47 }
 0x144   : > { %v2792_v53 = vpack.c.bf16 %v1650_v51, %v1650_v51  ;;  %v1714_v54 = vsel %vm1458_vm13, %v1151_v36, %v1586_v49  ;;  %vm1461_vm15 = vcmp.gt.f32.partialorder %v3061_v41, 0.0  ;;  %v1589_v55 = vmul.f32 0.2, %v3061_v41 }
 0x145   : > { %2357 = vst.msk [vmem:[%s3695_s15 + $0x118] sm:$0xf] %vm2286_vm3, %v2858_v50  ;;  %v2856_v56 = vpack.c.bf16 %v1714_v54, %v1714_v54  ;;  %v1653_v57 = vsel %vm1397_vm14, %v2997_v40, %v1525_v52  ;;  %vm1395_vm0 = vcmp.gt.f32.partialorder %v898_v45, 0.0  ;;  %v1523_v58 = vmul.f32 0.2, %v898_v45  ;;  %v3000_v62 = vpop.f32.mrb[8].mxu0 }
 0x146   : > { %2291 = vst.msk [vmem:[%s3695_s15 + $0x10] sm:$0xf] %vm2286_vm3, %v2792_v53  ;;  %v2795_v59 = vpack.c.bf16 %v1653_v57, %v1653_v57  ;;  %v1717_v60 = vsel %vm1461_vm15, %v3061_v41, %v1589_v55  ;;  %vm1459_vm1 = vcmp.gt.f32.partialorder %v1154_v46, 0.0  ;;  %v1587_v61 = vmul.f32 0.2, %v1154_v46  ;;  %v3064_v63 = vpop.f32.mrb[8].mxu1 }
 0x147   : > { %2355 = vst.msk [vmem:[%s3695_s15 + $0x110] sm:$0xf] %vm2286_vm3, %v2856_v56  ;;  %v2859_v0 = vpack.c.bf16 %v1717_v60, %v1717_v60  ;;  %v1651_v1 = vsel %vm1395_vm0, %v898_v45, %v1523_v58  ;;  %vm1400_vm2 = vcmp.gt.f32.partialorder %v3000_v62, 0.0  ;;  %v1528_v2 = vmul.f32 0.2, %v3000_v62  ;;  %v911_v3 = vpop.f32.mrb[9].mxu0 }
 0x148   : > { %v1167_v4 = vpop.f32.mrb[9].mxu1  ;;  %2294 = vst.msk [vmem:[%s3695_s15 + $0x1c] sm:$0xf] %vm2286_vm3, %v2795_v59  ;;  %v2793_v5 = vpack.c.bf16 %v1651_v1, %v1651_v1  ;;  %v1715_v6 = vsel %vm1459_vm1, %v1154_v46, %v1587_v61  ;;  %vm1464_vm4 = vcmp.gt.f32.partialorder %v3064_v63, 0.0  ;;  %v1592_v7 = vmul.f32 0.2, %v3064_v63 }
 0x149   : > { %v3001_v8 = vpop.f32.mrb[10].mxu0  ;;  %v3065_v9 = vpop.f32.mrb[10].mxu1  ;;  %2358 = vst.msk [vmem:[%s3695_s15 + $0x11c] sm:$0xf] %vm2286_vm3, %v2859_v0  ;;  %v2857_v10 = vpack.c.bf16 %v1715_v6, %v1715_v6  ;;  %v1656_v11 = vsel %vm1400_vm2, %v3000_v62, %v1528_v2  ;;  %vm1398_vm5 = vcmp.gt.f32.partialorder %v911_v3, 0.0  ;;  %vm1462_vm6 = vcmp.gt.f32.partialorder %v1167_v4, 0.0 }
 0x14a   : > { %v1526_v12 = vmul.f32 0.2, %v911_v3  ;;  %v914_v13 = vpop.f32.mrb[11].mxu0  ;;  %v1170_v14 = vpop.f32.mrb[11].mxu1  ;;  %2292 = vst.msk [vmem:[%s3695_s15 + $0x14] sm:$0xf] %vm2286_vm3, %v2793_v5  ;;  %v2798_v15 = vpack.c.bf16 %v1656_v11, %v1656_v11  ;;  %v1720_v16 = vsel %vm1464_vm4, %v3064_v63, %v1592_v7 }
 0x14b   : > { %v1590_v17 = vmul.f32 0.2, %v1167_v4  ;;  %2356 = vst.msk [vmem:[%s3695_s15 + $0x114] sm:$0xf] %vm2286_vm3, %v2857_v10  ;;  %v2862_v18 = vpack.c.bf16 %v1720_v16, %v1720_v16  ;;  %vm1401_vm7 = vcmp.gt.f32.partialorder %v3001_v8, 0.0  ;;  %vm1465_vm8 = vcmp.gt.f32.partialorder %v3065_v9, 0.0 }
 0x14c   : > { %v1654_v19 = vsel %vm1398_vm5, %v911_v3, %v1526_v12  ;;  %v1529_v20 = vmul.f32 0.2, %v3001_v8  ;;  %2297 = vst.msk [vmem:[%s3695_s15 + $0x28] sm:$0xf] %vm2286_vm3, %v2798_v15  ;;  %v1593_v23 = vmul.f32 0.2, %v3065_v9 }
 0x14d   : > { %v2796_v21 = vpack.c.bf16 %v1654_v19, %v1654_v19  ;;  %v1718_v22 = vsel %vm1462_vm6, %v1167_v4, %v1590_v17  ;;  %2361 = vst.msk [vmem:[%s3695_s15 + $0x128] sm:$0xf] %vm2286_vm3, %v2862_v18  ;;  %vm1399_vm9 = vcmp.gt.f32.partialorder %v914_v13, 0.0  ;;  %v1527_v26 = vmul.f32 0.2, %v914_v13  ;;  %v3004_v30 = vpop.f32.mrb[12].mxu0 }
 0x14e   : > { %v2860_v24 = vpack.c.bf16 %v1718_v22, %v1718_v22  ;;  %v1657_v25 = vsel %vm1401_vm7, %v3001_v8, %v1529_v20  ;;  %v1721_v28 = vsel %vm1465_vm8, %v3065_v9, %v1593_v23  ;;  %vm1463_vm10 = vcmp.gt.f32.partialorder %v1170_v14, 0.0  ;;  %v3068_v31 = vpop.f32.mrb[12].mxu1  ;;  %v927_v35 = vpop.f32.mrb[13].mxu0 }
 0x14f   : > { %2295 = vst.msk [vmem:[%s3695_s15 + $0x20] sm:$0xf] %vm2286_vm3, %v2796_v21  ;;  %v2799_v27 = vpack.c.bf16 %v1657_v25, %v1657_v25  ;;  %v1591_v29 = vmul.f32 0.2, %v1170_v14  ;;  %v2863_v32 = vpack.c.bf16 %v1721_v28, %v1721_v28  ;;  %v1655_v33 = vsel %vm1399_vm9, %v914_v13, %v1527_v26  ;;  %v1183_v36 = vpop.f32.mrb[13].mxu1  ;;  %v3005_v40 = vpop.f32.mrb[14].mxu0 }
 0x150   : > { %2359 = vst.msk [vmem:[%s3695_s15 + $0x120] sm:$0xf] %vm2286_vm3, %v2860_v24  ;;  %vm1404_vm11 = vcmp.gt.f32.partialorder %v3004_v30, 0.0  ;;  %v1532_v34 = vmul.f32 0.2, %v3004_v30  ;;  %v2797_v37 = vpack.c.bf16 %v1655_v33, %v1655_v33  ;;  %vm1468_vm12 = vcmp.gt.f32.partialorder %v3068_v31, 0.0 }
 0x151   : > { %2298 = vst.msk [vmem:[%s3695_s15 + $0x2c] sm:$0xf] %vm2286_vm3, %v2799_v27  ;;  %v1719_v38 = vsel %vm1463_vm10, %v1170_v14, %v1591_v29  ;;  %v1596_v39 = vmul.f32 0.2, %v3068_v31  ;;  %v3069_v41 = vpop.f32.mrb[14].mxu1  ;;  %vm1402_vm13 = vcmp.gt.f32.partialorder %v927_v35, 0.0 }
 0x152   : > { %2362 = vst.msk [vmem:[%s3695_s15 + $0x12c] sm:$0xf] %vm2286_vm3, %v2863_v32  ;;  %v2861_v42 = vpack.c.bf16 %v1719_v38, %v1719_v38  ;;  %v1660_v43 = vsel %vm1404_vm11, %v3004_v30, %v1532_v34  ;;  %v1530_v44 = vmul.f32 0.2, %v927_v35  ;;  %v930_v45 = vpop.f32.mrb[15].mxu0  ;;  %v1186_v46 = vpop.f32.mrb[15].mxu1 }
 0x153   : > { %2296 = vst.msk [vmem:[%s3695_s15 + $0x24] sm:$0xf] %vm2286_vm3, %v2797_v37  ;;  %v2802_v47 = vpack.c.bf16 %v1660_v43, %v1660_v43  ;;  %v1724_v48 = vsel %vm1468_vm12, %v3068_v31, %v1596_v39  ;;  %vm1466_vm14 = vcmp.gt.f32.partialorder %v1183_v36, 0.0  ;;  %v1594_v49 = vmul.f32 0.2, %v1183_v36 }
 0x154   : > { %2360 = vst.msk [vmem:[%s3695_s15 + $0x124] sm:$0xf] %vm2286_vm3, %v2861_v42  ;;  %v2866_v50 = vpack.c.bf16 %v1724_v48, %v1724_v48  ;;  %v1658_v51 = vsel %vm1402_vm13, %v927_v35, %v1530_v44  ;;  %vm1405_vm15 = vcmp.gt.f32.partialorder %v3005_v40, 0.0  ;;  %v1533_v52 = vmul.f32 0.2, %v3005_v40 }
 0x155   : > { %2301 = vst.msk [vmem:[%s3695_s15 + $0x38] sm:$0xf] %vm2286_vm3, %v2802_v47  ;;  %v2800_v53 = vpack.c.bf16 %v1658_v51, %v1658_v51  ;;  %v1722_v54 = vsel %vm1466_vm14, %v1183_v36, %v1594_v49  ;;  %vm1469_vm0 = vcmp.gt.f32.partialorder %v3069_v41, 0.0  ;;  %v1597_v55 = vmul.f32 0.2, %v3069_v41  ;;  %v3008_v62 = vpop.f32.mrb[16].mxu0 }
 0x156   : > { %2365 = vst.msk [vmem:[%s3695_s15 + $0x138] sm:$0xf] %vm2286_vm3, %v2866_v50  ;;  %v2864_v56 = vpack.c.bf16 %v1722_v54, %v1722_v54  ;;  %v1661_v57 = vsel %vm1405_vm15, %v3005_v40, %v1533_v52  ;;  %vm1403_vm1 = vcmp.gt.f32.partialorder %v930_v45, 0.0  ;;  %v1531_v58 = vmul.f32 0.2, %v930_v45  ;;  %v3072_v63 = vpop.f32.mrb[16].mxu1 }
 0x157   : > { %2299 = vst.msk [vmem:[%s3695_s15 + $0x30] sm:$0xf] %vm2286_vm3, %v2800_v53  ;;  %v2803_v59 = vpack.c.bf16 %v1661_v57, %v1661_v57  ;;  %v1725_v60 = vsel %vm1469_vm0, %v3069_v41, %v1597_v55  ;;  %vm1467_vm2 = vcmp.gt.f32.partialorder %v1186_v46, 0.0  ;;  %v1595_v61 = vmul.f32 0.2, %v1186_v46  ;;  %v943_v3 = vpop.f32.mrb[17].mxu0 }
 0x158   : > { %2363 = vst.msk [vmem:[%s3695_s15 + $0x130] sm:$0xf] %vm2286_vm3, %v2864_v56  ;;  %v2867_v0 = vpack.c.bf16 %v1725_v60, %v1725_v60  ;;  %v1659_v1 = vsel %vm1403_vm1, %v930_v45, %v1531_v58  ;;  %vm1408_vm4 = vcmp.gt.f32.partialorder %v3008_v62, 0.0  ;;  %v1536_v2 = vmul.f32 0.2, %v3008_v62  ;;  %v1199_v4 = vpop.f32.mrb[17].mxu1 }
 0x159   : > { %2302 = vst.msk [vmem:[%s3695_s15 + $0x3c] sm:$0xf] %vm2286_vm3, %v2803_v59  ;;  %v2801_v5 = vpack.c.bf16 %v1659_v1, %v1659_v1  ;;  %v1723_v6 = vsel %vm1467_vm2, %v1186_v46, %v1595_v61  ;;  %vm1472_vm5 = vcmp.gt.f32.partialorder %v3072_v63, 0.0  ;;  %v1600_v7 = vmul.f32 0.2, %v3072_v63  ;;  %v3009_v8 = vpop.f32.mrb[18].mxu0 }
 0x15a   : > { %v3073_v9 = vpop.f32.mrb[18].mxu1  ;;  %2366 = vst.msk [vmem:[%s3695_s15 + $0x13c] sm:$0xf] %vm2286_vm3, %v2867_v0  ;;  %v2865_v10 = vpack.c.bf16 %v1723_v6, %v1723_v6  ;;  %v1664_v11 = vsel %vm1408_vm4, %v3008_v62, %v1536_v2  ;;  %vm1406_vm6 = vcmp.gt.f32.partialorder %v943_v3, 0.0  ;;  %v1534_v12 = vmul.f32 0.2, %v943_v3 }
 0x15b   : > { %v946_v13 = vpop.f32.mrb[19].mxu0  ;;  %v1202_v14 = vpop.f32.mrb[19].mxu1  ;;  %2300 = vst.msk [vmem:[%s3695_s15 + $0x34] sm:$0xf] %vm2286_vm3, %v2801_v5  ;;  %v2806_v15 = vpack.c.bf16 %v1664_v11, %v1664_v11  ;;  %v1728_v16 = vsel %vm1472_vm5, %v3072_v63, %v1600_v7  ;;  %vm1470_vm7 = vcmp.gt.f32.partialorder %v1199_v4, 0.0  ;;  %vm1409_vm8 = vcmp.gt.f32.partialorder %v3009_v8, 0.0 }
 0x15c   : > { %v1598_v17 = vmul.f32 0.2, %v1199_v4  ;;  %2364 = vst.msk [vmem:[%s3695_s15 + $0x134] sm:$0xf] %vm2286_vm3, %v2865_v10  ;;  %v2870_v18 = vpack.c.bf16 %v1728_v16, %v1728_v16  ;;  %v1662_v19 = vsel %vm1406_vm6, %v943_v3, %v1534_v12  ;;  %v1537_v20 = vmul.f32 0.2, %v3009_v8 }
 0x15d   : > { %2305 = vst.msk [vmem:[%s3695_s15 + $0x48] sm:$0xf] %vm2286_vm3, %v2806_v15  ;;  %v2804_v21 = vpack.c.bf16 %v1662_v19, %v1662_v19  ;;  %vm1473_vm9 = vcmp.gt.f32.partialorder %v3073_v9, 0.0  ;;  %v1601_v23 = vmul.f32 0.2, %v3073_v9  ;;  %vm1407_vm10 = vcmp.gt.f32.partialorder %v946_v13, 0.0 }
 0x15e   : > { %v1726_v22 = vsel %vm1470_vm7, %v1199_v4, %v1598_v17  ;;  %2369 = vst.msk [vmem:[%s3695_s15 + $0x148] sm:$0xf] %vm2286_vm3, %v2870_v18  ;;  %v1665_v25 = vsel %vm1409_vm8, %v3009_v8, %v1537_v20  ;;  %v1535_v26 = vmul.f32 0.2, %v946_v13  ;;  %vm1471_vm11 = vcmp.gt.f32.partialorder %v1202_v14, 0.0  ;;  %v3012_v30 = vpop.f32.mrb[20].mxu0 }
 0x15f   : > { %v2868_v24 = vpack.c.bf16 %v1726_v22, %v1726_v22  ;;  %2303 = vst.msk [vmem:[%s3695_s15 + $0x40] sm:$0xf] %vm2286_vm3, %v2804_v21  ;;  %v2807_v27 = vpack.c.bf16 %v1665_v25, %v1665_v25  ;;  %v1729_v28 = vsel %vm1473_vm9, %v3073_v9, %v1601_v23  ;;  %v1599_v29 = vmul.f32 0.2, %v1202_v14  ;;  %v3076_v31 = vpop.f32.mrb[20].mxu1  ;;  %v959_v35 = vpop.f32.mrb[21].mxu0 }
 0x160   : > { %v2871_v32 = vpack.c.bf16 %v1729_v28, %v1729_v28  ;;  %v1663_v33 = vsel %vm1407_vm10, %v946_v13, %v1535_v26  ;;  %vm1412_vm12 = vcmp.gt.f32.partialorder %v3012_v30, 0.0  ;;  %v1540_v34 = vmul.f32 0.2, %v3012_v30  ;;  %v1215_v36 = vpop.f32.mrb[21].mxu1  ;;  %v3013_v40 = vpop.f32.mrb[22].mxu0 }
 0x161   : > { %2367 = vst.msk [vmem:[%s3695_s15 + $0x140] sm:$0xf] %vm2286_vm3, %v2868_v24  ;;  %2306 = vst.msk [vmem:[%s3695_s15 + $0x4c] sm:$0xf] %vm2286_vm3, %v2807_v27  ;;  %v2805_v37 = vpack.c.bf16 %v1663_v33, %v1663_v33  ;;  %v1727_v38 = vsel %vm1471_vm11, %v1202_v14, %v1599_v29  ;;  %vm1476_vm13 = vcmp.gt.f32.partialorder %v3076_v31, 0.0  ;;  %v3077_v41 = vpop.f32.mrb[22].mxu1 }
 0x162   : > { %v1604_v39 = vmul.f32 0.2, %v3076_v31  ;;  %2370 = vst.msk [vmem:[%s3695_s15 + $0x14c] sm:$0xf] %vm2286_vm3, %v2871_v32  ;;  %v2869_v42 = vpack.c.bf16 %v1727_v38, %v1727_v38  ;;  %v1668_v43 = vsel %vm1412_vm12, %v3012_v30, %v1540_v34  ;;  %vm1410_vm14 = vcmp.gt.f32.partialorder %v959_v35, 0.0  ;;  %v962_v45 = vpop.f32.mrb[23].mxu0 }
 0x163   : > { %v1538_v44 = vmul.f32 0.2, %v959_v35  ;;  %v1218_v46 = vpop.f32.mrb[23].mxu1  ;;  %2304 = vst.msk [vmem:[%s3695_s15 + $0x44] sm:$0xf] %vm2286_vm3, %v2805_v37  ;;  %v2810_v47 = vpack.c.bf16 %v1668_v43, %v1668_v43  ;;  %vm1474_vm15 = vcmp.gt.f32.partialorder %v1215_v36, 0.0 }
 0x164   : > { %v1732_v48 = vsel %vm1476_vm13, %v3076_v31, %v1604_v39  ;;  %v1602_v49 = vmul.f32 0.2, %v1215_v36  ;;  %2368 = vst.msk [vmem:[%s3695_s15 + $0x144] sm:$0xf] %vm2286_vm3, %v2869_v42  ;;  %vm1413_vm0 = vcmp.gt.f32.partialorder %v3013_v40, 0.0  ;;  %vm1477_vm1 = vcmp.gt.f32.partialorder %v3077_v41, 0.0 }
 0x165   : > { %v2874_v50 = vpack.c.bf16 %v1732_v48, %v1732_v48  ;;  %v1666_v51 = vsel %vm1410_vm14, %v959_v35, %v1538_v44  ;;  %v1541_v52 = vmul.f32 0.2, %v3013_v40  ;;  %2309 = vst.msk [vmem:[%s3695_s15 + $0x58] sm:$0xf] %vm2286_vm3, %v2810_v47  ;;  %v1605_v55 = vmul.f32 0.2, %v3077_v41 }
 0x166   : > { %v2808_v53 = vpack.c.bf16 %v1666_v51, %v1666_v51  ;;  %v1730_v54 = vsel %vm1474_vm15, %v1215_v36, %v1602_v49  ;;  %vm1411_vm2 = vcmp.gt.f32.partialorder %v962_v45, 0.0  ;;  %v1539_v58 = vmul.f32 0.2, %v962_v45  ;;  %v3016_v62 = vpop.f32.mrb[24].mxu0  ;;  %v3080_v63 = vpop.f32.mrb[24].mxu1 }
 0x167   : > { %2373 = vst.msk [vmem:[%s3695_s15 + $0x158] sm:$0xf] %vm2286_vm3, %v2874_v50  ;;  %v2872_v56 = vpack.c.bf16 %v1730_v54, %v1730_v54  ;;  %v1669_v57 = vsel %vm1413_vm0, %v3013_v40, %v1541_v52  ;;  %v1733_v60 = vsel %vm1477_vm1, %v3077_v41, %v1605_v55  ;;  %vm1475_vm4 = vcmp.gt.f32.partialorder %v1218_v46, 0.0  ;;  %v975_v3 = vpop.f32.mrb[25].mxu0  ;;  %v1231_v4 = vpop.f32.mrb[25].mxu1 }
 0x168   : > { %2307 = vst.msk [vmem:[%s3695_s15 + $0x50] sm:$0xf] %vm2286_vm3, %v2808_v53  ;;  %v2811_v59 = vpack.c.bf16 %v1669_v57, %v1669_v57  ;;  %v1603_v61 = vmul.f32 0.2, %v1218_v46  ;;  %v2875_v0 = vpack.c.bf16 %v1733_v60, %v1733_v60  ;;  %v1667_v1 = vsel %vm1411_vm2, %v962_v45, %v1539_v58  ;;  %v3017_v8 = vpop.f32.mrb[26].mxu0  ;;  %v3081_v9 = vpop.f32.mrb[26].mxu1 }
 0x169   : > { %2371 = vst.msk [vmem:[%s3695_s15 + $0x150] sm:$0xf] %vm2286_vm3, %v2872_v56  ;;  %vm1416_vm5 = vcmp.gt.f32.partialorder %v3016_v62, 0.0  ;;  %v1544_v2 = vmul.f32 0.2, %v3016_v62  ;;  %v2809_v5 = vpack.c.bf16 %v1667_v1, %v1667_v1  ;;  %vm1480_vm6 = vcmp.gt.f32.partialorder %v3080_v63, 0.0 }
 0x16a   : > { %2310 = vst.msk [vmem:[%s3695_s15 + $0x5c] sm:$0xf] %vm2286_vm3, %v2811_v59  ;;  %v1731_v6 = vsel %vm1475_vm4, %v1218_v46, %v1603_v61  ;;  %v1608_v7 = vmul.f32 0.2, %v3080_v63  ;;  %2374 = vst.msk [vmem:[%s3695_s15 + $0x15c] sm:$0xf] %vm2286_vm3, %v2875_v0 }
 0x16b   : > { %v2873_v10 = vpack.c.bf16 %v1731_v6, %v1731_v6  ;;  %v1672_v11 = vsel %vm1416_vm5, %v3016_v62, %v1544_v2  ;;  %vm1414_vm7 = vcmp.gt.f32.partialorder %v975_v3, 0.0  ;;  %v1542_v12 = vmul.f32 0.2, %v975_v3  ;;  %v978_v13 = vpop.f32.mrb[27].mxu0  ;;  %v1234_v14 = vpop.f32.mrb[27].mxu1 }
 0x16c   : > { %2308 = vst.msk [vmem:[%s3695_s15 + $0x54] sm:$0xf] %vm2286_vm3, %v2809_v5  ;;  %v2814_v15 = vpack.c.bf16 %v1672_v11, %v1672_v11  ;;  %v1736_v16 = vsel %vm1480_vm6, %v3080_v63, %v1608_v7  ;;  %vm1478_vm8 = vcmp.gt.f32.partialorder %v1231_v4, 0.0  ;;  %v1606_v17 = vmul.f32 0.2, %v1231_v4 }
 0x16d   : > { %2372 = vst.msk [vmem:[%s3695_s15 + $0x154] sm:$0xf] %vm2286_vm3, %v2873_v10  ;;  %v2878_v18 = vpack.c.bf16 %v1736_v16, %v1736_v16  ;;  %v1670_v19 = vsel %vm1414_vm7, %v975_v3, %v1542_v12  ;;  %vm1417_vm9 = vcmp.gt.f32.partialorder %v3017_v8, 0.0  ;;  %v1545_v20 = vmul.f32 0.2, %v3017_v8  ;;  %v3020_v30 = vpop.f32.mrb[28].mxu0 }
 0x16e   : > { %2313 = vst.msk [vmem:[%s3695_s15 + $0x68] sm:$0xf] %vm2286_vm3, %v2814_v15  ;;  %v2812_v21 = vpack.c.bf16 %v1670_v19, %v1670_v19  ;;  %v1734_v22 = vsel %vm1478_vm8, %v1231_v4, %v1606_v17  ;;  %vm1481_vm10 = vcmp.gt.f32.partialorder %v3081_v9, 0.0  ;;  %v1609_v23 = vmul.f32 0.2, %v3081_v9  ;;  %v3084_v31 = vpop.f32.mrb[28].mxu1 }
 0x16f   : > { %2377 = vst.msk [vmem:[%s3695_s15 + $0x168] sm:$0xf] %vm2286_vm3, %v2878_v18  ;;  %v2876_v24 = vpack.c.bf16 %v1734_v22, %v1734_v22  ;;  %v1673_v25 = vsel %vm1417_vm9, %v3017_v8, %v1545_v20  ;;  %vm1415_vm11 = vcmp.gt.f32.partialorder %v978_v13, 0.0  ;;  %v1543_v26 = vmul.f32 0.2, %v978_v13  ;;  %v991_v35 = vpop.f32.mrb[29].mxu0 }
 0x170   : > { %2311 = vst.msk [vmem:[%s3695_s15 + $0x60] sm:$0xf] %vm2286_vm3, %v2812_v21  ;;  %v2815_v27 = vpack.c.bf16 %v1673_v25, %v1673_v25  ;;  %v1737_v28 = vsel %vm1481_vm10, %v3081_v9, %v1609_v23  ;;  %vm1479_vm12 = vcmp.gt.f32.partialorder %v1234_v14, 0.0  ;;  %v1607_v29 = vmul.f32 0.2, %v1234_v14  ;;  %v1247_v36 = vpop.f32.mrb[29].mxu1 }
 0x171   : > { %2375 = vst.msk [vmem:[%s3695_s15 + $0x160] sm:$0xf] %vm2286_vm3, %v2876_v24  ;;  %v2879_v32 = vpack.c.bf16 %v1737_v28, %v1737_v28  ;;  %v1671_v33 = vsel %vm1415_vm11, %v978_v13, %v1543_v26  ;;  %vm1420_vm13 = vcmp.gt.f32.partialorder %v3020_v30, 0.0  ;;  %v1548_v34 = vmul.f32 0.2, %v3020_v30  ;;  %v3021_v40 = vpop.f32.mrb[30].mxu0 }
 0x172   : > { %2314 = vst.msk [vmem:[%s3695_s15 + $0x6c] sm:$0xf] %vm2286_vm3, %v2815_v27  ;;  %v2813_v37 = vpack.c.bf16 %v1671_v33, %v1671_v33  ;;  %v1735_v38 = vsel %vm1479_vm12, %v1234_v14, %v1607_v29  ;;  %vm1484_vm14 = vcmp.gt.f32.partialorder %v3084_v31, 0.0  ;;  %v1612_v39 = vmul.f32 0.2, %v3084_v31  ;;  %v3085_v41 = vpop.f32.mrb[30].mxu1 }
 0x173   : > { %2378 = vst.msk [vmem:[%s3695_s15 + $0x16c] sm:$0xf] %vm2286_vm3, %v2879_v32  ;;  %v2877_v42 = vpack.c.bf16 %v1735_v38, %v1735_v38  ;;  %v1676_v43 = vsel %vm1420_vm13, %v3020_v30, %v1548_v34  ;;  %vm1418_vm15 = vcmp.gt.f32.partialorder %v991_v35, 0.0  ;;  %v1546_v44 = vmul.f32 0.2, %v991_v35  ;;  %v994_v45 = vpop.f32.mrb[31].mxu0 }
 0x174   : > { %v1250_v46 = vpop.f32.mrb[31].mxu1  ;;  %2312 = vst.msk [vmem:[%s3695_s15 + $0x64] sm:$0xf] %vm2286_vm3, %v2813_v37  ;;  %v2818_v47 = vpack.c.bf16 %v1676_v43, %v1676_v43  ;;  %v1740_v48 = vsel %vm1484_vm14, %v3084_v31, %v1612_v39  ;;  %vm1482_vm0 = vcmp.gt.f32.partialorder %v1247_v36, 0.0  ;;  %v1610_v49 = vmul.f32 0.2, %v1247_v36 }
 0x175   : > { %2376 = vst.msk [vmem:[%s3695_s15 + $0x164] sm:$0xf] %vm2286_vm3, %v2877_v42  ;;  %v2882_v50 = vpack.c.bf16 %v1740_v48, %v1740_v48  ;;  %v1674_v51 = vsel %vm1418_vm15, %v991_v35, %v1546_v44  ;;  %vm1421_vm1 = vcmp.gt.f32.partialorder %v3021_v40, 0.0  ;;  %v1549_v52 = vmul.f32 0.2, %v3021_v40  ;;  %v3024_v62 = vpop.f32.mrb[32].mxu0 }
 0x176   : > { %2317 = vst.msk [vmem:[%s3695_s15 + $0x78] sm:$0xf] %vm2286_vm3, %v2818_v47  ;;  %v2816_v53 = vpack.c.bf16 %v1674_v51, %v1674_v51  ;;  %v1738_v54 = vsel %vm1482_vm0, %v1247_v36, %v1610_v49  ;;  %vm1485_vm2 = vcmp.gt.f32.partialorder %v3085_v41, 0.0  ;;  %v1613_v55 = vmul.f32 0.2, %v3085_v41  ;;  %v3088_v63 = vpop.f32.mrb[32].mxu1 }
 0x177   : > { %2381 = vst.msk [vmem:[%s3695_s15 + $0x178] sm:$0xf] %vm2286_vm3, %v2882_v50  ;;  %v2880_v56 = vpack.c.bf16 %v1738_v54, %v1738_v54  ;;  %v1677_v57 = vsel %vm1421_vm1, %v3021_v40, %v1549_v52  ;;  %vm1419_vm4 = vcmp.gt.f32.partialorder %v994_v45, 0.0  ;;  %v1547_v58 = vmul.f32 0.2, %v994_v45  ;;  %v1007_v3 = vpop.f32.mrb[33].mxu0 }
 0x178   : > { %2315 = vst.msk [vmem:[%s3695_s15 + $0x70] sm:$0xf] %vm2286_vm3, %v2816_v53  ;;  %v2819_v59 = vpack.c.bf16 %v1677_v57, %v1677_v57  ;;  %v1741_v60 = vsel %vm1485_vm2, %v3085_v41, %v1613_v55  ;;  %vm1483_vm5 = vcmp.gt.f32.partialorder %v1250_v46, 0.0  ;;  %v1611_v61 = vmul.f32 0.2, %v1250_v46  ;;  %v1263_v4 = vpop.f32.mrb[33].mxu1 }
 0x179   : > { %2379 = vst.msk [vmem:[%s3695_s15 + $0x170] sm:$0xf] %vm2286_vm3, %v2880_v56  ;;  %v2883_v0 = vpack.c.bf16 %v1741_v60, %v1741_v60  ;;  %v1675_v1 = vsel %vm1419_vm4, %v994_v45, %v1547_v58  ;;  %vm1424_vm6 = vcmp.gt.f32.partialorder %v3024_v62, 0.0  ;;  %v1552_v2 = vmul.f32 0.2, %v3024_v62  ;;  %v3025_v8 = vpop.f32.mrb[34].mxu0 }
 0x17a   : > { %2318 = vst.msk [vmem:[%s3695_s15 + $0x7c] sm:$0xf] %vm2286_vm3, %v2819_v59  ;;  %v2817_v5 = vpack.c.bf16 %v1675_v1, %v1675_v1  ;;  %v1739_v6 = vsel %vm1483_vm5, %v1250_v46, %v1611_v61  ;;  %vm1488_vm7 = vcmp.gt.f32.partialorder %v3088_v63, 0.0  ;;  %v1616_v7 = vmul.f32 0.2, %v3088_v63  ;;  %v3089_v9 = vpop.f32.mrb[34].mxu1 }
 0x17b   : > { %2382 = vst.msk [vmem:[%s3695_s15 + $0x17c] sm:$0xf] %vm2286_vm3, %v2883_v0  ;;  %v2881_v10 = vpack.c.bf16 %v1739_v6, %v1739_v6  ;;  %v1680_v11 = vsel %vm1424_vm6, %v3024_v62, %v1552_v2  ;;  %vm1422_vm8 = vcmp.gt.f32.partialorder %v1007_v3, 0.0  ;;  %v1550_v12 = vmul.f32 0.2, %v1007_v3  ;;  %v1010_v13 = vpop.f32.mrb[35].mxu0 }
 0x17c   : > { %v1266_v14 = vpop.f32.mrb[35].mxu1  ;;  %2316 = vst.msk [vmem:[%s3695_s15 + $0x74] sm:$0xf] %vm2286_vm3, %v2817_v5  ;;  %v2822_v15 = vpack.c.bf16 %v1680_v11, %v1680_v11  ;;  %v1744_v16 = vsel %vm1488_vm7, %v3088_v63, %v1616_v7  ;;  %vm1486_vm9 = vcmp.gt.f32.partialorder %v1263_v4, 0.0  ;;  %v1614_v17 = vmul.f32 0.2, %v1263_v4 }
 0x17d   : > { %2380 = vst.msk [vmem:[%s3695_s15 + $0x174] sm:$0xf] %vm2286_vm3, %v2881_v10  ;;  %v2886_v18 = vpack.c.bf16 %v1744_v16, %v1744_v16  ;;  %v1678_v19 = vsel %vm1422_vm8, %v1007_v3, %v1550_v12  ;;  %vm1425_vm10 = vcmp.gt.f32.partialorder %v3025_v8, 0.0  ;;  %v1553_v20 = vmul.f32 0.2, %v3025_v8  ;;  %v3028_v30 = vpop.f32.mrb[36].mxu0 }
 0x17e   : > { %2321 = vst.msk [vmem:[%s3695_s15 + $0x88] sm:$0xf] %vm2286_vm3, %v2822_v15  ;;  %v2820_v21 = vpack.c.bf16 %v1678_v19, %v1678_v19  ;;  %v1742_v22 = vsel %vm1486_vm9, %v1263_v4, %v1614_v17  ;;  %vm1489_vm11 = vcmp.gt.f32.partialorder %v3089_v9, 0.0  ;;  %v1617_v23 = vmul.f32 0.2, %v3089_v9  ;;  %v3092_v31 = vpop.f32.mrb[36].mxu1 }
 0x17f   : > { %2385 = vst.msk [vmem:[%s3695_s15 + $0x188] sm:$0xf] %vm2286_vm3, %v2886_v18  ;;  %v2884_v24 = vpack.c.bf16 %v1742_v22, %v1742_v22  ;;  %v1681_v25 = vsel %vm1425_vm10, %v3025_v8, %v1553_v20  ;;  %vm1423_vm12 = vcmp.gt.f32.partialorder %v1010_v13, 0.0  ;;  %v1551_v26 = vmul.f32 0.2, %v1010_v13  ;;  %v1023_v35 = vpop.f32.mrb[37].mxu0 }
 0x180   : > { %2319 = vst.msk [vmem:[%s3695_s15 + $0x80] sm:$0xf] %vm2286_vm3, %v2820_v21  ;;  %v2823_v27 = vpack.c.bf16 %v1681_v25, %v1681_v25  ;;  %v1745_v28 = vsel %vm1489_vm11, %v3089_v9, %v1617_v23  ;;  %vm1487_vm13 = vcmp.gt.f32.partialorder %v1266_v14, 0.0  ;;  %v1615_v29 = vmul.f32 0.2, %v1266_v14  ;;  %v1279_v36 = vpop.f32.mrb[37].mxu1 }
 0x181   : > { %2383 = vst.msk [vmem:[%s3695_s15 + $0x180] sm:$0xf] %vm2286_vm3, %v2884_v24  ;;  %v2887_v32 = vpack.c.bf16 %v1745_v28, %v1745_v28  ;;  %v1679_v33 = vsel %vm1423_vm12, %v1010_v13, %v1551_v26  ;;  %vm1428_vm14 = vcmp.gt.f32.partialorder %v3028_v30, 0.0  ;;  %v1556_v34 = vmul.f32 0.2, %v3028_v30  ;;  %v3029_v40 = vpop.f32.mrb[38].mxu0 }
 0x182   : > { %2322 = vst.msk [vmem:[%s3695_s15 + $0x8c] sm:$0xf] %vm2286_vm3, %v2823_v27  ;;  %v2821_v37 = vpack.c.bf16 %v1679_v33, %v1679_v33  ;;  %v1743_v38 = vsel %vm1487_vm13, %v1266_v14, %v1615_v29  ;;  %vm1492_vm15 = vcmp.gt.f32.partialorder %v3092_v31, 0.0  ;;  %v1620_v39 = vmul.f32 0.2, %v3092_v31  ;;  %v3093_v41 = vpop.f32.mrb[38].mxu1 }
 0x183   : > { %2386 = vst.msk [vmem:[%s3695_s15 + $0x18c] sm:$0xf] %vm2286_vm3, %v2887_v32  ;;  %v2885_v42 = vpack.c.bf16 %v1743_v38, %v1743_v38  ;;  %v1684_v43 = vsel %vm1428_vm14, %v3028_v30, %v1556_v34  ;;  %vm1426_vm0 = vcmp.gt.f32.partialorder %v1023_v35, 0.0  ;;  %v1554_v44 = vmul.f32 0.2, %v1023_v35  ;;  %v1026_v45 = vpop.f32.mrb[39].mxu0 }
 0x184   : > { %v1282_v46 = vpop.f32.mrb[39].mxu1  ;;  %2320 = vst.msk [vmem:[%s3695_s15 + $0x84] sm:$0xf] %vm2286_vm3, %v2821_v37  ;;  %v2826_v47 = vpack.c.bf16 %v1684_v43, %v1684_v43  ;;  %v1748_v48 = vsel %vm1492_vm15, %v3092_v31, %v1620_v39  ;;  %vm1490_vm1 = vcmp.gt.f32.partialorder %v1279_v36, 0.0  ;;  %v1618_v49 = vmul.f32 0.2, %v1279_v36 }
 0x185   : > { %2384 = vst.msk [vmem:[%s3695_s15 + $0x184] sm:$0xf] %vm2286_vm3, %v2885_v42  ;;  %v2890_v50 = vpack.c.bf16 %v1748_v48, %v1748_v48  ;;  %v1682_v51 = vsel %vm1426_vm0, %v1023_v35, %v1554_v44  ;;  %vm1429_vm2 = vcmp.gt.f32.partialorder %v3029_v40, 0.0  ;;  %v1557_v52 = vmul.f32 0.2, %v3029_v40  ;;  %v3032_v62 = vpop.f32.mrb[40].mxu0 }
 0x186   : > { %2325 = vst.msk [vmem:[%s3695_s15 + $0x98] sm:$0xf] %vm2286_vm3, %v2826_v47  ;;  %v2824_v53 = vpack.c.bf16 %v1682_v51, %v1682_v51  ;;  %v1746_v54 = vsel %vm1490_vm1, %v1279_v36, %v1618_v49  ;;  %vm1493_vm4 = vcmp.gt.f32.partialorder %v3093_v41, 0.0  ;;  %v1621_v55 = vmul.f32 0.2, %v3093_v41  ;;  %v3096_v63 = vpop.f32.mrb[40].mxu1 }
 0x187   : > { %2389 = vst.msk [vmem:[%s3695_s15 + $0x198] sm:$0xf] %vm2286_vm3, %v2890_v50  ;;  %v2888_v56 = vpack.c.bf16 %v1746_v54, %v1746_v54  ;;  %v1685_v57 = vsel %vm1429_vm2, %v3029_v40, %v1557_v52  ;;  %vm1427_vm5 = vcmp.gt.f32.partialorder %v1026_v45, 0.0  ;;  %v1555_v58 = vmul.f32 0.2, %v1026_v45  ;;  %v1039_v3 = vpop.f32.mrb[41].mxu0 }
 0x188   : > { %2323 = vst.msk [vmem:[%s3695_s15 + $0x90] sm:$0xf] %vm2286_vm3, %v2824_v53  ;;  %v2827_v59 = vpack.c.bf16 %v1685_v57, %v1685_v57  ;;  %v1749_v60 = vsel %vm1493_vm4, %v3093_v41, %v1621_v55  ;;  %vm1491_vm6 = vcmp.gt.f32.partialorder %v1282_v46, 0.0  ;;  %v1619_v61 = vmul.f32 0.2, %v1282_v46  ;;  %v1295_v4 = vpop.f32.mrb[41].mxu1 }
 0x189   : > { %2387 = vst.msk [vmem:[%s3695_s15 + $0x190] sm:$0xf] %vm2286_vm3, %v2888_v56  ;;  %v2891_v0 = vpack.c.bf16 %v1749_v60, %v1749_v60  ;;  %v1683_v1 = vsel %vm1427_vm5, %v1026_v45, %v1555_v58  ;;  %vm1432_vm7 = vcmp.gt.f32.partialorder %v3032_v62, 0.0  ;;  %v1560_v2 = vmul.f32 0.2, %v3032_v62  ;;  %v3033_v8 = vpop.f32.mrb[42].mxu0 }
 0x18a   : > { %2326 = vst.msk [vmem:[%s3695_s15 + $0x9c] sm:$0xf] %vm2286_vm3, %v2827_v59  ;;  %v2825_v5 = vpack.c.bf16 %v1683_v1, %v1683_v1  ;;  %v1747_v6 = vsel %vm1491_vm6, %v1282_v46, %v1619_v61  ;;  %vm1496_vm8 = vcmp.gt.f32.partialorder %v3096_v63, 0.0  ;;  %v1624_v7 = vmul.f32 0.2, %v3096_v63  ;;  %v3097_v9 = vpop.f32.mrb[42].mxu1 }
 0x18b   : > { %2390 = vst.msk [vmem:[%s3695_s15 + $0x19c] sm:$0xf] %vm2286_vm3, %v2891_v0  ;;  %v2889_v10 = vpack.c.bf16 %v1747_v6, %v1747_v6  ;;  %v1688_v11 = vsel %vm1432_vm7, %v3032_v62, %v1560_v2  ;;  %vm1430_vm9 = vcmp.gt.f32.partialorder %v1039_v3, 0.0  ;;  %v1558_v12 = vmul.f32 0.2, %v1039_v3  ;;  %v1042_v13 = vpop.f32.mrb[43].mxu0 }
 0x18c   : > { %v1298_v14 = vpop.f32.mrb[43].mxu1  ;;  %2324 = vst.msk [vmem:[%s3695_s15 + $0x94] sm:$0xf] %vm2286_vm3, %v2825_v5  ;;  %v2830_v15 = vpack.c.bf16 %v1688_v11, %v1688_v11  ;;  %v1752_v16 = vsel %vm1496_vm8, %v3096_v63, %v1624_v7  ;;  %vm1494_vm10 = vcmp.gt.f32.partialorder %v1295_v4, 0.0  ;;  %v1622_v17 = vmul.f32 0.2, %v1295_v4 }
 0x18d   : > { %2388 = vst.msk [vmem:[%s3695_s15 + $0x194] sm:$0xf] %vm2286_vm3, %v2889_v10  ;;  %v2894_v18 = vpack.c.bf16 %v1752_v16, %v1752_v16  ;;  %v1686_v19 = vsel %vm1430_vm9, %v1039_v3, %v1558_v12  ;;  %vm1433_vm11 = vcmp.gt.f32.partialorder %v3033_v8, 0.0  ;;  %v1561_v20 = vmul.f32 0.2, %v3033_v8  ;;  %v3036_v30 = vpop.f32.mrb[44].mxu0 }
 0x18e   : > { %2329 = vst.msk [vmem:[%s3695_s15 + $0xa8] sm:$0xf] %vm2286_vm3, %v2830_v15  ;;  %v2828_v21 = vpack.c.bf16 %v1686_v19, %v1686_v19  ;;  %v1750_v22 = vsel %vm1494_vm10, %v1295_v4, %v1622_v17  ;;  %vm1497_vm12 = vcmp.gt.f32.partialorder %v3097_v9, 0.0  ;;  %v1625_v23 = vmul.f32 0.2, %v3097_v9  ;;  %v3100_v31 = vpop.f32.mrb[44].mxu1 }
 0x18f   : > { %2393 = vst.msk [vmem:[%s3695_s15 + $0x1a8] sm:$0xf] %vm2286_vm3, %v2894_v18  ;;  %v2892_v24 = vpack.c.bf16 %v1750_v22, %v1750_v22  ;;  %v1689_v25 = vsel %vm1433_vm11, %v3033_v8, %v1561_v20  ;;  %vm1431_vm13 = vcmp.gt.f32.partialorder %v1042_v13, 0.0  ;;  %v1559_v26 = vmul.f32 0.2, %v1042_v13  ;;  %v1055_v35 = vpop.f32.mrb[45].mxu0 }
 0x190   : > { %2327 = vst.msk [vmem:[%s3695_s15 + $0xa0] sm:$0xf] %vm2286_vm3, %v2828_v21  ;;  %v2831_v27 = vpack.c.bf16 %v1689_v25, %v1689_v25  ;;  %v1753_v28 = vsel %vm1497_vm12, %v3097_v9, %v1625_v23  ;;  %vm1495_vm14 = vcmp.gt.f32.partialorder %v1298_v14, 0.0  ;;  %v1623_v29 = vmul.f32 0.2, %v1298_v14  ;;  %v1311_v36 = vpop.f32.mrb[45].mxu1 }
 0x191   : > { %2391 = vst.msk [vmem:[%s3695_s15 + $0x1a0] sm:$0xf] %vm2286_vm3, %v2892_v24  ;;  %v2895_v32 = vpack.c.bf16 %v1753_v28, %v1753_v28  ;;  %v1687_v33 = vsel %vm1431_vm13, %v1042_v13, %v1559_v26  ;;  %vm1436_vm15 = vcmp.gt.f32.partialorder %v3036_v30, 0.0  ;;  %v1564_v34 = vmul.f32 0.2, %v3036_v30  ;;  %v3037_v40 = vpop.f32.mrb[46].mxu0 }
 0x192   : > { %2330 = vst.msk [vmem:[%s3695_s15 + $0xac] sm:$0xf] %vm2286_vm3, %v2831_v27  ;;  %v2829_v37 = vpack.c.bf16 %v1687_v33, %v1687_v33  ;;  %v1751_v38 = vsel %vm1495_vm14, %v1298_v14, %v1623_v29  ;;  %vm1500_vm0 = vcmp.gt.f32.partialorder %v3100_v31, 0.0  ;;  %v1628_v39 = vmul.f32 0.2, %v3100_v31  ;;  %v3101_v41 = vpop.f32.mrb[46].mxu1 }
 0x193   : > { %2394 = vst.msk [vmem:[%s3695_s15 + $0x1ac] sm:$0xf] %vm2286_vm3, %v2895_v32  ;;  %v2893_v42 = vpack.c.bf16 %v1751_v38, %v1751_v38  ;;  %v1692_v43 = vsel %vm1436_vm15, %v3036_v30, %v1564_v34  ;;  %vm1434_vm1 = vcmp.gt.f32.partialorder %v1055_v35, 0.0  ;;  %v1562_v44 = vmul.f32 0.2, %v1055_v35  ;;  %v1058_v45 = vpop.f32.mrb[47].mxu0 }
 0x194   : > { %v1314_v46 = vpop.f32.mrb[47].mxu1  ;;  %2328 = vst.msk [vmem:[%s3695_s15 + $0xa4] sm:$0xf] %vm2286_vm3, %v2829_v37  ;;  %v2834_v47 = vpack.c.bf16 %v1692_v43, %v1692_v43  ;;  %v1756_v48 = vsel %vm1500_vm0, %v3100_v31, %v1628_v39  ;;  %vm1498_vm2 = vcmp.gt.f32.partialorder %v1311_v36, 0.0  ;;  %v1626_v49 = vmul.f32 0.2, %v1311_v36 }
 0x195   : > { %2392 = vst.msk [vmem:[%s3695_s15 + $0x1a4] sm:$0xf] %vm2286_vm3, %v2893_v42  ;;  %v2898_v50 = vpack.c.bf16 %v1756_v48, %v1756_v48  ;;  %v1690_v51 = vsel %vm1434_vm1, %v1055_v35, %v1562_v44  ;;  %vm1437_vm4 = vcmp.gt.f32.partialorder %v3037_v40, 0.0  ;;  %v1565_v52 = vmul.f32 0.2, %v3037_v40  ;;  %v3040_v62 = vpop.f32.mrb[48].mxu0 }
 0x196   : > { %2333 = vst.msk [vmem:[%s3695_s15 + $0xb8] sm:$0xf] %vm2286_vm3, %v2834_v47  ;;  %v2832_v53 = vpack.c.bf16 %v1690_v51, %v1690_v51  ;;  %v1754_v54 = vsel %vm1498_vm2, %v1311_v36, %v1626_v49  ;;  %vm1501_vm5 = vcmp.gt.f32.partialorder %v3101_v41, 0.0  ;;  %v1629_v55 = vmul.f32 0.2, %v3101_v41  ;;  %v3104_v63 = vpop.f32.mrb[48].mxu1 }
 0x197   : > { %2397 = vst.msk [vmem:[%s3695_s15 + $0x1b8] sm:$0xf] %vm2286_vm3, %v2898_v50  ;;  %v2896_v56 = vpack.c.bf16 %v1754_v54, %v1754_v54  ;;  %v1693_v57 = vsel %vm1437_vm4, %v3037_v40, %v1565_v52  ;;  %vm1435_vm6 = vcmp.gt.f32.partialorder %v1058_v45, 0.0  ;;  %v1563_v58 = vmul.f32 0.2, %v1058_v45  ;;  %v1071_v3 = vpop.f32.mrb[49].mxu0 }
 0x198   : > { %2331 = vst.msk [vmem:[%s3695_s15 + $0xb0] sm:$0xf] %vm2286_vm3, %v2832_v53  ;;  %v2835_v59 = vpack.c.bf16 %v1693_v57, %v1693_v57  ;;  %v1757_v60 = vsel %vm1501_vm5, %v3101_v41, %v1629_v55  ;;  %vm1499_vm7 = vcmp.gt.f32.partialorder %v1314_v46, 0.0  ;;  %v1627_v61 = vmul.f32 0.2, %v1314_v46  ;;  %v1327_v4 = vpop.f32.mrb[49].mxu1 }
 0x199   : > { %2395 = vst.msk [vmem:[%s3695_s15 + $0x1b0] sm:$0xf] %vm2286_vm3, %v2896_v56  ;;  %v2899_v0 = vpack.c.bf16 %v1757_v60, %v1757_v60  ;;  %v1691_v1 = vsel %vm1435_vm6, %v1058_v45, %v1563_v58  ;;  %vm1440_vm8 = vcmp.gt.f32.partialorder %v3040_v62, 0.0  ;;  %v1568_v2 = vmul.f32 0.2, %v3040_v62  ;;  %v3041_v8 = vpop.f32.mrb[50].mxu0 }
 0x19a   : > { %2334 = vst.msk [vmem:[%s3695_s15 + $0xbc] sm:$0xf] %vm2286_vm3, %v2835_v59  ;;  %v2833_v5 = vpack.c.bf16 %v1691_v1, %v1691_v1  ;;  %v1755_v6 = vsel %vm1499_vm7, %v1314_v46, %v1627_v61  ;;  %vm1504_vm9 = vcmp.gt.f32.partialorder %v3104_v63, 0.0  ;;  %v1632_v7 = vmul.f32 0.2, %v3104_v63  ;;  %v3105_v9 = vpop.f32.mrb[50].mxu1 }
 0x19b   : > { %2398 = vst.msk [vmem:[%s3695_s15 + $0x1bc] sm:$0xf] %vm2286_vm3, %v2899_v0  ;;  %v2897_v10 = vpack.c.bf16 %v1755_v6, %v1755_v6  ;;  %v1696_v11 = vsel %vm1440_vm8, %v3040_v62, %v1568_v2  ;;  %vm1438_vm10 = vcmp.gt.f32.partialorder %v1071_v3, 0.0  ;;  %v1566_v12 = vmul.f32 0.2, %v1071_v3  ;;  %v1074_v13 = vpop.f32.mrb[51].mxu0 }
 0x19c   : > { %v1330_v14 = vpop.f32.mrb[51].mxu1  ;;  %2332 = vst.msk [vmem:[%s3695_s15 + $0xb4] sm:$0xf] %vm2286_vm3, %v2833_v5  ;;  %v2838_v15 = vpack.c.bf16 %v1696_v11, %v1696_v11  ;;  %v1760_v16 = vsel %vm1504_vm9, %v3104_v63, %v1632_v7  ;;  %vm1502_vm11 = vcmp.gt.f32.partialorder %v1327_v4, 0.0  ;;  %v1630_v17 = vmul.f32 0.2, %v1327_v4 }
 0x19d   : > { %2396 = vst.msk [vmem:[%s3695_s15 + $0x1b4] sm:$0xf] %vm2286_vm3, %v2897_v10  ;;  %v2902_v18 = vpack.c.bf16 %v1760_v16, %v1760_v16  ;;  %v1694_v19 = vsel %vm1438_vm10, %v1071_v3, %v1566_v12  ;;  %vm1441_vm12 = vcmp.gt.f32.partialorder %v3041_v8, 0.0  ;;  %v1569_v20 = vmul.f32 0.2, %v3041_v8  ;;  %v3044_v30 = vpop.f32.mrb[52].mxu0 }
 0x19e   : > { %2337 = vst.msk [vmem:[%s3695_s15 + $0xc8] sm:$0xf] %vm2286_vm3, %v2838_v15  ;;  %v2836_v21 = vpack.c.bf16 %v1694_v19, %v1694_v19  ;;  %v1758_v22 = vsel %vm1502_vm11, %v1327_v4, %v1630_v17  ;;  %vm1505_vm13 = vcmp.gt.f32.partialorder %v3105_v9, 0.0  ;;  %v1633_v23 = vmul.f32 0.2, %v3105_v9  ;;  %v3108_v31 = vpop.f32.mrb[52].mxu1 }
 0x19f   : > { %2401 = vst.msk [vmem:[%s3695_s15 + $0x1c8] sm:$0xf] %vm2286_vm3, %v2902_v18  ;;  %v2900_v24 = vpack.c.bf16 %v1758_v22, %v1758_v22  ;;  %v1697_v25 = vsel %vm1441_vm12, %v3041_v8, %v1569_v20  ;;  %vm1439_vm14 = vcmp.gt.f32.partialorder %v1074_v13, 0.0  ;;  %v1567_v26 = vmul.f32 0.2, %v1074_v13  ;;  %v1087_v35 = vpop.f32.mrb[53].mxu0 }
 0x1a0   : > { %2335 = vst.msk [vmem:[%s3695_s15 + $0xc0] sm:$0xf] %vm2286_vm3, %v2836_v21  ;;  %v2839_v27 = vpack.c.bf16 %v1697_v25, %v1697_v25  ;;  %v1761_v28 = vsel %vm1505_vm13, %v3105_v9, %v1633_v23  ;;  %vm1503_vm15 = vcmp.gt.f32.partialorder %v1330_v14, 0.0  ;;  %v1631_v29 = vmul.f32 0.2, %v1330_v14  ;;  %v1343_v36 = vpop.f32.mrb[53].mxu1 }
 0x1a1   : > { %2399 = vst.msk [vmem:[%s3695_s15 + $0x1c0] sm:$0xf] %vm2286_vm3, %v2900_v24  ;;  %v2903_v32 = vpack.c.bf16 %v1761_v28, %v1761_v28  ;;  %v1695_v33 = vsel %vm1439_vm14, %v1074_v13, %v1567_v26  ;;  %vm1444_vm0 = vcmp.gt.f32.partialorder %v3044_v30, 0.0  ;;  %v1572_v34 = vmul.f32 0.2, %v3044_v30  ;;  %v3045_v40 = vpop.f32.mrb[54].mxu0 }
 0x1a2   : > { %2338 = vst.msk [vmem:[%s3695_s15 + $0xcc] sm:$0xf] %vm2286_vm3, %v2839_v27  ;;  %v2837_v37 = vpack.c.bf16 %v1695_v33, %v1695_v33  ;;  %v1759_v38 = vsel %vm1503_vm15, %v1330_v14, %v1631_v29  ;;  %vm1508_vm1 = vcmp.gt.f32.partialorder %v3108_v31, 0.0  ;;  %v1636_v39 = vmul.f32 0.2, %v3108_v31  ;;  %v3109_v41 = vpop.f32.mrb[54].mxu1 }
 0x1a3   : > { %2402 = vst.msk [vmem:[%s3695_s15 + $0x1cc] sm:$0xf] %vm2286_vm3, %v2903_v32  ;;  %v2901_v42 = vpack.c.bf16 %v1759_v38, %v1759_v38  ;;  %v1700_v43 = vsel %vm1444_vm0, %v3044_v30, %v1572_v34  ;;  %vm1442_vm2 = vcmp.gt.f32.partialorder %v1087_v35, 0.0  ;;  %v1570_v44 = vmul.f32 0.2, %v1087_v35  ;;  %v1090_v45 = vpop.f32.mrb[55].mxu0 }
 0x1a4   : > { %v1346_v46 = vpop.f32.mrb[55].mxu1  ;;  %2336 = vst.msk [vmem:[%s3695_s15 + $0xc4] sm:$0xf] %vm2286_vm3, %v2837_v37  ;;  %v2842_v47 = vpack.c.bf16 %v1700_v43, %v1700_v43  ;;  %v1764_v48 = vsel %vm1508_vm1, %v3108_v31, %v1636_v39  ;;  %vm1506_vm4 = vcmp.gt.f32.partialorder %v1343_v36, 0.0  ;;  %v1634_v49 = vmul.f32 0.2, %v1343_v36 }
 0x1a5   : > { %2400 = vst.msk [vmem:[%s3695_s15 + $0x1c4] sm:$0xf] %vm2286_vm3, %v2901_v42  ;;  %v2906_v50 = vpack.c.bf16 %v1764_v48, %v1764_v48  ;;  %v1698_v51 = vsel %vm1442_vm2, %v1087_v35, %v1570_v44  ;;  %vm1445_vm5 = vcmp.gt.f32.partialorder %v3045_v40, 0.0  ;;  %v1573_v52 = vmul.f32 0.2, %v3045_v40  ;;  %v3048_v62 = vpop.f32.mrb[56].mxu0 }
 0x1a6   : > { %2341 = vst.msk [vmem:[%s3695_s15 + $0xd8] sm:$0xf] %vm2286_vm3, %v2842_v47  ;;  %v2840_v53 = vpack.c.bf16 %v1698_v51, %v1698_v51  ;;  %v1762_v54 = vsel %vm1506_vm4, %v1343_v36, %v1634_v49  ;;  %vm1509_vm6 = vcmp.gt.f32.partialorder %v3109_v41, 0.0  ;;  %v1637_v55 = vmul.f32 0.2, %v3109_v41  ;;  %v3112_v63 = vpop.f32.mrb[56].mxu1 }
 0x1a7   : > { %2405 = vst.msk [vmem:[%s3695_s15 + $0x1d8] sm:$0xf] %vm2286_vm3, %v2906_v50  ;;  %v2904_v56 = vpack.c.bf16 %v1762_v54, %v1762_v54  ;;  %v1701_v57 = vsel %vm1445_vm5, %v3045_v40, %v1573_v52  ;;  %vm1443_vm7 = vcmp.gt.f32.partialorder %v1090_v45, 0.0  ;;  %v1571_v58 = vmul.f32 0.2, %v1090_v45  ;;  %v1103_v3 = vpop.f32.mrb[57].mxu0 }
 0x1a8   : > { %2339 = vst.msk [vmem:[%s3695_s15 + $0xd0] sm:$0xf] %vm2286_vm3, %v2840_v53  ;;  %v2843_v59 = vpack.c.bf16 %v1701_v57, %v1701_v57  ;;  %v1765_v60 = vsel %vm1509_vm6, %v3109_v41, %v1637_v55  ;;  %vm1507_vm8 = vcmp.gt.f32.partialorder %v1346_v46, 0.0  ;;  %v1635_v61 = vmul.f32 0.2, %v1346_v46  ;;  %v1359_v4 = vpop.f32.mrb[57].mxu1 }
 0x1a9   : > { %2403 = vst.msk [vmem:[%s3695_s15 + $0x1d0] sm:$0xf] %vm2286_vm3, %v2904_v56  ;;  %v2907_v0 = vpack.c.bf16 %v1765_v60, %v1765_v60  ;;  %v1699_v1 = vsel %vm1443_vm7, %v1090_v45, %v1571_v58  ;;  %vm1448_vm9 = vcmp.gt.f32.partialorder %v3048_v62, 0.0  ;;  %v1576_v2 = vmul.f32 0.2, %v3048_v62  ;;  %v3049_v8 = vpop.f32.mrb[58].mxu0 }
 0x1aa   : > { %2342 = vst.msk [vmem:[%s3695_s15 + $0xdc] sm:$0xf] %vm2286_vm3, %v2843_v59  ;;  %v2841_v5 = vpack.c.bf16 %v1699_v1, %v1699_v1  ;;  %v1763_v6 = vsel %vm1507_vm8, %v1346_v46, %v1635_v61  ;;  %vm1512_vm10 = vcmp.gt.f32.partialorder %v3112_v63, 0.0  ;;  %v1640_v7 = vmul.f32 0.2, %v3112_v63  ;;  %v3113_v9 = vpop.f32.mrb[58].mxu1 }
 0x1ab   : > { %2406 = vst.msk [vmem:[%s3695_s15 + $0x1dc] sm:$0xf] %vm2286_vm3, %v2907_v0  ;;  %v2905_v10 = vpack.c.bf16 %v1763_v6, %v1763_v6  ;;  %v1704_v11 = vsel %vm1448_vm9, %v3048_v62, %v1576_v2  ;;  %vm1446_vm11 = vcmp.gt.f32.partialorder %v1103_v3, 0.0  ;;  %v1574_v12 = vmul.f32 0.2, %v1103_v3  ;;  %v1106_v13 = vpop.f32.mrb[59].mxu0 }
 0x1ac   : > { %v1362_v14 = vpop.f32.mrb[59].mxu1  ;;  %2340 = vst.msk [vmem:[%s3695_s15 + $0xd4] sm:$0xf] %vm2286_vm3, %v2841_v5  ;;  %v2846_v15 = vpack.c.bf16 %v1704_v11, %v1704_v11  ;;  %v1768_v16 = vsel %vm1512_vm10, %v3112_v63, %v1640_v7  ;;  %vm1510_vm12 = vcmp.gt.f32.partialorder %v1359_v4, 0.0  ;;  %v1638_v17 = vmul.f32 0.2, %v1359_v4 }
 0x1ad   : > { %2404 = vst.msk [vmem:[%s3695_s15 + $0x1d4] sm:$0xf] %vm2286_vm3, %v2905_v10  ;;  %v2910_v18 = vpack.c.bf16 %v1768_v16, %v1768_v16  ;;  %v1702_v19 = vsel %vm1446_vm11, %v1103_v3, %v1574_v12  ;;  %vm1449_vm13 = vcmp.gt.f32.partialorder %v3049_v8, 0.0  ;;  %v1577_v20 = vmul.f32 0.2, %v3049_v8  ;;  %v3052_v30 = vpop.f32.mrb[60].mxu0 }
 0x1ae   : > { %2345 = vst.msk [vmem:[%s3695_s15 + $0xe8] sm:$0xf] %vm2286_vm3, %v2846_v15  ;;  %v2844_v21 = vpack.c.bf16 %v1702_v19, %v1702_v19  ;;  %v1766_v22 = vsel %vm1510_vm12, %v1359_v4, %v1638_v17  ;;  %vm1513_vm14 = vcmp.gt.f32.partialorder %v3113_v9, 0.0  ;;  %v1641_v23 = vmul.f32 0.2, %v3113_v9  ;;  %v3116_v31 = vpop.f32.mrb[60].mxu1 }
 0x1af   : > { %2409 = vst.msk [vmem:[%s3695_s15 + $0x1e8] sm:$0xf] %vm2286_vm3, %v2910_v18  ;;  %v2908_v24 = vpack.c.bf16 %v1766_v22, %v1766_v22  ;;  %v1705_v25 = vsel %vm1449_vm13, %v3049_v8, %v1577_v20  ;;  %vm1447_vm15 = vcmp.gt.f32.partialorder %v1106_v13, 0.0  ;;  %v1575_v26 = vmul.f32 0.2, %v1106_v13  ;;  %v1119_v35 = vpop.f32.mrb[61].mxu0 }
 0x1b0   : > { %2343 = vst.msk [vmem:[%s3695_s15 + $0xe0] sm:$0xf] %vm2286_vm3, %v2844_v21  ;;  %v2847_v27 = vpack.c.bf16 %v1705_v25, %v1705_v25  ;;  %v1769_v28 = vsel %vm1513_vm14, %v3113_v9, %v1641_v23  ;;  %vm1511_vm0 = vcmp.gt.f32.partialorder %v1362_v14, 0.0  ;;  %v1639_v29 = vmul.f32 0.2, %v1362_v14  ;;  %v1375_v36 = vpop.f32.mrb[61].mxu1 }
 0x1b1   : > { %2407 = vst.msk [vmem:[%s3695_s15 + $0x1e0] sm:$0xf] %vm2286_vm3, %v2908_v24  ;;  %v2911_v32 = vpack.c.bf16 %v1769_v28, %v1769_v28  ;;  %v1703_v33 = vsel %vm1447_vm15, %v1106_v13, %v1575_v26  ;;  %vm1452_vm1 = vcmp.gt.f32.partialorder %v3052_v30, 0.0  ;;  %v1580_v34 = vmul.f32 0.2, %v3052_v30  ;;  %v3053_v40 = vpop.f32.mrb[62].mxu0 }
 0x1b2   : > { %2346 = vst.msk [vmem:[%s3695_s15 + $0xec] sm:$0xf] %vm2286_vm3, %v2847_v27  ;;  %v2845_v37 = vpack.c.bf16 %v1703_v33, %v1703_v33  ;;  %v1767_v38 = vsel %vm1511_vm0, %v1362_v14, %v1639_v29  ;;  %vm1516_vm2 = vcmp.gt.f32.partialorder %v3116_v31, 0.0  ;;  %v1644_v39 = vmul.f32 0.2, %v3116_v31  ;;  %v3117_v41 = vpop.f32.mrb[62].mxu1 }
 0x1b3   : > { %2410 = vst.msk [vmem:[%s3695_s15 + $0x1ec] sm:$0xf] %vm2286_vm3, %v2911_v32  ;;  %v2909_v42 = vpack.c.bf16 %v1767_v38, %v1767_v38  ;;  %v1708_v43 = vsel %vm1452_vm1, %v3052_v30, %v1580_v34  ;;  %vm1450_vm4 = vcmp.gt.f32.partialorder %v1119_v35, 0.0  ;;  %v1578_v44 = vmul.f32 0.2, %v1119_v35  ;;  %v1122_v45 = vpop.f32.mrb[63].mxu0 }
 0x1b4   : > { %v1378_v46 = vpop.f32.mrb[63].mxu1  ;;  %2344 = vst.msk [vmem:[%s3695_s15 + $0xe4] sm:$0xf] %vm2286_vm3, %v2845_v37  ;;  %v2850_v47 = vpack.c.bf16 %v1708_v43, %v1708_v43  ;;  %v1772_v48 = vsel %vm1516_vm2, %v3116_v31, %v1644_v39  ;;  %vm1514_vm5 = vcmp.gt.f32.partialorder %v1375_v36, 0.0  ;;  %v1642_v49 = vmul.f32 0.2, %v1375_v36 }
 0x1b5   : > { %2408 = vst.msk [vmem:[%s3695_s15 + $0x1e4] sm:$0xf] %vm2286_vm3, %v2909_v42  ;;  %v2914_v50 = vpack.c.bf16 %v1772_v48, %v1772_v48  ;;  %v1706_v51 = vsel %vm1450_vm4, %v1119_v35, %v1578_v44  ;;  %vm1453_vm6 = vcmp.gt.f32.partialorder %v3053_v40, 0.0  ;;  %v1581_v52 = vmul.f32 0.2, %v3053_v40 }
 0x1b6   : > { %2349 = vst.msk [vmem:[%s3695_s15 + $0xf8] sm:$0xf] %vm2286_vm3, %v2850_v47  ;;  %v2848_v53 = vpack.c.bf16 %v1706_v51, %v1706_v51  ;;  %v1770_v54 = vsel %vm1514_vm5, %v1375_v36, %v1642_v49  ;;  %vm1517_vm7 = vcmp.gt.f32.partialorder %v3117_v41, 0.0  ;;  %v1645_v55 = vmul.f32 0.2, %v3117_v41 }
 0x1b7   : > { %2413 = vst.msk [vmem:[%s3695_s15 + $0x1f8] sm:$0xf] %vm2286_vm3, %v2914_v50  ;;  %v2912_v56 = vpack.c.bf16 %v1770_v54, %v1770_v54  ;;  %v1709_v57 = vsel %vm1453_vm6, %v3053_v40, %v1581_v52  ;;  %vm1451_vm8 = vcmp.gt.f32.partialorder %v1122_v45, 0.0  ;;  %v1579_v58 = vmul.f32 0.2, %v1122_v45 }
 0x1b8   : > { %2347 = vst.msk [vmem:[%s3695_s15 + $0xf0] sm:$0xf] %vm2286_vm3, %v2848_v53  ;;  %v2851_v59 = vpack.c.bf16 %v1709_v57, %v1709_v57  ;;  %v1773_v60 = vsel %vm1517_vm7, %v3117_v41, %v1645_v55  ;;  %vm1515_vm9 = vcmp.gt.f32.partialorder %v1378_v46, 0.0  ;;  %v1643_v61 = vmul.f32 0.2, %v1378_v46 }
 0x1b9   : > { %2411 = vst.msk [vmem:[%s3695_s15 + $0x1f0] sm:$0xf] %vm2286_vm3, %v2912_v56  ;;  %v2915_v62 = vpack.c.bf16 %v1773_v60, %v1773_v60  ;;  %v1707_v63 = vsel %vm1451_vm8, %v1122_v45, %v1579_v58 }
 0x1ba   : > { %2350 = vst.msk [vmem:[%s3695_s15 + $0xfc] sm:$0xf] %vm2286_vm3, %v2851_v59  ;;  %v2849_v0 = vpack.c.bf16 %v1707_v63, %v1707_v63  ;;  %v1771_v1 = vsel %vm1515_vm9, %v1378_v46, %v1643_v61 }
 0x1bb   : > { %2414 = vst.msk [vmem:[%s3695_s15 + $0x1fc] sm:$0xf] %vm2286_vm3, %v2915_v62  ;;  %v2913_v2 = vpack.c.bf16 %v1771_v1, %v1771_v1 }
 0x1bc   : > { %2348 = vst.msk [vmem:[%s3695_s15 + $0xf4] sm:$0xf] %vm2286_vm3, %v2849_v0 }
 0x1bd   : > { %2412 = vst.msk [vmem:[%s3695_s15 + $0x1f4] sm:$0xf] %vm2286_vm3, %v2913_v2 }
 0x1be   : > { %3323 = shalt.err (!%p3320_p7)
}
 0x1bf   : > { %s3324_s20 = scalar_lea.hbm %s3953_s27, 8192  ;;  %s3328_s25 = scalar_lea.hbm %s4007_s2, 16384 }
 0x1c0   : > { %p3325_p9 = scmp.ne.s32.totalorder %s3953_s27, %s3324_s20  ;;  %p3329_p5 = scmp.lt.u32.totalorder %s3953_s27, %s4007_s2 }
 0x1c1   : > { %p3330_p11 = scmp.lt.u32.totalorder %s3328_s25, %s3324_s20  ;;  %p3332_p4 = scmp.lt.u32.totalorder %s3324_s20, %s3953_s27 }
 0x1c2   : > { %p3326_p1 = pnand %p3325_p9, %p3498_p12 }
 0x1c3   : > { %p3331_p2 = por %p3330_p11, %p3329_p5 }
 0x1c4   : > { %p3327_p0 = pneg %p3326_p1 }
 0x1c5   : > { %p3333_p6 = por %p3332_p4, %p3331_p2 }
 0x1c7   : > { %p3334_p8 = pnand %p3333_p6, %p3327_p0 }
 0x1c9   : > { %3337 = shalt.err (!%p3334_p8)
}
 0x1ca   : > { %s3387_s30 = smov 64   ;;  %s3388_s23 = smov 4  }
 0x1cb   : > { %3130 = dma.vmem_to_hbm [thread:$0]  (%p3498_p12), %s3957_s4, 8192, %s3953_s27, %s2416_s22, %s3387_s30, %s3387_s30, %s3388_s23  }
 0x1cc PF: > { %s2444_s15 = sand.u32 1, %s3368_s9   ;;  %p4022_p10 = scmp.ne.s32.totalorder %s4012_s16, 0 }
 0x1cd   : > { %p4023_p13 = scmp.ge.s32.totalorder %s3380_s12, 2  ;;  %s2445_s17 = scalar_lea.sflag [#allocation4], %s2444_s15 }
 0x1cf   : > { %p3141_p3 = pnand %p4023_p13, %p4022_p10 }
 0x1d1   : > { %3363 = dma.done.wait (!%p3141_p3), %s2445_s17, 8192  }
 0x1d2   : > { %3365 = vsyncadd (!%p3141_p3), %s2445_s17, 4294959104  ;;  %p16_p7 = scmp.ge.s32.totalorder %s3460_s21, 4   ;;  %s4024_s9 = smov %s3372_s10 }
 0x1d3   : > { %s4025_s10 = smov %s3376_s11  ;;  %s4026_s11 = smov %s3494_s8 }
 0x1d4   : > { %s4027_s12 = smov %s3460_s21  ;;  %18 = sbr.rel (!%p16_p7) target bundleno = 6 (0x6), region = 77 }
 0x1db   :  { %2450 = vsyncpa [#allocation3], 1 }
 0x1dc   :  { %2452 = vsyncpa [#allocation3 + $0x1], 1 }
 0x1dd   :  { %2453 = vsyncpa [#allocation6], 1 }
 0x1de   :  { %2454 = vsyncpa [#allocation4], 1 }
 0x1df   :  { %2456 = vsyncpa [#allocation4 + $0x1], 1 }

// kernel: discriminator_forward.10
= control target key start
LH: loop header
LB: loop body
LE: loop exit
PB: predicated region body
PF: predicated region fallthrough
CT: control target
= control target key end

     0   :  { %8 = vsyncpa [#allocation3], 0  ;;  %s1677_s0 = inlined_call_operand.hbm [shape: bf16[512,128], index: 0, kind: input, shape index: {}]   ;;  %s1678_s1 = inlined_call_operand.hbm [shape: f32[1,128], index: 1, kind: input, shape index: {}]   ;;  %s1679_s2 = inlined_call_operand.hbm [shape: f32[1,128], index: 2, kind: input, shape index: {}]   ;;  %s1680_s3 = inlined_call_operand.hbm [shape: bf16[512,128], index: 3, kind: output, shape index: {}]  }
   0x1   :  { %10 = vsyncpa [#allocation3 + $0x1], 0 }
   0x2   :  { %11 = vsyncpa [#allocation6], 0 }
   0x3   :  { %12 = vsyncpa [#allocation4], 0 }
   0x4   :  { %14 = vsyncpa [#allocation4 + $0x1], 0  ;;  %s1318_s12 = smov 0   ;;  %s1320_s13 = smov 0  }
   0x5   :  { %s1322_s14 = smov 0   ;;  %s1324_s15 = smov 0  }
   0x6   :  { %s1326_s16 = smov 0   ;;  %s1328_s17 = smov 0  }
   0x7 LB: > { %s768_s18 = sadd.s32 4294967295, %s1288_s17   ;;  %s769_s19 = sadd.s32 4294967294, %s1288_s17   ;;  %s1288_s17 = sphi %s1328_s17, %s20_s17   ;;  %s1284_s16 = sphi %s1326_s16, %s1706_s16   ;;  %s1280_s15 = sphi %s1324_s15, %s1705_s15   ;;  %s1276_s14 = sphi %s1322_s14, %s1704_s14   ;;  %s1272_s13 = sphi %s1320_s13, %s1703_s13   ;;  %s1268_s12 = sphi %s1318_s12, %s1702_s12  }
   0x8   : > { %s41_s20 = sadd.s32 1, %s1276_s14  ;;  %p48_p0 = scmp.ne.s32.totalorder %s1276_s14, %s1272_s13 }
   0x9   : > { %p49_p1 = scmp.eq.s32.totalorder %s1288_s17, 0  ;;  %p54_p2 = scmp.ne.s32.totalorder %s1272_s13, %s1268_s12 }
   0xa   : > { %p1356_p3 = scmp.eq.s32.totalorder %s768_s18, 0  ;;  %p132_p4 = scmp.eq.s32.totalorder %s768_s18, 1 }
   0xb   : > { %p1360_p5 = por %p49_p1, %p48_p0  ;;  %p138_p6 = scmp.eq.s32.totalorder %s769_s19, 1 }
   0xc   : > { %s1687_s21 = scalar_select %p1356_p3, 1, 0 }
   0xd   : > { %p1366_p7 = por %p1356_p3, %p54_p2  ;;  %p1370_p8 = por %p132_p4, %p48_p0 }
   0xe   : > { %p1374_p9 = por %p138_p6, %p54_p2  ;;  %p770_p10 = scmp.ge.s32.totalorder %s1288_s17, 1 }
   0xf   : > { %s1689_s23 = scalar_select %p1366_p7, 1, 0 }
  0x10   : > { %s1690_s24 = scalar_select %p1370_p8, 1, 0 }
  0x11   : > { %s1691_s25 = scalar_select %p1374_p9, 1, 0 }
  0x12   : > { %p145_p11 = scmp.lt.s32.totalorder %s1288_s17, 3  ;;  %s1290_s27 = smov [#allocation5]  }
  0x13   : > { %s160_s28 = sshll.u32 %s1290_s27, 4  ;;  %p1058_p1 = scmp.lt.s32.totalorder %s1288_s17, 2  ;;  %s161_s28 = int_to_ptr.vmem [resolvable:$true] %s160_s28 }
  0x14   : > { %p1381_p13 = pnand %p770_p10, %p145_p11  ;;  %s1291_s30 = smov [#allocation7]  }
  0x15   : > { %p1390_p4 = pnand %p1058_p1, %p1360_p5  ;;  %s173_s4 = sshll.u32 %s1291_s30, 4  ;;  %s1400_s4 = int_to_ptr.vmem [resolvable:$true] %s173_s4 }
  0x16   : > { %s1692_s26 = scalar_select %p1381_p13, 1, 0 }
  0x17   : > { %p1041_p0 = pneg %p1381_p13  ;;  %s1116_s8 = scalar_lea.hbm %s1678_s1, 16 }
  0x18   : > { %s1693_s29 = scalar_select %p1390_p4, 1, 0 }
  0x19   : > { %p1396_p2 = pnand %p1041_p0, %p1356_p3  ;;  %p1117_p5 = scmp.ne.s32.totalorder %s1678_s1, %s1116_s8 }
  0x1a   : > { %p1123_p1 = scmp.lt.u32.totalorder %s1116_s8, %s1678_s1 }
  0x1b   : > { %p1118_p6 = pneg %p1396_p2 }
  0x1d   : > { %p1119_p10 = pnand %p1118_p6, %p1117_p5 }
  0x1f   : > { %p1120_p11 = pneg %p1119_p10 }
  0x21   : > { %p1125_p0 = pnand %p1123_p1, %p1120_p11 }
  0x23   : > { %1128 = shalt.err (!%p1125_p0)
}
  0x24   : > { %s1129_s19 = scalar_lea.vmem %s161_s28, 16  ;;  %s1136_s22 = scalar_lea.vmem %s161_s28, 32 }
  0x25   : > { %p1130_p12 = scmp.ne.s32.totalorder %s161_s28, %s1129_s19  ;;  %p1137_p3 = scmp.lt.s32.totalorder %s161_s28, %s161_s28 }
  0x26   : > { %p1138_p7 = scmp.lt.s32.totalorder %s1136_s22, %s1129_s19 }
  0x27   : > { %p1132_p9 = pnand %p1130_p12, %p1118_p6 }
  0x28   : > { %p1139_p13 = por %p1138_p7, %p1137_p3 }
  0x29   : > { %p1133_p8 = pneg %p1132_p9 }
  0x2b   : > { %p1140_p4 = pnand %p1139_p13, %p1133_p8 }
  0x2d   : > { %1143 = shalt.err (!%p1140_p4)
}
  0x2e   : > { %1044 = dma.hbm_to_vmem [thread:$0]  (!%p1396_p2), %s1678_s1, 16, %s161_s28, [#allocation6]  }
  0x2f   : > { %s1144_s8 = scalar_lea.hbm %s1679_s2, 16 }
  0x30   : > { %p1145_p9 = scmp.ne.s32.totalorder %s1679_s2, %s1144_s8  ;;  %p1151_p8 = scmp.lt.u32.totalorder %s1144_s8, %s1679_s2 }
  0x32   : > { %p1147_p3 = pnand %p1145_p9, %p1118_p6 }
  0x34   : > { %p1148_p7 = pneg %p1147_p3 }
  0x36   : > { %p1153_p12 = pnand %p1151_p8, %p1148_p7 }
  0x38   : > { %1156 = shalt.err (!%p1153_p12)
}
  0x39   : > { %s1157_s28 = scalar_lea.vmem %s1400_s4, 16  ;;  %s1164_s19 = scalar_lea.vmem %s1400_s4, 32 }
  0x3a   : > { %p1158_p13 = scmp.ne.s32.totalorder %s1400_s4, %s1157_s28  ;;  %p1165_p10 = scmp.lt.s32.totalorder %s1400_s4, %s1400_s4 }
  0x3b   : > { %p1166_p11 = scmp.lt.s32.totalorder %s1164_s19, %s1157_s28 }
  0x3c   : > { %p1160_p4 = pnand %p1158_p13, %p1118_p6 }
  0x3d   : > { %p1167_p1 = por %p1166_p11, %p1165_p10 }
  0x3e   : > { %p1161_p5 = pneg %p1160_p4 }
  0x40   : > { %p1168_p0 = pnand %p1167_p1, %p1161_p5 }
  0x42   : > { %1171 = shalt.err (!%p1168_p0)
}
  0x43   : > { %1047 = dma.hbm_to_vmem [thread:$0]  (!%p1396_p2), %s1679_s2, 16, %s1400_s4, [#allocation6]  }
  0x44   : > { %s32_s30 = sadd.s32 1, %s1284_s16  ;;  %s184_s6 = sand.u32 1, %s1276_s14  }
  0x45   : > { %p34_p6 = scmp.ge.s32.totalorder %s32_s30, 2  ;;  %s774_s7 = sshll.u32 %s184_s6, 7 }
  0x46   : > { %s821_s8 = sshll.u32 %s1284_s16, 11  ;;  %s188_s4 = scalar_lea.vmem [#allocation2], %s774_s7 }
  0x47   : > { %s1708_s30 = smov (%p34_p6, %s32_s30), 0  ;;  %s1458_s10 = scalar_lea.hbm %s1677_s0, %s821_s8 }
  0x48   : > { %s36_s11 = ssub.s32 %s1284_s16, %s1708_s30  ;;  %s196_s18 = sshll.u32 %s188_s4, 4  ;;  %s1462_s18 = int_to_ptr.vmem [resolvable:$true] %s196_s18 }
  0x49   : > { %p39_p2 = scmp.eq.s32.totalorder %s36_s11, 0  ;;  %s1469_s19 = scalar_lea.sflag [#allocation3], %s184_s6 }
  0x4a   : > { %s1172_s22 = scalar_lea.hbm %s1458_s10, 2048  ;;  %p1695_p3 = scmp.ne.s32.totalorder %s1693_s29, 0 }
  0x4b   : > { %s1467_s28 = scalar_select %p39_p2, %s1276_s14, %s41_s20  }
  0x4c   : > { %p1173_p9 = scmp.ne.s32.totalorder %s1458_s10, %s1172_s22  ;;  %p1174_p7 = pneg %p1695_p3 }
  0x4d   : > { %s1177_s7 = scalar_lea.hbm %s1677_s0, 4096  ;;  %p1178_p13 = scmp.lt.u32.totalorder %s1458_s10, %s1677_s0 }
  0x4e   : > { %p1175_p8 = pnand %p1174_p7, %p1173_p9  ;;  %p1179_p4 = scmp.lt.u32.totalorder %s1177_s7, %s1172_s22 }
  0x4f   : > { %p1181_p10 = scmp.lt.u32.totalorder %s1172_s22, %s1458_s10 }
  0x50   : > { %p1176_p12 = pneg %p1175_p8  ;;  %p1180_p5 = por %p1179_p4, %p1178_p13 }
  0x52   : > { %p1182_p11 = por %p1181_p10, %p1180_p5 }
  0x54   : > { %p1183_p1 = pnand %p1182_p11, %p1176_p12 }
  0x56   : > { %1186 = shalt.err (!%p1183_p1)
}
  0x57   : > { %s1187_s20 = scalar_lea.vmem %s1462_s18, 2048  ;;  %s1292_s6 = smov [#allocation2]  }
  0x58   : > { %p1188_p0 = scmp.ne.s32.totalorder %s1462_s18, %s1187_s20  ;;  %s1192_s11 = sshll.u32 %s1292_s6, 4  ;;  %s1193_s11 = int_to_ptr.vmem [resolvable:$false] %s1192_s11 }
  0x59   : > { %s1194_s4 = scalar_lea.vmem %s1193_s11, 4096  ;;  %p1195_p9 = scmp.lt.s32.totalorder %s1462_s18, %s1193_s11 }
  0x5a   : > { %p1190_p6 = pnand %p1188_p0, %p1174_p7  ;;  %p1196_p8 = scmp.lt.s32.totalorder %s1194_s4, %s1187_s20 }
  0x5c   : > { %p1191_p2 = pneg %p1190_p6  ;;  %p1197_p13 = por %p1196_p8, %p1195_p9 }
  0x5e   : > { %p1198_p4 = pnand %p1197_p13, %p1191_p2 }
  0x60   : > { %1201 = shalt.err (!%p1198_p4)
}
  0x61   : > { %s1293_s22 = smov 64   ;;  %s1294_s27 = smov 4  }
  0x62   : > { %1051 = dma.hbm_to_vmem [thread:$0]  (!%p1695_p3), %s1458_s10, 2048, %s1462_s18, %s1469_s19, %s1293_s22, %s1293_s22, %s1294_s27  }
  0x63   : > { %p1696_p7 = scmp.ne.s32.totalorder %s1692_s26, 0 }
  0x64   : > { %s1500_s8 = sand.u32 (!%p1696_p7), 1, %s1272_s13   ;;  %p1697_p12 = scmp.ne.s32.totalorder (!%p1696_p7), %s1689_s23, 0 }
  0x65   : > { %208 = sbr.rel (%p1696_p7) target bundleno = 184 (0xb8), region = 32  ;;  %s778_s7 = sshll.u32 (!%p1696_p7), %s1500_s8, 7 }
  0x66   : > { %s211_s5 = scalar_lea.sflag (!%p1696_p7), [#allocation3], %s1500_s8  ;;  %s1506_s9 = scalar_lea.vmem (!%p1696_p7), [#allocation2], %s778_s7 }
  0x6c   : > { %1255 = dma.done.wait (%p1697_p12), %s211_s5, 2048  }
  0x6d   : > { %1257 = vsyncadd (%p1697_p12), %s211_s5, 4294965248  ;;  %p1698_p3 = scmp.ne.s32.totalorder %s1687_s21, 0 }
  0x6f   : > { %1259 = dma.done.wait (%p1698_p3), [#allocation6], 32  }
  0x70   : > { %1261 = vsyncadd (%p1698_p3), [#allocation6], 4294967264  ;;  %v856_v0 = vld [vmem:[%s1506_s9] sm:$0xff]   ;;  %v999_v4 = vld [vmem:[%s1506_s9 + $0x8] sm:$0xff]   ;;  %s1544_s21 = scalar_lea.vmem [#allocation8], %s778_s7  ;;  %s854_s23 = sshll.u32 %s1280_s15, 11 }
  0x71   : > { %v1517_v1 = vld [vmem:[#allocation5] ss:$0 sm:$0xff]  ;;  %v857_v2 = vunpack.c.l.bf16 %v856_v0  ;;  %v858_v3 = vunpack.c.h.bf16 %v856_v0  ;;  %v1000_v5 = vld [vmem:[%s1506_s9 + $0x10] sm:$0xff]   ;;  %v1001_v6 = vld [vmem:[%s1506_s9 + $0x18] sm:$0xff]   ;;  %v861_v8 = vunpack.c.l.bf16 %v999_v4  ;;  %v862_v9 = vunpack.c.h.bf16 %v999_v4  ;;  %s660_s26 = sshll.u32 %s1544_s21, 4  ;;  %s1624_s18 = scalar_lea.hbm %s1680_s3, %s854_s23  ;;  %s1626_s26 = int_to_ptr.vmem [resolvable:$true] %s660_s26 }
  0x72   : > { %v1522_v7 = vld [vmem:[#allocation7] ss:$0 sm:$0xff]  ;;  %v865_v10 = vunpack.c.l.bf16 %v1000_v5  ;;  %v866_v11 = vunpack.c.h.bf16 %v1000_v5  ;;  %v869_v14 = vunpack.c.l.bf16 %v1001_v6  ;;  %v870_v15 = vunpack.c.h.bf16 %v1001_v6  ;;  %v1003_v35 = vld [vmem:[%s1506_s9 + $0x28] sm:$0xff]   ;;  %v1004_v48 = vld [vmem:[%s1506_s9 + $0x30] sm:$0xff]   ;;  %s646_s15 = scalar_lea.sflag [#allocation4], %s1500_s8  ;;  %s1202_s19 = scalar_lea.vmem %s1626_s26, 2048 }
  0x73   : > { %v318_v12 = vmul.f32 %v857_v2, %v1517_v1  ;;  %v319_v13 = vmul.f32 %v858_v3, %v1517_v1  ;;  %v320_v16 = vmul.f32 %v861_v8, %v1517_v1  ;;  %v321_v17 = vmul.f32 %v862_v9, %v1517_v1  ;;  %v1002_v34 = vld [vmem:[%s1506_s9 + $0x20] sm:$0xff]   ;;  %v1005_v4 = vld [vmem:[%s1506_s9 + $0x38] sm:$0xff]   ;;  %p1203_p5 = scmp.ne.s32.totalorder %s1626_s26, %s1202_s19  ;;  %p1699_p10 = scmp.ne.s32.totalorder %s1690_s24, 0 }
  0x74   : > { %v322_v18 = vmul.f32 %v865_v10, %v1517_v1  ;;  %v323_v19 = vmul.f32 %v866_v11, %v1517_v1  ;;  %v324_v22 = vmul.f32 %v869_v14, %v1517_v1  ;;  %v325_v23 = vmul.f32 %v870_v15, %v1517_v1  ;;  %v1006_v15 = vld [vmem:[%s1506_s9 + $0x40] sm:$0xff]   ;;  %s1295_s20 = smov [#allocation8]  }
  0x75   : > { %v357_v20 = vadd.f32 %v1522_v7, %v318_v12  ;;  %v358_v21 = vadd.f32 %v1522_v7, %v319_v13  ;;  %v359_v24 = vadd.f32 %v1522_v7, %v320_v16  ;;  %v360_v25 = vadd.f32 %v1522_v7, %v321_v17  ;;  %p1204_p11 = pnand %p1203_p5, %p1699_p10  ;;  %s1206_s6 = sshll.u32 %s1295_s20, 4  ;;  %s1207_s6 = int_to_ptr.vmem [resolvable:$false] %s1206_s6 }
  0x76   : > { %v361_v26 = vadd.f32 %v1522_v7, %v322_v18  ;;  %v362_v27 = vadd.f32 %v1522_v7, %v323_v19  ;;  %v363_v42 = vadd.f32 %v1522_v7, %v324_v22  ;;  %v364_v43 = vadd.f32 %v1522_v7, %v325_v23  ;;  %s1208_s11 = scalar_lea.vmem %s1207_s6, 4096  ;;  %p1209_p0 = scmp.lt.s32.totalorder %s1626_s26, %s1207_s6 }
  0x77   : > { %vm389_vm0 = vcmp.gt.f32.partialorder %v357_v20, 0.0  ;;  %vm390_vm1 = vcmp.gt.f32.partialorder %v358_v21, 0.0  ;;  %v421_v28 = vmul.f32 0.2, %v357_v20  ;;  %v422_v29 = vmul.f32 0.2, %v358_v21  ;;  %p1205_p1 = pneg %p1204_p11  ;;  %p1210_p6 = scmp.lt.s32.totalorder %s1208_s11, %s1202_s19 }
  0x78   : > { %vm391_vm2 = vcmp.gt.f32.partialorder %v359_v24, 0.0  ;;  %vm392_vm3 = vcmp.gt.f32.partialorder %v360_v25, 0.0  ;;  %v423_v30 = vmul.f32 0.2, %v359_v24  ;;  %v424_v31 = vmul.f32 0.2, %v360_v25 }
  0x79   : > { %v453_v32 = vsel %vm389_vm0, %v357_v20, %v421_v28  ;;  %v454_v33 = vsel %vm390_vm1, %v358_v21, %v422_v29  ;;  %vm393_vm4 = vcmp.gt.f32.partialorder %v361_v26, 0.0  ;;  %vm394_vm5 = vcmp.gt.f32.partialorder %v362_v27, 0.0  ;;  %p1211_p2 = por %p1210_p6, %p1209_p0 }
  0x7a   : > { %v922_v36 = vpack.c.bf16 %v454_v33, %v453_v32  ;;  %v455_v37 = vsel %vm391_vm2, %v359_v24, %v423_v30  ;;  %v456_v38 = vsel %vm392_vm3, %v360_v25, %v424_v31  ;;  %v425_v39 = vmul.f32 0.2, %v361_v26 }
  0x7b   : > { %v927_v40 = vpack.c.bf16 %v456_v38, %v455_v37  ;;  %v426_v41 = vmul.f32 0.2, %v362_v27  ;;  %v873_v45 = vunpack.c.l.bf16 %v1002_v34  ;;  %v874_v46 = vunpack.c.h.bf16 %v1002_v34  ;;  %p1212_p9 = pnand %p1211_p2, %p1205_p1 }
  0x7c   : > { %923 = vst [vmem:[%s1544_s21] sm:$0xff] %v922_v36   ;;  %v457_v44 = vsel %vm393_vm4, %v361_v26, %v425_v39  ;;  %v877_v47 = vunpack.c.l.bf16 %v1003_v35  ;;  %vm395_vm6 = vcmp.gt.f32.partialorder %v363_v42, 0.0  ;;  %vm396_vm7 = vcmp.gt.f32.partialorder %v364_v43, 0.0  ;;  %v1007_v26 = vld [vmem:[%s1506_s9 + $0x48] sm:$0xff]  }
  0x7d   : > { %1014 = vst [vmem:[%s1544_s21 + $0x8] sm:$0xff] %v927_v40   ;;  %v458_v49 = vsel %vm394_vm5, %v362_v27, %v426_v41  ;;  %v427_v50 = vmul.f32 0.2, %v363_v42  ;;  %v428_v52 = vmul.f32 0.2, %v364_v43  ;;  %v326_v53 = vmul.f32 %v873_v45, %v1517_v1  ;;  %v1008_v27 = vld [vmem:[%s1506_s9 + $0x50] sm:$0xff]  }
  0x7e   : > { %v932_v51 = vpack.c.bf16 %v458_v49, %v457_v44  ;;  %v327_v54 = vmul.f32 %v874_v46, %v1517_v1  ;;  %v878_v56 = vunpack.c.h.bf16 %v1003_v35  ;;  %v328_v57 = vmul.f32 %v877_v47, %v1517_v1 }
  0x7f   : > { %v459_v55 = vsel %vm395_vm6, %v363_v42, %v427_v50  ;;  %v881_v58 = vunpack.c.l.bf16 %v1004_v48  ;;  %v460_v59 = vsel %vm396_vm7, %v364_v43, %v428_v52  ;;  %v365_v60 = vadd.f32 %v1522_v7, %v326_v53 }
  0x80   : > { %1015 = vst [vmem:[%s1544_s21 + $0x10] sm:$0xff] %v932_v51   ;;  %v366_v61 = vadd.f32 %v1522_v7, %v327_v54  ;;  %v882_v62 = vunpack.c.h.bf16 %v1004_v48  ;;  %v937_v63 = vpack.c.bf16 %v460_v59, %v459_v55  ;;  %v329_v0 = vmul.f32 %v878_v56, %v1517_v1  ;;  %v1009_v55 = vld [vmem:[%s1506_s9 + $0x58] sm:$0xff]  }
  0x81   : > { %v367_v2 = vadd.f32 %v1522_v7, %v328_v57  ;;  %v330_v3 = vmul.f32 %v881_v58, %v1517_v1  ;;  %vm397_vm8 = vcmp.gt.f32.partialorder %v365_v60, 0.0  ;;  %v429_v5 = vmul.f32 0.2, %v365_v60 }
  0x82   : > { %vm398_vm9 = vcmp.gt.f32.partialorder %v366_v61, 0.0  ;;  %v430_v6 = vmul.f32 0.2, %v366_v61  ;;  %1016 = vst [vmem:[%s1544_s21 + $0x18] sm:$0xff] %v937_v63   ;;  %v368_v8 = vadd.f32 %v1522_v7, %v329_v0  ;;  %v331_v10 = vmul.f32 %v882_v62, %v1517_v1 }
  0x83   : > { %vm399_vm10 = vcmp.gt.f32.partialorder %v367_v2, 0.0  ;;  %v431_v9 = vmul.f32 0.2, %v367_v2  ;;  %v461_v11 = vsel %vm397_vm8, %v365_v60, %v429_v5  ;;  %v369_v13 = vadd.f32 %v1522_v7, %v330_v3  ;;  %v1010_v60 = vld [vmem:[%s1506_s9 + $0x60] sm:$0xff]  }
  0x84   : > { %v462_v12 = vsel %vm398_vm9, %v366_v61, %v430_v6  ;;  %v885_v14 = vunpack.c.l.bf16 %v1005_v4  ;;  %vm400_vm11 = vcmp.gt.f32.partialorder %v368_v8, 0.0  ;;  %v432_v17 = vmul.f32 0.2, %v368_v8 }
  0x85   : > { %v942_v16 = vpack.c.bf16 %v462_v12, %v461_v11  ;;  %v463_v18 = vsel %vm399_vm10, %v367_v2, %v431_v9  ;;  %v370_v19 = vadd.f32 %v1522_v7, %v331_v10  ;;  %vm401_vm12 = vcmp.gt.f32.partialorder %v369_v13, 0.0  ;;  %v1011_v9 = vld [vmem:[%s1506_s9 + $0x68] sm:$0xff]  }
  0x86   : > { %v433_v20 = vmul.f32 0.2, %v369_v13  ;;  %v886_v21 = vunpack.c.h.bf16 %v1005_v4  ;;  %v464_v22 = vsel %vm400_vm11, %v368_v8, %v432_v17  ;;  %v332_v23 = vmul.f32 %v885_v14, %v1517_v1 }
  0x87   : > { %1017 = vst [vmem:[%s1544_s21 + $0x20] sm:$0xff] %v942_v16   ;;  %v889_v24 = vunpack.c.l.bf16 %v1006_v15  ;;  %v890_v25 = vunpack.c.h.bf16 %v1006_v15  ;;  %v947_v28 = vpack.c.bf16 %v464_v22, %v463_v18  ;;  %vm402_vm13 = vcmp.gt.f32.partialorder %v370_v19, 0.0 }
  0x88   : > { %v434_v29 = vmul.f32 0.2, %v370_v19  ;;  %v465_v30 = vsel %vm401_vm12, %v369_v13, %v433_v20  ;;  %v333_v31 = vmul.f32 %v886_v21, %v1517_v1  ;;  %v371_v32 = vadd.f32 %v1522_v7, %v332_v23 }
  0x89   : > { %v334_v33 = vmul.f32 %v889_v24, %v1517_v1  ;;  %v335_v34 = vmul.f32 %v890_v25, %v1517_v1  ;;  %1018 = vst [vmem:[%s1544_s21 + $0x28] sm:$0xff] %v947_v28   ;;  %v893_v36 = vunpack.c.l.bf16 %v1007_v26  ;;  %v894_v37 = vunpack.c.h.bf16 %v1007_v26  ;;  %v1012_v28 = vld [vmem:[%s1506_s9 + $0x70] sm:$0xff]  }
  0x8a   : > { %v466_v35 = vsel %vm402_vm13, %v370_v19, %v434_v29  ;;  %v897_v38 = vunpack.c.l.bf16 %v1008_v27  ;;  %v372_v40 = vadd.f32 %v1522_v7, %v333_v31  ;;  %vm403_vm14 = vcmp.gt.f32.partialorder %v371_v32, 0.0 }
  0x8b   : > { %v952_v39 = vpack.c.bf16 %v466_v35, %v465_v30  ;;  %v435_v41 = vmul.f32 0.2, %v371_v32  ;;  %v373_v42 = vadd.f32 %v1522_v7, %v334_v33  ;;  %v374_v43 = vadd.f32 %v1522_v7, %v335_v34 }
  0x8c   : > { %v336_v44 = vmul.f32 %v893_v36, %v1517_v1  ;;  %v337_v45 = vmul.f32 %v894_v37, %v1517_v1  ;;  %vm404_vm15 = vcmp.gt.f32.partialorder %v372_v40, 0.0  ;;  %v436_v46 = vmul.f32 0.2, %v372_v40  ;;  %v1013_v37 = vld [vmem:[%s1506_s9 + $0x78] sm:$0xff]  }
  0x8d   : > { %1019 = vst [vmem:[%s1544_s21 + $0x30] sm:$0xff] %v952_v39   ;;  %v467_v47 = vsel %vm403_vm14, %v371_v32, %v435_v41  ;;  %v898_v48 = vunpack.c.h.bf16 %v1008_v27  ;;  %vm405_vm0 = vcmp.gt.f32.partialorder %v373_v42, 0.0  ;;  %vm406_vm1 = vcmp.gt.f32.partialorder %v374_v43, 0.0 }
  0x8e   : > { %v437_v49 = vmul.f32 0.2, %v373_v42  ;;  %v438_v50 = vmul.f32 0.2, %v374_v43  ;;  %v468_v51 = vsel %vm404_vm15, %v372_v40, %v436_v46  ;;  %v375_v52 = vadd.f32 %v1522_v7, %v336_v44 }
  0x8f   : > { %v376_v53 = vadd.f32 %v1522_v7, %v337_v45  ;;  %v338_v54 = vmul.f32 %v897_v38, %v1517_v1  ;;  %v957_v56 = vpack.c.bf16 %v468_v51, %v467_v47  ;;  %v339_v59 = vmul.f32 %v898_v48, %v1517_v1 }
  0x90   : > { %v469_v57 = vsel %vm405_vm0, %v373_v42, %v437_v49  ;;  %v470_v58 = vsel %vm406_vm1, %v374_v43, %v438_v50  ;;  %vm407_vm2 = vcmp.gt.f32.partialorder %v375_v52, 0.0  ;;  %v439_v62 = vmul.f32 0.2, %v375_v52 }
  0x91   : > { %v962_v61 = vpack.c.bf16 %v470_v58, %v469_v57  ;;  %vm408_vm3 = vcmp.gt.f32.partialorder %v376_v53, 0.0  ;;  %1020 = vst [vmem:[%s1544_s21 + $0x38] sm:$0xff] %v957_v56   ;;  %v440_v63 = vmul.f32 0.2, %v376_v53  ;;  %v377_v0 = vadd.f32 %v1522_v7, %v338_v54 }
  0x92   : > { %v378_v2 = vadd.f32 %v1522_v7, %v339_v59  ;;  %v901_v3 = vunpack.c.l.bf16 %v1009_v55  ;;  %v471_v4 = vsel %vm407_vm2, %v375_v52, %v439_v62  ;;  %v902_v5 = vunpack.c.h.bf16 %v1009_v55 }
  0x93   : > { %1021 = vst [vmem:[%s1544_s21 + $0x40] sm:$0xff] %v962_v61   ;;  %v905_v6 = vunpack.c.l.bf16 %v1010_v60  ;;  %v906_v8 = vunpack.c.h.bf16 %v1010_v60  ;;  %v472_v10 = vsel %vm408_vm3, %v376_v53, %v440_v63  ;;  %vm409_vm4 = vcmp.gt.f32.partialorder %v377_v0, 0.0 }
  0x94   : > { %vm410_vm5 = vcmp.gt.f32.partialorder %v378_v2, 0.0  ;;  %v441_v11 = vmul.f32 0.2, %v377_v0  ;;  %v967_v12 = vpack.c.bf16 %v472_v10, %v471_v4  ;;  %v442_v13 = vmul.f32 0.2, %v378_v2 }
  0x95   : > { %v340_v14 = vmul.f32 %v901_v3, %v1517_v1  ;;  %v341_v15 = vmul.f32 %v902_v5, %v1517_v1  ;;  %v342_v17 = vmul.f32 %v905_v6, %v1517_v1  ;;  %v343_v18 = vmul.f32 %v906_v8, %v1517_v1 }
  0x96   : > { %v473_v16 = vsel %vm409_vm4, %v377_v0, %v441_v11  ;;  %v909_v19 = vunpack.c.l.bf16 %v1011_v9  ;;  %1022 = vst [vmem:[%s1544_s21 + $0x48] sm:$0xff] %v967_v12   ;;  %v474_v20 = vsel %vm410_vm5, %v378_v2, %v442_v13  ;;  %v910_v23 = vunpack.c.h.bf16 %v1011_v9 }
  0x97   : > { %v379_v21 = vadd.f32 %v1522_v7, %v340_v14  ;;  %v380_v22 = vadd.f32 %v1522_v7, %v341_v15  ;;  %v972_v24 = vpack.c.bf16 %v474_v20, %v473_v16  ;;  %v381_v25 = vadd.f32 %v1522_v7, %v342_v17 }
  0x98   : > { %v382_v26 = vadd.f32 %v1522_v7, %v343_v18  ;;  %v344_v27 = vmul.f32 %v909_v19, %v1517_v1  ;;  %v345_v35 = vmul.f32 %v910_v23, %v1517_v1  ;;  %v913_v41 = vunpack.c.l.bf16 %v1012_v28 }
  0x99   : > { %vm411_vm6 = vcmp.gt.f32.partialorder %v379_v21, 0.0  ;;  %vm412_vm7 = vcmp.gt.f32.partialorder %v380_v22, 0.0  ;;  %v443_v29 = vmul.f32 0.2, %v379_v21  ;;  %v444_v30 = vmul.f32 0.2, %v380_v22 }
  0x9a   : > { %1023 = vst [vmem:[%s1544_s21 + $0x50] sm:$0xff] %v972_v24   ;;  %vm413_vm8 = vcmp.gt.f32.partialorder %v381_v25, 0.0  ;;  %vm414_vm9 = vcmp.gt.f32.partialorder %v382_v26, 0.0  ;;  %v445_v31 = vmul.f32 0.2, %v381_v25  ;;  %v383_v36 = vadd.f32 %v1522_v7, %v344_v27 }
  0x9b   : > { %v446_v32 = vmul.f32 0.2, %v382_v26  ;;  %v475_v33 = vsel %vm411_vm6, %v379_v21, %v443_v29  ;;  %v476_v34 = vsel %vm412_vm7, %v380_v22, %v444_v30  ;;  %v384_v43 = vadd.f32 %v1522_v7, %v345_v35 }
  0x9c   : > { %v977_v38 = vpack.c.bf16 %v476_v34, %v475_v33  ;;  %v477_v39 = vsel %vm413_vm8, %v381_v25, %v445_v31  ;;  %vm415_vm10 = vcmp.gt.f32.partialorder %v383_v36, 0.0  ;;  %v447_v44 = vmul.f32 0.2, %v383_v36 }
  0x9d   : > { %v478_v40 = vsel %vm414_vm9, %v382_v26, %v446_v32  ;;  %v914_v45 = vunpack.c.h.bf16 %v1012_v28  ;;  %v346_v46 = vmul.f32 %v913_v41, %v1517_v1  ;;  %v917_v47 = vunpack.c.l.bf16 %v1013_v37 }
  0x9e   : > { %v982_v42 = vpack.c.bf16 %v478_v40, %v477_v39  ;;  %1024 = vst [vmem:[%s1544_s21 + $0x58] sm:$0xff] %v977_v38   ;;  %v918_v48 = vunpack.c.h.bf16 %v1013_v37  ;;  %vm416_vm11 = vcmp.gt.f32.partialorder %v384_v43, 0.0  ;;  %v448_v49 = vmul.f32 0.2, %v384_v43 }
  0x9f   : > { %v479_v50 = vsel %vm415_vm10, %v383_v36, %v447_v44  ;;  %v347_v51 = vmul.f32 %v914_v45, %v1517_v1  ;;  %v385_v52 = vadd.f32 %v1522_v7, %v346_v46  ;;  %v348_v53 = vmul.f32 %v917_v47, %v1517_v1 }
  0xa0   : > { %1025 = vst [vmem:[%s1544_s21 + $0x60] sm:$0xff] %v982_v42   ;;  %v349_v54 = vmul.f32 %v918_v48, %v1517_v1  ;;  %v480_v55 = vsel %vm416_vm11, %v384_v43, %v448_v49 }
  0xa1   : > { %v987_v56 = vpack.c.bf16 %v480_v55, %v479_v50  ;;  %v386_v57 = vadd.f32 %v1522_v7, %v347_v51  ;;  %vm417_vm12 = vcmp.gt.f32.partialorder %v385_v52, 0.0  ;;  %v449_v58 = vmul.f32 0.2, %v385_v52 }
  0xa2   : > { %v387_v59 = vadd.f32 %v1522_v7, %v348_v53  ;;  %v388_v60 = vadd.f32 %v1522_v7, %v349_v54 }
  0xa3   : > { %1026 = vst [vmem:[%s1544_s21 + $0x68] sm:$0xff] %v987_v56   ;;  %vm418_vm13 = vcmp.gt.f32.partialorder %v386_v57, 0.0  ;;  %v450_v61 = vmul.f32 0.2, %v386_v57  ;;  %v481_v62 = vsel %vm417_vm12, %v385_v52, %v449_v58 }
  0xa4   : > { %vm419_vm14 = vcmp.gt.f32.partialorder %v387_v59, 0.0  ;;  %vm420_vm15 = vcmp.gt.f32.partialorder %v388_v60, 0.0  ;;  %v451_v1 = vmul.f32 0.2, %v387_v59  ;;  %v452_v63 = vmul.f32 0.2, %v388_v60 }
  0xa5   : > { %v482_v0 = vsel %vm418_vm13, %v386_v57, %v450_v61 }
  0xa6   : > { %v992_v2 = vpack.c.bf16 %v482_v0, %v481_v62  ;;  %v483_v3 = vsel %vm419_vm14, %v387_v59, %v451_v1  ;;  %v484_v4 = vsel %vm420_vm15, %v388_v60, %v452_v63 }
  0xa7   : > { %v997_v7 = vpack.c.bf16 %v484_v4, %v483_v3 }
  0xa8   : > { %1027 = vst [vmem:[%s1544_s21 + $0x70] sm:$0xff] %v992_v2  }
  0xa9   : > { %1028 = vst [vmem:[%s1544_s21 + $0x78] sm:$0xff] %v997_v7  }
  0xaa   : > { %1215 = shalt.err (!%p1212_p9)
}
  0xab   : > { %s1216_s4 = scalar_lea.hbm %s1624_s18, 2048  ;;  %s1220_s7 = scalar_lea.hbm %s1680_s3, 4096 }
  0xac   : > { %p1217_p8 = scmp.ne.s32.totalorder %s1624_s18, %s1216_s4  ;;  %p1221_p7 = scmp.lt.u32.totalorder %s1624_s18, %s1680_s3 }
  0xad   : > { %p1222_p12 = scmp.lt.u32.totalorder %s1220_s7, %s1216_s4  ;;  %p1224_p5 = scmp.lt.u32.totalorder %s1216_s4, %s1624_s18 }
  0xae   : > { %p1218_p13 = pnand %p1217_p8, %p1699_p10 }
  0xaf   : > { %p1223_p3 = por %p1222_p12, %p1221_p7 }
  0xb0   : > { %p1219_p4 = pneg %p1218_p13 }
  0xb1   : > { %p1225_p11 = por %p1224_p5, %p1223_p3 }
  0xb3   : > { %p1226_p1 = pnand %p1225_p11, %p1219_p4 }
  0xb5   : > { %1229 = shalt.err (!%p1226_p1)
}
  0xb6   : > { %s1296_s21 = smov 64   ;;  %s1297_s23 = smov 4  }
  0xb7   : > { %1039 = dma.vmem_to_hbm [thread:$0]  (%p1699_p10), %s1626_s26, 2048, %s1624_s18, %s646_s15, %s1296_s21, %s1296_s21, %s1297_s23  }
  0xb8 PF: > { %s675_s29 = sand.u32 1, %s1268_s12   ;;  %p1700_p0 = scmp.ne.s32.totalorder %s1691_s25, 0 }
  0xb9   : > { %p1701_p6 = scmp.ge.s32.totalorder %s1288_s17, 2  ;;  %s676_s10 = scalar_lea.sflag [#allocation4], %s675_s29 }
  0xbb   : > { %p1053_p2 = pnand %p1701_p6, %p1700_p0 }
  0xbd   : > { %1263 = dma.done.wait (!%p1053_p2), %s676_s10, 2048  }
  0xbe   : > { %1265 = vsyncadd (!%p1053_p2), %s676_s10, 4294965248  ;;  %s20_s17 = sadd.s32 1, %s1288_s17   ;;  %s1702_s12 = smov %s1272_s13 }
  0xbf   : > { %p17_p9 = scmp.ge.s32.totalorder %s20_s17, 4   ;;  %s1703_s13 = smov %s1276_s14 }
  0xc0   : > { %s1704_s14 = smov %s1467_s28  ;;  %s1705_s15 = smov %s1284_s16 }
  0xc1   : > { %s1706_s16 = smov %s1708_s30  ;;  %19 = sbr.rel (!%p17_p9) target bundleno = 7 (0x7), region = 87 }
  0xc8   :  { %681 = vsyncpa [#allocation3], 1 }
  0xc9   :  { %683 = vsyncpa [#allocation3 + $0x1], 1 }
  0xca   :  { %684 = vsyncpa [#allocation6], 1 }
  0xcb   :  { %685 = vsyncpa [#allocation4], 1 }
  0xcc   :  { %687 = vsyncpa [#allocation4 + $0x1], 1 }

// kernel: discriminator_forward.12
= control target key start
LH: loop header
LB: loop body
LE: loop exit
PB: predicated region body
PF: predicated region fallthrough
CT: control target
= control target key end

     0   :  { %s1327_s0 = inlined_call_operand.hbm [shape: bf16[128,256], index: 0, kind: input, shape index: {}]   ;;  %s1328_s1 = inlined_call_operand.hbm [shape: f32[1,256], index: 1, kind: input, shape index: {}]   ;;  %s1329_s2 = inlined_call_operand.hbm [shape: f32[1,256], index: 2, kind: input, shape index: {}]   ;;  %s1330_s3 = inlined_call_operand.hbm [shape: bf16[128,256], index: 3, kind: output, shape index: {}]  }
   0x1   :  { %1345 = sst [smem:[#allocation20_spill]] %s1327_s0 }
   0x2   :  { %1346 = sst [smem:[#allocation21_spill]] %s1328_s1 }
   0x3   :  { %1347 = sst [smem:[#allocation22_spill]] %s1330_s3 }
   0x4   :  { %8 = vsyncpa [#allocation3], 0 }
   0x5   :  { %10 = vsyncpa [#allocation3 + $0x1], 0 }
   0x6   :  { %11 = vsyncpa [#allocation6], 0 }
   0x7   :  { %13 = vsyncpa [#allocation6 + $0x1], 0 }
   0x8   :  { %14 = vsyncpa [#allocation4], 0 }
   0x9   :  { %16 = vsyncpa [#allocation4 + $0x1], 0  ;;  %s972_s12 = smov 0   ;;  %s974_s13 = smov 0  }
   0xa   :  { %s976_s14 = smov 0   ;;  %s978_s15 = smov 0  }
   0xb   :  { %s980_s16 = smov 0   ;;  %s982_s17 = smov 0  }
   0xc   :  { %s984_s18 = smov 0   ;;  %s986_s19 = smov 0  }
   0xd   :  { %s988_s20 = smov 0   ;;  %s990_s21 = smov 0  }
   0xe   :  { %s992_s22 = smov 0  }
   0xf LB: > { %1348 = sst [smem:[#allocation12_spill]] %s912_s15  ;;  %s1028_s23 = sadd.s32 4294967295, %s940_s22   ;;  %s940_s22 = sphi %s992_s22, %s22_s22   ;;  %s936_s21 = sphi %s990_s21, %s1385_s21   ;;  %s932_s20 = sphi %s988_s20, %s1393_s20   ;;  %s928_s19 = sphi %s986_s19, %s1383_s19   ;;  %s924_s18 = sphi %s984_s18, %s1392_s18   ;;  %s920_s17 = sphi %s982_s17, %s1391_s17   ;;  %s916_s16 = sphi %s980_s16, %s1390_s16   ;;  %s912_s15 = sphi %s978_s15, %s1389_s15   ;;  %s908_s14 = sphi %s976_s14, %s1388_s14   ;;  %s904_s13 = sphi %s974_s13, %s1387_s13   ;;  %s900_s12 = sphi %s972_s12, %s1386_s12  }
  0x10   : > { %1349 = sst [smem:[#allocation13_spill]] %s936_s21  ;;  %s526_s24 = sadd.s32 4294967294, %s940_s22  }
  0x11   : > { %s31_s25 = sadd.s32 1, %s932_s20  ;;  %s34_s26 = sadd.s32 1, %s936_s21 }
  0x12   : > { %p32_p0 = scmp.ge.s32.totalorder %s31_s25, 2  ;;  %s43_s27 = sadd.s32 1, %s920_s17 }
  0x13   : > { %p50_p1 = scmp.ne.s32.totalorder %s920_s17, %s916_s16  ;;  %p51_p2 = scmp.eq.s32.totalorder %s940_s22, 0 }
  0x14   : > { %s1395_s25 = smov (%p32_p0, %s31_s25), 0  ;;  %s1397_s26 = smov (!%p32_p0, %s34_s26), %s936_s21 }
  0x15   : > { %1350 = sst [smem:[#allocation14_spill]] %s1395_s25  ;;  %s39_s28 = ssub.s32 %s932_s20, %s1395_s25 }
  0x16   : > { %p1047_p3 = por %p51_p2, %p50_p1  ;;  %p36_p4 = scmp.ge.s32.totalorder %s1397_s26, 2 }
  0x17   : > { %p1331_p5 = scmp.ne.s32.totalorder %s916_s16, %s912_s15  ;;  %p57_p6 = scmp.eq.s32.totalorder %s1028_s23, 0 }
  0x18   : > { %p67_p7 = scmp.eq.s32.totalorder %s39_s28, 0  ;;  %s1399_s26 = smov (%p36_p4, %s1397_s26), 0 }
  0x19   : > { %1352 = sst [smem:[#allocation15_spill]] %s1399_s26  ;;  %p1061_p8 = por %p57_p6, %p1331_p5 }
  0x1a   : > { %s69_s4 = sadd.s32 1, %s908_s14  ;;  %s38_s5 = ssub.s32 %s936_s21, %s1399_s26 }
  0x1b   : > { %s1353_s30 = scalar_select %p1061_p8, 1, 0 }
  0x1c   : > { %p76_p9 = scmp.ne.s32.totalorder %s908_s14, %s904_s13  ;;  %s40_s6 = sor.u32 %s39_s28, %s38_s5 }
  0x1d   : > { %p82_p10 = scmp.ne.s32.totalorder %s904_s13, %s900_s12  ;;  %p41_p11 = scmp.eq.s32.totalorder %s40_s6, 0 }
  0x1e   : > { %p1074_p12 = por %p76_p9, %p51_p2  ;;  %p134_p0 = scmp.eq.s32.totalorder %s1028_s23, 3 }
  0x1f   : > { %s1079_s8 = scalar_select %p67_p7, %s908_s14, %s69_s4  }
  0x20   : > { %s1082_s9 = scalar_select %p41_p11, %s920_s17, %s43_s27  }
  0x21   : > { %1355 = sst [smem:[#allocation16_spill]] %s1079_s8  ;;  %p1086_p13 = por %p82_p10, %p57_p6 }
  0x22   : > { %1356 = sst [smem:[#allocation17_spill]] %s1082_s9  ;;  %p140_p4 = scmp.eq.s32.totalorder %s526_s24, 3 }
  0x23   : > { %s1357_s10 = scalar_select %p1086_p13, 1, 0 }
  0x24   : > { %p1094_p5 = por %p134_p0, %p50_p1  ;;  %p628_p2 = scmp.lt.s32.totalorder %s940_s22, 4 }
  0x25   : > { %p1360_p9 = scmp.ne.s32.totalorder %s916_s16, %s912_s15  ;;  %s183_s27 = sand.u32 1, %s940_s22  }
  0x26   : > { %s1358_s11 = scalar_select %p1094_p5, 1, 0 }
  0x27   : > { %p1102_p7 = por %p140_p4, %p1360_p9  ;;  %p1109_p6 = pnand %p628_p2, %p1047_p3 }
  0x28   : > { %1359 = sst [smem:[#allocation18_spill]] %s1358_s11  ;;  %s1335_s4 = sand.u32 1, %s908_s14  }
  0x29   : > { %s1361_s12 = scalar_select %p1102_p7, 1, 0 }
  0x2a   : > { %s533_s5 = sshll.u32 %s932_s20, 4  ;;  %s1364_s1 = sld [smem:[#allocation21_spill]] }
  0x2b   : > { %1362 = sst [smem:[#allocation19_spill]] %s1361_s12  ;;  %s186_s25 = scalar_lea.vmem [#allocation5], %s1335_s4 }
  0x2c   : > { %s193_s9 = sshll.u32 %s186_s25, 4  ;;  %p1126_p1 = pnand %p628_p2, %p1074_p12  ;;  %s1122_s9 = int_to_ptr.vmem [resolvable:$true] %s193_s9 }
  0x2d   : > { %s1133_s24 = scalar_lea.hbm %s1329_s2, %s533_s5  ;;  %s1136_s6 = scalar_lea.sflag [#allocation6], %s183_s27 }
  0x2e   : > { %p1344_p11 = pneg %p1126_p1 }
  0x30   : > { %s1118_s26 = scalar_lea.hbm %s1364_s1, %s533_s5  ;;  %s729_s15 = scalar_lea.hbm %s1364_s1, 32 }
  0x31   : > { %s724_s4 = scalar_lea.hbm %s1118_s26, 16  ;;  %p730_p4 = scmp.lt.u32.totalorder %s1118_s26, %s1364_s1 }
  0x32   : > { %p725_p10 = scmp.ne.s32.totalorder %s1118_s26, %s724_s4  ;;  %p731_p2 = scmp.lt.u32.totalorder %s729_s15, %s724_s4 }
  0x33   : > { %p733_p3 = scmp.lt.u32.totalorder %s724_s4, %s1118_s26 }
  0x34   : > { %p727_p12 = pnand %p1344_p11, %p725_p10  ;;  %p732_p9 = por %p731_p2, %p730_p4 }
  0x36   : > { %p728_p0 = pneg %p727_p12  ;;  %p734_p7 = por %p733_p3, %p732_p9 }
  0x38   : > { %p735_p5 = pnand %p734_p7, %p728_p0 }
  0x3a   : > { %738 = shalt.err (!%p735_p5)
}
  0x3b   : > { %s739_s27 = scalar_lea.vmem %s1122_s9, 16  ;;  %s942_s5 = smov [#allocation5]  }
  0x3c   : > { %p740_p10 = scmp.ne.s32.totalorder %s1122_s9, %s739_s27  ;;  %s744_s25 = sshll.u32 %s942_s5, 4  ;;  %s745_s25 = int_to_ptr.vmem [resolvable:$false] %s744_s25 }
  0x3d   : > { %s746_s7 = scalar_lea.vmem %s745_s25, 32  ;;  %p747_p8 = scmp.lt.s32.totalorder %s1122_s9, %s745_s25 }
  0x3e   : > { %p742_p12 = pnand %p740_p10, %p1344_p11  ;;  %p748_p4 = scmp.lt.s32.totalorder %s746_s7, %s739_s27 }
  0x40   : > { %p743_p13 = pneg %p742_p12  ;;  %p749_p2 = por %p748_p4, %p747_p8 }
  0x42   : > { %p750_p3 = pnand %p749_p2, %p743_p13 }
  0x44   : > { %753 = shalt.err (!%p750_p3)
}
  0x45   : > { %620 = dma.hbm_to_vmem [thread:$0]  (!%p1126_p1), %s1118_s26, 16, %s1122_s9, %s1136_s6  }
  0x46   : > { %p215_p5 = scmp.lt.s32.totalorder %s940_s22, 5  ;;  %p1366_p7 = scmp.ge.s32.totalorder %s940_s22, 1 }
  0x47   : > { %s160_s4 = sand.u32 1, %s920_s17   ;;  %s554_s8 = sshll.u32 %s936_s21, 4 }
  0x48   : > { %p1167_p0 = pnand %p1366_p7, %p215_p5  ;;  %s529_s12 = sshll.u32 %s160_s4, 5 }
  0x49   : > { %s170_s27 = sadd.s32 %s932_s20, %s554_s8  ;;  %s164_s25 = scalar_lea.vmem [#allocation2], %s529_s12 }
  0x4a   : > { %s1367_s15 = scalar_select %p1167_p0, 1, 0 }
  0x4b   : > { %s532_s5 = sshll.u32 %s170_s27, 6  ;;  %s173_s7 = sshll.u32 %s164_s25, 4  ;;  %s1179_s7 = int_to_ptr.vmem [resolvable:$true] %s173_s7 }
  0x4c   : > { %s1368_s0 = sld [smem:[#allocation20_spill]]  ;;  %s1369_s26 = sand.u32 1, %s908_s14  }
  0x4d   : > { %s1183_s9 = scalar_lea.vmem [#allocation7], %s1369_s26  ;;  %s1186_s8 = scalar_lea.sflag [#allocation3], %s160_s4 }
  0x4e   : > { %s210_s21 = sshll.u32 %s1183_s9, 4  ;;  %p756_p13 = pneg %p1109_p6  ;;  %s211_s21 = int_to_ptr.vmem [resolvable:$true] %s210_s21 }
  0x52   : > { %s1177_s11 = scalar_lea.hbm %s1368_s0, %s532_s5  ;;  %s759_s27 = scalar_lea.hbm %s1368_s0, 2048 }
  0x53   : > { %s754_s12 = scalar_lea.hbm %s1177_s11, 512  ;;  %p760_p12 = scmp.lt.u32.totalorder %s1177_s11, %s1368_s0 }
  0x54   : > { %p755_p8 = scmp.ne.s32.totalorder %s1177_s11, %s754_s12  ;;  %p761_p4 = scmp.lt.u32.totalorder %s759_s27, %s754_s12 }
  0x55   : > { %p763_p3 = scmp.lt.u32.totalorder %s754_s12, %s1177_s11 }
  0x56   : > { %p757_p9 = pnand %p756_p13, %p755_p8  ;;  %p762_p2 = por %p761_p4, %p760_p12 }
  0x58   : > { %p758_p10 = pneg %p757_p9  ;;  %p764_p5 = por %p763_p3, %p762_p2 }
  0x5a   : > { %p765_p7 = pnand %p764_p5, %p758_p10 }
  0x5c   : > { %768 = shalt.err (!%p765_p7)
}
  0x5d   : > { %s769_s4 = scalar_lea.vmem %s1179_s7, 512  ;;  %s943_s26 = smov [#allocation2]  }
  0x5e   : > { %p770_p8 = scmp.ne.s32.totalorder %s1179_s7, %s769_s4  ;;  %s774_s1 = sshll.u32 %s943_s26, 4  ;;  %s775_s1 = int_to_ptr.vmem [resolvable:$false] %s774_s1 }
  0x5f   : > { %s776_s3 = scalar_lea.vmem %s775_s1, 1024  ;;  %p777_p0 = scmp.lt.s32.totalorder %s1179_s7, %s775_s1 }
  0x60   : > { %p772_p9 = pnand %p770_p8, %p756_p13  ;;  %p778_p12 = scmp.lt.s32.totalorder %s776_s3, %s769_s4 }
  0x62   : > { %p773_p11 = pneg %p772_p9  ;;  %p779_p4 = por %p778_p12, %p777_p0 }
  0x64   : > { %p780_p2 = pnand %p779_p4, %p773_p11 }
  0x66   : > { %783 = shalt.err (!%p780_p2)
}
  0x67   : > { %s944_s12 = smov 128   ;;  %s945_s27 = smov 64  }
  0x68   : > { %s946_s5 = smov 4   ;;  %s784_s25 = scalar_lea.hbm %s1133_s24, 16 }
  0x69   : > { %617 = dma.hbm_to_vmem [thread:$0]  (!%p1109_p6), %s1177_s11, 512, %s1179_s7, %s1186_s8, %s944_s12, %s945_s27, %s946_s5  }
  0x6a   : > { %p785_p11 = scmp.ne.s32.totalorder %s1133_s24, %s784_s25  ;;  %p1370_p0 = pneg %p1126_p1 }
  0x6b   : > { %s789_s1 = scalar_lea.hbm %s1329_s2, 32  ;;  %p790_p3 = scmp.lt.u32.totalorder %s1133_s24, %s1329_s2 }
  0x6c   : > { %p787_p13 = pnand %p785_p11, %p1370_p0  ;;  %p791_p5 = scmp.lt.u32.totalorder %s789_s1, %s784_s25 }
  0x6d   : > { %p793_p8 = scmp.lt.u32.totalorder %s784_s25, %s1133_s24 }
  0x6e   : > { %p788_p10 = pneg %p787_p13  ;;  %p792_p7 = por %p791_p5, %p790_p3 }
  0x70   : > { %p794_p6 = por %p793_p8, %p792_p7 }
  0x72   : > { %p795_p9 = pnand %p794_p6, %p788_p10 }
  0x74   : > { %798 = shalt.err (!%p795_p9)
}
  0x75   : > { %s799_s11 = scalar_lea.vmem %s211_s21, 16  ;;  %p1371_p4 = pmov %p1370_p0 }
  0x76   : > { %p800_p12 = scmp.ne.s32.totalorder %s211_s21, %s799_s11  ;;  %s947_s28 = smov [#allocation7]  }
  0x77   : > { %s804_s7 = sshll.u32 %s947_s28, 4  ;;  %s805_s7 = int_to_ptr.vmem [resolvable:$false] %s804_s7 }
  0x78   : > { %p802_p2 = pnand %p800_p12, %p1371_p4  ;;  %s806_s9 = scalar_lea.vmem %s805_s7, 32 }
  0x79   : > { %p807_p0 = scmp.lt.s32.totalorder %s211_s21, %s805_s7  ;;  %p808_p13 = scmp.lt.s32.totalorder %s806_s9, %s799_s11 }
  0x7a   : > { %p803_p11 = pneg %p802_p2 }
  0x7b   : > { %p809_p3 = por %p808_p13, %p807_p0 }
  0x7d   : > { %p810_p5 = pnand %p809_p3, %p803_p11 }
  0x7f   : > { %813 = shalt.err (!%p810_p5)
}
  0x80   : > { %623 = dma.hbm_to_vmem [thread:$0]  (!%p1126_p1), %s1133_s24, 16, %s211_s21, %s1136_s6  }
  0x81   : > { %p1372_p10 = scmp.ne.s32.totalorder %s1367_s15, 0 }
  0x82   : > { %s1239_s0 = sand.u32 (!%p1372_p10), 1, %s916_s16   ;;  %p1373_p7 = scmp.ne.s32.totalorder (!%p1372_p10), %s1353_s30, 0 }
  0x83   : > { %219 = sbr.rel (%p1372_p10) target bundleno = 177 (0xb1), region = 32  ;;  %s536_s8 = sshll.u32 (!%p1372_p10), %s1239_s0, 5 }
  0x84   : > { %s222_s12 = scalar_lea.sflag (!%p1372_p10), [#allocation3], %s1239_s0  ;;  %s225_s27 = scalar_lea.vmem (!%p1372_p10), [#allocation2], %s536_s8 }
  0x8a   : > { %887 = dma.done.wait (%p1373_p7), %s222_s12, 512  }
  0x8b   : > { %889 = vsyncadd (%p1373_p7), %s222_s12, 4294966784  ;;  %s230_s21 = sand.u32 1, %s1028_s23   ;;  %s232_s29 = sand.u32 1, %s904_s13  }
  0x8c   : > { %s231_s24 = scalar_lea.sflag [#allocation6], %s230_s21  ;;  %s233_s6 = scalar_lea.vmem [#allocation5], %s232_s29 }
  0x8d   : > { %p1374_p1 = scmp.ne.s32.totalorder %s1357_s10, 0 }
  0x8f   : > { %891 = dma.done.wait (%p1374_p1), %s231_s24, 32  }
  0x90   : > { %893 = vsyncadd (%p1374_p1), %s231_s24, 4294967264  ;;  %v565_v0 = vld [vmem:[%s225_s27] sm:$0xff]   ;;  %v600_v4 = vld [vmem:[%s225_s27 + $0x8] sm:$0xff]   ;;  %s241_s30 = scalar_lea.vmem [#allocation7], %s232_s29  ;;  %s563_s23 = sshll.u32 %s928_s19, 4 }
  0x91   : > { %v538_v1 = vld [vmem:[%s233_s6] ss:$0 sm:$0xff]  ;;  %v566_v2 = vunpack.c.l.bf16 %v565_v0  ;;  %v567_v3 = vunpack.c.h.bf16 %v565_v0  ;;  %v601_v5 = vld [vmem:[%s225_s27 + $0x10] sm:$0xff]   ;;  %v602_v6 = vld [vmem:[%s225_s27 + $0x18] sm:$0xff]   ;;  %v570_v8 = vunpack.c.l.bf16 %v600_v4  ;;  %v571_v9 = vunpack.c.h.bf16 %v600_v4  ;;  %s397_s19 = sadd.s32 %s924_s18, %s563_s23  ;;  %s271_s10 = scalar_lea.vmem [#allocation8], %s536_s8 }
  0x92   : > { %v539_v7 = vld [vmem:[%s241_s30] ss:$0 sm:$0xff]  ;;  %v574_v10 = vunpack.c.l.bf16 %v601_v5  ;;  %v575_v11 = vunpack.c.h.bf16 %v601_v5  ;;  %v578_v14 = vunpack.c.l.bf16 %v602_v6  ;;  %v579_v15 = vunpack.c.h.bf16 %v602_v6  ;;  %s400_s15 = sshll.u32 %s271_s10, 4  ;;  %s1375_s5 = sld [smem:[#allocation18_spill]]  ;;  %s1259_s15 = int_to_ptr.vmem [resolvable:$true] %s400_s15 }
  0x93   : > { %v297_v12 = vmul.f32 %v566_v2, %v538_v1  ;;  %v298_v13 = vmul.f32 %v567_v3, %v538_v1  ;;  %v299_v16 = vmul.f32 %v570_v8, %v538_v1  ;;  %v300_v17 = vmul.f32 %v571_v9, %v538_v1  ;;  %s551_s25 = sshll.u32 %s397_s19, 6  ;;  %s1376_s26 = sld [smem:[#allocation22_spill]] }
  0x94   : > { %v301_v18 = vmul.f32 %v574_v10, %v538_v1  ;;  %v302_v19 = vmul.f32 %v575_v11, %v538_v1  ;;  %v303_v22 = vmul.f32 %v578_v14, %v538_v1  ;;  %v304_v23 = vmul.f32 %v579_v15, %v538_v1  ;;  %s385_s3 = scalar_lea.sflag [#allocation4], %s1239_s0  ;;  %s814_s11 = scalar_lea.vmem %s1259_s15, 512 }
  0x95   : > { %v312_v20 = vadd.f32 %v539_v7, %v297_v12  ;;  %v313_v21 = vadd.f32 %v539_v7, %v298_v13  ;;  %v314_v24 = vadd.f32 %v539_v7, %v299_v16  ;;  %v315_v25 = vadd.f32 %v539_v7, %v300_v17  ;;  %p815_p8 = scmp.ne.s32.totalorder %s1259_s15, %s814_s11  ;;  %s948_s28 = smov [#allocation8]  }
  0x96   : > { %v316_v26 = vadd.f32 %v539_v7, %v301_v18  ;;  %v317_v27 = vadd.f32 %v539_v7, %v302_v19  ;;  %v318_v40 = vadd.f32 %v539_v7, %v303_v22  ;;  %v319_v41 = vadd.f32 %v539_v7, %v304_v23  ;;  %s818_s7 = sshll.u32 %s948_s28, 4  ;;  %s819_s7 = int_to_ptr.vmem [resolvable:$false] %s818_s7 }
  0x97   : > { %vm320_vm0 = vcmp.gt.f32.partialorder %v312_v20, 0.0  ;;  %vm321_vm1 = vcmp.gt.f32.partialorder %v313_v21, 0.0  ;;  %v328_v28 = vmul.f32 0.2, %v312_v20  ;;  %v329_v29 = vmul.f32 0.2, %v313_v21  ;;  %p821_p4 = scmp.lt.s32.totalorder %s1259_s15, %s819_s7 }
  0x98   : > { %vm322_vm2 = vcmp.gt.f32.partialorder %v314_v24, 0.0  ;;  %vm323_vm3 = vcmp.gt.f32.partialorder %v315_v25, 0.0  ;;  %v330_v30 = vmul.f32 0.2, %v314_v24  ;;  %v331_v31 = vmul.f32 0.2, %v315_v25 }
  0x99   : > { %v336_v32 = vsel %vm320_vm0, %v312_v20, %v328_v28  ;;  %v337_v33 = vsel %vm321_vm1, %v313_v21, %v329_v29  ;;  %vm324_vm4 = vcmp.gt.f32.partialorder %v316_v26, 0.0  ;;  %vm325_vm5 = vcmp.gt.f32.partialorder %v317_v27, 0.0  ;;  %s1264_s1 = scalar_lea.hbm %s1376_s26, %s551_s25  ;;  %p1377_p6 = scmp.ne.s32.totalorder %s1375_s5, 0 }
  0x9a   : > { %v583_v34 = vpack.c.bf16 %v337_v33, %v336_v32  ;;  %v338_v35 = vsel %vm322_vm2, %v314_v24, %v330_v30  ;;  %v339_v36 = vsel %vm323_vm3, %v315_v25, %v331_v31  ;;  %v332_v37 = vmul.f32 0.2, %v316_v26  ;;  %s820_s9 = scalar_lea.vmem %s819_s7, 1024 }
  0x9b   : > { %v588_v38 = vpack.c.bf16 %v339_v36, %v338_v35  ;;  %v333_v39 = vmul.f32 0.2, %v317_v27  ;;  %vm326_vm6 = vcmp.gt.f32.partialorder %v318_v40, 0.0  ;;  %vm327_vm7 = vcmp.gt.f32.partialorder %v319_v41, 0.0  ;;  %p816_p9 = pnand %p815_p8, %p1377_p6  ;;  %p822_p2 = scmp.lt.s32.totalorder %s820_s9, %s814_s11 }
  0x9c   : > { %584 = vst [vmem:[%s271_s10] sm:$0xff] %v583_v34   ;;  %v340_v42 = vsel %vm324_vm4, %v316_v26, %v332_v37  ;;  %v334_v44 = vmul.f32 0.2, %v318_v40  ;;  %v335_v46 = vmul.f32 0.2, %v319_v41 }
  0x9d   : > { %603 = vst [vmem:[%s271_s10 + $0x8] sm:$0xff] %v588_v38   ;;  %v341_v43 = vsel %vm325_vm5, %v317_v27, %v333_v39  ;;  %p817_p12 = pneg %p816_p9  ;;  %p823_p11 = por %p822_p2, %p821_p4 }
  0x9e   : > { %v593_v45 = vpack.c.bf16 %v341_v43, %v340_v42  ;;  %v342_v47 = vsel %vm326_vm6, %v318_v40, %v334_v44  ;;  %v343_v48 = vsel %vm327_vm7, %v319_v41, %v335_v46 }
  0x9f   : > { %v598_v49 = vpack.c.bf16 %v343_v48, %v342_v47  ;;  %p824_p0 = pnand %p823_p11, %p817_p12 }
  0xa0   : > { %604 = vst [vmem:[%s271_s10 + $0x10] sm:$0xff] %v593_v45  }
  0xa1   : > { %605 = vst [vmem:[%s271_s10 + $0x18] sm:$0xff] %v598_v49  }
  0xa2   : > { %827 = shalt.err (!%p824_p0)
}
  0xa3   : > { %s828_s8 = scalar_lea.hbm %s1264_s1, 512  ;;  %s832_s21 = scalar_lea.hbm %s1376_s26, 2048 }
  0xa4   : > { %p829_p13 = scmp.ne.s32.totalorder %s1264_s1, %s828_s8  ;;  %p833_p10 = scmp.lt.u32.totalorder %s1264_s1, %s1376_s26 }
  0xa5   : > { %p834_p7 = scmp.lt.u32.totalorder %s832_s21, %s828_s8  ;;  %p836_p8 = scmp.lt.u32.totalorder %s828_s8, %s1264_s1 }
  0xa6   : > { %p830_p3 = pnand %p829_p13, %p1377_p6 }
  0xa7   : > { %p835_p1 = por %p834_p7, %p833_p10 }
  0xa8   : > { %p831_p5 = pneg %p830_p3 }
  0xa9   : > { %p837_p9 = por %p836_p8, %p835_p1 }
  0xab   : > { %p838_p12 = pnand %p837_p9, %p831_p5 }
  0xad   : > { %841 = shalt.err (!%p838_p12)
}
  0xae   : > { %s949_s6 = smov 64   ;;  %s950_s30 = smov 128  }
  0xaf   : > { %s951_s23 = smov 4  }
  0xb0   : > { %612 = dma.vmem_to_hbm [thread:$0]  (%p1377_p6), %s1259_s15, 512, %s1264_s1, %s385_s3, %s949_s6, %s950_s30, %s951_s23  }
  0xb1 PF: > { %s1378_s19 = sld [smem:[#allocation12_spill]]  ;;  %s1379_s10 = sld [smem:[#allocation19_spill]] }
  0xb2   : > { %p629_p4 = scmp.ge.s32.totalorder %s940_s22, 2 }
  0xb7   : > { %s415_s25 = sand.u32 1, %s1378_s19   ;;  %p1380_p2 = scmp.ne.s32.totalorder %s1379_s10, 0 }
  0xb8   : > { %s416_s18 = scalar_lea.sflag [#allocation4], %s415_s25 }
  0xb9   : > { %p625_p11 = pnand %p629_p4, %p1380_p2 }
  0xbb   : > { %895 = dma.done.wait (!%p625_p11), %s416_s18, 512  }
  0xbc   : > { %897 = vsyncadd (!%p625_p11), %s416_s18, 4294966784  ;;  %s22_s22 = sadd.s32 1, %s940_s22   ;;  %s1381_s4 = sld [smem:[#allocation16_spill]] }
  0xbd   : > { %p19_p0 = scmp.ge.s32.totalorder %s22_s22, 6   ;;  %s1382_s0 = sld [smem:[#allocation17_spill]] }
  0xbe   : > { %s1383_s19 = sld [smem:[#allocation13_spill]]  ;;  %s1384_s5 = sld [smem:[#allocation14_spill]] }
  0xbf   : > { %s1385_s21 = sld [smem:[#allocation15_spill]]  ;;  %s1386_s12 = smov %s904_s13 }
  0xc0   : > { %s1387_s13 = smov %s908_s14  ;;  %s1389_s15 = smov %s916_s16 }
  0xc1   : > { %s1390_s16 = smov %s920_s17  ;;  %s1392_s18 = smov %s932_s20 }
  0xc2   : > { %s1388_s14 = smov %s1381_s4  ;;  %21 = sbr.rel (!%p19_p0) target bundleno = 15 (0xf), region = 101 }
  0xc3   : > { %s1391_s17 = smov %s1382_s0 }
  0xc4   : > { %s1393_s20 = smov %s1384_s5 }
  0xc9   :  { %421 = vsyncpa [#allocation3], 1 }
  0xca   :  { %423 = vsyncpa [#allocation3 + $0x1], 1 }
  0xcb   :  { %424 = vsyncpa [#allocation6], 1 }
  0xcc   :  { %426 = vsyncpa [#allocation6 + $0x1], 1 }
  0xcd   :  { %427 = vsyncpa [#allocation4], 1 }
  0xce   :  { %429 = vsyncpa [#allocation4 + $0x1], 1 }

// kernel: discriminator_forward.11
= control target key start
LH: loop header
LB: loop body
LE: loop exit
PB: predicated region body
PF: predicated region fallthrough
CT: control target
= control target key end

     0   :  { %s4671_s0 = inlined_call_operand.hbm [shape: bf16[4,2,9,9,128], index: 0, kind: input, shape index: {}]   ;;  %s4672_s1 = inlined_call_operand.hbm [shape: bf16[2048,256], index: 1, kind: input, shape index: {}]   ;;  %s4673_s2 = inlined_call_operand.hbm [shape: bf16[128,256], index: 2, kind: output, shape index: {0}]   ;;  %s4674_s3 = inlined_call_operand.hbm [shape: f32[2,2,256], index: 3, kind: output, shape index: {1}]  }
   0x1   :  { %4686 = sst [smem:[#allocation27_spill]] %s4671_s0 }
   0x2   :  { %4687 = sst [smem:[#allocation28_spill]] %s4674_s3 }
   0x3   :  { %9 = vsyncpa [#allocation3], 0 }
   0x4   :  { %11 = vsyncpa [#allocation3 + $0x1], 0 }
   0x5   :  { %12 = vsyncpa [#allocation6], 0 }
   0x6   :  { %14 = vsyncpa [#allocation6 + $0x1], 0 }
   0x7   :  { %15 = vsyncpa [#allocation4], 0 }
   0x8   :  { %17 = vsyncpa [#allocation4 + $0x1], 0 }
   0x9   :  { %18 = vsyncpa [#allocation9], 0 }
   0xa   :  { %20 = vsyncpa [#allocation9 + $0x1], 0  ;;  %s4010_s12 = smov 0   ;;  %s4012_s13 = smov 0  }
   0xb   :  { %s4014_s14 = smov 0   ;;  %s4016_s15 = smov 0  }
   0xc   :  { %s4018_s16 = smov 0   ;;  %s4020_s17 = smov 0  }
   0xd   :  { %s4022_s18 = smov 0   ;;  %s4024_s19 = smov 0  }
   0xe   :  { %s4026_s20 = smov 0   ;;  %s4028_s21 = smov 0  }
   0xf   :  { %s4030_s22 = smov 0   ;;  %s4032_s23 = smov 0  }
  0x10   :  { %s4034_s24 = smov 0   ;;  %s4036_s25 = smov 0  }
  0x11 LB: > { %4688 = sst [smem:[#allocation17_spill]] %s3921_s12  ;;  %s4675_s26 = sadd.s32 4294967295, %s3973_s25   ;;  %s3973_s25 = sphi %s4036_s25, %s26_s25   ;;  %s3969_s24 = sphi %s4034_s24, %s4733_s24   ;;  %s3965_s23 = sphi %s4032_s23, %s4732_s23   ;;  %s3961_s22 = sphi %s4030_s22, %s4721_s22   ;;  %s3957_s21 = sphi %s4028_s21, %s4731_s21   ;;  %s3953_s20 = sphi %s4026_s20, %s4720_s20   ;;  %s3949_s19 = sphi %s4024_s19, %s4730_s19   ;;  %s3945_s18 = sphi %s4022_s18, %s4729_s18   ;;  %s3941_s17 = sphi %s4020_s17, %s4728_s17   ;;  %s3937_s16 = sphi %s4018_s16, %s4727_s16   ;;  %s3933_s15 = sphi %s4016_s15, %s4726_s15   ;;  %s3929_s14 = sphi %s4014_s14, %s4717_s14   ;;  %s3925_s13 = sphi %s4012_s13, %s4725_s13   ;;  %s3921_s12 = sphi %s4010_s12, %s4724_s12  }
  0x12   : > { %4689 = sst [smem:[#allocation18_spill]] %s3929_s14  ;;  %s35_s28 = sadd.s32 1, %s3965_s23 }
  0x13   : > { %4690 = sst [smem:[#allocation19_spill]] %s3953_s20  ;;  %s38_s29 = sadd.s32 1, %s3969_s24 }
  0x14   : > { %4691 = sst [smem:[#allocation20_spill]] %s3969_s24  ;;  %p36_p0 = scmp.ge.s32.totalorder %s35_s28, 2 }
  0x15   : > { %s45_s30 = sadd.s32 1, %s3953_s20  ;;  %p52_p1 = scmp.ne.s32.totalorder %s3953_s20, %s3949_s19 }
  0x16   : > { %p53_p2 = scmp.eq.s32.totalorder %s3973_s25, 0  ;;  %s4735_s28 = smov (%p36_p0, %s35_s28), 0 }
  0x17   : > { %4692 = sst [smem:[#allocation21_spill]] %s4735_s28  ;;  %s4737_s29 = smov (!%p36_p0, %s38_s29), %s3969_s24 }
  0x18   : > { %p4091_p3 = por %p53_p2, %p52_p1  ;;  %p58_p4 = scmp.ne.s32.totalorder %s3949_s19, %s3945_s18 }
  0x19   : > { %p40_p5 = scmp.ge.s32.totalorder %s4737_s29, 2  ;;  %p4098_p6 = scmp.eq.s32.totalorder %s4675_s26, 0 }
  0x1a   : > { %s68_s6 = ssub.s32 %s3965_s23, %s4735_s28  ;;  %s71_s7 = sadd.s32 1, %s3941_s17 }
  0x1b   : > { %s4739_s29 = smov (%p40_p5, %s4737_s29), 0  ;;  %p4109_p7 = por %p4098_p6, %p58_p4 }
  0x1c   : > { %4695 = sst [smem:[#allocation22_spill]] %s4739_s29  ;;  %p69_p8 = scmp.eq.s32.totalorder %s68_s6, 0 }
  0x1d   : > { %s42_s9 = ssub.s32 %s3969_s24, %s4739_s29  ;;  %p78_p9 = scmp.ne.s32.totalorder %s3941_s17, %s3937_s16 }
  0x1e   : > { %p43_p10 = scmp.eq.s32.totalorder %s42_s9, 0  ;;  %p84_p11 = scmp.ne.s32.totalorder %s3937_s16, %s3933_s15 }
  0x1f   : > { %s4120_s10 = scalar_select %p69_p8, %s3941_s17, %s71_s7  }
  0x20   : > { %s4123_s11 = scalar_select %p43_p10, %s3953_s20, %s45_s30  }
  0x21   : > { %4697 = sst [smem:[#allocation23_spill]] %s4120_s10  ;;  %p4127_p12 = por %p78_p9, %p53_p2 }
  0x22   : > { %4698 = sst [smem:[#allocation24_spill]] %s4123_s11  ;;  %p4133_p13 = por %p84_p11, %p4098_p6 }
  0x23   : > { %s96_s26 = sor.u32 %s68_s6, %s42_s9  ;;  %s99_s29 = sadd.s32 1, %s3929_s14 }
  0x24   : > { %s4700_s27 = scalar_select %p4133_p13, 1, 0 }
  0x25   : > { %p97_p0 = scmp.eq.s32.totalorder %s96_s26, 0  ;;  %p109_p1 = scmp.ne.s32.totalorder %s3929_s14, %s3925_s13 }
  0x26   : > { %s4701_s28 = sadd.s32 4294967295, %s3973_s25   ;;  %p115_p5 = scmp.ne.s32.totalorder %s3925_s13, %s3921_s12 }
  0x27   : > { %p110_p4 = scmp.eq.s32.totalorder %s4701_s28, 3  ;;  %s4704_s7 = sadd.s32 4294967294, %s3973_s25  }
  0x28   : > { %s4145_s15 = scalar_select %p97_p0, %s3929_s14, %s99_s29  }
  0x29   : > { %p4147_p8 = por %p110_p4, %p109_p1  ;;  %p116_p2 = scmp.eq.s32.totalorder %s4704_s7, 3 }
  0x2a   : > { %4702 = sst [smem:[#allocation25_spill]] %s4145_s15  ;;  %p2756_p6 = scmp.ge.s32.totalorder %s3973_s25, 4 }
  0x2b   : > { %s4703_s30 = scalar_select %p4147_p8, 1, 0 }
  0x2c   : > { %p4153_p9 = por %p116_p2, %p115_p5  ;;  %160 = sbr.rel (%p2756_p6) target bundleno = 92 (0x5c), region = 16 }
  0x2e   : > { %s4705_s5 = scalar_select %p4153_p9, 1, 0 }
  0x30   : > { %4706 = sst [smem:[#allocation26_spill]] %s4705_s5 }
  0x33   : > { %s164_s26 = sand.u32 1, %s3953_s20   ;;  %s3418_s28 = smul.u32 1152, %s3969_s24 }
  0x34   : > { %s3417_s29 = smul.u32 288, %s164_s26  ;;  %s3975_s6 = smov 2304  }
  0x35   : > { %3421 = sst [smem:[#allocation11]] (%p4091_p3), %s3975_s6  ;;  %s3976_s12 = smov 1152  }
  0x36   : > { %s3420_s9 = scalar_select %p4091_p3, [#allocation0], [#allocation12] }
  0x37   : > { %s4707_s0 = sld [smem:[#allocation27_spill]]  ;;  %s168_s14 = scalar_lea.vmem [#allocation2], %s3417_s29 }
  0x38   : > { %s179_s15 = sld [smem:[%s3420_s9]]   ;;  %s187_s5 = sshll.u32 %s168_s14, 4  ;;  %s188_s5 = int_to_ptr.vmem [resolvable:$true] %s187_s5 }
  0x39   : > { %3422 = sst [smem:[#allocation11 + $0x1]] (%p4091_p3), %s3976_s12  ;;  %s3977_s24 = smov 18  }
  0x3a   : > { %3423 = sst [smem:[#allocation11 + $0x2]] (%p4091_p3), %s3977_s24  ;;  %s3978_s20 = smov 64  }
  0x3b   : > { %3424 = sst [smem:[#allocation11 + $0x3]] (%p4091_p3), %s3978_s20  ;;  %s3979_s6 = smov 4  }
  0x3c   : > { %3425 = sst [smem:[#allocation11 + $0x4]] (%p4091_p3), %s3978_s20  ;;  %s165_s29 = scalar_lea.sflag [#allocation3], %s164_s26 }
  0x3d   : > { %s174_s10 = scalar_lea.hbm %s4707_s0, %s3418_s28  ;;  %3426 = sst [smem:[#allocation11 + $0x5]] (%p4091_p3), %s3979_s6 }
  0x3e   : > { %s2758_s11 = sshll.u32 %s179_s15, 26  ;;  %s3980_s9 = smov [#allocation10]  }
  0x3f   : > { %s2759_s28 = sadd.s32 134217728, %s2758_s11  ;;  %s210_s12 = sand.u32 1, %s3941_s17  }
  0x40   : > { %3427 = dma.general (%p4091_p3), %s174_s10, 4608, %s188_s5, %s165_s29, %s3980_s9, [#allocation11], %s2759_s28, 0  }
  0x41   : > { %s2761_s14 = sshll.u32 %s3965_s23, 6  ;;  %s2760_s24 = sshll.u32 %s210_s12, 10 }
  0x42   : > { %s4184_s3 = scalar_lea.hbm %s4672_s1, %s2761_s14  ;;  %s214_s20 = scalar_lea.vmem [#allocation5], %s2760_s24 }
  0x43   : > { %s220_s15 = sshll.u32 %s214_s20, 4  ;;  %s4188_s4 = scalar_lea.sflag [#allocation6], %s210_s12  ;;  %s4186_s15 = int_to_ptr.vmem [resolvable:$true] %s220_s15 }
  0x44   : > { %s3763_s10 = scalar_lea.hbm %s4184_s3, 16384  ;;  %s3767_s0 = scalar_lea.hbm %s4672_s1, 32768 }
  0x45   : > { %p3764_p3 = scmp.ne.s32.totalorder %s4184_s3, %s3763_s10  ;;  %p3768_p0 = scmp.lt.u32.totalorder %s4184_s3, %s4672_s1 }
  0x46   : > { %p3769_p1 = scmp.lt.u32.totalorder %s3767_s0, %s3763_s10  ;;  %p3771_p5 = scmp.lt.u32.totalorder %s3763_s10, %s4184_s3 }
  0x47   : > { %p3765_p10 = pnand %p3764_p3, %p4127_p12 }
  0x48   : > { %p3770_p4 = por %p3769_p1, %p3768_p0 }
  0x49   : > { %p3766_p11 = pneg %p3765_p10 }
  0x4a   : > { %p3772_p2 = por %p3771_p5, %p3770_p4 }
  0x4c   : > { %p3773_p6 = pnand %p3772_p2, %p3766_p11 }
  0x4e   : > { %3776 = shalt.err (!%p3773_p6)
}
  0x4f   : > { %s3777_s28 = scalar_lea.vmem %s4186_s15, 16384  ;;  %s3981_s29 = smov [#allocation5]  }
  0x50   : > { %p3778_p3 = scmp.ne.s32.totalorder %s4186_s15, %s3777_s28  ;;  %s3781_s9 = sshll.u32 %s3981_s29, 4  ;;  %s3782_s9 = int_to_ptr.vmem [resolvable:$false] %s3781_s9 }
  0x51   : > { %s3783_s12 = scalar_lea.vmem %s3782_s9, 32768  ;;  %p3784_p8 = scmp.lt.s32.totalorder %s4186_s15, %s3782_s9 }
  0x52   : > { %p3779_p10 = pnand %p3778_p3, %p4127_p12  ;;  %p3785_p13 = scmp.lt.s32.totalorder %s3783_s12, %s3777_s28 }
  0x54   : > { %p3780_p9 = pneg %p3779_p10  ;;  %p3786_p0 = por %p3785_p13, %p3784_p8 }
  0x56   : > { %p3787_p1 = pnand %p3786_p0, %p3780_p9 }
  0x58   : > { %3790 = shalt.err (!%p3787_p1)
}
  0x59   : > { %s3982_s14 = smov 128   ;;  %s3983_s24 = smov 64  }
  0x5a   : > { %s3984_s7 = smov 4  }
  0x5b   : > { %3428 = dma.hbm_to_vmem [thread:$0]  (%p4127_p12), %s4184_s3, 16384, %s4186_s15, %s4188_s4, %s3982_s14, %s3983_s24, %s3984_s7  }
  0x5c PF: > { %p2762_p11 = scmp.ge.s32.totalorder %s3973_s25, 1  ;;  %p228_p4 = scmp.lt.s32.totalorder %s3973_s25, 5 }
  0x5e   : > { %p229_p5 = pnand %p2762_p11, %p228_p4 }
  0x5f   : > { %s234_s20 = sand.u32 (!%p229_p5), 1, %s3949_s19  }
  0x60   : > { %232 = sbr.rel (%p229_p5) target bundleno = 527 (0x20f), region = 28  ;;  %s235_s5 = scalar_lea.sflag (!%p229_p5), [#allocation3], %s234_s20 }
  0x61   : > { %s3419_s10 = smul.u32 (!%p229_p5), 288, %s234_s20 }
  0x63   : > { %s4215_s26 = scalar_lea.vmem (!%p229_p5), [#allocation2], %s3419_s10 }
  0x67   : > { %3904 = dma.done.wait (%p4109_p7), %s235_s5, 4608  }
  0x68   : > { %3906 = vsyncadd (%p4109_p7), %s235_s5, 4294962688  ;;  %s243_s3 = sand.u32 1, %s3937_s16   ;;  %p4708_p12 = scmp.ne.s32.totalorder %s4700_s27, 0 }
  0x69   : > { %s2763_s18 = sshll.u32 %s243_s3, 10  ;;  %s244_s15 = scalar_lea.sflag [#allocation6], %s243_s3 }
  0x6a   : > { %s4222_s4 = scalar_lea.vmem [#allocation5], %s2763_s18 }
  0x6b   : > { %3908 = dma.done.wait (%p4708_p12), %s244_s15, 16384  }
  0x6c   : > { %3910 = vsyncadd (%p4708_p12), %s244_s15, 4294950912  ;;  %v3567_v0 = vld [vmem:[%s4222_s4 + $0x40] sm:$0xff]   ;;  %v3571_v4 = vld [vmem:[%s4222_s4 + $0x48] sm:$0xff]   ;;  %s4537_s27 = sand.u32 1, %s3925_s13   ;;  %s3073_s6 = sshll.u32 %s3961_s22, 4 }
  0x6d   : > { %v3568_v1 = vld [vmem:[%s4222_s4 + $0xc0] sm:$0xff]   ;;  %3097 = vmatprep.subr.bf16.mxu0 %v3567_v0  ;;  %v3572_v5 = vld [vmem:[%s4222_s4 + $0xc8] sm:$0xff]   ;;  %v3575_v8 = vld [vmem:[%s4222_s4 + $0x50] sm:$0xff]   ;;  %s2764_s8 = sshll.u32 %s4537_s27, 5  ;;  %s2592_s11 = sadd.s32 %s3957_s21, %s3073_s6 }
  0x6e   : > { %v3569_v2 = vld [vmem:[%s4222_s4] sm:$0xff]   ;;  %3137 = vmatprep.subr.bf16.mxu1 %v3568_v1  ;;  %v3573_v6 = vld [vmem:[%s4222_s4 + $0x8] sm:$0xff]   ;;  %v3576_v9 = vld [vmem:[%s4222_s4 + $0xd0] sm:$0xff]   ;;  %s4541_s0 = scalar_lea.vmem [#allocation7], %s2764_s8  ;;  %s3060_s29 = sshll.u32 %s2592_s11, 6 }
  0x6f   : > { %v3570_v3 = vld [vmem:[%s4222_s4 + $0x80] sm:$0xff]   ;;  %3098 = vmatpush3.bf16.msra.mxu0 %v3569_v2  ;;  %v3574_v7 = vld [vmem:[%s4222_s4 + $0x88] sm:$0xff]   ;;  %v3577_v10 = vld [vmem:[%s4222_s4 + $0x10] sm:$0xff]   ;;  %s2595_s28 = sshll.u32 %s4541_s0, 4  ;;  %s4560_s14 = scalar_lea.hbm %s4673_s2, %s3060_s29  ;;  %s4555_s28 = int_to_ptr.vmem [resolvable:$true] %s2595_s28 }
  0x70   : > { %3138 = vmatpush3.bf16.msra.mxu1 %v3570_v3  ;;  %3099 = vmatprep.subr.bf16.mxu0 %v3571_v4  ;;  %v3578_v11 = vld [vmem:[%s4222_s4 + $0x90] sm:$0xff]   ;;  %v3579_v12 = vld [vmem:[%s4222_s4 + $0x58] sm:$0xff]   ;;  %v3583_v16 = vld [vmem:[%s4222_s4 + $0x60] sm:$0xff]   ;;  %s2575_s24 = scalar_lea.sflag [#allocation4], %s4537_s27  ;;  %s3791_s7 = scalar_lea.vmem %s4555_s28, 512 }
  0x71   : > { %3139 = vmatprep.subr.bf16.mxu1 %v3572_v5  ;;  %v3580_v13 = vld [vmem:[%s4222_s4 + $0xd8] sm:$0xff]   ;;  %v3584_v17 = vld [vmem:[%s4222_s4 + $0xe0] sm:$0xff]   ;;  %v3587_v20 = vld [vmem:[%s4222_s4 + $0x68] sm:$0xff]   ;;  %p3792_p7 = scmp.ne.s32.totalorder %s4555_s28, %s3791_s7  ;;  %p4709_p13 = scmp.ne.s32.totalorder %s4703_s30, 0 }
  0x72   : > { %v3581_v14 = vld [vmem:[%s4222_s4 + $0x18] sm:$0xff]   ;;  %v3585_v18 = vld [vmem:[%s4222_s4 + $0x20] sm:$0xff]   ;;  %v3588_v21 = vld [vmem:[%s4222_s4 + $0xe8] sm:$0xff]   ;;  %s3985_s20 = smov [#allocation7]  }
  0x73   : > { %3100 = vmatpush3.bf16.msra.mxu0 %v3573_v6  ;;  %v3582_v15 = vld [vmem:[%s4222_s4 + $0x98] sm:$0xff]   ;;  %v3586_v19 = vld [vmem:[%s4222_s4 + $0xa0] sm:$0xff]   ;;  %v3589_v22 = vld [vmem:[%s4222_s4 + $0x28] sm:$0xff]   ;;  %p3793_p8 = pnand %p3792_p7, %p4709_p13  ;;  %s3795_s10 = sshll.u32 %s3985_s20, 4  ;;  %s3796_s10 = int_to_ptr.vmem [resolvable:$false] %s3795_s10 }
  0x74   : > { %3140 = vmatpush3.bf16.msra.mxu1 %v3574_v7  ;;  %3101 = vmatprep.subr.bf16.mxu0 %v3575_v8  ;;  %v3590_v23 = vld [vmem:[%s4222_s4 + $0xa8] sm:$0xff]   ;;  %v3591_v24 = vld [vmem:[%s4222_s4 + $0x70] sm:$0xff]   ;;  %v3595_v28 = vld [vmem:[%s4222_s4 + $0x78] sm:$0xff]   ;;  %s3797_s5 = scalar_lea.vmem %s3796_s10, 1024  ;;  %p3798_p2 = scmp.lt.s32.totalorder %s4555_s28, %s3796_s10 }
  0x75   : > { %3141 = vmatprep.subr.bf16.mxu1 %v3576_v9  ;;  %v3592_v25 = vld [vmem:[%s4222_s4 + $0xf0] sm:$0xff]   ;;  %v3596_v29 = vld [vmem:[%s4222_s4 + $0xf8] sm:$0xff]   ;;  %v282_v32 = vld [vmem:[%s4215_s26] sm:$0xf]  ;;  %p3794_p9 = pneg %p3793_p8  ;;  %p3799_p6 = scmp.lt.s32.totalorder %s3797_s5, %s3791_s7 }
  0x76   : > { %v3593_v26 = vld [vmem:[%s4222_s4 + $0x30] sm:$0xff]   ;;  %v3597_v30 = vld [vmem:[%s4222_s4 + $0x38] sm:$0xff]   ;;  %v283_v33 = vld [vmem:[%s4215_s26 + $0x4] sm:$0x1] }
  0x77   : > { %3102 = vmatpush3.bf16.msra.mxu0 %v3577_v10  ;;  %v3594_v27 = vld [vmem:[%s4222_s4 + $0xb0] sm:$0xff]   ;;  %v3598_v31 = vld [vmem:[%s4222_s4 + $0xb8] sm:$0xff]   ;;  %v284_v34 = vld [vmem:[%s4215_s26 + $0x8] sm:$0xf]  ;;  %v2820_v36 = vcombine.low %v282_v32, %v283_v33  ;;  %p3800_p3 = por %p3799_p6, %p3798_p2 }
  0x78   : > { %3142 = vmatpush3.bf16.msra.mxu1 %v3578_v11  ;;  %3103 = vmatprep.subr.bf16.mxu0 %v3579_v12  ;;  %v285_v35 = vld [vmem:[%s4215_s26 + $0xc] sm:$0x1]  ;;  %v4265_v37 = vld [vmem:[%s4215_s26 + $0x10] sm:$0xf]  ;;  %v287_v38 = vld [vmem:[%s4215_s26 + $0x14] sm:$0x1]  ;;  %v2856_v57 = vcombine.low %v282_v32, %v284_v34 }
  0x79   : > { %3143 = vmatprep.subr.bf16.mxu1 %v3580_v13  ;;  %v2821_v39 = vcombine.low %v284_v34, %v285_v35  ;;  %v2822_v40 = vcombine.low %v4265_v37, %v287_v38  ;;  %v3604_v41 = vld [vmem:[%s4222_s4 + $0x140] sm:$0xff]   ;;  %v398_v42 = vshrl.u32 %v2820_v36, 16  ;;  %v400_v43 = vshll.u32 %v2820_v36, 16  ;;  %v3608_v59 = vld [vmem:[%s4222_s4 + $0x148] sm:$0xff]   ;;  %v288_v63 = vld [vmem:[%s4215_s26 + $0x18] sm:$0xf]  ;;  %p3801_p10 = pnand %p3800_p3, %p3794_p9 }
  0x7a   : > { %v3605_v48 = vld [vmem:[%s4222_s4 + $0x1c0] sm:$0xff]   ;;  %v2858_v58 = vcombine.low %v284_v34, %v4265_v37  ;;  %v3609_v62 = vld [vmem:[%s4222_s4 + $0x1c8] sm:$0xff]   ;;  %v289_v0 = vld [vmem:[%s4215_s26 + $0x1c] sm:$0x1] }
  0x7b   : > { %3104 = vmatpush3.bf16.msra.mxu0 %v3581_v14  ;;  %v405_v44 = vshrl.u32 %v2821_v39, 16  ;;  %v407_v45 = vshll.u32 %v2821_v39, 16  ;;  %v412_v46 = vshrl.u32 %v2822_v40, 16  ;;  %v414_v47 = vshll.u32 %v2822_v40, 16  ;;  %v3606_v55 = vld [vmem:[%s4222_s4 + $0x100] sm:$0xff]   ;;  %v3610_v2 = vld [vmem:[%s4222_s4 + $0x108] sm:$0xff]  }
  0x7c   : > { %3144 = vmatpush3.bf16.msra.mxu1 %v3582_v15  ;;  %3105 = vmatprep.subr.bf16.mxu0 %v3583_v16  ;;  %v402_v49 = vrot.slane %v400_v43, 1  ;;  %v3607_v56 = vld [vmem:[%s4222_s4 + $0x180] sm:$0xff]   ;;  %v2823_v3 = vcombine.low %v288_v63, %v289_v0  ;;  %v3611_v5 = vld [vmem:[%s4222_s4 + $0x188] sm:$0xff]   ;;  %v3616_v9 = vld [vmem:[%s4222_s4 + $0x150] sm:$0xff]  }
  0x7d   : > { %3145 = vmatprep.subr.bf16.mxu1 %v3584_v17  ;;  %v409_v50 = vrot.slane %v407_v45, 1  ;;  %v416_v51 = vrot.slane %v414_v47, 1  ;;  %v4279_v1 = vld [vmem:[%s4215_s26 + $0x20] sm:$0xf]  ;;  %v291_v4 = vld [vmem:[%s4215_s26 + $0x24] sm:$0x1] }
  0x7e   : > { %v403_v52 = vor.u32 %v402_v49, %v398_v42  ;;  %v2824_v6 = vcombine.low %v4279_v1, %v291_v4  ;;  %v419_v7 = vshrl.u32 %v2823_v3, 16  ;;  %v421_v8 = vshll.u32 %v2823_v3, 16  ;;  %v3617_v10 = vld [vmem:[%s4222_s4 + $0x1d0] sm:$0xff]   ;;  %v3623_v32 = vld [vmem:[%s4222_s4 + $0x198] sm:$0xff]   ;;  %v3628_v33 = vld [vmem:[%s4222_s4 + $0x160] sm:$0xff]  }
  0x7f   : > { %3106 = vmatpush3.bf16.msra.mxu0 %v3585_v18  ;;  %v410_v53 = vor.u32 %v409_v50, %v405_v44  ;;  %v417_v54 = vor.u32 %v416_v51, %v412_v46  ;;  %v3618_v16 = vld [vmem:[%s4222_s4 + $0x110] sm:$0xff]   ;;  %v2872_v18 = vcombine.low %v4265_v37, %v288_v63  ;;  %v3629_v38 = vld [vmem:[%s4222_s4 + $0x1e0] sm:$0xff]   ;;  %v3632_v42 = vld [vmem:[%s4222_s4 + $0x168] sm:$0xff]  }
  0x80   : > { %3146 = vmatpush3.bf16.msra.mxu1 %v3586_v19  ;;  %3107 = vmatprep.subr.bf16.mxu0 %v3587_v20  ;;  %v426_v11 = vshrl.u32 %v2824_v6, 16  ;;  %v428_v12 = vshll.u32 %v2824_v6, 16  ;;  %v423_v13 = vrot.slane %v421_v8, 1  ;;  %v3619_v19 = vld [vmem:[%s4222_s4 + $0x190] sm:$0xff]   ;;  %v3620_v20 = vld [vmem:[%s4222_s4 + $0x158] sm:$0xff]   ;;  %v3631_v45 = vld [vmem:[%s4222_s4 + $0x1a0] sm:$0xff]  }
  0x81   : > { %3147 = vmatprep.subr.bf16.mxu1 %v3588_v21  ;;  %v2857_v60 = vcombine.low %v403_v52, %v410_v53  ;;  %v2859_v61 = vcombine.low %v410_v53, %v417_v54  ;;  %v3634_v51 = vld [vmem:[%s4222_s4 + $0x128] sm:$0xff]   ;;  %v296_v52 = vld [vmem:[%s4215_s26 + $0x38] sm:$0xf]  ;;  %v297_v53 = vld [vmem:[%s4215_s26 + $0x3c] sm:$0x1] }
  0x82   : > { %v430_v14 = vrot.slane %v428_v12, 1  ;;  %v424_v15 = vor.u32 %v423_v13, %v419_v7  ;;  %v3644_v4 = vld [vmem:[%s4222_s4 + $0x178] sm:$0xff]   ;;  %v3643_v7 = vld [vmem:[%s4222_s4 + $0x1b0] sm:$0xff]  }
  0x83   : > { %3108 = vmatpush3.bf16.msra.mxu0 %v3589_v22  ;;  %2009 = vmatprep.mubr.bf16.mxu0 %v2857_v60  ;;  %v2874_v22 = vcombine.low %v288_v63, %v4279_v1  ;;  %v3641_v60 = vld [vmem:[%s4222_s4 + $0x1f0] sm:$0xff]   ;;  %v3646_v13 = vld [vmem:[%s4222_s4 + $0x138] sm:$0xff]  }
  0x84   : > { %3148 = vmatpush3.bf16.msra.mxu1 %v3590_v23  ;;  %3109 = vmatprep.subr.bf16.mxu0 %v3591_v24  ;;  %v431_v17 = vor.u32 %v430_v14, %v426_v11  ;;  %v2873_v21 = vcombine.low %v417_v54, %v424_v15  ;;  %v3621_v23 = vld [vmem:[%s4222_s4 + $0x1d8] sm:$0xff]   ;;  %v292_v24 = vld [vmem:[%s4215_s26 + $0x28] sm:$0xf]  ;;  %v298_v54 = vld [vmem:[%s4215_s26 + $0x40] sm:$0xf] }
  0x85   : > { %3149 = vmatprep.subr.bf16.mxu1 %v3592_v25  ;;  %2074 = vmatprep.mubr.bf16.mxu1 %v2859_v61  ;;  %v2888_v46 = vcombine.low %v4279_v1, %v292_v24  ;;  %v3642_v1 = vld [vmem:[%s4222_s4 + $0x130] sm:$0xff]   ;;  %v2766_v14 = vld [vmem:[%s4215_s26 + $0x48] sm:$0xf] }
  0x86   : > { %v2875_v25 = vcombine.low %v424_v15, %v431_v17  ;;  %v2767_v15 = vld [vmem:[%s4215_s26 + $0x4c] sm:$0x1] }
  0x87   : > { %3110 = vmatpush3.bf16.msra.mxu0 %v3593_v26  ;;  %v293_v26 = vld [vmem:[%s4215_s26 + $0x2c] sm:$0x1] }
  0x88   : > { %3150 = vmatpush3.bf16.msra.mxu1 %v3594_v27  ;;  %3111 = vmatprep.subr.bf16.mxu0 %v3595_v28  ;;  %v4296_v27 = vld [vmem:[%s4215_s26 + $0x30] sm:$0xf]  ;;  %v295_v28 = vld [vmem:[%s4215_s26 + $0x34] sm:$0x1] }
  0x89   : > { %3151 = vmatprep.subr.bf16.mxu1 %v3596_v29  ;;  %v3622_v29 = vld [vmem:[%s4222_s4 + $0x118] sm:$0xff]   ;;  %v2890_v47 = vcombine.low %v292_v24, %v4296_v27  ;;  %v2904_v8 = vcombine.low %v4296_v27, %v296_v52 }
  0x8b   : > { %3112 = vmatpush3.bf16.msra.mxu0 %v3597_v30  ;;  %v2825_v30 = vcombine.low %v292_v24, %v293_v26  ;;  %v3653_v24 = vld [vmem:[%s4222_s4 + $0x240] sm:$0xff]  }
  0x8c   : > { %3152 = vmatpush3.bf16.msra.mxu1 %v3598_v31  ;;  %3177 = vmatprep.subr.bf16.mxu0 %v3604_v41  ;;  %v2826_v31 = vcombine.low %v4296_v27, %v295_v28  ;;  %v3630_v41 = vld [vmem:[%s4222_s4 + $0x120] sm:$0xff]  }
  0x8d   : > { %3217 = vmatprep.subr.bf16.mxu1 %v3605_v48  ;;  %v433_v34 = vshrl.u32 %v2825_v30, 16  ;;  %v435_v35 = vshll.u32 %v2825_v30, 16  ;;  %v3633_v48 = vld [vmem:[%s4222_s4 + $0x1e8] sm:$0xff]  }
  0x8e   : > { %2010 = vmatmul.mubr.bf16.vlgmr.msra.gmra.mrb[0].mxu0 %v2856_v57  ;;  %v440_v36 = vshrl.u32 %v2826_v31, 16  ;;  %v442_v37 = vshll.u32 %v2826_v31, 16  ;;  %v2827_v57 = vcombine.low %v296_v52, %v297_v53  ;;  %v3654_v31 = vld [vmem:[%s4222_s4 + $0x2c0] sm:$0xff]  }
  0x8f   : > { %2075 = vmatmul.mubr.bf16.vlgmr.msra.gmra.mrb[0].mxu1 %v2858_v58  ;;  %3178 = vmatpush3.bf16.msra.mxu0 %v3606_v55  ;;  %v437_v39 = vrot.slane %v435_v35, 1  ;;  %v299_v55 = vld [vmem:[%s4215_s26 + $0x44] sm:$0x1] }
  0x90   : > { %3218 = vmatpush3.bf16.msra.mxu1 %v3607_v56  ;;  %3179 = vmatprep.subr.bf16.mxu0 %v3608_v59  ;;  %v444_v40 = vrot.slane %v442_v37, 1  ;;  %v3635_v56 = vld [vmem:[%s4222_s4 + $0x1a8] sm:$0xff]   ;;  %v2828_v58 = vcombine.low %v298_v54, %v299_v55  ;;  %v3640_v59 = vld [vmem:[%s4222_s4 + $0x170] sm:$0xff]   ;;  %v447_v61 = vshrl.u32 %v2827_v57, 16  ;;  %v3655_v37 = vld [vmem:[%s4222_s4 + $0x200] sm:$0xff]  }
  0x91   : > { %3219 = vmatprep.subr.bf16.mxu1 %v3609_v62  ;;  %2017 = vmatprep.mubr.bf16.mxu0 %v2873_v21  ;;  %v438_v43 = vor.u32 %v437_v39, %v433_v34  ;;  %v449_v62 = vshll.u32 %v2827_v57, 16  ;;  %v4330_v21 = vld [vmem:[%s4215_s26 + $0x58] sm:$0xf] }
  0x92   : > { %2082 = vmatprep.mubr.bf16.mxu1 %v2875_v25  ;;  %v445_v44 = vor.u32 %v444_v40, %v440_v36  ;;  %v459_v63 = vshrl.u32 %v2828_v58, 16  ;;  %v461_v0 = vshll.u32 %v2828_v58, 16  ;;  %v3656_v40 = vld [vmem:[%s4222_s4 + $0x280] sm:$0xff]  }
  0x93   : > { %3180 = vmatpush3.bf16.msra.mxu0 %v3610_v2  ;;  %v2889_v49 = vcombine.low %v431_v17, %v438_v43  ;;  %v451_v2 = vrot.slane %v449_v62, 1  ;;  %v2769_v17 = vld [vmem:[%s4215_s26 + $0x54] sm:$0x1] }
  0x94   : > { %3220 = vmatpush3.bf16.msra.mxu1 %v3611_v5  ;;  %3181 = vmatprep.subr.bf16.mxu0 %v3616_v9  ;;  %v2891_v50 = vcombine.low %v438_v43, %v445_v44  ;;  %v463_v3 = vrot.slane %v461_v0, 1  ;;  %v2906_v9 = vcombine.low %v296_v52, %v298_v54  ;;  %v3657_v43 = vld [vmem:[%s4222_s4 + $0x248] sm:$0xff]   ;;  %v3665_v54 = vld [vmem:[%s4222_s4 + $0x250] sm:$0xff]  }
  0x95   : > { %3221 = vmatprep.subr.bf16.mxu1 %v3617_v10  ;;  %v452_v5 = vor.u32 %v451_v2, %v447_v61  ;;  %v3645_v10 = vld [vmem:[%s4222_s4 + $0x1f8] sm:$0xff]   ;;  %v3667_v62 = vld [vmem:[%s4222_s4 + $0x210] sm:$0xff]  }
  0x96   : > { %2018 = vmatmul.mubr.bf16.gmra.mrb[4].mxu0 %v2872_v18  ;;  %v464_v6 = vor.u32 %v463_v3, %v459_v63  ;;  %v3647_v18 = vld [vmem:[%s4222_s4 + $0x1b8] sm:$0xff]  }
  0x97   : > { %3182 = vmatpush3.bf16.msra.mxu0 %v3618_v16  ;;  %2083 = vmatmul.mubr.bf16.gmra.mrb[4].mxu1 %v2874_v22  ;;  %v2905_v11 = vcombine.low %v445_v44, %v452_v5  ;;  %v2768_v16 = vld [vmem:[%s4215_s26 + $0x50] sm:$0xf]  ;;  %v2771_v22 = vld [vmem:[%s4215_s26 + $0x5c] sm:$0x1] }
  0x98   : > { %3183 = vmatprep.subr.bf16.mxu0 %v3620_v20  ;;  %3222 = vmatpush3.bf16.msra.mxu1 %v3619_v19  ;;  %v2907_v12 = vcombine.low %v452_v5, %v464_v6  ;;  %v2829_v19 = vcombine.low %v2766_v14, %v2767_v15  ;;  %v2830_v20 = vcombine.low %v2768_v16, %v2769_v17  ;;  %v3669_v2 = vld [vmem:[%s4222_s4 + $0x258] sm:$0xff]   ;;  %v3678_v17 = vld [vmem:[%s4222_s4 + $0x2e0] sm:$0xff]  }
  0x99   : > { %3223 = vmatprep.subr.bf16.mxu1 %v3621_v23  ;;  %2025 = vmatprep.mubr.bf16.mxu0 %v2889_v49  ;;  %v2831_v23 = vcombine.low %v4330_v21, %v2771_v22  ;;  %v2860_v39 = vcombine.low %v2766_v14, %v2768_v16  ;;  %v4345_v49 = vld [vmem:[%s4215_s26 + $0x68] sm:$0xf]  ;;  %v3670_v5 = vld [vmem:[%s4222_s4 + $0x2d8] sm:$0xff]   ;;  %v3679_v22 = vld [vmem:[%s4222_s4 + $0x220] sm:$0xff]  }
  0x9a   : > { %2090 = vmatprep.mubr.bf16.mxu1 %v2891_v50  ;;  %v506_v25 = vshrl.u32 %v2829_v19, 16  ;;  %v508_v26 = vshll.u32 %v2829_v19, 16  ;;  %v513_v27 = vshrl.u32 %v2830_v20, 16  ;;  %v515_v28 = vshll.u32 %v2830_v20, 16  ;;  %v2775_v50 = vld [vmem:[%s4215_s26 + $0x6c] sm:$0x1] }
  0x9b   : > { %3184 = vmatpush3.bf16.msra.mxu0 %v3622_v29  ;;  %v520_v29 = vshrl.u32 %v2831_v23, 16  ;;  %v522_v30 = vshll.u32 %v2831_v23, 16  ;;  %v2833_v53 = vcombine.low %v4345_v49, %v2775_v50 }
  0x9c   : > { %3185 = vmatprep.subr.bf16.mxu0 %v3628_v33  ;;  %3224 = vmatpush3.bf16.msra.mxu1 %v3623_v32  ;;  %v510_v32 = vrot.slane %v508_v26, 1  ;;  %v517_v33 = vrot.slane %v515_v28, 1  ;;  %v3680_v28 = vld [vmem:[%s4222_s4 + $0x2a0] sm:$0xff]  }
  0x9d   : > { %3225 = vmatprep.subr.bf16.mxu1 %v3629_v38  ;;  %v524_v34 = vrot.slane %v522_v30, 1  ;;  %v534_v57 = vshrl.u32 %v2833_v53, 16  ;;  %v536_v58 = vshll.u32 %v2833_v53, 16 }
  0x9e   : > { %2026 = vmatmul.mubr.bf16.gmra.mrb[8].mxu0 %v2888_v46  ;;  %v511_v35 = vor.u32 %v510_v32, %v506_v25  ;;  %v518_v36 = vor.u32 %v517_v33, %v513_v27  ;;  %v2772_v46 = vld [vmem:[%s4215_s26 + $0x60] sm:$0xf]  ;;  %v3681_v25 = vld [vmem:[%s4222_s4 + $0x268] sm:$0xff]  }
  0x9f   : > { %3186 = vmatpush3.bf16.msra.mxu0 %v3630_v41  ;;  %2091 = vmatmul.mubr.bf16.gmra.mrb[8].mxu1 %v2890_v47  ;;  %v525_v38 = vor.u32 %v524_v34, %v520_v29  ;;  %v3659_v47 = vld [vmem:[%s4222_s4 + $0x208] sm:$0xff]   ;;  %v538_v61 = vrot.slane %v536_v58, 1  ;;  %v2876_v3 = vcombine.low %v4330_v21, %v2772_v46 }
  0xa0   : > { %3187 = vmatprep.subr.bf16.mxu0 %v3632_v42  ;;  %3226 = vmatpush3.bf16.msra.mxu1 %v3631_v45  ;;  %v2861_v41 = vcombine.low %v511_v35, %v518_v36  ;;  %v2862_v42 = vcombine.low %v2768_v16, %v4330_v21  ;;  %v3658_v45 = vld [vmem:[%s4222_s4 + $0x2c8] sm:$0xff]   ;;  %v3677_v16 = vld [vmem:[%s4222_s4 + $0x260] sm:$0xff]  }
  0xa1   : > { %3227 = vmatprep.subr.bf16.mxu1 %v3633_v48  ;;  %2033 = vmatprep.mubr.bf16.mxu0 %v2905_v11  ;;  %v2863_v44 = vcombine.low %v518_v36, %v525_v38  ;;  %v2773_v48 = vld [vmem:[%s4215_s26 + $0x64] sm:$0x1]  ;;  %v539_v0 = vor.u32 %v538_v61, %v534_v57  ;;  %v4362_v11 = vld [vmem:[%s4215_s26 + $0x78] sm:$0xf]  ;;  %v3683_v34 = vld [vmem:[%s4222_s4 + $0x228] sm:$0xff]  }
  0xa2   : > { %2098 = vmatprep.mubr.bf16.mxu1 %v2907_v12  ;;  %v2832_v52 = vcombine.low %v2772_v46, %v2773_v48  ;;  %v2779_v12 = vld [vmem:[%s4215_s26 + $0x7c] sm:$0x1]  ;;  %v2780_v35 = vld [vmem:[%s4215_s26 + $0x80] sm:$0xf]  ;;  %v2781_v36 = vld [vmem:[%s4215_s26 + $0x84] sm:$0x1] }
  0xa3   : > { %3188 = vmatpush3.bf16.msra.mxu0 %v3634_v51  ;;  %v3660_v51 = vld [vmem:[%s4222_s4 + $0x288] sm:$0xff]   ;;  %v2835_v15 = vcombine.low %v4362_v11, %v2779_v12  ;;  %v3691_v48 = vld [vmem:[%s4222_s4 + $0x230] sm:$0xff]   ;;  %v3694_v57 = vld [vmem:[%s4222_s4 + $0x2f8] sm:$0xff]  }
  0xa4   : > { %3189 = vmatprep.subr.bf16.mxu0 %v3640_v59  ;;  %3228 = vmatpush3.bf16.msra.mxu1 %v3635_v56  ;;  %v527_v55 = vshrl.u32 %v2832_v52, 16  ;;  %v529_v56 = vshll.u32 %v2832_v52, 16  ;;  %v3666_v59 = vld [vmem:[%s4222_s4 + $0x2d0] sm:$0xff]  }
  0xa5   : > { %3229 = vmatprep.subr.bf16.mxu1 %v3641_v60  ;;  %v548_v20 = vshrl.u32 %v2835_v15, 16  ;;  %v550_v21 = vshll.u32 %v2835_v15, 16  ;;  %v2784_v61 = vld [vmem:[%s4215_s26 + $0x90] sm:$0xf] }
  0xa6   : > { %2034 = vmatmul.mubr.bf16.gmra.mrb[12].mxu0 %v2904_v8  ;;  %v531_v60 = vrot.slane %v529_v56, 1  ;;  %v3671_v8 = vld [vmem:[%s4222_s4 + $0x218] sm:$0xff]  }
  0xa7   : > { %3190 = vmatpush3.bf16.msra.mxu0 %v3642_v1  ;;  %2099 = vmatmul.mubr.bf16.gmra.mrb[12].mxu1 %v2906_v9  ;;  %v3668_v1 = vld [vmem:[%s4222_s4 + $0x290] sm:$0xff]  }
  0xa8   : > { %3191 = vmatprep.subr.bf16.mxu0 %v3644_v4  ;;  %3230 = vmatpush3.bf16.msra.mxu1 %v3643_v7  ;;  %v532_v63 = vor.u32 %v531_v60, %v527_v55  ;;  %v2878_v4 = vcombine.low %v2772_v46, %v4345_v49  ;;  %v2776_v9 = vld [vmem:[%s4215_s26 + $0x70] sm:$0xf]  ;;  %v2908_v55 = vcombine.low %v4362_v11, %v2780_v35  ;;  %v3695_v60 = vld [vmem:[%s4222_s4 + $0x238] sm:$0xff]  }
  0xa9   : > { %3231 = vmatprep.subr.bf16.mxu1 %v3645_v10  ;;  %2139 = vmatprep.mubr.bf16.mxu0 %v2861_v41  ;;  %v2777_v10 = vld [vmem:[%s4215_s26 + $0x74] sm:$0x1]  ;;  %v2892_v29 = vcombine.low %v4345_v49, %v2776_v9  ;;  %v2894_v30 = vcombine.low %v2776_v9, %v4362_v11 }
  0xaa   : > { %2204 = vmatprep.mubr.bf16.mxu1 %v2863_v44  ;;  %v2877_v6 = vcombine.low %v525_v38, %v532_v63  ;;  %v2879_v7 = vcombine.low %v532_v63, %v539_v0  ;;  %v2834_v14 = vcombine.low %v2776_v9, %v2777_v10  ;;  %v2783_v38 = vld [vmem:[%s4215_s26 + $0x8c] sm:$0x1]  ;;  %v2786_v63 = vld [vmem:[%s4215_s26 + $0x98] sm:$0xf] }
  0xab   : > { %3192 = vmatpush3.bf16.msra.mxu0 %v3646_v13  ;;  %v3672_v13 = vld [vmem:[%s4222_s4 + $0x298] sm:$0xff]  }
  0xac   : > { %3257 = vmatprep.subr.bf16.mxu0 %v3653_v24  ;;  %3232 = vmatpush3.bf16.msra.mxu1 %v3647_v18  ;;  %v541_v18 = vshrl.u32 %v2834_v14, 16  ;;  %v543_v19 = vshll.u32 %v2834_v14, 16  ;;  %v552_v24 = vrot.slane %v550_v21, 1  ;;  %v3703_v14 = vld [vmem:[%s4222_s4 + $0x3c0] sm:$0xff]  }
  0xad   : > { %3297 = vmatprep.subr.bf16.mxu1 %v3654_v31  ;;  %v3682_v31 = vld [vmem:[%s4222_s4 + $0x2e8] sm:$0xff]  }
  0xae   : > { %2140 = vmatmul.mubr.bf16.vlgmr.msra.gmra.mrb[16].mxu0 %v2860_v39  ;;  %v545_v23 = vrot.slane %v543_v19, 1  ;;  %v553_v27 = vor.u32 %v552_v24, %v548_v20  ;;  %v3684_v39 = vld [vmem:[%s4222_s4 + $0x2a8] sm:$0xff]   ;;  %v3704_v20 = vld [vmem:[%s4222_s4 + $0x300] sm:$0xff]  }
  0xaf   : > { %2205 = vmatmul.mubr.bf16.vlgmr.msra.gmra.mrb[16].mxu1 %v2862_v42  ;;  %3258 = vmatpush3.bf16.msra.mxu0 %v3655_v37  ;;  %v2782_v37 = vld [vmem:[%s4215_s26 + $0x88] sm:$0xf]  ;;  %v3689_v42 = vld [vmem:[%s4222_s4 + $0x270] sm:$0xff]  }
  0xb0   : > { %3298 = vmatpush3.bf16.msra.mxu1 %v3656_v40  ;;  %3259 = vmatprep.subr.bf16.mxu0 %v3657_v43  ;;  %v546_v26 = vor.u32 %v545_v23, %v541_v18  ;;  %v2836_v40 = vcombine.low %v2780_v35, %v2781_v36  ;;  %v2837_v41 = vcombine.low %v2782_v37, %v2783_v38  ;;  %v3690_v43 = vld [vmem:[%s4222_s4 + $0x2f0] sm:$0xff]   ;;  %v3705_v23 = vld [vmem:[%s4222_s4 + $0x380] sm:$0xff]  }
  0xb1   : > { %3299 = vmatprep.subr.bf16.mxu1 %v3658_v45  ;;  %2147 = vmatprep.mubr.bf16.mxu0 %v2877_v6  ;;  %v2910_v56 = vcombine.low %v2780_v35, %v2782_v37  ;;  %v3714_v37 = vld [vmem:[%s4222_s4 + $0x350] sm:$0xff]  }
  0xb2   : > { %2212 = vmatprep.mubr.bf16.mxu1 %v2879_v7  ;;  %v2893_v32 = vcombine.low %v539_v0, %v546_v26  ;;  %v2895_v33 = vcombine.low %v546_v26, %v553_v27  ;;  %v555_v44 = vshrl.u32 %v2836_v40, 16  ;;  %v557_v45 = vshll.u32 %v2836_v40, 16  ;;  %v2787_v0 = vld [vmem:[%s4215_s26 + $0x9c] sm:$0x1]  ;;  %v3702_v7 = vld [vmem:[%s4222_s4 + $0x340] sm:$0xff]   ;;  %v3706_v26 = vld [vmem:[%s4222_s4 + $0x348] sm:$0xff]  }
  0xb3   : > { %3260 = vmatpush3.bf16.msra.mxu0 %v3659_v47  ;;  %v567_v46 = vshrl.u32 %v2837_v41, 16  ;;  %v569_v47 = vshll.u32 %v2837_v41, 16 }
  0xb4   : > { %3300 = vmatpush3.bf16.msra.mxu1 %v3660_v51  ;;  %3261 = vmatprep.subr.bf16.mxu0 %v3665_v54  ;;  %v559_v49 = vrot.slane %v557_v45, 1  ;;  %v3693_v51 = vld [vmem:[%s4222_s4 + $0x278] sm:$0xff]   ;;  %v3692_v54 = vld [vmem:[%s4222_s4 + $0x2b0] sm:$0xff]  }
  0xb5   : > { %3301 = vmatprep.subr.bf16.mxu1 %v3666_v59  ;;  %v571_v50 = vrot.slane %v569_v47, 1  ;;  %v3716_v45 = vld [vmem:[%s4222_s4 + $0x310] sm:$0xff]  }
  0xb6   : > { %2148 = vmatmul.mubr.bf16.gmra.mrb[20].mxu0 %v2876_v3  ;;  %v560_v52 = vor.u32 %v559_v49, %v555_v44  ;;  %v2839_v3 = vcombine.low %v2786_v63, %v2787_v0  ;;  %v3718_v49 = vld [vmem:[%s4222_s4 + $0x358] sm:$0xff]   ;;  %v3727_v0 = vld [vmem:[%s4222_s4 + $0x3e0] sm:$0xff]  }
  0xb7   : > { %3262 = vmatpush3.bf16.msra.mxu0 %v3667_v62  ;;  %2213 = vmatmul.mubr.bf16.gmra.mrb[20].mxu1 %v2878_v4  ;;  %v572_v53 = vor.u32 %v571_v50, %v567_v46  ;;  %v2785_v62 = vld [vmem:[%s4215_s26 + $0x94] sm:$0x1]  ;;  %v4395_v4 = vld [vmem:[%s4215_s26 + $0xa0] sm:$0xf] }
  0xb8   : > { %3302 = vmatpush3.bf16.msra.mxu1 %v3668_v1  ;;  %3263 = vmatprep.subr.bf16.mxu0 %v3669_v2  ;;  %v2909_v58 = vcombine.low %v553_v27, %v560_v52  ;;  %v3696_v1 = vld [vmem:[%s4222_s4 + $0x2b8] sm:$0xff]   ;;  %v2838_v2 = vcombine.low %v2784_v61, %v2785_v62  ;;  %v621_v10 = vshrl.u32 %v2839_v3, 16  ;;  %v623_v11 = vshll.u32 %v2839_v3, 16 }
  0xb9   : > { %3303 = vmatprep.subr.bf16.mxu1 %v3670_v5  ;;  %2155 = vmatprep.mubr.bf16.mxu0 %v2893_v32  ;;  %v2911_v59 = vcombine.low %v560_v52, %v572_v53  ;;  %v2789_v5 = vld [vmem:[%s4215_s26 + $0xa4] sm:$0x1]  ;;  %v4410_v32 = vld [vmem:[%s4215_s26 + $0xb0] sm:$0xf]  ;;  %v3719_v52 = vld [vmem:[%s4222_s4 + $0x3d8] sm:$0xff]  }
  0xba   : > { %2220 = vmatprep.mubr.bf16.mxu1 %v2895_v33  ;;  %v2840_v6 = vcombine.low %v4395_v4, %v2789_v5  ;;  %v616_v9 = vshll.u32 %v2838_v2, 16  ;;  %v2793_v33 = vld [vmem:[%s4215_s26 + $0xb4] sm:$0x1]  ;;  %v3728_v5 = vld [vmem:[%s4222_s4 + $0x320] sm:$0xff]  }
  0xbb   : > { %3264 = vmatpush3.bf16.msra.mxu0 %v3671_v8  ;;  %v614_v8 = vshrl.u32 %v2838_v2, 16  ;;  %v2842_v36 = vcombine.low %v4410_v32, %v2793_v33 }
  0xbc   : > { %3265 = vmatprep.subr.bf16.mxu0 %v3677_v16  ;;  %3304 = vmatpush3.bf16.msra.mxu1 %v3672_v13  ;;  %v628_v12 = vshrl.u32 %v2840_v6, 16  ;;  %v630_v13 = vshll.u32 %v2840_v6, 16  ;;  %v618_v15 = vrot.slane %v616_v9, 1  ;;  %v625_v16 = vrot.slane %v623_v11, 1  ;;  %v3729_v11 = vld [vmem:[%s4222_s4 + $0x3a0] sm:$0xff]  }
  0xbd   : > { %3305 = vmatprep.subr.bf16.mxu1 %v3678_v17  ;;  %v642_v40 = vshrl.u32 %v2842_v36, 16  ;;  %v644_v41 = vshll.u32 %v2842_v36, 16 }
  0xbe   : > { %2156 = vmatmul.mubr.bf16.gmra.mrb[24].mxu0 %v2892_v29  ;;  %v632_v17 = vrot.slane %v630_v13, 1  ;;  %v619_v18 = vor.u32 %v618_v15, %v614_v8  ;;  %v626_v19 = vor.u32 %v625_v16, %v621_v10  ;;  %v2790_v29 = vld [vmem:[%s4215_s26 + $0xa8] sm:$0xf] }
  0xbf   : > { %3266 = vmatpush3.bf16.msra.mxu0 %v3679_v22  ;;  %2221 = vmatmul.mubr.bf16.gmra.mrb[24].mxu1 %v2894_v30  ;;  %v2864_v22 = vcombine.low %v2784_v61, %v2786_v63  ;;  %v3708_v30 = vld [vmem:[%s4222_s4 + $0x308] sm:$0xff]   ;;  %v646_v44 = vrot.slane %v644_v41, 1  ;;  %v2880_v50 = vcombine.low %v4395_v4, %v2790_v29 }
  0xc0   : > { %3267 = vmatprep.subr.bf16.mxu0 %v3681_v25  ;;  %3306 = vmatpush3.bf16.msra.mxu1 %v3680_v28  ;;  %v633_v21 = vor.u32 %v632_v17, %v628_v12  ;;  %v2865_v24 = vcombine.low %v619_v18, %v626_v19  ;;  %v2866_v25 = vcombine.low %v2786_v63, %v4395_v4  ;;  %v3707_v28 = vld [vmem:[%s4222_s4 + $0x3c8] sm:$0xff]   ;;  %v3726_v63 = vld [vmem:[%s4222_s4 + $0x360] sm:$0xff]  }
  0xc1   : > { %3307 = vmatprep.subr.bf16.mxu1 %v3682_v31  ;;  %2163 = vmatprep.mubr.bf16.mxu0 %v2909_v58  ;;  %v2791_v31 = vld [vmem:[%s4215_s26 + $0xac] sm:$0x1]  ;;  %v647_v47 = vor.u32 %v646_v44, %v642_v40  ;;  %v4427_v58 = vld [vmem:[%s4215_s26 + $0xc0] sm:$0xf]  ;;  %v2798_v18 = vld [vmem:[%s4215_s26 + $0xc8] sm:$0xf] }
  0xc2   : > { %2228 = vmatprep.mubr.bf16.mxu1 %v2911_v59  ;;  %v2867_v27 = vcombine.low %v626_v19, %v633_v21  ;;  %v2841_v35 = vcombine.low %v2790_v29, %v2791_v31  ;;  %v2797_v59 = vld [vmem:[%s4215_s26 + $0xc4] sm:$0x1]  ;;  %v3730_v8 = vld [vmem:[%s4222_s4 + $0x368] sm:$0xff]   ;;  %v3740_v31 = vld [vmem:[%s4222_s4 + $0x330] sm:$0xff]  }
  0xc3   : > { %3268 = vmatpush3.bf16.msra.mxu0 %v3683_v34  ;;  %v3709_v34 = vld [vmem:[%s4222_s4 + $0x388] sm:$0xff]   ;;  %v2844_v62 = vcombine.low %v4427_v58, %v2797_v59  ;;  %v3743_v40 = vld [vmem:[%s4222_s4 + $0x3f8] sm:$0xff]  }
  0xc4   : > { %3269 = vmatprep.subr.bf16.mxu0 %v3689_v42  ;;  %3308 = vmatpush3.bf16.msra.mxu1 %v3684_v39  ;;  %v635_v38 = vshrl.u32 %v2841_v35, 16  ;;  %v637_v39 = vshll.u32 %v2841_v35, 16  ;;  %v3715_v42 = vld [vmem:[%s4222_s4 + $0x3d0] sm:$0xff]   ;;  %v3732_v17 = vld [vmem:[%s4222_s4 + $0x328] sm:$0xff]   ;;  %v4455_v44 = vld [vmem:[%s4215_s26 + $0xd8] sm:$0xf] }
  0xc5   : > { %3309 = vmatprep.subr.bf16.mxu1 %v3690_v43  ;;  %v656_v3 = vshrl.u32 %v2844_v62, 16  ;;  %v658_v4 = vshll.u32 %v2844_v62, 16  ;;  %v2799_v19 = vld [vmem:[%s4215_s26 + $0xcc] sm:$0x1]  ;;  %v4479_v62 = vld [vmem:[%s4215_s26 + $0x100] sm:$0xf] }
  0xc6   : > { %2164 = vmatmul.mubr.bf16.gmra.mrb[28].mxu0 %v2908_v55  ;;  %v639_v43 = vrot.slane %v637_v39, 1  ;;  %v3720_v55 = vld [vmem:[%s4222_s4 + $0x318] sm:$0xff]  }
  0xc7   : > { %3270 = vmatpush3.bf16.msra.mxu0 %v3691_v48  ;;  %2229 = vmatmul.mubr.bf16.gmra.mrb[28].mxu1 %v2910_v56  ;;  %v3717_v48 = vld [vmem:[%s4222_s4 + $0x390] sm:$0xff]   ;;  %v2794_v56 = vld [vmem:[%s4215_s26 + $0xb8] sm:$0xf] }
  0xc8   : > { %3271 = vmatprep.subr.bf16.mxu0 %v3693_v51  ;;  %3310 = vmatpush3.bf16.msra.mxu1 %v3692_v54  ;;  %v640_v46 = vor.u32 %v639_v43, %v635_v38  ;;  %v2882_v51 = vcombine.low %v2790_v29, %v4410_v32  ;;  %v2896_v12 = vcombine.low %v4410_v32, %v2794_v56  ;;  %v3744_v43 = vld [vmem:[%s4222_s4 + $0x338] sm:$0xff]  }
  0xc9   : > { %3311 = vmatprep.subr.bf16.mxu1 %v3694_v57  ;;  %2269 = vmatprep.mubr.bf16.mxu0 %v2865_v24  ;;  %v2795_v57 = vld [vmem:[%s4215_s26 + $0xbc] sm:$0x1]  ;;  %v2898_v13 = vcombine.low %v2794_v56, %v4427_v58  ;;  %v2912_v38 = vcombine.low %v4427_v58, %v2798_v18 }
  0xca   : > { %2334 = vmatprep.mubr.bf16.mxu1 %v2867_v27  ;;  %v2881_v53 = vcombine.low %v633_v21, %v640_v46  ;;  %v2883_v54 = vcombine.low %v640_v46, %v647_v47  ;;  %v2843_v61 = vcombine.low %v2794_v56, %v2795_v57  ;;  %v2801_v21 = vld [vmem:[%s4215_s26 + $0xd4] sm:$0x1]  ;;  %v4459_v46 = vld [vmem:[%s4215_s26 + $0xe0] sm:$0xf]  ;;  %v4475_v56 = vld [vmem:[%s4215_s26 + $0xf8] sm:$0xf] }
  0xcb   : > { %3272 = vmatpush3.bf16.msra.mxu0 %v3695_v60  ;;  %v3721_v60 = vld [vmem:[%s4222_s4 + $0x398] sm:$0xff]  }
  0xcc   : > { %3337 = vmatprep.subr.bf16.mxu0 %v3702_v7  ;;  %3312 = vmatpush3.bf16.msra.mxu1 %v3696_v1  ;;  %v649_v1 = vshrl.u32 %v2843_v61, 16  ;;  %v651_v2 = vshll.u32 %v2843_v61, 16  ;;  %v660_v7 = vrot.slane %v658_v4, 1  ;;  %v2811_v57 = vld [vmem:[%s4215_s26 + $0xfc] sm:$0x1] }
  0xcd   : > { %3377 = vmatprep.subr.bf16.mxu1 %v3703_v14  ;;  %v3731_v14 = vld [vmem:[%s4222_s4 + $0x3e8] sm:$0xff]  }
  0xce   : > { %2270 = vmatmul.mubr.bf16.vlgmr.msra.gmra.mrb[32].mxu0 %v2864_v22  ;;  %v653_v6 = vrot.slane %v651_v2, 1  ;;  %v661_v10 = vor.u32 %v660_v7, %v656_v3  ;;  %v3733_v22 = vld [vmem:[%s4222_s4 + $0x3a8] sm:$0xff]   ;;  %v2851_v2 = vcombine.low %v4475_v56, %v2811_v57  ;;  %v2813_v3 = vld [vmem:[%s4215_s26 + $0x104] sm:$0x1]  ;;  %v2900_v57 = vcombine.low %v4475_v56, %v4479_v62 }
  0xcf   : > { %2335 = vmatmul.mubr.bf16.vlgmr.msra.gmra.mrb[32].mxu1 %v2866_v25  ;;  %3338 = vmatpush3.bf16.msra.mxu0 %v3704_v20  ;;  %v2800_v20 = vld [vmem:[%s4215_s26 + $0xd0] sm:$0xf]  ;;  %v4486_v7 = vld [vmem:[%s4215_s26 + $0x108] sm:$0xf] }
  0xd0   : > { %3378 = vmatpush3.bf16.msra.mxu1 %v3705_v23  ;;  %3339 = vmatprep.subr.bf16.mxu0 %v3706_v26  ;;  %v654_v9 = vor.u32 %v653_v6, %v649_v1  ;;  %v2845_v23 = vcombine.low %v2798_v18, %v2799_v19  ;;  %v2846_v24 = vcombine.low %v2800_v20, %v2801_v21  ;;  %v3738_v25 = vld [vmem:[%s4222_s4 + $0x370] sm:$0xff]  }
  0xd1   : > { %3379 = vmatprep.subr.bf16.mxu1 %v3707_v28  ;;  %2277 = vmatprep.mubr.bf16.mxu0 %v2881_v53  ;;  %v3739_v26 = vld [vmem:[%s4222_s4 + $0x3f0] sm:$0xff]   ;;  %v2914_v39 = vcombine.low %v2798_v18, %v2800_v20  ;;  %v2852_v6 = vcombine.low %v4479_v62, %v2813_v3 }
  0xd2   : > { %2342 = vmatprep.mubr.bf16.mxu1 %v2883_v54  ;;  %v2897_v15 = vcombine.low %v647_v47, %v654_v9  ;;  %v2899_v16 = vcombine.low %v654_v9, %v661_v10  ;;  %v663_v27 = vshrl.u32 %v2845_v23, 16  ;;  %v665_v28 = vshll.u32 %v2845_v23, 16  ;;  %v2805_v47 = vld [vmem:[%s4215_s26 + $0xe4] sm:$0x1]  ;;  %v4470_v53 = vld [vmem:[%s4215_s26 + $0xf0] sm:$0xf] }
  0xd3   : > { %3340 = vmatpush3.bf16.msra.mxu0 %v3708_v30  ;;  %v675_v29 = vshrl.u32 %v2846_v24, 16  ;;  %v677_v30 = vshll.u32 %v2846_v24, 16  ;;  %v2817_v18 = vld [vmem:[%s4215_s26 + $0x114] sm:$0x1]  ;;  %v759_v21 = vshll.u32 %v2852_v6, 16 }
  0xd4   : > { %3380 = vmatpush3.bf16.msra.mxu1 %v3709_v34  ;;  %3341 = vmatprep.subr.bf16.mxu0 %v3714_v37  ;;  %v667_v32 = vrot.slane %v665_v28, 1  ;;  %v3742_v34 = vld [vmem:[%s4222_s4 + $0x378] sm:$0xff]   ;;  %v3741_v37 = vld [vmem:[%s4222_s4 + $0x3b0] sm:$0xff]   ;;  %v757_v28 = vshrl.u32 %v2852_v6, 16 }
  0xd5   : > { %3381 = vmatprep.subr.bf16.mxu1 %v3715_v42  ;;  %v679_v33 = vrot.slane %v677_v30, 1  ;;  %v2818_v23 = vld [vmem:[%s4215_s26 + $0x118] sm:$0xf]  ;;  %v2819_v24 = vld [vmem:[%s4215_s26 + $0x11c] sm:$0x1] }
  0xd6   : > { %2278 = vmatmul.mubr.bf16.gmra.mrb[36].mxu0 %v2880_v50  ;;  %v668_v35 = vor.u32 %v667_v32, %v663_v27  ;;  %v2848_v50 = vcombine.low %v4459_v46, %v2805_v47 }
  0xd7   : > { %3342 = vmatpush3.bf16.msra.mxu0 %v3716_v45  ;;  %2343 = vmatmul.mubr.bf16.gmra.mrb[36].mxu1 %v2882_v51  ;;  %v680_v36 = vor.u32 %v679_v33, %v675_v29  ;;  %v2803_v45 = vld [vmem:[%s4215_s26 + $0xdc] sm:$0x1]  ;;  %v4466_v51 = vld [vmem:[%s4215_s26 + $0xe8] sm:$0xf] }
  0xd8   : > { %3382 = vmatpush3.bf16.msra.mxu1 %v3717_v48  ;;  %3343 = vmatprep.subr.bf16.mxu0 %v3718_v49  ;;  %v2913_v41 = vcombine.low %v661_v10, %v668_v35  ;;  %v3745_v48 = vld [vmem:[%s4222_s4 + $0x3b8] sm:$0xff]   ;;  %v2847_v49 = vcombine.low %v4455_v44, %v2803_v45  ;;  %v731_v61 = vshll.u32 %v2848_v50, 16  ;;  %v2868_v10 = vcombine.low %v4455_v44, %v4459_v46 }
  0xd9   : > { %3383 = vmatprep.subr.bf16.mxu1 %v3719_v52  ;;  %2285 = vmatprep.mubr.bf16.mxu0 %v2897_v15  ;;  %v2915_v42 = vcombine.low %v668_v35, %v680_v36  ;;  %v2807_v52 = vld [vmem:[%s4215_s26 + $0xec] sm:$0x1]  ;;  %v750_v15 = vshrl.u32 %v2851_v2, 16  ;;  %v2855_v36 = vcombine.low %v2818_v23, %v2819_v24  ;;  %v2884_v44 = vcombine.low %v4466_v51, %v4470_v53 }
  0xda   : > { %2350 = vmatprep.mubr.bf16.mxu1 %v2899_v16  ;;  %v2849_v54 = vcombine.low %v4466_v51, %v2807_v52  ;;  %v722_v58 = vshrl.u32 %v2847_v49, 16  ;;  %v724_v59 = vshll.u32 %v2847_v49, 16  ;;  %v752_v16 = vshll.u32 %v2851_v2, 16 }
  0xdb   : > { %3344 = vmatpush3.bf16.msra.mxu0 %v3720_v55  ;;  %v2809_v55 = vld [vmem:[%s4215_s26 + $0xf4] sm:$0x1]  ;;  %v2886_v45 = vcombine.low %v4470_v53, %v4475_v56 }
  0xdc   : > { %3345 = vmatprep.subr.bf16.mxu0 %v3726_v63  ;;  %3384 = vmatpush3.bf16.msra.mxu1 %v3721_v60  ;;  %v729_v60 = vshrl.u32 %v2848_v50, 16  ;;  %v736_v63 = vshrl.u32 %v2849_v54, 16  ;;  %v2850_v1 = vcombine.low %v4470_v53, %v2809_v55  ;;  %v726_v4 = vrot.slane %v724_v59, 1 }
  0xdd   : > { %3385 = vmatprep.subr.bf16.mxu1 %v3727_v0  ;;  %v738_v0 = vshll.u32 %v2849_v54, 16  ;;  %v754_v27 = vrot.slane %v752_v16, 1  ;;  %v783_v50 = vshrl.u32 %v2855_v36, 16 }
  0xde   : > { %2286 = vmatmul.mubr.bf16.gmra.mrb[40].mxu0 %v2896_v12  ;;  %v745_v12 = vshll.u32 %v2850_v1, 16 }
  0xdf   : > { %3346 = vmatpush3.bf16.msra.mxu0 %v3728_v5  ;;  %2351 = vmatmul.mubr.bf16.gmra.mrb[40].mxu1 %v2898_v13  ;;  %v733_v5 = vrot.slane %v731_v61, 1  ;;  %v740_v9 = vrot.slane %v738_v0, 1  ;;  %v727_v13 = vor.u32 %v726_v4, %v722_v58  ;;  %v755_v33 = vor.u32 %v754_v27, %v750_v15 }
  0xe0   : > { %3347 = vmatprep.subr.bf16.mxu0 %v3730_v8  ;;  %3386 = vmatpush3.bf16.msra.mxu1 %v3729_v11  ;;  %v2815_v8 = vld [vmem:[%s4215_s26 + $0x10c] sm:$0x1]  ;;  %v743_v11 = vshrl.u32 %v2850_v1, 16  ;;  %v747_v20 = vrot.slane %v745_v12, 1 }
  0xe1   : > { %3387 = vmatprep.subr.bf16.mxu1 %v3731_v14  ;;  %2293 = vmatprep.mubr.bf16.mxu0 %v2913_v41  ;;  %v734_v14 = vor.u32 %v733_v5, %v729_v60  ;;  %v741_v19 = vor.u32 %v740_v9, %v736_v63 }
  0xe2   : > { %2358 = vmatprep.mubr.bf16.mxu1 %v2915_v42  ;;  %v748_v30 = vor.u32 %v747_v20, %v743_v11  ;;  %v785_v42 = vshll.u32 %v2855_v36, 16 }
  0xe3   : > { %3348 = vmatpush3.bf16.msra.mxu0 %v3732_v17  ;;  %v2816_v17 = vld [vmem:[%s4215_s26 + $0x110] sm:$0xf]  ;;  %v2871_v29 = vcombine.low %v734_v14, %v741_v19 }
  0xe4   : > { %3349 = vmatprep.subr.bf16.mxu0 %v3738_v25  ;;  %3388 = vmatpush3.bf16.msra.mxu1 %v3733_v22  ;;  %v2853_v22 = vcombine.low %v4486_v7, %v2815_v8  ;;  %v2869_v25 = vcombine.low %v727_v13, %v734_v14  ;;  %v2854_v35 = vcombine.low %v2816_v17, %v2817_v18  ;;  %v787_v52 = vrot.slane %v785_v42, 1 }
  0xe5   : > { %3389 = vmatprep.subr.bf16.mxu1 %v3739_v26  ;;  %v2870_v26 = vcombine.low %v4459_v46, %v4466_v51  ;;  %v2902_v51 = vcombine.low %v4479_v62, %v4486_v7  ;;  %v2916_v59 = vcombine.low %v4486_v7, %v2816_v17  ;;  %v2918_v60 = vcombine.low %v2816_v17, %v2818_v23 }
  0xe6   : > { %2294 = vmatmul.mubr.bf16.gmra.mrb[44].mxu0 %v2912_v38  ;;  %v764_v32 = vshrl.u32 %v2853_v22, 16  ;;  %v2887_v38 = vcombine.low %v748_v30, %v755_v33  ;;  %v773_v41 = vshll.u32 %v2854_v35, 16  ;;  %v771_v47 = vshrl.u32 %v2854_v35, 16 }
  0xe7   : > { %3350 = vmatpush3.bf16.msra.mxu0 %v3740_v31  ;;  %2359 = vmatmul.mubr.bf16.gmra.mrb[44].mxu1 %v2914_v39  ;;  %v761_v31 = vrot.slane %v759_v21, 1  ;;  %v788_v55 = vor.u32 %v787_v52, %v783_v50 }
  0xe8   : > { %3351 = vmatprep.subr.bf16.mxu0 %v3742_v34  ;;  %3390 = vmatpush3.bf16.msra.mxu1 %v3741_v37  ;;  %v766_v34 = vshll.u32 %v2853_v22, 16  ;;  %v2885_v37 = vcombine.low %v741_v19, %v748_v30 }
  0xe9   : > { %3391 = vmatprep.subr.bf16.mxu1 %v3743_v40  ;;  %2399 = vmatprep.mubr.bf16.mxu0 %v2869_v25  ;;  %v762_v39 = vor.u32 %v761_v31, %v757_v28 }
  0xea   : > { %2464 = vmatprep.mubr.bf16.mxu1 %v2871_v29  ;;  %v768_v40 = vrot.slane %v766_v34, 1 }
  0xeb   : > { %3352 = vmatpush3.bf16.msra.mxu0 %v3744_v43  ;;  %v2901_v46 = vcombine.low %v755_v33, %v762_v39 }
  0xec   : > { %3392 = vmatpush3.bf16.msra.mxu1 %v3745_v48  ;;  %v769_v43 = vor.u32 %v768_v40, %v764_v32  ;;  %v775_v48 = vrot.slane %v773_v41, 1 }
  0xee   : > { %2400 = vmatmul.mubr.bf16.vlgmr.msra.gmra.mrb[48].mxu0 %v2868_v10  ;;  %v2903_v49 = vcombine.low %v762_v39, %v769_v43  ;;  %v776_v54 = vor.u32 %v775_v48, %v771_v47 }
  0xef   : > { %2465 = vmatmul.mubr.bf16.vlgmr.msra.gmra.mrb[48].mxu1 %v2870_v26  ;;  %2407 = vmatprep.mubr.bf16.mxu0 %v2885_v37 }
  0xf0   : > { %2472 = vmatprep.mubr.bf16.mxu1 %v2887_v38  ;;  %v2917_v58 = vcombine.low %v769_v43, %v776_v54  ;;  %v2919_v53 = vcombine.low %v776_v54, %v788_v55 }
  0xf6   : > { %2408 = vmatmul.mubr.bf16.gmra.mrb[52].mxu0 %v2884_v44 }
  0xf7   : > { %2473 = vmatmul.mubr.bf16.gmra.mrb[52].mxu1 %v2886_v45  ;;  %2415 = vmatprep.mubr.bf16.mxu0 %v2901_v46 }
  0xf8   : > { %2480 = vmatprep.mubr.bf16.mxu1 %v2903_v49 }
  0xfe   : > { %2416 = vmatmul.mubr.bf16.gmra.mrb[56].mxu0 %v2900_v57 }
  0xff   : > { %2481 = vmatmul.mubr.bf16.gmra.mrb[56].mxu1 %v2902_v51  ;;  %2423 = vmatprep.mubr.bf16.mxu0 %v2917_v58 }
 0x100   : > { %2488 = vmatprep.mubr.bf16.mxu1 %v2919_v53 }
 0x106   : > { %2424 = vmatmul.mubr.bf16.gmra.mrb[60].mxu0 %v2916_v59 }
 0x107   : > { %2489 = vmatmul.mubr.bf16.gmra.mrb[60].mxu1 %v2918_v60 }
 0x161   : > { %v3113_v61 = vpop.f32.mrb[0].mxu0 }
 0x162   : > { %v3153_v63 = vpop.f32.mrb[0].mxu1  ;;  %v3114_v0 = vpop.f32.mrb[1].mxu0 }
 0x163   : > { %v3154_v1 = vpop.f32.mrb[1].mxu1  ;;  %v3115_v2 = vadd.f32 %v3114_v0, %v3113_v61  ;;  %v3116_v3 = vpop.f32.mrb[2].mxu0 }
 0x164   : > { %v3155_v56 = vadd.f32 %v3154_v1, %v3153_v63  ;;  %v3156_v4 = vpop.f32.mrb[2].mxu1  ;;  %v3117_v62 = vpop.f32.mrb[3].mxu0 }
 0x165   : > { %v3157_v5 = vpop.f32.mrb[3].mxu1  ;;  %v3118_v8 = vadd.f32 %v3117_v62, %v3116_v3 }
 0x166   : > { %v2077_v6 = vadd.f32 %v3155_v56, %v3115_v2  ;;  %v3158_v9 = vadd.f32 %v3157_v5, %v3156_v4 }
 0x168   : > { %v2080_v10 = vadd.f32 %v3158_v9, %v3118_v8 }
 0x169   : > { %v3119_v11 = vpop.f32.mrb[4].mxu0 }
 0x16a   : > { %v3159_v12 = vpop.f32.mrb[4].mxu1  ;;  %v3120_v7 = vpop.f32.mrb[5].mxu0 }
 0x16b   : > { %v3121_v13 = vadd.f32 %v3120_v7, %v3119_v11  ;;  %v3160_v14 = vpop.f32.mrb[5].mxu1  ;;  %v3122_v15 = vpop.f32.mrb[6].mxu0 }
 0x16c   : > { %v3161_v16 = vadd.f32 %v3160_v14, %v3159_v12  ;;  %v3162_v17 = vpop.f32.mrb[6].mxu1  ;;  %v3123_v18 = vpop.f32.mrb[7].mxu0 }
 0x16d   : > { %v3124_v19 = vadd.f32 %v3123_v18, %v3122_v15  ;;  %v3163_v20 = vpop.f32.mrb[7].mxu1 }
 0x16e   : > { %v2085_v21 = vadd.f32 %v3161_v16, %v3121_v13  ;;  %v3164_v22 = vadd.f32 %v3163_v20, %v3162_v17 }
 0x170   : > { %v2088_v23 = vadd.f32 %v3164_v22, %v3124_v19 }
 0x171   : > { %v3125_v24 = vpop.f32.mrb[8].mxu0 }
 0x172   : > { %v3165_v25 = vpop.f32.mrb[8].mxu1  ;;  %v3126_v26 = vpop.f32.mrb[9].mxu0 }
 0x173   : > { %v3166_v27 = vpop.f32.mrb[9].mxu1  ;;  %v3127_v28 = vadd.f32 %v3126_v26, %v3125_v24  ;;  %v3128_v30 = vpop.f32.mrb[10].mxu0 }
 0x174   : > { %v3167_v29 = vadd.f32 %v3166_v27, %v3165_v25  ;;  %v3168_v31 = vpop.f32.mrb[10].mxu1  ;;  %v3129_v32 = vpop.f32.mrb[11].mxu0 }
 0x175   : > { %v3169_v33 = vpop.f32.mrb[11].mxu1  ;;  %v3130_v35 = vadd.f32 %v3129_v32, %v3128_v30 }
 0x176   : > { %v2093_v34 = vadd.f32 %v3167_v29, %v3127_v28  ;;  %v3170_v36 = vadd.f32 %v3169_v33, %v3168_v31 }
 0x178   : > { %v2096_v37 = vadd.f32 %v3170_v36, %v3130_v35 }
 0x179   : > { %v3131_v38 = vpop.f32.mrb[12].mxu0 }
 0x17a   : > { %v3171_v39 = vpop.f32.mrb[12].mxu1  ;;  %v3132_v40 = vpop.f32.mrb[13].mxu0 }
 0x17b   : > { %v3172_v41 = vpop.f32.mrb[13].mxu1  ;;  %v3133_v42 = vadd.f32 %v3132_v40, %v3131_v38  ;;  %v3134_v44 = vpop.f32.mrb[14].mxu0 }
 0x17c   : > { %v3173_v43 = vadd.f32 %v3172_v41, %v3171_v39  ;;  %v3174_v45 = vpop.f32.mrb[14].mxu1  ;;  %v3135_v46 = vpop.f32.mrb[15].mxu0 }
 0x17d   : > { %v3175_v47 = vpop.f32.mrb[15].mxu1  ;;  %v3136_v49 = vadd.f32 %v3135_v46, %v3134_v44 }
 0x17e   : > { %v2101_v48 = vadd.f32 %v3173_v43, %v3133_v42  ;;  %v3176_v50 = vadd.f32 %v3175_v47, %v3174_v45 }
 0x180   : > { %v4507_v52 = vadd.f32 %v3176_v50, %v3136_v49 }
 0x181   : > { %v3193_v54 = vpop.f32.mrb[16].mxu0 }
 0x182   : > { %v3233_v55 = vpop.f32.mrb[16].mxu1  ;;  %v3194_v57 = vpop.f32.mrb[17].mxu0 }
 0x183   : > { %v3195_v51 = vadd.f32 %v3194_v57, %v3193_v54  ;;  %v3234_v58 = vpop.f32.mrb[17].mxu1  ;;  %v3196_v53 = vpop.f32.mrb[18].mxu0 }
 0x184   : > { %v3235_v59 = vadd.f32 %v3234_v58, %v3233_v55  ;;  %v3236_v60 = vpop.f32.mrb[18].mxu1  ;;  %v3197_v61 = vpop.f32.mrb[19].mxu0 }
 0x185   : > { %v2142_v63 = vadd.f32 %v3195_v51, %v2077_v6  ;;  %v3198_v0 = vadd.f32 %v3197_v61, %v3196_v53  ;;  %v3237_v1 = vpop.f32.mrb[19].mxu1 }
 0x186   : > { %v3238_v2 = vadd.f32 %v3237_v1, %v3236_v60 }
 0x187   : > { %v2207_v56 = vadd.f32 %v3235_v59, %v2142_v63  ;;  %v2145_v3 = vadd.f32 %v3198_v0, %v2080_v10 }
 0x189   : > { %v4509_v4 = vadd.f32 %v3238_v2, %v2145_v3  ;;  %v3199_v62 = vpop.f32.mrb[20].mxu0 }
 0x18a   : > { %v3239_v5 = vpop.f32.mrb[20].mxu1  ;;  %v3200_v8 = vpop.f32.mrb[21].mxu0 }
 0x18b   : > { %v3240_v9 = vpop.f32.mrb[21].mxu1  ;;  %v3201_v11 = vadd.f32 %v3200_v8, %v3199_v62  ;;  %v3202_v7 = vpop.f32.mrb[22].mxu0 }
 0x18c   : > { %v3241_v12 = vadd.f32 %v3240_v9, %v3239_v5  ;;  %v3242_v13 = vpop.f32.mrb[22].mxu1  ;;  %v3203_v14 = vpop.f32.mrb[23].mxu0 }
 0x18d   : > { %v3243_v15 = vpop.f32.mrb[23].mxu1  ;;  %v2150_v16 = vadd.f32 %v3201_v11, %v2085_v21  ;;  %v3204_v17 = vadd.f32 %v3203_v14, %v3202_v7 }
 0x18e   : > { %v3244_v6 = vadd.f32 %v3243_v15, %v3242_v13 }
 0x18f   : > { %v2215_v18 = vadd.f32 %v3241_v12, %v2150_v16  ;;  %v2153_v19 = vadd.f32 %v3204_v17, %v2088_v23 }
 0x191   : > { %v4511_v20 = vadd.f32 %v3244_v6, %v2153_v19  ;;  %v3205_v10 = vpop.f32.mrb[24].mxu0 }
 0x192   : > { %v3245_v22 = vpop.f32.mrb[24].mxu1  ;;  %v3206_v24 = vpop.f32.mrb[25].mxu0 }
 0x193   : > { %v3246_v25 = vpop.f32.mrb[25].mxu1  ;;  %v3207_v26 = vadd.f32 %v3206_v24, %v3205_v10  ;;  %v3208_v28 = vpop.f32.mrb[26].mxu0 }
 0x194   : > { %v3247_v27 = vadd.f32 %v3246_v25, %v3245_v22  ;;  %v3248_v29 = vpop.f32.mrb[26].mxu1  ;;  %v3209_v30 = vpop.f32.mrb[27].mxu0 }
 0x195   : > { %v3249_v31 = vpop.f32.mrb[27].mxu1  ;;  %v2158_v32 = vadd.f32 %v3207_v26, %v2093_v34  ;;  %v3210_v33 = vadd.f32 %v3209_v30, %v3208_v28 }
 0x196   : > { %v3250_v35 = vadd.f32 %v3249_v31, %v3248_v29 }
 0x197   : > { %v2223_v21 = vadd.f32 %v3247_v27, %v2158_v32  ;;  %v2161_v36 = vadd.f32 %v3210_v33, %v2096_v37 }
 0x199   : > { %v4513_v38 = vadd.f32 %v3250_v35, %v2161_v36  ;;  %v3211_v23 = vpop.f32.mrb[28].mxu0 }
 0x19a   : > { %v3251_v39 = vpop.f32.mrb[28].mxu1  ;;  %v3212_v40 = vpop.f32.mrb[29].mxu0 }
 0x19b   : > { %v3252_v41 = vpop.f32.mrb[29].mxu1  ;;  %v3213_v42 = vadd.f32 %v3212_v40, %v3211_v23  ;;  %v3214_v44 = vpop.f32.mrb[30].mxu0 }
 0x19c   : > { %v3253_v43 = vadd.f32 %v3252_v41, %v3251_v39  ;;  %v3254_v45 = vpop.f32.mrb[30].mxu1  ;;  %v3215_v46 = vpop.f32.mrb[31].mxu0 }
 0x19d   : > { %v3255_v47 = vpop.f32.mrb[31].mxu1  ;;  %v2166_v49 = vadd.f32 %v3213_v42, %v2101_v48  ;;  %v3216_v50 = vadd.f32 %v3215_v46, %v3214_v44 }
 0x19e   : > { %v3256_v54 = vadd.f32 %v3255_v47, %v3254_v45 }
 0x19f   : > { %v2231_v34 = vadd.f32 %v3253_v43, %v2166_v49  ;;  %v2169_v55 = vadd.f32 %v3216_v50, %v4507_v52 }
 0x1a1   : > { %v4516_v57 = vadd.f32 %v3256_v54, %v2169_v55  ;;  %v3273_v37 = vpop.f32.mrb[32].mxu0 }
 0x1a2   : > { %v3313_v51 = vpop.f32.mrb[32].mxu1  ;;  %v3274_v58 = vpop.f32.mrb[33].mxu0 }
 0x1a3   : > { %v3275_v53 = vadd.f32 %v3274_v58, %v3273_v37  ;;  %v3314_v59 = vpop.f32.mrb[33].mxu1  ;;  %v3276_v60 = vpop.f32.mrb[34].mxu0 }
 0x1a4   : > { %v3315_v61 = vadd.f32 %v3314_v59, %v3313_v51  ;;  %v3316_v63 = vpop.f32.mrb[34].mxu1  ;;  %v3277_v0 = vpop.f32.mrb[35].mxu0 }
 0x1a5   : > { %v2272_v1 = vadd.f32 %v3275_v53, %v2207_v56  ;;  %v3278_v2 = vadd.f32 %v3277_v0, %v3276_v60  ;;  %v3317_v3 = vpop.f32.mrb[35].mxu1 }
 0x1a6   : > { %v3318_v48 = vadd.f32 %v3317_v3, %v3316_v63 }
 0x1a7   : > { %v2337_v62 = vadd.f32 %v3315_v61, %v2272_v1  ;;  %v2275_v5 = vadd.f32 %v3278_v2, %v4509_v4 }
 0x1a9   : > { %v4519_v8 = vadd.f32 %v3318_v48, %v2275_v5  ;;  %v3279_v52 = vpop.f32.mrb[36].mxu0 }
 0x1aa   : > { %v3319_v9 = vpop.f32.mrb[36].mxu1  ;;  %v3280_v11 = vpop.f32.mrb[37].mxu0 }
 0x1ab   : > { %v3320_v12 = vpop.f32.mrb[37].mxu1  ;;  %v3281_v7 = vadd.f32 %v3280_v11, %v3279_v52  ;;  %v3282_v14 = vpop.f32.mrb[38].mxu0 }
 0x1ac   : > { %v3321_v13 = vadd.f32 %v3320_v12, %v3319_v9  ;;  %v3322_v15 = vpop.f32.mrb[38].mxu1  ;;  %v3283_v16 = vpop.f32.mrb[39].mxu0 }
 0x1ad   : > { %v3323_v17 = vpop.f32.mrb[39].mxu1  ;;  %v2280_v6 = vadd.f32 %v3281_v7, %v2215_v18  ;;  %v3284_v56 = vadd.f32 %v3283_v16, %v3282_v14 }
 0x1ae   : > { %v3324_v19 = vadd.f32 %v3323_v17, %v3322_v15 }
 0x1af   : > { %v4521_v10 = vadd.f32 %v3321_v13, %v2280_v6  ;;  %v2283_v22 = vadd.f32 %v3284_v56, %v4511_v20 }
 0x1b1   : > { %v4524_v4 = vadd.f32 %v3324_v19, %v2283_v22  ;;  %v3285_v24 = vpop.f32.mrb[40].mxu0 }
 0x1b2   : > { %v3325_v25 = vpop.f32.mrb[40].mxu1  ;;  %v3286_v26 = vpop.f32.mrb[41].mxu0 }
 0x1b3   : > { %v3326_v27 = vpop.f32.mrb[41].mxu1  ;;  %v3287_v28 = vadd.f32 %v3286_v26, %v3285_v24  ;;  %v3288_v30 = vpop.f32.mrb[42].mxu0 }
 0x1b4   : > { %v3327_v29 = vadd.f32 %v3326_v27, %v3325_v25  ;;  %v3328_v31 = vpop.f32.mrb[42].mxu1  ;;  %v3289_v32 = vpop.f32.mrb[43].mxu0 }
 0x1b5   : > { %v3329_v33 = vpop.f32.mrb[43].mxu1  ;;  %v2288_v35 = vadd.f32 %v3287_v28, %v2223_v21  ;;  %v3290_v18 = vadd.f32 %v3289_v32, %v3288_v30 }
 0x1b6   : > { %v3330_v36 = vadd.f32 %v3329_v33, %v3328_v31 }
 0x1b7   : > { %v4526_v23 = vadd.f32 %v3327_v29, %v2288_v35  ;;  %v2291_v39 = vadd.f32 %v3290_v18, %v4513_v38 }
 0x1b9   : > { %v4529_v20 = vadd.f32 %v3330_v36, %v2291_v39  ;;  %v3291_v40 = vpop.f32.mrb[44].mxu0 }
 0x1ba   : > { %v3331_v41 = vpop.f32.mrb[44].mxu1  ;;  %v3292_v42 = vpop.f32.mrb[45].mxu0 }
 0x1bb   : > { %v3332_v43 = vpop.f32.mrb[45].mxu1  ;;  %v3293_v44 = vadd.f32 %v3292_v42, %v3291_v40  ;;  %v3294_v46 = vpop.f32.mrb[46].mxu0 }
 0x1bc   : > { %v3333_v45 = vadd.f32 %v3332_v43, %v3331_v41  ;;  %v3334_v47 = vpop.f32.mrb[46].mxu1  ;;  %v3295_v49 = vpop.f32.mrb[47].mxu0 }
 0x1bd   : > { %v3335_v50 = vpop.f32.mrb[47].mxu1  ;;  %v2296_v21 = vadd.f32 %v3293_v44, %v2231_v34  ;;  %v3296_v54 = vadd.f32 %v3295_v49, %v3294_v46 }
 0x1be   : > { %v3336_v55 = vadd.f32 %v3335_v50, %v3334_v47 }
 0x1bf   : > { %v4531_v37 = vadd.f32 %v3333_v45, %v2296_v21  ;;  %v2299_v38 = vadd.f32 %v3296_v54, %v4516_v57 }
 0x1c1   : > { %v4534_v51 = vadd.f32 %v3336_v55, %v2299_v38  ;;  %v3353_v58 = vpop.f32.mrb[48].mxu0 }
 0x1c2   : > { %v3393_v53 = vpop.f32.mrb[48].mxu1  ;;  %v3354_v59 = vpop.f32.mrb[49].mxu0 }
 0x1c3   : > { %v3355_v60 = vadd.f32 %v3354_v59, %v3353_v58  ;;  %v3394_v61 = vpop.f32.mrb[49].mxu1  ;;  %v3356_v63 = vpop.f32.mrb[50].mxu0 }
 0x1c4   : > { %v3395_v0 = vadd.f32 %v3394_v61, %v3393_v53  ;;  %v3396_v1 = vpop.f32.mrb[50].mxu1  ;;  %v3357_v2 = vpop.f32.mrb[51].mxu0 }
 0x1c5   : > { %v2402_v34 = vadd.f32 %v3355_v60, %v2337_v62  ;;  %v3358_v3 = vadd.f32 %v3357_v2, %v3356_v63  ;;  %v3397_v48 = vpop.f32.mrb[51].mxu1 }
 0x1c6   : > { %v3398_v5 = vadd.f32 %v3397_v48, %v3396_v1 }
 0x1c7   : > { %v2467_v52 = vadd.f32 %v3395_v0, %v2402_v34  ;;  %v2405_v57 = vadd.f32 %v3358_v3, %v4519_v8 }
 0x1c9   : > { %v2470_v9 = vadd.f32 %v3398_v5, %v2405_v57  ;;  %v3359_v11 = vpop.f32.mrb[52].mxu0  ;;  %v2550_v12 = vmul.f32 %v2467_v52, %v2467_v52 }
 0x1ca   : > { %v3399_v7 = vpop.f32.mrb[52].mxu1  ;;  %v3360_v13 = vpop.f32.mrb[53].mxu0 }
 0x1cb   : > { %v3077_v14 = vpack.c.bf16 %v2470_v9, %v2467_v52  ;;  %v2537_v15 = vadd.f32 %v2470_v9, %v2467_v52  ;;  %v2551_v16 = vmul.f32 %v2470_v9, %v2470_v9  ;;  %v3361_v17 = vadd.f32 %v3360_v13, %v3359_v11  ;;  %v3400_v6 = vpop.f32.mrb[53].mxu1  ;;  %v3362_v56 = vpop.f32.mrb[54].mxu0 }
 0x1cc   : > { %v3401_v19 = vadd.f32 %v3400_v6, %v3399_v7  ;;  %v3402_v62 = vpop.f32.mrb[54].mxu1  ;;  %v3363_v22 = vpop.f32.mrb[55].mxu0 }
 0x1cd   : > { %3078 = vst [vmem:[%s4541_s0] sm:$0xff] %v3077_v14   ;;  %v2558_v8 = vadd.f32 %v2551_v16, %v2550_v12  ;;  %v2410_v24 = vadd.f32 %v3361_v17, %v4521_v10  ;;  %v3364_v25 = vadd.f32 %v3363_v22, %v3362_v56  ;;  %v3403_v26 = vpop.f32.mrb[55].mxu1 }
 0x1ce   : > { %v3404_v27 = vadd.f32 %v3403_v26, %v3402_v62 }
 0x1cf   : > { %v2475_v28 = vadd.f32 %v3401_v19, %v2410_v24  ;;  %v2413_v29 = vadd.f32 %v3364_v25, %v4524_v4 }
 0x1d1   : > { %v2538_v30 = vadd.f32 %v2537_v15, %v2475_v28  ;;  %v2552_v31 = vmul.f32 %v2475_v28, %v2475_v28  ;;  %v2478_v32 = vadd.f32 %v3404_v27, %v2413_v29  ;;  %v3365_v33 = vpop.f32.mrb[56].mxu0 }
 0x1d2   : > { %v3405_v35 = vpop.f32.mrb[56].mxu1  ;;  %v3366_v18 = vpop.f32.mrb[57].mxu0 }
 0x1d3   : > { %v2559_v36 = vadd.f32 %v2558_v8, %v2552_v31  ;;  %v3082_v39 = vpack.c.bf16 %v2478_v32, %v2475_v28  ;;  %v2539_v40 = vadd.f32 %v2538_v30, %v2478_v32  ;;  %v2553_v41 = vmul.f32 %v2478_v32, %v2478_v32  ;;  %v3406_v42 = vpop.f32.mrb[57].mxu1  ;;  %v3368_v43 = vpop.f32.mrb[58].mxu0 }
 0x1d4   : > { %v3367_v10 = vadd.f32 %v3366_v18, %v3365_v33  ;;  %v3407_v44 = vadd.f32 %v3406_v42, %v3405_v35  ;;  %v3408_v45 = vpop.f32.mrb[58].mxu1  ;;  %v3369_v46 = vpop.f32.mrb[59].mxu0 }
 0x1d5   : > { %3094 = vst [vmem:[%s4541_s0 + $0x8] sm:$0xff] %v3082_v39   ;;  %v2560_v4 = vadd.f32 %v2559_v36, %v2553_v41  ;;  %v3370_v47 = vadd.f32 %v3369_v46, %v3368_v43  ;;  %v3409_v49 = vpop.f32.mrb[59].mxu1 }
 0x1d6   : > { %v2418_v50 = vadd.f32 %v3367_v10, %v4526_v23  ;;  %v3410_v21 = vadd.f32 %v3409_v49, %v3408_v45 }
 0x1d7   : > { %v2421_v54 = vadd.f32 %v3370_v47, %v4529_v20 }
 0x1d8   : > { %v2483_v55 = vadd.f32 %v3407_v44, %v2418_v50 }
 0x1d9   : > { %v2486_v38 = vadd.f32 %v3410_v21, %v2421_v54  ;;  %v3371_v58 = vpop.f32.mrb[60].mxu0 }
 0x1da   : > { %v2540_v53 = vadd.f32 %v2539_v40, %v2483_v55  ;;  %v2554_v59 = vmul.f32 %v2483_v55, %v2483_v55  ;;  %v3411_v60 = vpop.f32.mrb[60].mxu1  ;;  %v3372_v61 = vpop.f32.mrb[61].mxu0 }
 0x1db   : > { %v3087_v63 = vpack.c.bf16 %v2486_v38, %v2483_v55  ;;  %v2555_v0 = vmul.f32 %v2486_v38, %v2486_v38  ;;  %v3373_v1 = vadd.f32 %v3372_v61, %v3371_v58  ;;  %v3412_v2 = vpop.f32.mrb[61].mxu1  ;;  %v3374_v34 = vpop.f32.mrb[62].mxu0 }
 0x1dc   : > { %v2561_v23 = vadd.f32 %v2560_v4, %v2554_v59  ;;  %v2541_v3 = vadd.f32 %v2540_v53, %v2486_v38  ;;  %v3413_v48 = vadd.f32 %v3412_v2, %v3411_v60  ;;  %v3414_v20 = vpop.f32.mrb[62].mxu1  ;;  %v3375_v5 = vpop.f32.mrb[63].mxu0 }
 0x1dd   : > { %3095 = vst [vmem:[%s4541_s0 + $0x10] sm:$0xff] %v3087_v63   ;;  %v2426_v52 = vadd.f32 %v3373_v1, %v4531_v37  ;;  %v3376_v57 = vadd.f32 %v3375_v5, %v3374_v34  ;;  %v3415_v9 = vpop.f32.mrb[63].mxu1 }
 0x1de   : > { %v2562_v11 = vadd.f32 %v2561_v23, %v2555_v0  ;;  %v3416_v12 = vadd.f32 %v3415_v9, %v3414_v20 }
 0x1df   : > { %v2491_v7 = vadd.f32 %v3413_v48, %v2426_v52  ;;  %v2429_v13 = vadd.f32 %v3376_v57, %v4534_v51 }
 0x1e1   : > { %v2542_v14 = vadd.f32 %v2541_v3, %v2491_v7  ;;  %v2556_v15 = vmul.f32 %v2491_v7, %v2491_v7  ;;  %v2494_v37 = vadd.f32 %v3416_v12, %v2429_v13 }
 0x1e3   : > { %v2563_v16 = vadd.f32 %v2562_v11, %v2556_v15  ;;  %v3092_v17 = vpack.c.bf16 %v2494_v37, %v2491_v7  ;;  %v2543_v6 = vadd.f32 %v2542_v14, %v2494_v37  ;;  %v2557_v56 = vmul.f32 %v2494_v37, %v2494_v37 }
 0x1e5   : > { %3096 = vst [vmem:[%s4541_s0 + $0x18] sm:$0xff] %v3092_v17   ;;  %v2544_v51 = vrot.slane %v2543_v6, 4  ;;  %v2564_v19 = vadd.f32 %v2563_v16, %v2557_v56 }
 0x1e6   : > { %3804 = shalt.err (!%p3801_p10)
}
 0x1e7   : > { %s3805_s26 = scalar_lea.hbm %s4560_s14, 512  ;;  %s3809_s15 = scalar_lea.hbm %s4673_s2, 2048 }
 0x1e8   : > { %p3806_p0 = scmp.ne.s32.totalorder %s4560_s14, %s3805_s26  ;;  %p3810_p4 = scmp.lt.u32.totalorder %s4560_s14, %s4673_s2 }
 0x1e9   : > { %p3811_p5 = scmp.lt.u32.totalorder %s3809_s15, %s3805_s26  ;;  %p3813_p7 = scmp.lt.u32.totalorder %s3805_s26, %s4560_s14 }
 0x1ea   : > { %p3807_p1 = pnand %p3806_p0, %p4709_p13 }
 0x1eb   : > { %p3812_p12 = por %p3811_p5, %p3810_p4 }
 0x1ec   : > { %p3808_p11 = pneg %p3807_p1 }
 0x1ed   : > { %p3814_p8 = por %p3813_p7, %p3812_p12 }
 0x1ef   : > { %p3815_p9 = pnand %p3814_p8, %p3808_p11 }
 0x1f1   : > { %3818 = shalt.err (!%p3815_p9)
}
 0x1f2   : > { %s3986_s0 = smov 64   ;;  %s3987_s6 = smov 128   ;;  %v2545_v62 = vadd.f32 %v2544_v51, %v2543_v6  ;;  %v2565_v22 = vrot.slane %v2564_v19, 4  ;;  %vm2571_vm0 = vcmask 1040384  }
 0x1f3   : > { %s3988_s11 = smov 4   ;;  %s2765_s29 = sshll.u32 %s4537_s27, 1 }
 0x1f4   : > { %3431 = dma.vmem_to_hbm [thread:$0]  (%p4709_p13), %s4555_s28, 512, %s4560_s14, %s2575_s24, %s3986_s0, %s3987_s6, %s3988_s11   ;;  %v2546_v8 = vrot.slane %v2545_v62, 2  ;;  %v2566_v24 = vadd.f32 %v2565_v22, %v2564_v19 }
 0x1f5   : > { %s3061_s9 = sshll.u32 %s3961_s22, 1  ;;  %s279_s20 = scalar_lea.vmem [#allocation8], %s2765_s29 }
 0x1f6   : > { %v2547_v25 = vadd.f32 %v2546_v8, %v2545_v62  ;;  %v2567_v26 = vrot.slane %v2566_v24, 2  ;;  %s2609_s12 = sadd.s32 %s3957_s21, %s3061_s9  ;;  %s2613_s10 = sshll.u32 %s279_s20, 4  ;;  %s4595_s10 = int_to_ptr.vmem [resolvable:$true] %s2613_s10 }
 0x1f7   : > { %s3062_s7 = sshll.u32 %s2609_s12, 5  ;;  %s4710_s24 = sld [smem:[#allocation28_spill]] }
 0x1f8   : > { %v2548_v27 = vrot.slane %v2547_v25, 1  ;;  %v2568_v28 = vadd.f32 %v2567_v26, %v2566_v24  ;;  %s2580_s21 = scalar_lea.sflag [#allocation9], %s4537_s27  ;;  %s3819_s22 = scalar_lea.vmem %s4595_s10, 32 }
 0x1f9   : > { %p3820_p2 = scmp.ne.s32.totalorder %s4595_s10, %s3819_s22  ;;  %s3989_s3 = smov [#allocation8]  }
 0x1fa   : > { %v2569_v29 = vrot.slane %v2568_v28, 1  ;;  %v2549_v30 = vadd.f32 %v2548_v27, %v2547_v25  ;;  %s3823_s18 = sshll.u32 %s3989_s3, 4  ;;  %s3824_s18 = int_to_ptr.vmem [resolvable:$false] %s3823_s18 }
 0x1fb   : > { %p3821_p6 = pnand %p3820_p2, %p4709_p13  ;;  %s3825_s15 = scalar_lea.vmem %s3824_s18, 64 }
 0x1fc   : > { %v2570_v31 = vadd.f32 %v2569_v29, %v2568_v28  ;;  %p3826_p10 = scmp.lt.s32.totalorder %s4595_s10, %s3824_s18  ;;  %p3827_p0 = scmp.lt.s32.totalorder %s3825_s15, %s3819_s22 }
 0x1fd   : > { %s4711_s5 = smov %s4710_s24  ;;  %s4593_s26 = scalar_lea.hbm %s4710_s24, %s3062_s7 }
 0x1fe   : > { %v2572_v32 = vsel %vm2571_vm0, %v2549_v30, %v2570_v31  ;;  %p3822_p3 = pneg %p3821_p6  ;;  %p3828_p1 = por %p3827_p0, %p3826_p10 }
 0x1ff   : > { %2573 = vst [vmem:[%s279_s20] sm:$0x3] %v2572_v32 }
 0x200   : > { %p3829_p11 = pnand %p3828_p1, %p3822_p3 }
 0x202   : > { %3832 = shalt.err (!%p3829_p11)
}
 0x203   : > { %s3833_s27 = scalar_lea.hbm %s4593_s26, 32  ;;  %s3837_s0 = scalar_lea.hbm %s4711_s5, 128 }
 0x204   : > { %p3834_p4 = scmp.ne.s32.totalorder %s4593_s26, %s3833_s27  ;;  %p3838_p7 = scmp.lt.u32.totalorder %s4593_s26, %s4711_s5 }
 0x205   : > { %p3839_p8 = scmp.lt.u32.totalorder %s3837_s0, %s3833_s27  ;;  %p3841_p2 = scmp.lt.u32.totalorder %s3833_s27, %s4593_s26 }
 0x206   : > { %p3835_p5 = pnand %p3834_p4, %p4709_p13 }
 0x207   : > { %p3840_p9 = por %p3839_p8, %p3838_p7 }
 0x208   : > { %p3836_p12 = pneg %p3835_p5 }
 0x209   : > { %p3842_p6 = por %p3841_p2, %p3840_p9 }
 0x20b   : > { %p3843_p3 = pnand %p3842_p6, %p3836_p12 }
 0x20d   : > { %3846 = shalt.err (!%p3843_p3)
}
 0x20e   : > { %3432 = dma.vmem_to_hbm [thread:$0]  (%p4709_p13), %s4595_s10, 32, %s4593_s26, %s2580_s21  }
 0x20f PF: > { %s4712_s29 = sld [smem:[#allocation17_spill]]  ;;  %s4713_s9 = sld [smem:[#allocation26_spill]] }
 0x210   : > { %p3442_p10 = scmp.ge.s32.totalorder %s3973_s25, 2 }
 0x215   : > { %s2625_s12 = sand.u32 1, %s4712_s29   ;;  %p4714_p0 = scmp.ne.s32.totalorder %s4713_s9, 0 }
 0x216   : > { %s2626_s7 = scalar_lea.sflag [#allocation4], %s2625_s12 }
 0x217   : > { %p3436_p1 = pnand %p3442_p10, %p4714_p0 }
 0x219   : > { %3912 = dma.done.wait (!%p3436_p1), %s2626_s7, 512  }
 0x21a   : > { %3914 = vsyncadd (!%p3436_p1), %s2626_s7, 4294966784  ;;  %s2635_s20 = scalar_lea.sflag [#allocation9], %s2625_s12 }
 0x21b   : > { %3916 = dma.done.wait (!%p3436_p1), %s2635_s20, 32  }
 0x21c   : > { %3918 = vsyncadd (!%p3436_p1), %s2635_s20, 4294967264  ;;  %s26_s25 = sadd.s32 1, %s3973_s25   ;;  %s4716_s10 = sld [smem:[#allocation18_spill]] }
 0x21d   : > { %p4624_p11 = scmp.ge.s32.totalorder %s26_s25, 6   ;;  %s4717_s14 = sld [smem:[#allocation25_spill]] }
 0x21e   : > { %s4718_s28 = sld [smem:[#allocation23_spill]]  ;;  %s4719_s24 = sld [smem:[#allocation19_spill]] }
 0x21f   : > { %s4720_s20 = sld [smem:[#allocation24_spill]]  ;;  %s4721_s22 = sld [smem:[#allocation20_spill]] }
 0x220   : > { %s4722_s26 = sld [smem:[#allocation21_spill]]  ;;  %s4723_s3 = sld [smem:[#allocation22_spill]] }
 0x221   : > { %s4724_s12 = smov %s3925_s13  ;;  %s4726_s15 = smov %s3937_s16 }
 0x222   : > { %s4725_s13 = smov %s4716_s10  ;;  %s4727_s16 = smov %s3941_s17 }
 0x223   : > { %s4729_s18 = smov %s3949_s19  ;;  %s4731_s21 = smov %s3965_s23 }
 0x224   : > { %s4728_s17 = smov %s4718_s28  ;;  %s4730_s19 = smov %s4719_s24 }
 0x225   :  { %25 = sbr.rel (!%p4624_p11) target bundleno = 17 (0x11), region = 111 }
 0x226   : > { %s4732_s23 = smov %s4722_s26  ;;  %s4733_s24 = smov %s4723_s3 }
 0x22c   :  { %2640 = vsyncpa [#allocation3], 1 }
 0x22d   :  { %2642 = vsyncpa [#allocation3 + $0x1], 1 }
 0x22e   :  { %2643 = vsyncpa [#allocation6], 1 }
 0x22f   :  { %2645 = vsyncpa [#allocation6 + $0x1], 1 }
 0x230   :  { %2646 = vsyncpa [#allocation4], 1 }
 0x231   :  { %2648 = vsyncpa [#allocation4 + $0x1], 1 }
 0x232   :  { %2649 = vsyncpa [#allocation9], 1 }
 0x233   :  { %2651 = vsyncpa [#allocation9 + $0x1], 1 }

// kernel: discriminator_forward.9
= control target key start
LH: loop header
LB: loop body
LE: loop exit
PB: predicated region body
PF: predicated region fallthrough
CT: control target
= control target key end

     0   :  { %s6200_s0 = inlined_call_operand.hbm [shape: bf16[4,2,17,17,64], index: 0, kind: input, shape index: {}]   ;;  %s6201_s1 = inlined_call_operand.hbm [shape: bf16[1024,128], index: 1, kind: input, shape index: {}]   ;;  %s6202_s2 = inlined_call_operand.hbm [shape: bf16[512,128], index: 2, kind: output, shape index: {0}]   ;;  %s6203_s3 = inlined_call_operand.hbm [shape: f32[2,2,128], index: 3, kind: output, shape index: {1}]  }
   0x1   :  { %6210 = sst [smem:[#allocation17_spill]] %s6201_s1 }
   0x2   :  { %9 = vsyncpa [#allocation3], 0 }
   0x3   :  { %11 = vsyncpa [#allocation3 + $0x1], 0 }
   0x4   :  { %12 = vsyncpa [#allocation6], 0 }
   0x5   :  { %13 = vsyncpa [#allocation4], 0 }
   0x6   :  { %15 = vsyncpa [#allocation4 + $0x1], 0 }
   0x7   :  { %16 = vsyncpa [#allocation9], 0 }
   0x8   :  { %18 = vsyncpa [#allocation9 + $0x1], 0  ;;  %s5261_s12 = smov 0   ;;  %s5263_s13 = smov 0  }
   0x9   :  { %s5265_s14 = smov 0   ;;  %s5267_s15 = smov 0  }
   0xa   :  { %s5269_s16 = smov 0   ;;  %s5271_s17 = smov 0  }
   0xb LB: > { %s3761_s18 = sadd.s32 4294967295, %s5226_s17   ;;  %s3762_s19 = sadd.s32 4294967294, %s5226_s17   ;;  %s5226_s17 = sphi %s5271_s17, %s24_s17   ;;  %s5222_s16 = sphi %s5269_s16, %s6229_s16   ;;  %s5218_s15 = sphi %s5267_s15, %s6228_s15   ;;  %s5214_s14 = sphi %s5265_s14, %s6227_s14   ;;  %s5210_s13 = sphi %s5263_s13, %s6226_s13   ;;  %s5206_s12 = sphi %s5261_s12, %s6225_s12  }
   0xc   : > { %s36_s20 = sadd.s32 1, %s5222_s16  ;;  %s43_s21 = sadd.s32 1, %s5214_s14 }
   0xd   : > { %p38_p0 = scmp.ge.s32.totalorder %s36_s20, 2  ;;  %p50_p1 = scmp.ne.s32.totalorder %s5214_s14, %s5210_s13 }
   0xe   : > { %p51_p2 = scmp.eq.s32.totalorder %s5226_s17, 0  ;;  %p56_p3 = scmp.ne.s32.totalorder %s5210_s13, %s5206_s12 }
   0xf   : > { %s6231_s20 = smov (%p38_p0, %s36_s20), 0  ;;  %p5306_p5 = scmp.eq.s32.totalorder %s3761_s18, 0 }
  0x10   : > { %p5302_p4 = por %p51_p2, %p50_p1  ;;  %s40_s24 = ssub.s32 %s5222_s16, %s6231_s20 }
  0x11   : > { %s6212_s23 = scalar_select %p5306_p5, 1, 0 }
  0x12   : > { %s6211_s22 = scalar_select %p5302_p4, 1, 0 }
  0x13   : > { %p108_p6 = scmp.eq.s32.totalorder %s3761_s18, 1  ;;  %p41_p7 = scmp.eq.s32.totalorder %s40_s24, 0 }
  0x14   : > { %p5314_p8 = por %p5306_p5, %p56_p3  ;;  %p114_p10 = scmp.eq.s32.totalorder %s3762_s19, 1 }
  0x15   : > { %p5318_p9 = por %p108_p6, %p50_p1  ;;  %p3763_p12 = scmp.ge.s32.totalorder %s5226_s17, 1 }
  0x16   : > { %s6213_s25 = scalar_select %p5314_p8, 1, 0 }
  0x17   : > { %s6214_s26 = scalar_select %p5318_p9, 1, 0 }
  0x18   : > { %s5323_s27 = scalar_select %p41_p7, %s5214_s14, %s43_s21  }
  0x19   : > { %p5325_p11 = por %p114_p10, %p56_p3  ;;  %p149_p13 = scmp.lt.s32.totalorder %s5226_s17, 3 }
  0x1a   : > { %s5228_s30 = smov [#allocation5]   ;;  %s6218_s1 = sld [smem:[#allocation17_spill]] }
  0x1b   : > { %s6215_s28 = scalar_select %p5325_p11, 1, 0 }
  0x1c   : > { %p5331_p0 = pnand %p3763_p12, %p149_p13  ;;  %s163_s4 = sshll.u32 %s5228_s30, 4  ;;  %s164_s4 = int_to_ptr.vmem [resolvable:$true] %s163_s4 }
  0x1e   : > { %s6216_s29 = scalar_select %p5331_p0, 1, 0 }
  0x1f   : > { %p4761_p1 = pneg %p5331_p0 }
  0x20   : > { %s5080_s8 = scalar_lea.hbm %s6218_s1, 8192 }
  0x21   : > { %p5339_p2 = pnand %p4761_p1, %p5306_p5  ;;  %p5081_p3 = scmp.ne.s32.totalorder %s6218_s1, %s5080_s8 }
  0x22   : > { %p5087_p12 = scmp.lt.u32.totalorder %s5080_s8, %s6218_s1 }
  0x23   : > { %p5082_p6 = pneg %p5339_p2 }
  0x25   : > { %p5083_p7 = pnand %p5082_p6, %p5081_p3 }
  0x27   : > { %p5084_p10 = pneg %p5083_p7 }
  0x29   : > { %p5089_p13 = pnand %p5087_p12, %p5084_p10 }
  0x2b   : > { %5092 = shalt.err (!%p5089_p13)
}
  0x2c   : > { %s5093_s19 = scalar_lea.vmem %s164_s4, 8192  ;;  %p5101_p5 = scmp.lt.s32.totalorder %s164_s4, %s164_s4 }
  0x2d   : > { %p5094_p1 = scmp.ne.s32.totalorder %s164_s4, %s5093_s19  ;;  %p5102_p8 = scmp.lt.s32.totalorder %s5093_s19, %s5093_s19 }
  0x2f   : > { %p5096_p11 = pnand %p5094_p1, %p5082_p6  ;;  %p5103_p0 = por %p5102_p8, %p5101_p5 }
  0x31   : > { %p5097_p9 = pneg %p5096_p11 }
  0x33   : > { %p5104_p4 = pnand %p5103_p0, %p5097_p9 }
  0x35   : > { %5107 = shalt.err (!%p5104_p4)
}
  0x36   : > { %s5229_s21 = smov 64   ;;  %s5230_s24 = smov 4  }
  0x37   : > { %4764 = dma.hbm_to_vmem [thread:$0]  (!%p5339_p2), %s6218_s1, 8192, %s164_s4, [#allocation6], %s5229_s21, %s5229_s21, %s5230_s24  }
  0x38   : > { %p3765_p3 = scmp.ge.s32.totalorder %s5226_s17, 2 }
  0x3a   : > { %173 = sbr.rel (%p3765_p3) target bundleno = 81 (0x51), region = 20 }
  0x41   : > { %s177_s7 = sand.u32 1, %s5214_s14   ;;  %s4742_s8 = smul.u32 3264, %s5222_s16 }
  0x42   : > { %s4741_s5 = smul.u32 816, %s177_s7  ;;  %s5231_s9 = smov 6528  }
  0x43   : > { %p6219_p4 = scmp.ne.s32.totalorder %s6211_s22, 0  ;;  %s187_s18 = scalar_lea.hbm %s6200_s0, %s4742_s8 }
  0x44   : > { %s181_s21 = scalar_lea.vmem [#allocation2], %s4741_s5  ;;  %s5232_s30 = smov 3264  }
  0x45   : > { %4747 = sst [smem:[#allocation11]] (%p6219_p4), %s5231_s9  ;;  %s200_s24 = sshll.u32 %s181_s21, 4  ;;  %s201_s24 = int_to_ptr.vmem [resolvable:$true] %s200_s24 }
  0x46   : > { %s4746_s4 = scalar_select %p6219_p4, [#allocation0], [#allocation12] }
  0x47   : > { %4748 = sst [smem:[#allocation11 + $0x1]] (%p6219_p4), %s5232_s30  ;;  %s5233_s6 = smov 51  }
  0x48   : > { %s192_s19 = sld [smem:[%s4746_s4]]   ;;  %s5234_s1 = smov 64  }
  0x49   : > { %4749 = sst [smem:[#allocation11 + $0x2]] (%p6219_p4), %s5233_s6  ;;  %s5235_s9 = smov 4  }
  0x4a   : > { %4750 = sst [smem:[#allocation11 + $0x3]] (%p6219_p4), %s5234_s1  ;;  %s178_s5 = scalar_lea.sflag [#allocation3], %s177_s7 }
  0x4b   : > { %4751 = sst [smem:[#allocation11 + $0x4]] (%p6219_p4), %s5234_s1  ;;  %s5236_s10 = smov [#allocation10]  }
  0x4c   : > { %4752 = sst [smem:[#allocation11 + $0x5]] (%p6219_p4), %s5235_s9 }
  0x4e   : > { %s3767_s8 = sshll.u32 %s192_s19, 26 }
  0x4f   : > { %s3768_s4 = sadd.s32 134217728, %s3767_s8 }
  0x50   : > { %4753 = dma.general (%p6219_p4), %s187_s18, 13056, %s201_s24, %s178_s5, %s5236_s10, [#allocation11], %s3768_s4, 0  }
  0x51 PF: > { %p6220_p5 = scmp.ne.s32.totalorder %s6216_s29, 0 }
  0x52   : > { %s5386_s11 = sand.u32 (!%p6220_p5), 1, %s5210_s13   ;;  %p6221_p8 = scmp.ne.s32.totalorder (!%p6220_p5), %s6213_s25, 0 }
  0x53   : > { %225 = sbr.rel (%p6220_p5) target bundleno = 734 (0x2de), region = 28  ;;  %s228_s21 = scalar_lea.sflag (!%p6220_p5), [#allocation3], %s5386_s11 }
  0x54   : > { %s4743_s1 = smul.u32 (!%p6220_p5), 816, %s5386_s11 }
  0x56   : > { %s5390_s30 = scalar_lea.vmem (!%p6220_p5), [#allocation2], %s4743_s1 }
  0x5a   : > { %5189 = dma.done.wait (%p6221_p8), %s228_s21, 13056  }
  0x5b   : > { %5191 = vsyncadd (%p6221_p8), %s228_s21, 4294954240  ;;  %p6222_p9 = scmp.ne.s32.totalorder %s6212_s23, 0 }
  0x5d   : > { %5193 = dma.done.wait (%p6222_p9), [#allocation6], 8192  }
  0x5e   : > { %5195 = vsyncadd (%p6222_p9), [#allocation6], 4294959104  ;;  %vm600_vm0 = vsmask.f32 7424  ;;  %v4834_v0 = vld [vmem:[%s5390_s30 + $0xd8] sm:$0xff]   ;;  %v4836_v2 = vld [vmem:[%s5390_s30 + $0xc] sm:$0xff]  }
  0x5f   : > { %v4835_v1 = vld [vmem:[%s5390_s30 + $0xe0] ss:$0 sps:$4 sm:$0x11]   ;;  %v988_v3 = vshrl.u32 %v4834_v0, 16  ;;  %v990_v4 = vshll.u32 %v4834_v0, 16  ;;  %v614_v7 = vshrl.u32 %v4836_v2, 16 }
  0x60   : > { %v995_v5 = vshll.u32 %v4835_v1, 16  ;;  %v4837_v6 = vld [vmem:[%s5390_s30 + $0x14] ss:$0 sps:$4 sm:$0x11]   ;;  %v616_v8 = vshll.u32 %v4836_v2, 16  ;;  %v4838_v12 = vld [vmem:[%s5390_s30 + $0xcc] sm:$0xff]  }
  0x61   : > { %v992_v9 = vrot.slane %v990_v4, 1  ;;  %v621_v11 = vshll.u32 %v4837_v6, 16  ;;  %v4839_v14 = vld [vmem:[%s5390_s30 + $0xd4] ss:$0 sps:$4 sm:$0x11]   ;;  %v976_v17 = vshrl.u32 %v4838_v12, 16 }
  0x62   : > { %v997_v10 = vrot.slane %v995_v5, 1  ;;  %v618_v13 = vrot.slane %v616_v8, 1  ;;  %v978_v18 = vshll.u32 %v4838_v12, 16  ;;  %v4840_v19 = vld [vmem:[%s5390_s30] sm:$0xff]   ;;  %v983_v21 = vshll.u32 %v4839_v14, 16  ;;  %s5237_s22 = smov 64  }
  0x63   : > { %v993_v15 = vor.u32 %v992_v9, %v988_v3  ;;  %v623_v16 = vrot.slane %v621_v11, 1  ;;  %v4841_v22 = vld [vmem:[%s5390_s30 + $0x8] ss:$0 sps:$4 sm:$0x11]   ;;  %v602_v25 = vshrl.u32 %v4840_v19, 16  ;;  %v604_v26 = vshll.u32 %v4840_v19, 16 }
  0x64   : > { %v619_v20 = vor.u32 %v618_v13, %v614_v7  ;;  %v980_v24 = vrot.slane %v978_v18, 1  ;;  %v4842_v27 = vld [vmem:[%s5390_s30 + $0xe4] sm:$0xff]   ;;  %v985_v29 = vrot.slane %v983_v21, 1  ;;  %v609_v30 = vshll.u32 %v4841_v22, 16  ;;  %v4844_v37 = vld [vmem:[%s5390_s30 + $0x18] sm:$0xff]   ;;  %v4846_v45 = vld [vmem:[%s5390_s30 + $0xf0] sm:$0xff]  }
  0x65   : > { %v998_v23 = vsel %vm600_vm0, %v993_v15, %v997_v10  ;;  %v606_v32 = vrot.slane %v604_v26, 1  ;;  %v4843_v33 = vld [vmem:[%s5390_s30 + $0xec] ss:$0 sps:$4 sm:$0x11]   ;;  %v1000_v34 = vshrl.u32 %v4842_v27, 16  ;;  %v1002_v35 = vshll.u32 %v4842_v27, 16 }
  0x66   : > { %1169 = vrot.lane.b32.xlu1 %v998_v23, %s5237_s22  ;;  %v624_v28 = vsel %vm600_vm0, %v619_v20, %v623_v16  ;;  %v981_v31 = vor.u32 %v980_v24, %v976_v17  ;;  %v611_v36 = vrot.slane %v609_v30, 1  ;;  %v1007_v41 = vshll.u32 %v4843_v33, 16  ;;  %v4845_v42 = vld [vmem:[%s5390_s30 + $0x20] ss:$0 sps:$4 sm:$0x11]   ;;  %v4848_v49 = vld [vmem:[%s5390_s30 + $0x24] sm:$0xff]  }
  0x67   : > { %795 = vrot.lane.b32.xlu0 %v624_v28, %s5237_s22  ;;  %v607_v39 = vor.u32 %v606_v32, %v602_v25  ;;  %v1004_v40 = vrot.slane %v1002_v35, 1  ;;  %v626_v43 = vshrl.u32 %v4844_v37, 16  ;;  %v628_v44 = vshll.u32 %v4844_v37, 16  ;;  %v4847_v52 = vld [vmem:[%s5390_s30 + $0xf8] ss:$0 sps:$4 sm:$0x11]  }
  0x68   : > { %v986_v38 = vsel %vm600_vm0, %v981_v31, %v985_v29  ;;  %v1009_v48 = vrot.slane %v1007_v41, 1  ;;  %v633_v51 = vshll.u32 %v4845_v42, 16  ;;  %v1012_v53 = vshrl.u32 %v4846_v45, 16  ;;  %v4850_v61 = vld [vmem:[%s5390_s30 + $0xfc] sm:$0xff]   ;;  %v4852_v13 = vld [vmem:[%s5390_s30 + $0x30] sm:$0xff]   ;;  %v4854_v15 = vld [vmem:[%s5390_s30 + $0x108] sm:$0xff]  }
  0x69   : > { %v612_v46 = vsel %vm600_vm0, %v607_v39, %v611_v36  ;;  %v1005_v47 = vor.u32 %v1004_v40, %v1000_v34  ;;  %v630_v50 = vrot.slane %v628_v44, 1  ;;  %v1014_v55 = vshll.u32 %v4846_v45, 16  ;;  %v4849_v63 = vld [vmem:[%s5390_s30 + $0x2c] ss:$0 sps:$4 sm:$0x11]   ;;  %v4856_v26 = vld [vmem:[%s5390_s30 + $0x3c] sm:$0xff]  }
  0x6a   : > { %1167 = vrot.lane.b32.xlu1 %v986_v38, %s5237_s22  ;;  %v638_v56 = vshrl.u32 %v4848_v49, 16  ;;  %v635_v58 = vrot.slane %v633_v51, 1  ;;  %v1019_v59 = vshll.u32 %v4847_v52, 16  ;;  %v640_v60 = vshll.u32 %v4848_v49, 16  ;;  %v4858_v34 = vld [vmem:[%s5390_s30 + $0x114] sm:$0xff]   ;;  %v4860_v45 = vld [vmem:[%s5390_s30 + $0x48] sm:$0xff]  }
  0x6b   : > { %793 = vrot.lane.b32.xlu0 %v612_v46, %s5237_s22  ;;  %v1010_v54 = vsel %vm600_vm0, %v1005_v47, %v1009_v48  ;;  %v631_v57 = vor.u32 %v630_v50, %v626_v43  ;;  %v1016_v62 = vrot.slane %v1014_v55, 1  ;;  %v645_v4 = vshll.u32 %v4849_v63, 16  ;;  %v4851_v5 = vld [vmem:[%s5390_s30 + $0x104] ss:$0 sps:$4 sm:$0x11]   ;;  %s3771_s23 = sshll.u32 %s5386_s11, 7 }
  0x6c   : > { %v1021_v1 = vrot.slane %v1019_v59, 1  ;;  %v642_v2 = vrot.slane %v640_v60, 1  ;;  %v1024_v6 = vshrl.u32 %v4850_v61, 16  ;;  %v1026_v7 = vshll.u32 %v4850_v61, 16  ;;  %s6063_s25 = scalar_lea.vmem [#allocation7], %s3771_s23  ;;  %s4197_s29 = sshll.u32 %s5218_s15, 11 }
  0x6d   : > { %v636_v0 = vsel %vm600_vm0, %v631_v57, %v635_v58  ;;  %v1017_v3 = vor.u32 %v1016_v62, %v1012_v53  ;;  %v647_v10 = vrot.slane %v645_v4, 1  ;;  %v1031_v12 = vshll.u32 %v4851_v5, 16  ;;  %v4853_v14 = vld [vmem:[%s5390_s30 + $0x38] ss:$0 sps:$4 sm:$0x11]   ;;  %v4862_v53 = vld [vmem:[%s5390_s30 + $0x120] sm:$0xff]   ;;  %s6115_s24 = scalar_lea.hbm %s6202_s2, %s4197_s29 }
  0x6e   : > { %1171 = vrot.lane.b32.xlu1 %v1010_v54, %s5237_s22  ;;  %v643_v8 = vor.u32 %v642_v2, %v638_v56  ;;  %v1028_v11 = vrot.slane %v1026_v7, 1  ;;  %v650_v19 = vshrl.u32 %v4852_v13, 16  ;;  %v652_v20 = vshll.u32 %v4852_v13, 16  ;;  %v4855_v22 = vld [vmem:[%s5390_s30 + $0x110] ss:$0 sps:$4 sm:$0x11]  }
  0x6f   : > { %797 = vrot.lane.b32.xlu0 %v636_v0, %s5237_s22  ;;  %v1022_v9 = vsel %vm600_vm0, %v1017_v3, %v1021_v1  ;;  %v1033_v18 = vrot.slane %v1031_v12, 1  ;;  %v657_v21 = vshll.u32 %v4853_v14, 16  ;;  %v1036_v23 = vshrl.u32 %v4854_v15, 16  ;;  %v4857_v30 = vld [vmem:[%s5390_s30 + $0x44] ss:$0 sps:$4 sm:$0x11]  }
  0x70   : > { %v648_v16 = vsel %vm600_vm0, %v643_v8, %v647_v10  ;;  %v1029_v17 = vor.u32 %v1028_v11, %v1024_v6  ;;  %v1038_v25 = vshll.u32 %v4854_v15, 16  ;;  %v654_v27 = vrot.slane %v652_v20, 1  ;;  %v4859_v40 = vld [vmem:[%s5390_s30 + $0x11c] ss:$0 sps:$4 sm:$0x11]   ;;  %v4864_v57 = vld [vmem:[%s5390_s30 + $0x54] sm:$0xff]  }
  0x71   : > { %v659_v28 = vrot.slane %v657_v21, 1  ;;  %v1043_v29 = vshll.u32 %v4855_v22, 16  ;;  %v662_v32 = vshrl.u32 %v4856_v26, 16  ;;  %v664_v33 = vshll.u32 %v4856_v26, 16  ;;  %v4866_v5 = vld [vmem:[%s5390_s30 + $0x12c] sm:$0xff]   ;;  %v4868_v21 = vld [vmem:[%s5390_s30 + $0x60] sm:$0xff]  }
  0x72   : > { %1173 = vrot.lane.b32.xlu1 %v1022_v9, %s5237_s22  ;;  %v1034_v24 = vsel %vm600_vm0, %v1029_v17, %v1033_v18  ;;  %v1040_v31 = vrot.slane %v1038_v25, 1  ;;  %v655_v35 = vor.u32 %v654_v27, %v650_v19  ;;  %v669_v37 = vshll.u32 %v4857_v30, 16  ;;  %v4861_v50 = vld [vmem:[%s5390_s30 + $0x50] ss:$0 sps:$4 sm:$0x11]   ;;  %s3619_s7 = sshll.u32 %s6063_s25, 4  ;;  %s6117_s7 = int_to_ptr.vmem [resolvable:$true] %s3619_s7 }
  0x73   : > { %799 = vrot.lane.b32.xlu0 %v648_v16, %s5237_s22  ;;  %v1045_v36 = vrot.slane %v1043_v29, 1  ;;  %v666_v39 = vrot.slane %v664_v33, 1  ;;  %v1048_v41 = vshrl.u32 %v4858_v34, 16  ;;  %v1050_v42 = vshll.u32 %v4858_v34, 16  ;;  %v4872_v34 = vld [vmem:[%s5390_s30 + $0x6c] sm:$0xff]   ;;  %s3600_s6 = scalar_lea.sflag [#allocation4], %s5386_s11 }
  0x74   : > { %v1041_v38 = vor.u32 %v1040_v31, %v1036_v23  ;;  %v660_v43 = vsel %vm600_vm0, %v655_v35, %v659_v28  ;;  %v671_v44 = vrot.slane %v669_v37, 1  ;;  %v1055_v49 = vshll.u32 %v4859_v40, 16  ;;  %v4863_v60 = vld [vmem:[%s5390_s30 + $0x128] ss:$0 sps:$4 sm:$0x11]   ;;  %v4870_v23 = vld [vmem:[%s5390_s30 + $0x138] sm:$0xff]  }
  0x75   : > { %v667_v47 = vor.u32 %v666_v39, %v662_v32  ;;  %v1052_v48 = vrot.slane %v1050_v42, 1  ;;  %v674_v51 = vshrl.u32 %v4860_v45, 16  ;;  %v676_v52 = vshll.u32 %v4860_v45, 16  ;;  %v4865_v7 = vld [vmem:[%s5390_s30 + $0x5c] ss:$0 sps:$4 sm:$0x11]  }
  0x76   : > { %1175 = vrot.lane.b32.xlu1 %v1034_v24, %s5237_s22  ;;  %v1046_v46 = vsel %vm600_vm0, %v1041_v38, %v1045_v36  ;;  %v1057_v56 = vrot.slane %v1055_v49, 1  ;;  %v681_v59 = vshll.u32 %v4861_v50, 16  ;;  %v1060_v61 = vshrl.u32 %v4862_v53, 16  ;;  %v4867_v13 = vld [vmem:[%s5390_s30 + $0x134] ss:$0 sps:$4 sm:$0x11]  }
  0x77   : > { %801 = vrot.lane.b32.xlu0 %v660_v43, %s5237_s22  ;;  %v672_v54 = vsel %vm600_vm0, %v667_v47, %v671_v44  ;;  %v1053_v55 = vor.u32 %v1052_v48, %v1048_v41  ;;  %v678_v58 = vrot.slane %v676_v52, 1  ;;  %v1062_v63 = vshll.u32 %v4862_v53, 16  ;;  %v4869_v22 = vld [vmem:[%s5390_s30 + $0x68] ss:$0 sps:$4 sm:$0x11]   ;;  %v4876_v53 = vld [vmem:[%s5390_s30 + $0x78] sm:$0xff]  }
  0x78   : > { %v686_v0 = vshrl.u32 %v4864_v57, 16  ;;  %v683_v2 = vrot.slane %v681_v59, 1  ;;  %v1067_v3 = vshll.u32 %v4863_v60, 16  ;;  %v688_v4 = vshll.u32 %v4864_v57, 16  ;;  %v4874_v42 = vld [vmem:[%s5390_s30 + $0x144] sm:$0xff]   ;;  %s5108_s9 = scalar_lea.vmem %s6117_s7, 2048 }
  0x79   : > { %v1058_v62 = vsel %vm600_vm0, %v1053_v55, %v1057_v56  ;;  %v679_v1 = vor.u32 %v678_v58, %v674_v51  ;;  %v1064_v6 = vrot.slane %v1062_v63, 1  ;;  %v693_v12 = vshll.u32 %v4865_v7, 16  ;;  %v4871_v30 = vld [vmem:[%s5390_s30 + $0x140] ss:$0 sps:$4 sm:$0x11]   ;;  %p5109_p11 = scmp.ne.s32.totalorder %s6117_s7, %s5108_s9  ;;  %p6223_p0 = scmp.ne.s32.totalorder %s6214_s26, 0 }
  0x7a   : > { %1177 = vrot.lane.b32.xlu1 %v1046_v46, %s5237_s22  ;;  %v1069_v9 = vrot.slane %v1067_v3, 1  ;;  %v690_v10 = vrot.slane %v688_v4, 1  ;;  %v1072_v14 = vshrl.u32 %v4866_v5, 16  ;;  %v1074_v15 = vshll.u32 %v4866_v5, 16  ;;  %s5238_s8 = smov [#allocation7]  }
  0x7b   : > { %803 = vrot.lane.b32.xlu0 %v672_v54, %s5237_s22  ;;  %v684_v8 = vsel %vm600_vm0, %v679_v1, %v683_v2  ;;  %v1065_v11 = vor.u32 %v1064_v6, %v1060_v61  ;;  %v695_v18 = vrot.slane %v693_v12, 1  ;;  %v1079_v20 = vshll.u32 %v4867_v13, 16  ;;  %v4873_v38 = vld [vmem:[%s5390_s30 + $0x74] ss:$0 sps:$4 sm:$0x11]   ;;  %v4880_v1 = vld [vmem:[%s5390_s30 + $0x84] sm:$0xff]   ;;  %p5110_p2 = pnand %p5109_p11, %p6223_p0 }
  0x7c   : > { %v691_v16 = vor.u32 %v690_v10, %v686_v0  ;;  %v1076_v19 = vrot.slane %v1074_v15, 1  ;;  %v698_v27 = vshrl.u32 %v4868_v21, 16  ;;  %v700_v28 = vshll.u32 %v4868_v21, 16  ;;  %v4875_v48 = vld [vmem:[%s5390_s30 + $0x14c] ss:$0 sps:$4 sm:$0x11]  }
  0x7d   : > { %v1070_v17 = vsel %vm600_vm0, %v1065_v11, %v1069_v9  ;;  %v1081_v26 = vrot.slane %v1079_v20, 1  ;;  %v705_v29 = vshll.u32 %v4869_v22, 16  ;;  %v1084_v31 = vshrl.u32 %v4870_v23, 16  ;;  %v4877_v58 = vld [vmem:[%s5390_s30 + $0x80] ss:$0 sps:$4 sm:$0x11]   ;;  %p5111_p6 = pneg %p5110_p2 }
  0x7e   : > { %1179 = vrot.lane.b32.xlu1 %v1058_v62, %s5237_s22  ;;  %v696_v24 = vsel %vm600_vm0, %v691_v16, %v695_v18  ;;  %v1077_v25 = vor.u32 %v1076_v19, %v1072_v14  ;;  %v1086_v33 = vshll.u32 %v4870_v23, 16  ;;  %v702_v35 = vrot.slane %v700_v28, 1  ;;  %v4878_v61 = vld [vmem:[%s5390_s30 + $0x150] sm:$0xff]   ;;  %v4879_v4 = vld [vmem:[%s5390_s30 + $0x158] ss:$0 sps:$4 sm:$0x11]  }
  0x7f   : > { %805 = vrot.lane.b32.xlu0 %v684_v8, %s5237_s22  ;;  %v707_v36 = vrot.slane %v705_v29, 1  ;;  %v1091_v37 = vshll.u32 %v4871_v30, 16  ;;  %v710_v40 = vshrl.u32 %v4872_v34, 16  ;;  %v712_v41 = vshll.u32 %v4872_v34, 16  ;;  %v4882_v13 = vld [vmem:[#allocation5 + $0x40] sm:$0xff]   ;;  %s5112_s4 = sshll.u32 %s5238_s8, 4  ;;  %s5113_s4 = int_to_ptr.vmem [resolvable:$false] %s5112_s4 }
  0x80   : > { %v1082_v32 = vsel %vm600_vm0, %v1077_v25, %v1081_v26  ;;  %v1088_v39 = vrot.slane %v1086_v33, 1  ;;  %v703_v43 = vor.u32 %v702_v35, %v698_v27  ;;  %v717_v45 = vshll.u32 %v4873_v38, 16  ;;  %v4881_v15 = vld [vmem:[%s5390_s30 + $0x8c] ss:$0 sps:$4 sm:$0x11]   ;;  %4293 = vmatprep.subr.bf16.mxu0 %v4882_v13  ;;  %v4883_v21 = vld [vmem:[#allocation5] sm:$0xff]   ;;  %p5115_p7 = scmp.lt.s32.totalorder %s6117_s7, %s5113_s4 }
  0x81   : > { %v1093_v44 = vrot.slane %v1091_v37, 1  ;;  %v714_v47 = vrot.slane %v712_v41, 1  ;;  %v1096_v49 = vshrl.u32 %v4874_v42, 16  ;;  %v1098_v50 = vshll.u32 %v4874_v42, 16  ;;  %v4884_v23 = vld [vmem:[#allocation5 + $0xc0] sm:$0xff]   ;;  %4294 = vmatpush3.bf16.msra.mxu0 %v4883_v21  ;;  %v4886_v27 = vld [vmem:[#allocation5 + $0x48] sm:$0xff]  }
  0x82   : > { %1181 = vrot.lane.b32.xlu1 %v1070_v17, %s5237_s22  ;;  %v1089_v46 = vor.u32 %v1088_v39, %v1084_v31  ;;  %v708_v51 = vsel %vm600_vm0, %v703_v43, %v707_v36  ;;  %v719_v52 = vrot.slane %v717_v45, 1  ;;  %v1103_v57 = vshll.u32 %v4875_v48, 16  ;;  %v4885_v26 = vld [vmem:[#allocation5 + $0x80] sm:$0xff]   ;;  %4405 = vmatprep.subr.bf16.mxu1 %v4884_v23  ;;  %v4890_v35 = vld [vmem:[%s5390_s30 + $0x98] ss:$0 sps:$4 sm:$0x11]  }
  0x83   : > { %807 = vrot.lane.b32.xlu0 %v696_v24, %s5237_s22  ;;  %v715_v55 = vor.u32 %v714_v47, %v710_v40  ;;  %v1100_v56 = vrot.slane %v1098_v50, 1  ;;  %v722_v59 = vshrl.u32 %v4876_v53, 16  ;;  %v724_v60 = vshll.u32 %v4876_v53, 16  ;;  %4406 = vmatpush3.bf16.msra.mxu1 %v4885_v26  ;;  %v4887_v29 = vld [vmem:[%s5390_s30 + $0x15c] sm:$0xff]   ;;  %v4889_v31 = vld [vmem:[%s5390_s30 + $0x90] sm:$0xff]   ;;  %s5114_s5 = scalar_lea.vmem %s5113_s4, 4096 }
  0x84   : > { %v1094_v54 = vsel %vm600_vm0, %v1089_v46, %v1093_v44  ;;  %v1105_v0 = vrot.slane %v1103_v57, 1  ;;  %v729_v3 = vshll.u32 %v4877_v58, 16  ;;  %v1108_v5 = vshrl.u32 %v4878_v61, 16  ;;  %4295 = vmatprep.subr.bf16.mxu0 %v4886_v27  ;;  %v4888_v30 = vld [vmem:[%s5390_s30 + $0x164] ss:$0 sps:$4 sm:$0x11]   ;;  %p5116_p10 = scmp.lt.s32.totalorder %s5114_s5, %s5108_s9 }
  0x85   : > { %v720_v62 = vsel %vm600_vm0, %v715_v55, %v719_v52  ;;  %v1101_v63 = vor.u32 %v1100_v56, %v1096_v49  ;;  %v726_v2 = vrot.slane %v724_v60, 1  ;;  %v1110_v7 = vshll.u32 %v4878_v61, 16  ;;  %v4891_v39 = vld [vmem:[#allocation5 + $0x8] sm:$0xff]   ;;  %v4894_v49 = vld [vmem:[#allocation5 + $0x50] sm:$0xff]   ;;  %v4908_v13 = vld [vmem:[#allocation5 + $0xe0] sm:$0xff]  }
  0x86   : > { %1183 = vrot.lane.b32.xlu1 %v1082_v32, %s5237_s22  ;;  %v734_v8 = vshrl.u32 %v4880_v1, 16  ;;  %v731_v10 = vrot.slane %v729_v3, 1  ;;  %v1115_v11 = vshll.u32 %v4879_v4, 16  ;;  %v736_v12 = vshll.u32 %v4880_v1, 16  ;;  %v4892_v43 = vld [vmem:[#allocation5 + $0xc8] sm:$0xff]   ;;  %4296 = vmatpush3.bf16.msra.mxu0 %v4891_v39  ;;  %v4896_v52 = vld [vmem:[#allocation5 + $0xd0] sm:$0xff]   ;;  %p5117_p12 = por %p5116_p10, %p5115_p7 }
  0x87   : > { %809 = vrot.lane.b32.xlu0 %v708_v51, %s5237_s22  ;;  %v1106_v6 = vsel %vm600_vm0, %v1101_v63, %v1105_v0  ;;  %v727_v9 = vor.u32 %v726_v2, %v722_v59  ;;  %v1112_v14 = vrot.slane %v1110_v7, 1  ;;  %v741_v20 = vshll.u32 %v4881_v15, 16  ;;  %4407 = vmatprep.subr.bf16.mxu1 %v4892_v43  ;;  %v4893_v47 = vld [vmem:[#allocation5 + $0x88] sm:$0xff]   ;;  %v4895_v51 = vld [vmem:[#allocation5 + $0x10] sm:$0xff]   ;;  %v4904_v4 = vld [vmem:[#allocation5 + $0xd8] sm:$0xff]  }
  0x88   : > { %v1117_v17 = vrot.slane %v1115_v11, 1  ;;  %v738_v18 = vrot.slane %v736_v12, 1  ;;  %v1120_v32 = vshrl.u32 %v4887_v29, 16  ;;  %v1122_v33 = vshll.u32 %v4887_v29, 16  ;;  %4408 = vmatpush3.bf16.msra.mxu1 %v4893_v47  ;;  %4297 = vmatprep.subr.bf16.mxu0 %v4894_v49  ;;  %v4897_v53 = vld [vmem:[#allocation5 + $0x90] sm:$0xff]   ;;  %v4899_v55 = vld [vmem:[%s5390_s30 + $0x168] sm:$0xff]   ;;  %p5118_p13 = pnand %p5117_p12, %p5111_p6 }
  0x89   : > { %v732_v16 = vsel %vm600_vm0, %v727_v9, %v731_v10  ;;  %v1113_v19 = vor.u32 %v1112_v14, %v1108_v5  ;;  %v743_v25 = vrot.slane %v741_v20, 1  ;;  %v1127_v34 = vshll.u32 %v4888_v30, 16  ;;  %4409 = vmatprep.subr.bf16.mxu1 %v4896_v52  ;;  %v4900_v56 = vld [vmem:[%s5390_s30 + $0x170] ss:$0 sps:$4 sm:$0x11]   ;;  %v4901_v60 = vld [vmem:[%s5390_s30 + $0x9c] sm:$0xff]  }
  0x8a   : > { %1185 = vrot.lane.b32.xlu1 %v1094_v54, %s5237_s22  ;;  %v739_v22 = vor.u32 %v738_v18, %v734_v8  ;;  %v746_v36 = vshrl.u32 %v4889_v31, 16  ;;  %v748_v37 = vshll.u32 %v4889_v31, 16  ;;  %v1124_v38 = vrot.slane %v1122_v33, 1  ;;  %4298 = vmatpush3.bf16.msra.mxu0 %v4895_v51  ;;  %v4898_v54 = vld [vmem:[#allocation5 + $0x58] sm:$0xff]   ;;  %v4906_v9 = vld [vmem:[#allocation5 + $0x60] sm:$0xff]   ;;  %v4915_v27 = vld [vmem:[#allocation5 + $0x28] sm:$0xff]  }
  0x8b   : > { %811 = vrot.lane.b32.xlu0 %v720_v62, %s5237_s22  ;;  %v1118_v24 = vsel %vm600_vm0, %v1113_v19, %v1117_v17  ;;  %v1129_v40 = vrot.slane %v1127_v34, 1  ;;  %v753_v42 = vshll.u32 %v4890_v35, 16  ;;  %4299 = vmatprep.subr.bf16.mxu0 %v4898_v54  ;;  %v1132_v57 = vshrl.u32 %v4899_v55, 16  ;;  %v4902_v61 = vld [vmem:[%s5390_s30 + $0xa4] ss:$0 sps:$4 sm:$0x11]  }
  0x8c   : > { %v744_v28 = vsel %vm600_vm0, %v739_v22, %v743_v25  ;;  %v750_v41 = vrot.slane %v748_v37, 1  ;;  %v1125_v44 = vor.u32 %v1124_v38, %v1120_v32  ;;  %4410 = vmatpush3.bf16.msra.mxu1 %v4897_v53  ;;  %v1134_v58 = vshll.u32 %v4899_v55, 16  ;;  %v4903_v62 = vld [vmem:[#allocation5 + $0x18] sm:$0xff]   ;;  %v4907_v12 = vld [vmem:[#allocation5 + $0x20] sm:$0xff]   ;;  %v4916_v31 = vld [vmem:[#allocation5 + $0xe8] sm:$0xff]  }
  0x8d   : > { %v755_v46 = vrot.slane %v753_v42, 1  ;;  %v1139_v59 = vshll.u32 %v4900_v56, 16  ;;  %v758_v1 = vshrl.u32 %v4901_v60, 16  ;;  %v760_v2 = vshll.u32 %v4901_v60, 16  ;;  %v4905_v7 = vld [vmem:[#allocation5 + $0x98] sm:$0xff]   ;;  %4411 = vmatprep.subr.bf16.mxu1 %v4904_v4  ;;  %v4909_v15 = vld [vmem:[#allocation5 + $0xa0] sm:$0xff]  }
  0x8e   : > { %1187 = vrot.lane.b32.xlu1 %v1106_v6, %s5237_s22  ;;  %v751_v45 = vor.u32 %v750_v41, %v746_v36  ;;  %v1130_v48 = vsel %vm600_vm0, %v1125_v44, %v1129_v40  ;;  %v1136_v63 = vrot.slane %v1134_v58, 1  ;;  %v765_v3 = vshll.u32 %v4902_v61, 16  ;;  %4300 = vmatpush3.bf16.msra.mxu0 %v4903_v62  ;;  %v4911_v17 = vld [vmem:[%s5390_s30 + $0x174] sm:$0xff]   ;;  %v4912_v18 = vld [vmem:[%s5390_s30 + $0x17c] ss:$0 sps:$4 sm:$0x11]  }
  0x8f   : > { %813 = vrot.lane.b32.xlu0 %v732_v16, %s5237_s22  ;;  %v1141_v0 = vrot.slane %v1139_v59, 1  ;;  %v762_v6 = vrot.slane %v760_v2, 1  ;;  %4301 = vmatprep.subr.bf16.mxu0 %v4906_v9  ;;  %v4910_v16 = vld [vmem:[#allocation5 + $0x68] sm:$0xff]   ;;  %v1144_v20 = vshrl.u32 %v4911_v17, 16  ;;  %v1146_v21 = vshll.u32 %v4911_v17, 16  ;;  %v4918_v37 = vld [vmem:[#allocation5 + $0x70] sm:$0xff]  }
  0x90   : > { %v756_v50 = vsel %vm600_vm0, %v751_v45, %v755_v46  ;;  %v1137_v5 = vor.u32 %v1136_v63, %v1132_v57  ;;  %v767_v8 = vrot.slane %v765_v3, 1  ;;  %4412 = vmatpush3.bf16.msra.mxu1 %v4905_v7  ;;  %v4913_v19 = vld [vmem:[%s5390_s30 + $0xa8] sm:$0xff]   ;;  %v1151_v22 = vshll.u32 %v4912_v18, 16  ;;  %v4914_v23 = vld [vmem:[%s5390_s30 + $0xb0] ss:$0 sps:$4 sm:$0x11]  }
  0x91   : > { %v763_v11 = vor.u32 %v762_v6, %v758_v1  ;;  %4413 = vmatprep.subr.bf16.mxu1 %v4908_v13  ;;  %v772_v25 = vshll.u32 %v4913_v19, 16  ;;  %v1148_v26 = vrot.slane %v1146_v21, 1  ;;  %v777_v30 = vshll.u32 %v4914_v23, 16  ;;  %v4917_v35 = vld [vmem:[#allocation5 + $0xa8] sm:$0xff]   ;;  %v4919_v39 = vld [vmem:[#allocation5 + $0x30] sm:$0xff]   ;;  %v4922_v42 = vld [vmem:[#allocation5 + $0x78] sm:$0xff]  }
  0x92   : > { %1189 = vrot.lane.b32.xlu1 %v1118_v24, %s5237_s22  ;;  %v1142_v10 = vsel %vm600_vm0, %v1137_v5, %v1141_v0  ;;  %4302 = vmatpush3.bf16.msra.mxu0 %v4907_v12  ;;  %v770_v24 = vshrl.u32 %v4913_v19, 16  ;;  %v4920_v40 = vld [vmem:[#allocation5 + $0xf0] sm:$0xff]   ;;  %v4924_v44 = vld [vmem:[%s5390_s30 + $0x188] ss:$0 sps:$4 sm:$0x11]   ;;  %v4930_v61 = vld [vmem:[#allocation5 + $0x140] sm:$0xff]  }
  0x93   : > { %815 = vrot.lane.b32.xlu0 %v744_v28, %s5237_s22  ;;  %v768_v14 = vsel %vm600_vm0, %v763_v11, %v767_v8  ;;  %4303 = vmatprep.subr.bf16.mxu0 %v4910_v16  ;;  %v1153_v28 = vrot.slane %v1151_v22, 1  ;;  %v774_v29 = vrot.slane %v772_v25, 1  ;;  %v1149_v32 = vor.u32 %v1148_v26, %v1144_v20  ;;  %v4921_v41 = vld [vmem:[#allocation5 + $0xb0] sm:$0xff]   ;;  %v4926_v49 = vld [vmem:[%s5390_s30 + $0xbc] ss:$0 sps:$4 sm:$0x11]  }
  0x94   : > { %4414 = vmatpush3.bf16.msra.mxu1 %v4909_v15  ;;  %v779_v34 = vrot.slane %v777_v30, 1  ;;  %v4923_v43 = vld [vmem:[%s5390_s30 + $0x180] sm:$0xff]   ;;  %v1163_v47 = vshll.u32 %v4924_v44, 16  ;;  %v789_v55 = vshll.u32 %v4926_v49, 16  ;;  %v4928_v56 = vld [vmem:[#allocation5 + $0xf8] sm:$0xff]   ;;  %vm1969_vm1 = vcmask 523264  }
  0x95   : > { %v775_v33 = vor.u32 %v774_v29, %v770_v24  ;;  %4415 = vmatprep.subr.bf16.mxu1 %v4916_v31  ;;  %v1154_v36 = vsel %vm600_vm0, %v1149_v32, %v1153_v28  ;;  %v1156_v45 = vshrl.u32 %v4923_v43, 16  ;;  %v1158_v46 = vshll.u32 %v4923_v43, 16  ;;  %v4929_v59 = vld [vmem:[#allocation5 + $0xb8] sm:$0xff]   ;;  %v4932_v0 = vld [vmem:[#allocation5 + $0x1c0] sm:$0xff]  }
  0x96   : > { %1191 = vrot.lane.b32.xlu1 %v1130_v48, %s5237_s22  ;;  %4304 = vmatpush3.bf16.msra.mxu0 %v4915_v27  ;;  %v4925_v48 = vld [vmem:[%s5390_s30 + $0xb4] sm:$0xff]   ;;  %v1165_v52 = vrot.slane %v1163_v47, 1  ;;  %v791_v60 = vrot.slane %v789_v55, 1  ;;  %v4934_v2 = vld [vmem:[%s5390_s30 + $0x18c] sm:$0xff]   ;;  %v4936_v4 = vld [vmem:[%s5390_s30 + $0xc0] sm:$0xff]  }
  0x97   : > { %817 = vrot.lane.b32.xlu0 %v756_v50, %s5237_s22  ;;  %v780_v38 = vsel %vm600_vm0, %v775_v33, %v779_v34  ;;  %4305 = vmatprep.subr.bf16.mxu0 %v4918_v37  ;;  %v4927_v50 = vld [vmem:[#allocation5 + $0x38] sm:$0xff]   ;;  %v1160_v51 = vrot.slane %v1158_v46, 1  ;;  %v782_v53 = vshrl.u32 %v4925_v48, 16  ;;  %v784_v54 = vshll.u32 %v4925_v48, 16  ;;  %v4942_v21 = vld [vmem:[%s5390_s30 + $0x270] sm:$0xff]  }
  0x98   : > { %4416 = vmatpush3.bf16.msra.mxu1 %v4917_v35  ;;  %v4935_v3 = vld [vmem:[%s5390_s30 + $0x194] ss:$0 sps:$4 sm:$0x11]   ;;  %v1208_v5 = vshrl.u32 %v4934_v2, 16  ;;  %v1210_v6 = vshll.u32 %v4934_v2, 16  ;;  %v834_v9 = vshrl.u32 %v4936_v4, 16 }
  0x99   : > { %4417 = vmatprep.subr.bf16.mxu1 %v4920_v40  ;;  %v1161_v57 = vor.u32 %v1160_v51, %v1156_v45  ;;  %v786_v58 = vrot.slane %v784_v54, 1  ;;  %v1215_v7 = vshll.u32 %v4935_v3, 16  ;;  %v4937_v8 = vld [vmem:[%s5390_s30 + $0xc8] ss:$0 sps:$4 sm:$0x11]   ;;  %v4940_v16 = vld [vmem:[%s5390_s30 + $0x198] sm:$0xff]  }
  0x9a   : > { %1193 = vrot.lane.b32.xlu1 %v1142_v10, %s5237_s22  ;;  %4306 = vmatpush3.bf16.msra.mxu0 %v4919_v39  ;;  %v836_v10 = vshll.u32 %v4936_v4, 16  ;;  %v1212_v11 = vrot.slane %v1210_v6, 1  ;;  %v4938_v12 = vld [vmem:[%s5390_s30 + $0x1a4] sm:$0xff]   ;;  %v841_v15 = vshll.u32 %v4937_v8, 16  ;;  %v1350_v24 = vshrl.u32 %v4940_v16, 16  ;;  %v5034_v37 = vld [vmem:[%s5390_s30 + $0xd8] sm:$0xff]  }
  0x9b   : > { %819 = vrot.lane.b32.xlu0 %v768_v14, %s5237_s22  ;;  %4307 = vmatprep.subr.bf16.mxu0 %v4922_v42  ;;  %v1166_v62 = vsel %vm600_vm0, %v1161_v57, %v1165_v52  ;;  %v787_v63 = vor.u32 %v786_v58, %v782_v53  ;;  %v1217_v13 = vrot.slane %v1215_v7, 1  ;;  %v4939_v18 = vld [vmem:[%s5390_s30 + $0x1ac] ss:$0 sps:$4 sm:$0x11]   ;;  %v1362_v19 = vshrl.u32 %v4938_v12, 16  ;;  %v4944_v31 = vld [vmem:[%s5390_s30 + $0x264] sm:$0xff]  }
  0x9c   : > { %4418 = vmatpush3.bf16.msra.mxu1 %v4921_v41  ;;  %v838_v14 = vrot.slane %v836_v10, 1  ;;  %v1213_v17 = vor.u32 %v1212_v11, %v1208_v5  ;;  %v1364_v20 = vshll.u32 %v4938_v12, 16  ;;  %v843_v23 = vrot.slane %v841_v15, 1  ;;  %v4941_v30 = vld [vmem:[%s5390_s30 + $0x1a0] ss:$0 sps:$4 sm:$0x11]  }
  0x9d   : > { %4419 = vmatprep.subr.bf16.mxu1 %v4928_v56  ;;  %v792_v1 = vsel %vm600_vm0, %v787_v63, %v791_v60  ;;  %v1369_v27 = vshll.u32 %v4939_v18, 16  ;;  %v1352_v28 = vshll.u32 %v4940_v16, 16  ;;  %v4933_v39 = vld [vmem:[#allocation5 + $0x180] sm:$0xff]   ;;  %v1357_v40 = vshll.u32 %v4941_v30, 16  ;;  %v4947_v4 = vld [vmem:[#allocation5 + $0x108] sm:$0xff]  }
  0x9e   : > { %1195 = vrot.lane.b32.xlu1 %v1154_v36, %s5237_s22  ;;  %4308 = vmatpush3.bf16.msra.mxu0 %v4927_v50  ;;  %v839_v22 = vor.u32 %v838_v14, %v834_v9  ;;  %v1218_v25 = vsel %vm600_vm0, %v1213_v17, %v1217_v13  ;;  %v1366_v26 = vrot.slane %v1364_v20, 1  ;;  %v4943_v41 = vld [vmem:[%s5390_s30 + $0x278] ss:$0 sps:$4 sm:$0x11]   ;;  %v1736_v42 = vshrl.u32 %v4942_v21, 16  ;;  %v5035_v44 = vld [vmem:[%s5390_s30 + $0xc] sm:$0xff]  }
  0x9f   : > { %821 = vrot.lane.b32.xlu0 %v780_v38, %s5237_s22  ;;  %4517 = vmatprep.subr.bf16.mxu0 %v4930_v61  ;;  %v1371_v34 = vrot.slane %v1369_v27, 1  ;;  %v1354_v35 = vrot.slane %v1352_v28, 1  ;;  %v1738_v43 = vshll.u32 %v4942_v21, 16  ;;  %v4931_v48 = vld [vmem:[#allocation5 + $0x100] sm:$0xff]   ;;  %v1359_v49 = vrot.slane %v1357_v40, 1  ;;  %v4946_v61 = vld [vmem:[#allocation5 + $0x148] sm:$0xff]  }
  0xa0   : > { %4420 = vmatpush3.bf16.msra.mxu1 %v4929_v59  ;;  %v844_v29 = vsel %vm600_vm0, %v839_v22, %v843_v23  ;;  %v1367_v33 = vor.u32 %v1366_v26, %v1362_v19  ;;  %v1743_v51 = vshll.u32 %v4943_v41, 16  ;;  %v4945_v52 = vld [vmem:[%s5390_s30 + $0x26c] ss:$0 sps:$4 sm:$0x11]   ;;  %v1724_v54 = vshrl.u32 %v4944_v31, 16  ;;  %v5038_v10 = vld [vmem:[%s5390_s30 + $0xe4] sm:$0xff]  }
  0xa1   : > { %4629 = vmatprep.subr.bf16.mxu1 %v4932_v0  ;;  %v1355_v47 = vor.u32 %v1354_v35, %v1350_v24  ;;  %v1740_v50 = vrot.slane %v1738_v43, 1  ;;  %v1726_v55 = vshll.u32 %v4944_v31, 16  ;;  %v5036_v56 = vld [vmem:[%s5390_s30 + $0xcc] sm:$0xff]   ;;  %v1731_v0 = vshll.u32 %v4945_v52, 16  ;;  %v4950_v12 = vld [vmem:[%s5390_s30 + $0x27c] sm:$0xff]   ;;  %v5041_v43 = vld [vmem:[%s5390_s30 + $0x24] sm:$0xff]  }
  0xa2   : > { %1197 = vrot.lane.b32.xlu1 %v1166_v62, %s5237_s22  ;;  %v1372_v46 = vsel %vm600_vm0, %v1367_v33, %v1371_v34  ;;  %v1745_v60 = vrot.slane %v1743_v51, 1  ;;  %v4948_v5 = vld [vmem:[#allocation5 + $0x1c8] sm:$0xff]   ;;  %v4951_v13 = vld [vmem:[%s5390_s30 + $0x284] ss:$0 sps:$4 sm:$0x11]   ;;  %v1748_v16 = vshrl.u32 %v4950_v12, 16 }
  0xa3   : > { %823 = vrot.lane.b32.xlu0 %v792_v1, %s5237_s22  ;;  %v1360_v58 = vsel %vm600_vm0, %v1355_v47, %v1359_v49  ;;  %v1741_v59 = vor.u32 %v1740_v50, %v1736_v42  ;;  %v1728_v63 = vrot.slane %v1726_v55, 1  ;;  %v5037_v1 = vld [vmem:[%s5390_s30] sm:$0xff]   ;;  %v1733_v8 = vrot.slane %v1731_v0, 1  ;;  %v4949_v9 = vld [vmem:[#allocation5 + $0x188] sm:$0xff]   ;;  %v4952_v19 = vld [vmem:[%s5390_s30 + $0x1b0] sm:$0xff]  }
  0xa4   : > { %v1750_v17 = vshll.u32 %v4950_v12, 16  ;;  %v1755_v18 = vshll.u32 %v4951_v13, 16  ;;  %v5039_v20 = vld [vmem:[%s5390_s30 + $0x18] sm:$0xff]   ;;  %v4954_v23 = vld [vmem:[%s5390_s30 + $0x288] sm:$0xff]   ;;  %v1374_v26 = vshrl.u32 %v4952_v19, 16  ;;  %v1376_v27 = vshll.u32 %v4952_v19, 16 }
  0xa5   : > { %v1746_v3 = vsel %vm600_vm0, %v1741_v59, %v1745_v60  ;;  %v1729_v7 = vor.u32 %v1728_v63, %v1724_v54  ;;  %v4953_v22 = vld [vmem:[%s5390_s30 + $0x1b8] ss:$0 sps:$4 sm:$0x11]   ;;  %v4955_v30 = vld [vmem:[%s5390_s30 + $0x290] ss:$0 sps:$4 sm:$0x11]  }
  0xa6   : > { %1219 = vrot.lane.b32.xlu1 %v1218_v25, %s5237_s22  ;;  %v1752_v24 = vrot.slane %v1750_v17, 1  ;;  %v1757_v25 = vrot.slane %v1755_v18, 1  ;;  %v1760_v31 = vshrl.u32 %v4954_v23, 16  ;;  %v5040_v33 = vld [vmem:[%s5390_s30 + $0xf0] sm:$0xff]   ;;  %v1767_v41 = vshll.u32 %v4955_v30, 16 }
  0xa7   : > { %845 = vrot.lane.b32.xlu0 %v844_v29, %s5237_s22  ;;  %v1734_v14 = vsel %vm600_vm0, %v1729_v7, %v1733_v8  ;;  %v1381_v29 = vshll.u32 %v4953_v22, 16  ;;  %v4958_v42 = vld [vmem:[#allocation5 + $0x150] sm:$0xff]  }
  0xa8   : > { %v1753_v35 = vor.u32 %v1752_v24, %v1748_v16  ;;  %v1769_v51 = vrot.slane %v1767_v41, 1  ;;  %v4959_v55 = vld [vmem:[#allocation5 + $0x110] sm:$0xff]   ;;  %v4967_v24 = vld [vmem:[%s5390_s30 + $0x2a8] ss:$0 sps:$4 sm:$0x11]  }
  0xa9   : > { %v4960_v60 = vld [vmem:[#allocation5 + $0x1d0] sm:$0xff]   ;;  %v4972_v41 = vld [vmem:[#allocation5 + $0x1d8] sm:$0xff]  }
  0xaa   : > { %1541 = vrot.lane.b32.xlu1 %v1360_v58, %s5237_s22  ;;  %v4962_v0 = vld [vmem:[%s5390_s30 + $0x294] sm:$0xff]  }
  0xab   : > { %1543 = vrot.lane.b32.xlu0 %v1372_v46, %s5237_s22  ;;  %v1758_v46 = vsel %vm600_vm0, %v1753_v35, %v1757_v25  ;;  %v1772_v7 = vshrl.u32 %v4962_v0, 16  ;;  %v1774_v8 = vshll.u32 %v4962_v0, 16 }
  0xae   : > { %1915 = vrot.lane.b32.xlu1 %v1734_v14, %s5237_s22  ;;  %v1776_v14 = vrot.slane %v1774_v8, 1 }
  0xaf   : > { %1917 = vrot.lane.b32.xlu0 %v1746_v3, %s5237_s22  ;;  %v4964_v3 = vld [vmem:[%s5390_s30 + $0x1c8] sm:$0xff]  }
  0xb0   : > { %v1398_v12 = vshrl.u32 %v4964_v3, 16  ;;  %v1400_v13 = vshll.u32 %v4964_v3, 16  ;;  %v5663_v3 = vld [vmem:[%s5390_s30 + $0x2b8] sm:$0xff]  }
  0xb2   : > { %1919 = vrot.lane.b32.xlu1 %v1758_v46, %s5237_s22  ;;  %v1402_v18 = vrot.slane %v1400_v13, 1  ;;  %v5671_v13 = vld [vmem:[%s5390_s30 + $0x1ec] sm:$0xff]  }
  0xb4   : > { %v1403_v30 = vor.u32 %v1402_v18, %v1398_v12  ;;  %v5048_v18 = vld [vmem:[%s5390_s30 + $0x120] sm:$0xff]  }
  0xd8   : > { %v1170_v32 = vpop.permute.xlu1 %1169 }
  0xd9   : > { %v796_v36 = vpop.permute.xlu0 %795  ;;  %v5544_v38 = vsel %vm1969_vm1, %v5034_v37, %v1170_v32  ;;  %v1762_v32 = vshll.u32 %v4954_v23, 16  ;;  %v4956_v37 = vld [vmem:[%s5390_s30 + $0x1bc] sm:$0xff]   ;;  %v1777_v23 = vor.u32 %v1776_v14, %v1772_v7 }
  0xda   : > { %v5549_v45 = vsel %vm1969_vm1, %v5035_v44, %v796_v36  ;;  %2879 = vmatprep.mubr.bf16.mxu1 %v5544_v38  ;;  %v1378_v36 = vrot.slane %v1376_v27, 1  ;;  %v1386_v49 = vshrl.u32 %v4956_v37, 16  ;;  %v1388_v52 = vshll.u32 %v4956_v37, 16  ;;  %v4970_v27 = vld [vmem:[#allocation5 + $0x158] sm:$0xff]  }
  0xdb   : > { %2718 = vmatprep.mubr.bf16.mxu0 %v5549_v45  ;;  %v1764_v40 = vrot.slane %v1762_v32, 1 }
  0xdc   : > { %v1168_v53 = vpop.permute.xlu1 %1167  ;;  %v1379_v47 = vor.u32 %v1378_v36, %v1374_v26  ;;  %v1390_v59 = vrot.slane %v1388_v52, 1  ;;  %v1791_v36 = vshll.u32 %v4967_v24, 16  ;;  %v5046_v52 = vld [vmem:[%s5390_s30 + $0x114] sm:$0xff]  }
  0xdd   : > { %v2022_v57 = vsel %vm1969_vm1, %v5036_v56, %v1168_v53  ;;  %v794_v62 = vpop.permute.xlu0 %793  ;;  %v1765_v50 = vor.u32 %v1764_v40, %v1760_v31  ;;  %v5042_v56 = vld [vmem:[%s5390_s30 + $0xfc] sm:$0xff]  }
  0xde   : > { %2880 = vmatmul.mubr.bf16.vlgmr.msra.gmra.mrb[0].mxu1 %v2022_v57  ;;  %v1971_v2 = vsel %vm1969_vm1, %v5037_v1, %v794_v62  ;;  %v4961_v62 = vld [vmem:[#allocation5 + $0x190] sm:$0xff]   ;;  %v1391_v63 = vor.u32 %v1390_v59, %v1386_v49  ;;  %v4969_v40 = vld [vmem:[%s5390_s30 + $0x1dc] ss:$0 sps:$4 sm:$0x11]   ;;  %v4982_v24 = vld [vmem:[#allocation5 + $0x160] sm:$0xff]  }
  0xdf   : > { %4630 = vmatpush3.bf16.msra.mxu1 %v4933_v39  ;;  %2719 = vmatmul.mubr.bf16.vlgmr.msra.gmra.mrb[0].mxu0 %v1971_v2  ;;  %v1770_v58 = vsel %vm600_vm0, %v1765_v50, %v1769_v51  ;;  %v4963_v2 = vld [vmem:[%s5390_s30 + $0x29c] ss:$0 sps:$4 sm:$0x11]   ;;  %v5639_v51 = vld [vmem:[%s5390_s30 + $0x2ac] sm:$0xff]  }
  0xe0   : > { %v1172_v6 = vpop.permute.xlu1 %1171  ;;  %4518 = vmatpush3.bf16.msra.mxu0 %v4931_v48  ;;  %4631 = vmatprep.subr.bf16.mxu1 %v4948_v5  ;;  %v4957_v48 = vld [vmem:[%s5390_s30 + $0x1c4] ss:$0 sps:$4 sm:$0x11]   ;;  %v1798_v59 = vshll.u32 %v5639_v51, 16 }
  0xe1   : > { %v5566_v11 = vsel %vm1969_vm1, %v5038_v10, %v1172_v6  ;;  %4519 = vmatprep.subr.bf16.mxu0 %v4946_v61  ;;  %v798_v15 = vpop.permute.xlu0 %797  ;;  %v1393_v54 = vshll.u32 %v4957_v48, 16  ;;  %1921 = vrot.lane.b32.xlu1 %v1770_v58, %s5237_s22  ;;  %v1779_v10 = vshll.u32 %v4963_v2, 16  ;;  %v4973_v48 = vld [vmem:[#allocation5 + $0x198] sm:$0xff]   ;;  %v1796_v58 = vshrl.u32 %v5639_v51, 16 }
  0xe2   : > { %2887 = vmatprep.mubr.bf16.mxu1 %v5566_v11  ;;  %v1977_v21 = vsel %vm1969_vm1, %v5039_v20, %v798_v15  ;;  %v4966_v15 = vld [vmem:[%s5390_s30 + $0x2a0] sm:$0xff]   ;;  %v4968_v20 = vld [vmem:[%s5390_s30 + $0x1d4] sm:$0xff]   ;;  %v1800_v0 = vrot.slane %v1798_v59, 1 }
  0xe3   : > { %4632 = vmatpush3.bf16.msra.mxu1 %v4949_v9  ;;  %2726 = vmatprep.mubr.bf16.mxu0 %v1977_v21  ;;  %v1395_v61 = vrot.slane %v1393_v54, 1  ;;  %v1781_v17 = vrot.slane %v1779_v10, 1  ;;  %v1784_v25 = vshrl.u32 %v4966_v15, 16  ;;  %v1786_v26 = vshll.u32 %v4966_v15, 16 }
  0xe4   : > { %4520 = vmatpush3.bf16.msra.mxu0 %v4947_v4  ;;  %v1174_v28 = vpop.permute.xlu1 %1173  ;;  %4633 = vmatprep.subr.bf16.mxu1 %v4960_v60  ;;  %v5043_v4 = vld [vmem:[%s5390_s30 + $0x30] sm:$0xff]   ;;  %v1410_v32 = vshrl.u32 %v4968_v20, 16  ;;  %v1412_v37 = vshll.u32 %v4968_v20, 16  ;;  %v5047_v60 = vld [vmem:[%s5390_s30 + $0x48] sm:$0xff]   ;;  %v1801_v7 = vor.u32 %v1800_v0, %v1796_v58  ;;  %v1808_v10 = vshrl.u32 %v5663_v3, 16 }
  0xe5   : > { %v5582_v34 = vsel %vm1969_vm1, %v5040_v33, %v1174_v28  ;;  %v800_v39 = vpop.permute.xlu0 %799  ;;  %4521 = vmatprep.subr.bf16.mxu0 %v4958_v42  ;;  %v1396_v6 = vsel %vm600_vm0, %v1391_v63, %v1395_v61  ;;  %v5045_v28 = vld [vmem:[%s5390_s30 + $0x3c] sm:$0xff]   ;;  %v1782_v33 = vsel %vm600_vm0, %v1777_v23, %v1781_v17  ;;  %v1788_v35 = vrot.slane %v1786_v26, 1  ;;  %v4975_v54 = vld [vmem:[%s5390_s30 + $0x2b4] ss:$0 sps:$4 sm:$0x11]  }
  0xe6   : > { %2888 = vmatmul.mubr.bf16.gmra.mrb[4].mxu1 %v5544_v38  ;;  %v1383_v38 = vrot.slane %v1381_v29, 1  ;;  %v5589_v44 = vsel %vm1969_vm1, %v5041_v43, %v800_v39  ;;  %v4971_v39 = vld [vmem:[#allocation5 + $0x118] sm:$0xff]   ;;  %1923 = vrot.lane.b32.xlu1 %v1782_v33, %s5237_s22  ;;  %v1793_v42 = vrot.slane %v1791_v36, 1  ;;  %v1414_v43 = vrot.slane %v1412_v37, 1  ;;  %v4984_v36 = vld [vmem:[#allocation5 + $0x1e0] sm:$0xff]  }
  0xe7   : > { %2727 = vmatmul.mubr.bf16.gmra.mrb[4].mxu0 %v5549_v45  ;;  %2895 = vmatprep.mubr.bf16.mxu1 %v5582_v34  ;;  %v4977_v63 = vld [vmem:[%s5390_s30 + $0x1e8] ss:$0 sps:$4 sm:$0x11]   ;;  %v4981_v20 = vld [vmem:[%s5390_s30 + $0x1f4] ss:$0 sps:$4 sm:$0x11]  }
  0xe8   : > { %2734 = vmatprep.mubr.bf16.mxu0 %v5589_v44  ;;  %v1176_v45 = vpop.permute.xlu1 %1175  ;;  %v1384_v53 = vsel %vm600_vm0, %v1379_v47, %v1383_v38  ;;  %4522 = vmatpush3.bf16.msra.mxu0 %v4959_v55  ;;  %v1417_v47 = vshll.u32 %v4969_v40, 16  ;;  %v5647_v55 = vld [vmem:[%s5390_s30 + $0x1e0] sm:$0xff]   ;;  %v1436_v23 = vshll.u32 %v5671_v13, 16  ;;  %v1441_v33 = vshll.u32 %v4981_v20, 16 }
  0xe9   : > { %1545 = vrot.lane.b32.xlu0 %v1384_v53, %s5237_s22  ;;  %v5599_v57 = vsel %vm1969_vm1, %v5042_v56, %v1176_v45  ;;  %v802_v1 = vpop.permute.xlu0 %801  ;;  %4634 = vmatpush3.bf16.msra.mxu1 %v4961_v62  ;;  %v1415_v45 = vor.u32 %v1414_v43, %v1410_v32  ;;  %v1803_v62 = vshll.u32 %v4975_v54, 16  ;;  %v1424_v2 = vshll.u32 %v5647_v55, 16  ;;  %v5695_v40 = vld [vmem:[%s5390_s30 + $0x2c4] sm:$0xff]   ;;  %v5713_v54 = vld [vmem:[%s5390_s30 + $0x2d0] sm:$0xff]  }
  0xea   : > { %v5610_v5 = vsel %vm1969_vm1, %v5043_v4, %v802_v1  ;;  %4523 = vmatprep.subr.bf16.mxu0 %v4970_v27  ;;  %4635 = vmatprep.subr.bf16.mxu1 %v4972_v41  ;;  %v1419_v50 = vrot.slane %v1417_v47, 1  ;;  %v1422_v1 = vshrl.u32 %v5647_v55, 16  ;;  %v1429_v4 = vshll.u32 %v4977_v63, 16  ;;  %v5050_v47 = vld [vmem:[%s5390_s30 + $0x12c] sm:$0xff]   ;;  %v5721_v63 = vld [vmem:[%s5390_s30 + $0x204] sm:$0xff]  }
  0xeb   : > { %v1426_v8 = vrot.slane %v1424_v2, 1  ;;  %v1438_v32 = vrot.slane %v1436_v23, 1  ;;  %v1443_v37 = vrot.slane %v1441_v33, 1  ;;  %v1820_v43 = vshrl.u32 %v5695_v40, 16  ;;  %v5748_v33 = vld [vmem:[%s5390_s30 + $0x2dc] sm:$0xff]  }
  0xec   : > { %v1178_v9 = vpop.permute.xlu1 %1177  ;;  %4524 = vmatpush3.bf16.msra.mxu0 %v4971_v39  ;;  %v1420_v56 = vsel %vm600_vm0, %v1415_v45, %v1419_v50  ;;  %v1431_v12 = vrot.slane %v1429_v4, 1  ;;  %v4985_v39 = vld [vmem:[#allocation5 + $0x1a0] sm:$0xff]   ;;  %v1832_v2 = vshrl.u32 %v5713_v54, 16  ;;  %v4994_v4 = vld [vmem:[#allocation5 + $0x168] sm:$0xff]  }
  0xed   : > { %1547 = vrot.lane.b32.xlu0 %v1396_v6, %s5237_s22  ;;  %v804_v16 = vpop.permute.xlu0 %803  ;;  %4636 = vmatpush3.bf16.msra.mxu1 %v4973_v48  ;;  %v1427_v15 = vor.u32 %v1426_v8, %v1422_v1  ;;  %v4989_v45 = vld [vmem:[%s5390_s30 + $0x200] ss:$0 sps:$4 sm:$0x11]   ;;  %v4991_v1 = vld [vmem:[%s5390_s30 + $0x2d8] ss:$0 sps:$4 sm:$0x11]  }
  0xee   : > { %2896 = vmatmul.mubr.bf16.gmra.mrb[8].mxu1 %v5566_v11  ;;  %v4965_v11 = vld [vmem:[%s5390_s30 + $0x1d0] ss:$0 sps:$4 sm:$0x11]   ;;  %v5625_v29 = vsel %vm1969_vm1, %v5045_v28, %v804_v16  ;;  %4525 = vmatprep.subr.bf16.mxu0 %v4982_v24 }
  0xef   : > { %2903 = vmatprep.mubr.bf16.mxu1 %v5599_v57  ;;  %2735 = vmatmul.mubr.bf16.gmra.mrb[8].mxu0 %v1977_v21  ;;  %v1405_v19 = vshll.u32 %v4965_v11, 16  ;;  %v5044_v21 = vld [vmem:[%s5390_s30 + $0x108] sm:$0xff]   ;;  %v1810_v11 = vshll.u32 %v5663_v3, 16  ;;  %v4983_v28 = vld [vmem:[#allocation5 + $0x120] sm:$0xff]  }
  0xf0   : > { %2742 = vmatprep.mubr.bf16.mxu0 %v5610_v5  ;;  %v5620_v22 = vsel %vm1969_vm1, %v5044_v21, %v1178_v9  ;;  %v1180_v46 = vpop.permute.xlu1 %1179  ;;  %v4979_v9 = vld [vmem:[%s5390_s30 + $0x2c0] ss:$0 sps:$4 sm:$0x11]   ;;  %v1434_v21 = vshrl.u32 %v5671_v13, 16  ;;  %4526 = vmatpush3.bf16.msra.mxu0 %v4983_v28  ;;  %v5053_v28 = vld [vmem:[%s5390_s30 + $0x6c] sm:$0xff]  }
  0xf1   : > { %v1407_v31 = vrot.slane %v1405_v19, 1  ;;  %v5643_v53 = vsel %vm1969_vm1, %v5046_v52, %v1180_v46  ;;  %v1812_v16 = vrot.slane %v1810_v11, 1  ;;  %v1815_v17 = vshll.u32 %v4979_v9, 16  ;;  %4637 = vmatprep.subr.bf16.mxu1 %v4984_v36  ;;  %4527 = vmatprep.subr.bf16.mxu0 %v4994_v4  ;;  %v5753_v36 = vld [vmem:[%s5390_s30 + $0x210] sm:$0xff]  }
  0xf2   : > { %4638 = vmatpush3.bf16.msra.mxu1 %v4985_v39  ;;  %v1822_v46 = vshll.u32 %v5695_v40, 16  ;;  %v1839_v11 = vshll.u32 %v4991_v1, 16  ;;  %v1846_v39 = vshll.u32 %v5748_v33, 16 }
  0xf3   : > { %v1408_v38 = vsel %vm600_vm0, %v1403_v30, %v1407_v31  ;;  %v1813_v26 = vor.u32 %v1812_v16, %v1808_v10  ;;  %v1817_v27 = vrot.slane %v1815_v17, 1  ;;  %v5049_v30 = vld [vmem:[%s5390_s30 + $0x54] sm:$0xff]  }
  0xf4   : > { %1549 = vrot.lane.b32.xlu0 %v1408_v38, %s5237_s22  ;;  %v1182_v6 = vpop.permute.xlu1 %1181  ;;  %v1824_v52 = vrot.slane %v1822_v46, 1  ;;  %v5765_v46 = vld [vmem:[%s5390_s30 + $0x2e8] sm:$0xff]  }
  0xf5   : > { %v5676_v19 = vsel %vm1969_vm1, %v5048_v18, %v1182_v6  ;;  %v1841_v18 = vrot.slane %v1839_v11, 1 }
  0xf6   : > { %2904 = vmatmul.mubr.bf16.gmra.mrb[12].mxu1 %v5582_v34  ;;  %v1789_v34 = vor.u32 %v1788_v35, %v1784_v25  ;;  %v1432_v25 = vsel %vm600_vm0, %v1427_v15, %v1431_v12  ;;  %v1818_v35 = vsel %vm600_vm0, %v1813_v26, %v1817_v27  ;;  %v1825_v0 = vor.u32 %v1824_v52, %v1820_v43  ;;  %v4996_v15 = vld [vmem:[#allocation5 + $0x1e8] sm:$0xff]  }
  0xf7   : > { %2911 = vmatprep.mubr.bf16.mxu1 %v5620_v22  ;;  %2743 = vmatmul.mubr.bf16.gmra.mrb[12].mxu0 %v5589_v44  ;;  %v806_v44 = vpop.permute.xlu0 %805  ;;  %v1460_v12 = vshll.u32 %v5721_v63, 16  ;;  %v1472_v43 = vshll.u32 %v5753_v36, 16 }
  0xf8   : > { %2750 = vmatprep.mubr.bf16.mxu0 %v5625_v29  ;;  %v1794_v49 = vsel %vm600_vm0, %v1789_v34, %v1793_v42  ;;  %v5655_v61 = vsel %vm1969_vm1, %v5047_v60, %v806_v44  ;;  %1551 = vrot.lane.b32.xlu0 %v1420_v56, %s5237_s22  ;;  %v1184_v38 = vpop.permute.xlu1 %1183  ;;  %v4987_v34 = vld [vmem:[%s5390_s30 + $0x2cc] ss:$0 sps:$4 sm:$0x11]   ;;  %v5051_v56 = vld [vmem:[%s5390_s30 + $0x60] sm:$0xff]  }
  0xf9   : > { %1925 = vrot.lane.b32.xlu1 %v1794_v49, %s5237_s22  ;;  %v5707_v48 = vsel %vm1969_vm1, %v5050_v47, %v1184_v38  ;;  %v1827_v49 = vshll.u32 %v4987_v34, 16  ;;  %v1462_v20 = vrot.slane %v1460_v12, 1  ;;  %4639 = vmatprep.subr.bf16.mxu1 %v4996_v15  ;;  %v5054_v47 = vld [vmem:[%s5390_s30 + $0x144] sm:$0xff]   ;;  %v1474_v52 = vrot.slane %v1472_v43, 1 }
  0xfb   : > { %v808_v14 = vpop.permute.xlu0 %807  ;;  %v1829_v59 = vrot.slane %v1827_v49, 1 }
  0xfc   : > { %v5686_v31 = vsel %vm1969_vm1, %v5049_v30, %v808_v14  ;;  %1553 = vrot.lane.b32.xlu0 %v1432_v25, %s5237_s22  ;;  %v1186_v8 = vpop.permute.xlu1 %1185  ;;  %v4995_v14 = vld [vmem:[#allocation5 + $0x128] sm:$0xff]  }
  0xfd   : > { %v1830_v9 = vsel %vm600_vm0, %v1825_v0, %v1829_v59  ;;  %4528 = vmatpush3.bf16.msra.mxu0 %v4995_v14  ;;  %v4997_v25 = vld [vmem:[#allocation5 + $0x1a8] sm:$0xff]   ;;  %v1856_v59 = vshrl.u32 %v5765_v46, 16  ;;  %v5007_v14 = vld [vmem:[#allocation5 + $0x130] sm:$0xff]  }
  0xfe   : > { %2912 = vmatmul.mubr.bf16.gmra.mrb[16].mxu1 %v5599_v57  ;;  %v1805_v57 = vrot.slane %v1803_v62, 1  ;;  %v1453_v62 = vshll.u32 %v4989_v45, 16 }
  0xff   : > { %2919 = vmatprep.mubr.bf16.mxu1 %v5643_v53  ;;  %2751 = vmatmul.mubr.bf16.gmra.mrb[16].mxu0 %v5610_v5  ;;  %v810_v42 = vpop.permute.xlu0 %809 }
 0x100   : > { %2758 = vmatprep.mubr.bf16.mxu0 %v5655_v61  ;;  %v1806_v5 = vsel %vm600_vm0, %v1801_v7, %v1805_v57  ;;  %v5718_v58 = vsel %vm1969_vm1, %v5051_v56, %v810_v42  ;;  %v1834_v57 = vshll.u32 %v5713_v54, 16  ;;  %v1455_v6 = vrot.slane %v1453_v62, 1  ;;  %4640 = vmatpush3.bf16.msra.mxu1 %v4997_v25  ;;  %v5003_v56 = vld [vmem:[%s5390_s30 + $0x2f0] ss:$0 sps:$4 sm:$0x11]   ;;  %v5055_v62 = vld [vmem:[%s5390_s30 + $0x78] sm:$0xff]  }
 0x101   : > { %1927 = vrot.lane.b32.xlu1 %v1806_v5, %s5237_s22  ;;  %v1458_v7 = vshrl.u32 %v5721_v63, 16  ;;  %v4993_v5 = vld [vmem:[%s5390_s30 + $0x20c] ss:$0 sps:$4 sm:$0x11]   ;;  %v1848_v42 = vrot.slane %v1846_v39, 1 }
 0x102   : > { %v1836_v10 = vrot.slane %v1834_v57, 1  ;;  %v1465_v24 = vshll.u32 %v4993_v5, 16 }
 0x103   : > { %v812_v16 = vpop.permute.xlu0 %811  ;;  %v1463_v27 = vor.u32 %v1462_v20, %v1458_v7  ;;  %v5005_v7 = vld [vmem:[%s5390_s30 + $0x224] ss:$0 sps:$4 sm:$0x11]  }
 0x104   : > { %v1837_v17 = vor.u32 %v1836_v10, %v1832_v2  ;;  %v5744_v30 = vsel %vm1969_vm1, %v5053_v28, %v812_v16  ;;  %v5779_v2 = vld [vmem:[%s5390_s30 + $0x21c] sm:$0xff]   ;;  %v1489_v15 = vshll.u32 %v5005_v7, 16 }
 0x105   : > { %1929 = vrot.lane.b32.xlu1 %v1818_v35, %s5237_s22  ;;  %v4999_v35 = vld [vmem:[%s5390_s30 + $0x2e4] ss:$0 sps:$4 sm:$0x11]   ;;  %v5011_v28 = vld [vmem:[%s5390_s30 + $0x2fc] ss:$0 sps:$4 sm:$0x11]  }
 0x106   : > { %2920 = vmatmul.mubr.bf16.gmra.mrb[20].mxu1 %v5620_v22  ;;  %v1439_v22 = vor.u32 %v1438_v32, %v1434_v21  ;;  %v5052_v21 = vld [vmem:[%s5390_s30 + $0x138] sm:$0xff]   ;;  %v1842_v26 = vsel %vm600_vm0, %v1837_v17, %v1841_v18  ;;  %v1467_v32 = vrot.slane %v1465_v24, 1  ;;  %v1851_v38 = vshll.u32 %v4999_v35, 16  ;;  %v5006_v10 = vld [vmem:[#allocation5 + $0x170] sm:$0xff]  }
 0x107   : > { %2927 = vmatprep.mubr.bf16.mxu1 %v5676_v19  ;;  %2759 = vmatmul.mubr.bf16.gmra.mrb[20].mxu0 %v5625_v29  ;;  %v5700_v29 = vld [vmem:[%s5390_s30 + $0x1f8] sm:$0xff]   ;;  %v5738_v23 = vsel %vm1969_vm1, %v5052_v21, %v1186_v8  ;;  %v814_v34 = vpop.permute.xlu0 %813  ;;  %v1482_v8 = vshrl.u32 %v5779_v2, 16  ;;  %v1491_v20 = vrot.slane %v1489_v15, 1  ;;  %v5009_v21 = vld [vmem:[#allocation5 + $0x1b0] sm:$0xff]   ;;  %v1875_v39 = vshll.u32 %v5011_v28, 16 }
 0x108   : > { %2766 = vmatprep.mubr.bf16.mxu0 %v5686_v31  ;;  %v1444_v41 = vsel %vm600_vm0, %v1439_v22, %v1443_v37  ;;  %v1446_v44 = vshrl.u32 %v5700_v29, 16  ;;  %v1448_v50 = vshll.u32 %v5700_v29, 16  ;;  %v1468_v22 = vsel %vm600_vm0, %v1463_v27, %v1467_v32  ;;  %4529 = vmatprep.subr.bf16.mxu0 %v5006_v10  ;;  %v5056_v24 = vld [vmem:[%s5390_s30 + $0x150] sm:$0xff]   ;;  %v5804_v32 = vld [vmem:[%s5390_s30 + $0x228] sm:$0xff]   ;;  %v5855_v28 = vld [vmem:[%s5390_s30 + $0x240] sm:$0xff]  }
 0x109   : > { %1555 = vrot.lane.b32.xlu0 %v1444_v41, %s5237_s22  ;;  %1931 = vrot.lane.b32.xlu1 %v1830_v9, %s5237_s22  ;;  %v1844_v37 = vshrl.u32 %v5748_v33, 16  ;;  %v5001_v41 = vld [vmem:[%s5390_s30 + $0x218] ss:$0 sps:$4 sm:$0x11]   ;;  %v1853_v45 = vrot.slane %v1851_v38, 1  ;;  %v5776_v0 = vsel %vm1969_vm1, %v5055_v62, %v814_v34  ;;  %v1484_v9 = vshll.u32 %v5779_v2, 16 }
 0x10a   : > { %v1450_v60 = vrot.slane %v1448_v50, 1  ;;  %4530 = vmatpush3.bf16.msra.mxu0 %v5007_v14  ;;  %v5057_v35 = vld [vmem:[%s5390_s30 + $0x84] sm:$0xff]   ;;  %v5013_v38 = vld [vmem:[%s5390_s30 + $0x230] ss:$0 sps:$4 sm:$0x11]   ;;  %v1877_v43 = vrot.slane %v1875_v39, 1 }
 0x10b   : > { %v1849_v50 = vor.u32 %v1848_v42, %v1844_v37  ;;  %v1486_v5 = vrot.slane %v1484_v9, 1  ;;  %v816_v17 = vpop.permute.xlu0 %815  ;;  %v5058_v62 = vld [vmem:[%s5390_s30 + $0x15c] sm:$0xff]   ;;  %v5059_v14 = vld [vmem:[%s5390_s30 + $0x90] sm:$0xff]   ;;  %v5060_v39 = vld [vmem:[%s5390_s30 + $0x168] sm:$0xff]  }
 0x10c   : > { %v5019_v10 = vld [vmem:[#allocation5 + $0x138] sm:$0xff]  }
 0x10d   : > { %1933 = vrot.lane.b32.xlu1 %v1842_v26, %s5237_s22  ;;  %v1854_v57 = vsel %vm600_vm0, %v1849_v50, %v1853_v45  ;;  %v1487_v18 = vor.u32 %v1486_v5, %v1482_v8  ;;  %v5799_v26 = vld [vmem:[%s5390_s30 + $0x2f4] sm:$0xff]   ;;  %v1501_v45 = vshll.u32 %v5013_v38, 16 }
 0x10e   : > { %2928 = vmatmul.mubr.bf16.gmra.mrb[24].mxu1 %v5643_v53  ;;  %v1451_v53 = vor.u32 %v1450_v60, %v1446_v44  ;;  %v1477_v44 = vshll.u32 %v5001_v41, 16  ;;  %v1858_v60 = vshll.u32 %v5765_v46, 16  ;;  %v1870_v37 = vshll.u32 %v5799_v26, 16 }
 0x10f   : > { %2935 = vmatprep.mubr.bf16.mxu1 %v5707_v48  ;;  %2767 = vmatmul.mubr.bf16.gmra.mrb[24].mxu0 %v5655_v61  ;;  %v1492_v27 = vsel %vm600_vm0, %v1487_v18, %v1491_v20  ;;  %v1494_v41 = vshrl.u32 %v5804_v32, 16 }
 0x110   : > { %2774 = vmatprep.mubr.bf16.mxu0 %v5718_v58  ;;  %v1456_v61 = vsel %vm600_vm0, %v1451_v53, %v1455_v6  ;;  %v1479_v1 = vrot.slane %v1477_v44, 1  ;;  %v1860_v53 = vrot.slane %v1858_v60, 1  ;;  %v1863_v6 = vshll.u32 %v5003_v56, 16  ;;  %v5824_v44 = vld [vmem:[%s5390_s30 + $0x234] sm:$0xff]  }
 0x111   : > { %1557 = vrot.lane.b32.xlu0 %v1456_v61, %s5237_s22  ;;  %1935 = vrot.lane.b32.xlu1 %v1854_v57, %s5237_s22  ;;  %v1872_v42 = vrot.slane %v1870_v37, 1  ;;  %v5018_v60 = vld [vmem:[#allocation5 + $0x178] sm:$0xff]   ;;  %v1508_v9 = vshll.u32 %v5824_v44, 16 }
 0x112   : > { %v1865_v12 = vrot.slane %v1863_v6, 1  ;;  %4531 = vmatprep.subr.bf16.mxu0 %v5018_v60 }
 0x113   : > { %4532 = vmatpush3.bf16.msra.mxu0 %v5019_v10 }
 0x115   : > { %1559 = vrot.lane.b32.xlu0 %v1468_v22, %s5237_s22  ;;  %v1868_v22 = vshrl.u32 %v5799_v26, 16 }
 0x116   : > { %2936 = vmatmul.mubr.bf16.gmra.mrb[28].mxu1 %v5676_v19  ;;  %v1188_v19 = vpop.permute.xlu1 %1187 }
 0x117   : > { %2943 = vmatprep.mubr.bf16.mxu1 %v5738_v23  ;;  %2775 = vmatmul.mubr.bf16.gmra.mrb[28].mxu0 %v5686_v31  ;;  %v1470_v31 = vshrl.u32 %v5753_v36, 16  ;;  %v5769_v49 = vsel %vm1969_vm1, %v5054_v47, %v1188_v19  ;;  %v5809_v19 = vsel %vm1969_vm1, %v5057_v35, %v816_v17  ;;  %v1873_v50 = vor.u32 %v1872_v42, %v1868_v22  ;;  %v5021_v17 = vld [vmem:[#allocation5 + $0x1b8] sm:$0xff]  }
 0x118   : > { %2782 = vmatprep.mubr.bf16.mxu0 %v5744_v30  ;;  %v1518_v42 = vshrl.u32 %v5855_v28, 16 }
 0x119   : > { %v1475_v4 = vor.u32 %v1474_v52, %v1470_v31  ;;  %v5820_v31 = vld [vmem:[%s5390_s30 + $0x300] sm:$0xff]   ;;  %v5015_v52 = vld [vmem:[%s5390_s30 + $0x308] ss:$0 sps:$4 sm:$0x11]   ;;  %v1878_v6 = vsel %vm600_vm0, %v1873_v50, %v1877_v43  ;;  %v1520_v43 = vshll.u32 %v5855_v28, 16 }
 0x11a   : > { %v1190_v61 = vpop.permute.xlu1 %1189  ;;  %v1880_v56 = vshrl.u32 %v5820_v31, 16  ;;  %v1887_v8 = vshll.u32 %v5015_v52, 16 }
 0x11b   : > { %v1480_v11 = vsel %vm600_vm0, %v1475_v4, %v1479_v1  ;;  %v5796_v25 = vsel %vm1969_vm1, %v5056_v24, %v1190_v61  ;;  %v1503_v4 = vrot.slane %v1501_v45, 1  ;;  %v5851_v24 = vld [vmem:[%s5390_s30 + $0x30c] sm:$0xff]   ;;  %v5061_v45 = vld [vmem:[%s5390_s30 + $0x9c] sm:$0xff]   ;;  %v1522_v60 = vrot.slane %v1520_v43, 1 }
 0x11c   : > { %1561 = vrot.lane.b32.xlu0 %v1480_v11, %s5237_s22  ;;  %v1889_v15 = vrot.slane %v1887_v8, 1  ;;  %v1892_v22 = vshrl.u32 %v5851_v24, 16  ;;  %v1894_v37 = vshll.u32 %v5851_v24, 16  ;;  %v5033_v43 = vld [vmem:[%s5390_s30 + $0x260] ss:$0 sps:$4 sm:$0x11]  }
 0x11e   : > { %2944 = vmatmul.mubr.bf16.gmra.mrb[32].mxu1 %v5707_v48  ;;  %v1861_v48 = vor.u32 %v1860_v53, %v1856_v59  ;;  %v1192_v34 = vpop.permute.xlu1 %1191  ;;  %v1882_v59 = vshll.u32 %v5820_v31, 16  ;;  %v1506_v53 = vshrl.u32 %v5824_v44, 16 }
 0x11f   : > { %2951 = vmatprep.mubr.bf16.mxu1 %v5769_v49  ;;  %2783 = vmatmul.mubr.bf16.gmra.mrb[32].mxu0 %v5718_v58  ;;  %v5008_v58 = vld [vmem:[#allocation5 + $0x1f0] sm:$0xff]   ;;  %v5831_v1 = vsel %vm1969_vm1, %v5058_v62, %v1192_v34  ;;  %v1896_v34 = vrot.slane %v1894_v37, 1 }
 0x120   : > { %2790 = vmatprep.mubr.bf16.mxu0 %v5776_v0  ;;  %v1866_v16 = vsel %vm600_vm0, %v1861_v48, %v1865_v12  ;;  %4641 = vmatprep.subr.bf16.mxu1 %v5008_v58  ;;  %v1884_v7 = vrot.slane %v1882_v59, 1  ;;  %v5017_v48 = vld [vmem:[%s5390_s30 + $0x23c] ss:$0 sps:$4 sm:$0x11]  }
 0x121   : > { %1937 = vrot.lane.b32.xlu1 %v1866_v16, %s5237_s22  ;;  %4642 = vmatpush3.bf16.msra.mxu1 %v5009_v21  ;;  %v5020_v12 = vld [vmem:[#allocation5 + $0x1f8] sm:$0xff]   ;;  %v1510_v16 = vrot.slane %v1508_v9, 1  ;;  %v1513_v58 = vshll.u32 %v5017_v48, 16  ;;  %v1897_v59 = vor.u32 %v1896_v34, %v1892_v22 }
 0x122   : > { %1563 = vrot.lane.b32.xlu0 %v1492_v27, %s5237_s22  ;;  %v1885_v5 = vor.u32 %v1884_v7, %v1880_v56  ;;  %4643 = vmatprep.subr.bf16.mxu1 %v5020_v12  ;;  %v1194_v20 = vpop.permute.xlu1 %1193  ;;  %v5023_v27 = vld [vmem:[%s5390_s30 + $0x314] ss:$0 sps:$4 sm:$0x11]   ;;  %v1523_v7 = vor.u32 %v1522_v60, %v1518_v42  ;;  %v5891_v12 = vld [vmem:[%s5390_s30 + $0x324] sm:$0xff]   ;;  %v1589_v60 = vshll.u32 %v5033_v43, 16 }
 0x123   : > { %v1511_v18 = vor.u32 %v1510_v16, %v1506_v53  ;;  %v1515_v21 = vrot.slane %v1513_v58, 1  ;;  %v5862_v38 = vsel %vm1969_vm1, %v5060_v39, %v1194_v20  ;;  %v5895_v16 = vld [vmem:[%s5390_s30 + $0x258] sm:$0xff]   ;;  %v5031_v20 = vld [vmem:[%s5390_s30 + $0x32c] ss:$0 sps:$4 sm:$0x11]   ;;  %v1958_v22 = vshll.u32 %v5891_v12, 16 }
 0x124   : > { %v5062_v58 = vld [vmem:[%s5390_s30 + $0x174] sm:$0xff]   ;;  %v1582_v37 = vshrl.u32 %v5895_v16, 16  ;;  %v1584_v34 = vshll.u32 %v5895_v16, 16  ;;  %v5074_v43 = vld [vmem:[%s5390_s30 + $0x288] sm:$0xff]  }
 0x125   : > { %1939 = vrot.lane.b32.xlu1 %v1878_v6, %s5237_s22  ;;  %4644 = vmatpush3.bf16.msra.mxu1 %v5021_v17  ;;  %v1516_v35 = vsel %vm600_vm0, %v1511_v18, %v1515_v21  ;;  %v1956_v21 = vshrl.u32 %v5891_v12, 16  ;;  %v1960_v42 = vrot.slane %v1958_v22, 1 }
 0x126   : > { %2952 = vmatmul.mubr.bf16.gmra.mrb[36].mxu1 %v5738_v23  ;;  %v1496_v23 = vshll.u32 %v5804_v32, 16  ;;  %v1196_v53 = vpop.permute.xlu1 %1195 }
 0x127   : > { %2959 = vmatprep.mubr.bf16.mxu1 %v5796_v25  ;;  %2791 = vmatmul.mubr.bf16.gmra.mrb[36].mxu0 %v5744_v30  ;;  %v818_v30 = vpop.permute.xlu0 %817  ;;  %v2064_v17 = vsel %vm1969_vm1, %v5062_v58, %v1196_v53  ;;  %v5064_v53 = vld [vmem:[%s5390_s30 + $0x180] sm:$0xff]  }
 0x128   : > { %2798 = vmatprep.mubr.bf16.mxu0 %v5809_v19  ;;  %v1498_v47 = vrot.slane %v1496_v23, 1  ;;  %v5842_v61 = vsel %vm1969_vm1, %v5059_v14, %v818_v30  ;;  %v5025_v23 = vld [vmem:[%s5390_s30 + $0x248] ss:$0 sps:$4 sm:$0x11]  }
 0x129   : > { %v1525_v56 = vshll.u32 %v5025_v23, 16  ;;  %v5027_v30 = vld [vmem:[%s5390_s30 + $0x320] ss:$0 sps:$4 sm:$0x11]   ;;  %v1963_v23 = vshll.u32 %v5031_v20, 16  ;;  %v5070_v20 = vld [vmem:[%s5390_s30 + $0x264] sm:$0xff]  }
 0x12a   : > { %v1499_v57 = vor.u32 %v1498_v47, %v1494_v41  ;;  %v1899_v41 = vshll.u32 %v5023_v27, 16  ;;  %v5869_v47 = vld [vmem:[%s5390_s30 + $0x318] sm:$0xff]   ;;  %v1911_v9 = vshll.u32 %v5027_v30, 16  ;;  %v5063_v27 = vld [vmem:[%s5390_s30 + $0xa8] sm:$0xff]  }
 0x12b   : > { %v1904_v62 = vshrl.u32 %v5869_v47, 16 }
 0x12c   : > { %v1504_v11 = vsel %vm600_vm0, %v1499_v57, %v1503_v4  ;;  %v1901_v52 = vrot.slane %v1899_v41, 1  ;;  %v1906_v57 = vshll.u32 %v5869_v47, 16  ;;  %v5882_v4 = vld [vmem:[%s5390_s30 + $0x24c] sm:$0xff]  }
 0x12d   : > { %1565 = vrot.lane.b32.xlu0 %v1504_v11, %s5237_s22  ;;  %v5029_v11 = vld [vmem:[%s5390_s30 + $0x254] ss:$0 sps:$4 sm:$0x11]   ;;  %v1532_v48 = vshll.u32 %v5882_v4, 16 }
 0x12e   : > { %2960 = vmatmul.mubr.bf16.gmra.mrb[40].mxu1 %v5769_v49  ;;  %v1890_v49 = vsel %vm600_vm0, %v1885_v5, %v1889_v15  ;;  %v1902_v6 = vsel %vm600_vm0, %v1897_v59, %v1901_v52  ;;  %v1908_v8 = vrot.slane %v1906_v57, 1  ;;  %v1913_v15 = vrot.slane %v1911_v9, 1 }
 0x12f   : > { %2967 = vmatprep.mubr.bf16.mxu1 %v5831_v1  ;;  %2799 = vmatmul.mubr.bf16.gmra.mrb[40].mxu0 %v5776_v0  ;;  %v820_v0 = vpop.permute.xlu0 %819  ;;  %v1537_v18 = vshll.u32 %v5029_v11, 16  ;;  %v1965_v52 = vrot.slane %v1963_v23, 1  ;;  %v1961_v59 = vor.u32 %v1960_v42, %v1956_v21  ;;  %v5066_v11 = vld [vmem:[%s5390_s30 + $0x18c] sm:$0xff]  }
 0x130   : > { %2806 = vmatprep.mubr.bf16.mxu0 %v5842_v61  ;;  %1941 = vrot.lane.b32.xlu1 %v1890_v49, %s5237_s22  ;;  %v5874_v50 = vsel %vm1969_vm1, %v5061_v45, %v820_v0  ;;  %v1909_v5 = vor.u32 %v1908_v8, %v1904_v62  ;;  %v1534_v49 = vrot.slane %v1532_v48, 1  ;;  %v5067_v48 = vld [vmem:[%s5390_s30 + $0xc0] sm:$0xff]  }
 0x131   : > { %1567 = vrot.lane.b32.xlu0 %v1516_v35, %s5237_s22  ;;  %v1539_v41 = vrot.slane %v1537_v18, 1  ;;  %v1966_v57 = vsel %vm600_vm0, %v1961_v59, %v1965_v52  ;;  %v5075_v52 = vld [vmem:[%s5390_s30 + $0x1bc] sm:$0xff]  }
 0x132   : > { %v1914_v35 = vsel %vm600_vm0, %v1909_v5, %v1913_v15 }
 0x133   : > { %v822_v10 = vpop.permute.xlu0 %821 }
 0x134   : > { %1943 = vrot.lane.b32.xlu1 %v1902_v6, %s5237_s22  ;;  %v2013_v0 = vsel %vm1969_vm1, %v5063_v27, %v822_v10 }
 0x136   : > { %2968 = vmatmul.mubr.bf16.gmra.mrb[44].mxu1 %v5796_v25  ;;  %v1527_v25 = vrot.slane %v1525_v56, 1  ;;  %v1586_v56 = vrot.slane %v1584_v34, 1 }
 0x137   : > { %2975 = vmatprep.mubr.bf16.mxu1 %v5862_v38  ;;  %2807 = vmatmul.mubr.bf16.gmra.mrb[44].mxu0 %v5809_v19  ;;  %v1530_v19 = vshrl.u32 %v5882_v4, 16  ;;  %v824_v62 = vpop.permute.xlu0 %823 }
 0x138   : > { %2814 = vmatprep.mubr.bf16.mxu0 %v5874_v50  ;;  %v1528_v14 = vsel %vm600_vm0, %v1523_v7, %v1527_v25  ;;  %1945 = vrot.lane.b32.xlu1 %v1914_v35, %s5237_s22  ;;  %v1587_v30 = vor.u32 %v1586_v56, %v1582_v37  ;;  %v1591_v25 = vrot.slane %v1589_v60, 1  ;;  %v5065_v7 = vld [vmem:[%s5390_s30 + $0xb4] sm:$0xff]  }
 0x139   : > { %1569 = vrot.lane.b32.xlu0 %v1528_v14, %s5237_s22  ;;  %v1535_v39 = vor.u32 %v1534_v49, %v1530_v19  ;;  %v2016_v8 = vsel %vm1969_vm1, %v5065_v7, %v824_v62  ;;  %v5069_v49 = vld [vmem:[%s5390_s30 + $0x1a4] sm:$0xff]   ;;  %v5072_v37 = vld [vmem:[%s5390_s30 + $0x198] sm:$0xff]  }
 0x13a   : > { %v1592_v6 = vsel %vm600_vm0, %v1587_v30, %v1591_v25  ;;  %v5076_v60 = vld [vmem:[%s5390_s30 + $0x294] sm:$0xff]   ;;  %v5077_v62 = vld [vmem:[%s5390_s30 + $0x1c8] sm:$0xff]  }
 0x13b   : > { %v1540_v45 = vsel %vm600_vm0, %v1535_v39, %v1539_v41  ;;  %v846_v10 = vpop.permute.xlu0 %845  ;;  %v5073_v41 = vld [vmem:[%s5390_s30 + $0x1b0] sm:$0xff]  }
 0x13c   : > { %1967 = vrot.lane.b32.xlu1 %v1966_v57, %s5237_s22  ;;  %v5079_v7 = vld [vmem:[%s5390_s30 + $0x1d4] sm:$0xff]  }
 0x13d   : > { %1571 = vrot.lane.b32.xlu0 %v1540_v45, %s5237_s22 }
 0x13e   : > { %2976 = vmatmul.mubr.bf16.gmra.mrb[48].mxu1 %v5831_v1  ;;  %v1198_v1 = vpop.permute.xlu1 %1197 }
 0x13f   : > { %2983 = vmatprep.mubr.bf16.mxu1 %v2064_v17  ;;  %2815 = vmatmul.mubr.bf16.gmra.mrb[48].mxu0 %v5842_v61  ;;  %v2067_v61 = vsel %vm1969_vm1, %v5064_v53, %v1198_v1  ;;  %v1544_v14 = vpop.permute.xlu0 %1543 }
 0x140   : > { %2822 = vmatprep.mubr.bf16.mxu0 %v2013_v0 }
 0x141   : > { %1593 = vrot.lane.b32.xlu0 %v1592_v6, %s5237_s22 }
 0x142   : > { %v1220_v9 = vpop.permute.xlu1 %1219 }
 0x143   : > { %v2070_v19 = vsel %vm1969_vm1, %v5066_v11, %v1220_v9  ;;  %v1918_v15 = vpop.permute.xlu0 %1917 }
 0x146   : > { %2984 = vmatmul.mubr.bf16.gmra.mrb[52].mxu1 %v5862_v38  ;;  %v2019_v38 = vsel %vm1969_vm1, %v5067_v48, %v846_v10  ;;  %v1542_v5 = vpop.permute.xlu1 %1541 }
 0x147   : > { %2991 = vmatprep.mubr.bf16.mxu1 %v2067_v61  ;;  %2823 = vmatmul.mubr.bf16.gmra.mrb[52].mxu0 %v5874_v50  ;;  %v5068_v50 = vld [vmem:[%s5390_s30 + $0x270] sm:$0xff]   ;;  %v2073_v39 = vsel %vm1969_vm1, %v5072_v37, %v1542_v5 }
 0x148   : > { %2830 = vmatprep.mubr.bf16.mxu0 %v2016_v8  ;;  %v2127_v58 = vsel %vm1969_vm1, %v5068_v50, %v1918_v15 }
 0x14a   : > { %v1916_v18 = vpop.permute.xlu1 %1915 }
 0x14b   : > { %v2124_v21 = vsel %vm1969_vm1, %v5070_v20, %v1916_v18 }
 0x14e   : > { %2992 = vmatmul.mubr.bf16.gmra.mrb[56].mxu1 %v2064_v17  ;;  %v2076_v17 = vsel %vm1969_vm1, %v5069_v49, %v1544_v14  ;;  %v1920_v27 = vpop.permute.xlu1 %1919 }
 0x14f   : > { %2999 = vmatprep.mubr.bf16.mxu1 %v2070_v19  ;;  %2831 = vmatmul.mubr.bf16.gmra.mrb[56].mxu0 %v2013_v0  ;;  %v5071_v0 = vld [vmem:[%s5390_s30 + $0x27c] sm:$0xff]  }
 0x150   : > { %2838 = vmatprep.mubr.bf16.mxu0 %v2019_v38  ;;  %v2130_v35 = vsel %vm1969_vm1, %v5071_v0, %v1920_v27 }
 0x153   : > { %v1922_v34 = vpop.permute.xlu1 %1921 }
 0x154   : > { %v2133_v45 = vsel %vm1969_vm1, %v5074_v43, %v1922_v34 }
 0x156   : > { %3000 = vmatmul.mubr.bf16.gmra.mrb[60].mxu1 %v2067_v61  ;;  %v5078_v61 = vld [vmem:[%s5390_s30 + $0x2a0] sm:$0xff]  }
 0x157   : > { %3201 = vmatprep.mubr.bf16.mxu1 %v2127_v58  ;;  %2839 = vmatmul.mubr.bf16.gmra.mrb[60].mxu0 %v2016_v8 }
 0x158   : > { %3040 = vmatprep.mubr.bf16.mxu0 %v2076_v17  ;;  %v1924_v1 = vpop.permute.xlu1 %1923 }
 0x159   : > { %v2136_v30 = vsel %vm1969_vm1, %v5076_v60, %v1924_v1 }
 0x15b   : > { %v1546_v22 = vpop.permute.xlu0 %1545 }
 0x15c   : > { %v2079_v23 = vsel %vm1969_vm1, %v5073_v41, %v1546_v22 }
 0x15e   : > { %3202 = vmatmul.mubr.bf16.vlgmr.msra.gmra.mrb[64].mxu1 %v2124_v21 }
 0x15f   : > { %3209 = vmatprep.mubr.bf16.mxu1 %v2130_v35  ;;  %3041 = vmatmul.mubr.bf16.vlgmr.msra.gmra.mrb[64].mxu0 %v2073_v39  ;;  %v1548_v42 = vpop.permute.xlu0 %1547 }
 0x160   : > { %3048 = vmatprep.mubr.bf16.mxu0 %v2079_v23  ;;  %v2082_v56 = vsel %vm1969_vm1, %v5075_v52, %v1548_v42 }
 0x166   : > { %3210 = vmatmul.mubr.bf16.gmra.mrb[68].mxu1 %v2127_v58  ;;  %v1550_v59 = vpop.permute.xlu0 %1549 }
 0x167   : > { %3217 = vmatprep.mubr.bf16.mxu1 %v2133_v45  ;;  %3049 = vmatmul.mubr.bf16.gmra.mrb[68].mxu0 %v2076_v17  ;;  %v2085_v57 = vsel %vm1969_vm1, %v5077_v62, %v1550_v59 }
 0x168   : > { %3056 = vmatprep.mubr.bf16.mxu0 %v2082_v56 }
 0x16a   : > { %v1552_v53 = vpop.permute.xlu0 %1551 }
 0x16b   : > { %v1926_v25 = vpop.permute.xlu1 %1925  ;;  %v2088_v8 = vsel %vm1969_vm1, %v5079_v7, %v1552_v53 }
 0x16c   : > { %v2139_v6 = vsel %vm1969_vm1, %v5078_v61, %v1926_v25 }
 0x16e   : > { %3218 = vmatmul.mubr.bf16.gmra.mrb[72].mxu1 %v2130_v35  ;;  %v1554_v10 = vpop.permute.xlu0 %1553 }
 0x16f   : > { %3225 = vmatprep.mubr.bf16.mxu1 %v2136_v30  ;;  %3057 = vmatmul.mubr.bf16.gmra.mrb[72].mxu0 %v2079_v23  ;;  %v2091_v19 = vsel %vm1969_vm1, %v5647_v55, %v1554_v10 }
 0x170   : > { %3064 = vmatprep.mubr.bf16.mxu0 %v2085_v57 }
 0x173   : > { %v1928_v9 = vpop.permute.xlu1 %1927 }
 0x174   : > { %v2142_v11 = vsel %vm1969_vm1, %v5639_v51, %v1928_v9 }
 0x176   : > { %3226 = vmatmul.mubr.bf16.gmra.mrb[76].mxu1 %v2133_v45 }
 0x177   : > { %3233 = vmatprep.mubr.bf16.mxu1 %v2139_v6  ;;  %3065 = vmatmul.mubr.bf16.gmra.mrb[76].mxu0 %v2082_v56  ;;  %v1930_v48 = vpop.permute.xlu1 %1929 }
 0x178   : > { %3072 = vmatprep.mubr.bf16.mxu0 %v2088_v8  ;;  %v2145_v14 = vsel %vm1969_vm1, %v5663_v3, %v1930_v48 }
 0x17b   : > { %v1556_v38 = vpop.permute.xlu0 %1555  ;;  %v1932_v51 = vpop.permute.xlu1 %1931 }
 0x17c   : > { %v2094_v5 = vsel %vm1969_vm1, %v5671_v13, %v1556_v38  ;;  %v2148_v55 = vsel %vm1969_vm1, %v5695_v40, %v1932_v51 }
 0x17e   : > { %3234 = vmatmul.mubr.bf16.gmra.mrb[80].mxu1 %v2136_v30 }
 0x17f   : > { %3241 = vmatprep.mubr.bf16.mxu1 %v2142_v11  ;;  %3073 = vmatmul.mubr.bf16.gmra.mrb[80].mxu0 %v2085_v57  ;;  %v1934_v3 = vpop.permute.xlu1 %1933 }
 0x180   : > { %3080 = vmatprep.mubr.bf16.mxu0 %v2091_v19  ;;  %v2151_v13 = vsel %vm1969_vm1, %v5713_v54, %v1934_v3 }
 0x183   : > { %v1558_v15 = vpop.permute.xlu0 %1557  ;;  %v1936_v40 = vpop.permute.xlu1 %1935 }
 0x184   : > { %v2097_v50 = vsel %vm1969_vm1, %v5700_v29, %v1558_v15  ;;  %v2154_v29 = vsel %vm1969_vm1, %v5748_v33, %v1936_v40 }
 0x186   : > { %3242 = vmatmul.mubr.bf16.gmra.mrb[84].mxu1 %v2139_v6 }
 0x187   : > { %3249 = vmatprep.mubr.bf16.mxu1 %v2145_v14  ;;  %3081 = vmatmul.mubr.bf16.gmra.mrb[84].mxu0 %v2088_v8  ;;  %v1560_v58 = vpop.permute.xlu0 %1559 }
 0x188   : > { %3088 = vmatprep.mubr.bf16.mxu0 %v2094_v5  ;;  %v2100_v49 = vsel %vm1969_vm1, %v5721_v63, %v1560_v58 }
 0x18e   : > { %3250 = vmatmul.mubr.bf16.gmra.mrb[88].mxu1 %v2142_v11  ;;  %v1562_v17 = vpop.permute.xlu0 %1561 }
 0x18f   : > { %3257 = vmatprep.mubr.bf16.mxu1 %v2148_v55  ;;  %3089 = vmatmul.mubr.bf16.gmra.mrb[88].mxu0 %v2091_v19  ;;  %v2103_v18 = vsel %vm1969_vm1, %v5753_v36, %v1562_v17 }
 0x190   : > { %3096 = vmatprep.mubr.bf16.mxu0 %v2097_v50 }
 0x193   : > { %v1938_v54 = vpop.permute.xlu1 %1937 }
 0x194   : > { %v1564_v20 = vpop.permute.xlu0 %1563  ;;  %v2157_v63 = vsel %vm1969_vm1, %v5765_v46, %v1938_v54 }
 0x195   : > { %v2106_v21 = vsel %vm1969_vm1, %v5779_v2, %v1564_v20 }
 0x196   : > { %3258 = vmatmul.mubr.bf16.gmra.mrb[92].mxu1 %v2145_v14 }
 0x197   : > { %3265 = vmatprep.mubr.bf16.mxu1 %v2151_v13  ;;  %3097 = vmatmul.mubr.bf16.gmra.mrb[92].mxu0 %v2094_v5  ;;  %v1940_v33 = vpop.permute.xlu1 %1939 }
 0x198   : > { %3104 = vmatprep.mubr.bf16.mxu0 %v2100_v49  ;;  %v2160_v36 = vsel %vm1969_vm1, %v5799_v26, %v1940_v33 }
 0x19e   : > { %3266 = vmatmul.mubr.bf16.gmra.mrb[96].mxu1 %v2148_v55 }
 0x19f   : > { %3273 = vmatprep.mubr.bf16.mxu1 %v2154_v29  ;;  %3105 = vmatmul.mubr.bf16.gmra.mrb[96].mxu0 %v2097_v50  ;;  %v1566_v27 = vpop.permute.xlu0 %1565 }
 0x1a0   : > { %3112 = vmatprep.mubr.bf16.mxu0 %v2103_v18  ;;  %v2109_v0 = vsel %vm1969_vm1, %v5804_v32, %v1566_v27 }
 0x1a2   : > { %v1942_v46 = vpop.permute.xlu1 %1941 }
 0x1a3   : > { %v1568_v37 = vpop.permute.xlu0 %1567  ;;  %v2163_v42 = vsel %vm1969_vm1, %v5820_v31, %v1942_v46 }
 0x1a4   : > { %v2112_v32 = vsel %vm1969_vm1, %v5824_v44, %v1568_v37 }
 0x1a6   : > { %3274 = vmatmul.mubr.bf16.gmra.mrb[100].mxu1 %v2151_v13  ;;  %v1944_v30 = vpop.permute.xlu1 %1943 }
 0x1a7   : > { %3281 = vmatprep.mubr.bf16.mxu1 %v2157_v63  ;;  %3113 = vmatmul.mubr.bf16.gmra.mrb[100].mxu0 %v2100_v49  ;;  %v2166_v44 = vsel %vm1969_vm1, %v5851_v24, %v1944_v30 }
 0x1a8   : > { %3120 = vmatprep.mubr.bf16.mxu0 %v2106_v21 }
 0x1aa   : > { %v1946_v5 = vpop.permute.xlu1 %1945 }
 0x1ab   : > { %v1570_v31 = vpop.permute.xlu0 %1569 }
 0x1ac   : > { %v2115_v11 = vsel %vm1969_vm1, %v5855_v28, %v1570_v31  ;;  %v2169_v28 = vsel %vm1969_vm1, %v5869_v47, %v1946_v5 }
 0x1ae   : > { %3282 = vmatmul.mubr.bf16.gmra.mrb[104].mxu1 %v2154_v29 }
 0x1af   : > { %3289 = vmatprep.mubr.bf16.mxu1 %v2160_v36  ;;  %3121 = vmatmul.mubr.bf16.gmra.mrb[104].mxu0 %v2103_v18  ;;  %v1572_v24 = vpop.permute.xlu0 %1571 }
 0x1b0   : > { %3128 = vmatprep.mubr.bf16.mxu0 %v2109_v0  ;;  %v2118_v29 = vsel %vm1969_vm1, %v5882_v4, %v1572_v24 }
 0x1b1   : > { %v4421_v35 = vpop.f32.mrb[0].mxu1 }
 0x1b2   : > { %v4422_v22 = vpop.f32.mrb[1].mxu1  ;;  %v4309_v2 = vpop.f32.mrb[0].mxu0 }
 0x1b3   : > { %v4423_v39 = vadd.f32 %v4422_v22, %v4421_v35  ;;  %v4424_v41 = vpop.f32.mrb[2].mxu1  ;;  %v4310_v23 = vpop.f32.mrb[1].mxu0 }
 0x1b4   : > { %v4425_v34 = vpop.f32.mrb[3].mxu1  ;;  %v4311_v26 = vadd.f32 %v4310_v23, %v4309_v2  ;;  %v4312_v43 = vpop.f32.mrb[2].mxu0 }
 0x1b5   : > { %v4426_v45 = vadd.f32 %v4425_v34, %v4424_v41  ;;  %v4313_v52 = vpop.f32.mrb[3].mxu0  ;;  %v1594_v47 = vpop.permute.xlu0 %1593 }
 0x1b6   : > { %3290 = vmatmul.mubr.bf16.gmra.mrb[108].mxu1 %v2157_v63  ;;  %v5984_v56 = vadd.f32 %v4423_v39, %v4311_v26  ;;  %v4314_v1 = vadd.f32 %v4313_v52, %v4312_v43  ;;  %v2121_v41 = vsel %vm1969_vm1, %v5895_v16, %v1594_v47 }
 0x1b7   : > { %3297 = vmatprep.mubr.bf16.mxu1 %v2163_v42  ;;  %3129 = vmatmul.mubr.bf16.gmra.mrb[108].mxu0 %v2106_v21  ;;  %v1968_v21 = vpop.permute.xlu1 %1967 }
 0x1b8   : > { %v5986_v59 = vadd.f32 %v4426_v45, %v4314_v1  ;;  %3136 = vmatprep.mubr.bf16.mxu0 %v2112_v32  ;;  %v2172_v4 = vsel %vm1969_vm1, %v5891_v12, %v1968_v21 }
 0x1b9   : > { %v4427_v60 = vpop.f32.mrb[4].mxu1 }
 0x1ba   : > { %v4428_v62 = vpop.f32.mrb[5].mxu1  ;;  %v4315_v57 = vpop.f32.mrb[4].mxu0 }
 0x1bb   : > { %v4429_v25 = vadd.f32 %v4428_v62, %v4427_v60  ;;  %v4430_v53 = vpop.f32.mrb[6].mxu1  ;;  %v4316_v61 = vpop.f32.mrb[5].mxu0 }
 0x1bc   : > { %v4431_v6 = vpop.f32.mrb[7].mxu1  ;;  %v4317_v7 = vadd.f32 %v4316_v61, %v4315_v57  ;;  %v4318_v8 = vpop.f32.mrb[6].mxu0 }
 0x1bd   : > { %v4432_v9 = vadd.f32 %v4431_v6, %v4430_v53  ;;  %v4319_v10 = vpop.f32.mrb[7].mxu0 }
 0x1be   : > { %3298 = vmatmul.mubr.bf16.gmra.mrb[112].mxu1 %v2160_v36  ;;  %v5992_v19 = vadd.f32 %v4429_v25, %v4317_v7  ;;  %v4320_v48 = vadd.f32 %v4319_v10, %v4318_v8 }
 0x1bf   : > { %3305 = vmatprep.mubr.bf16.mxu1 %v2166_v44  ;;  %3137 = vmatmul.mubr.bf16.gmra.mrb[112].mxu0 %v2109_v0 }
 0x1c0   : > { %v5994_v38 = vadd.f32 %v4432_v9, %v4320_v48  ;;  %3144 = vmatprep.mubr.bf16.mxu0 %v2115_v11 }
 0x1c1   : > { %v4433_v14 = vpop.f32.mrb[8].mxu1 }
 0x1c2   : > { %v4434_v51 = vpop.f32.mrb[9].mxu1  ;;  %v4321_v15 = vpop.f32.mrb[8].mxu0 }
 0x1c3   : > { %v4435_v55 = vadd.f32 %v4434_v51, %v4433_v14  ;;  %v4436_v50 = vpop.f32.mrb[10].mxu1  ;;  %v4322_v3 = vpop.f32.mrb[9].mxu0 }
 0x1c4   : > { %v4437_v58 = vpop.f32.mrb[11].mxu1  ;;  %v4323_v13 = vadd.f32 %v4322_v3, %v4321_v15  ;;  %v4324_v49 = vpop.f32.mrb[10].mxu0 }
 0x1c5   : > { %v4438_v40 = vadd.f32 %v4437_v58, %v4436_v50  ;;  %v4325_v17 = vpop.f32.mrb[11].mxu0 }
 0x1c6   : > { %3306 = vmatmul.mubr.bf16.gmra.mrb[116].mxu1 %v2163_v42  ;;  %v6000_v18 = vadd.f32 %v4435_v55, %v4323_v13  ;;  %v4326_v54 = vadd.f32 %v4325_v17, %v4324_v49 }
 0x1c7   : > { %3313 = vmatprep.mubr.bf16.mxu1 %v2169_v28  ;;  %3145 = vmatmul.mubr.bf16.gmra.mrb[116].mxu0 %v2112_v32 }
 0x1c8   : > { %v6002_v20 = vadd.f32 %v4438_v40, %v4326_v54  ;;  %3152 = vmatprep.mubr.bf16.mxu0 %v2118_v29 }
 0x1c9   : > { %v4439_v63 = vpop.f32.mrb[12].mxu1 }
 0x1ca   : > { %v4440_v33 = vpop.f32.mrb[13].mxu1  ;;  %v4327_v27 = vpop.f32.mrb[12].mxu0 }
 0x1cb   : > { %v4441_v36 = vadd.f32 %v4440_v33, %v4439_v63  ;;  %v4442_v0 = vpop.f32.mrb[14].mxu1  ;;  %v4328_v35 = vpop.f32.mrb[13].mxu0 }
 0x1cc   : > { %v4443_v46 = vpop.f32.mrb[15].mxu1  ;;  %v4329_v22 = vadd.f32 %v4328_v35, %v4327_v27  ;;  %v4330_v37 = vpop.f32.mrb[14].mxu0 }
 0x1cd   : > { %v4444_v2 = vadd.f32 %v4443_v46, %v4442_v0  ;;  %v4331_v39 = vpop.f32.mrb[15].mxu0 }
 0x1ce   : > { %3314 = vmatmul.mubr.bf16.gmra.mrb[120].mxu1 %v2166_v44  ;;  %v6008_v23 = vadd.f32 %v4441_v36, %v4329_v22  ;;  %v4332_v34 = vadd.f32 %v4331_v39, %v4330_v37 }
 0x1cf   : > { %3321 = vmatprep.mubr.bf16.mxu1 %v2172_v4  ;;  %3153 = vmatmul.mubr.bf16.gmra.mrb[120].mxu0 %v2115_v11 }
 0x1d0   : > { %v6010_v42 = vadd.f32 %v4444_v2, %v4332_v34  ;;  %3160 = vmatprep.mubr.bf16.mxu0 %v2121_v41 }
 0x1d1   : > { %v4445_v26 = vpop.f32.mrb[16].mxu1 }
 0x1d2   : > { %v4446_v43 = vpop.f32.mrb[17].mxu1  ;;  %v4333_v45 = vpop.f32.mrb[16].mxu0 }
 0x1d3   : > { %v4447_v12 = vadd.f32 %v4446_v43, %v4445_v26  ;;  %v4448_v52 = vpop.f32.mrb[18].mxu1  ;;  %v4334_v32 = vpop.f32.mrb[17].mxu0 }
 0x1d4   : > { %v4449_v1 = vpop.f32.mrb[19].mxu1  ;;  %v4335_v60 = vadd.f32 %v4334_v32, %v4333_v45  ;;  %v4336_v30 = vpop.f32.mrb[18].mxu0 }
 0x1d5   : > { %v4450_v62 = vadd.f32 %v4449_v1, %v4448_v52  ;;  %v4337_v31 = vpop.f32.mrb[19].mxu0 }
 0x1d6   : > { %3322 = vmatmul.mubr.bf16.gmra.mrb[124].mxu1 %v2169_v28  ;;  %v6012_v16 = vadd.f32 %v4447_v12, %v4335_v60  ;;  %v4338_v57 = vadd.f32 %v4337_v31, %v4336_v30 }
 0x1d7   : > { %3161 = vmatmul.mubr.bf16.gmra.mrb[124].mxu0 %v2118_v29 }
 0x1d8   : > { %v6014_v25 = vadd.f32 %v4450_v62, %v4338_v57 }
 0x1d9   : > { %v4451_v53 = vpop.f32.mrb[20].mxu1 }
 0x1da   : > { %v4452_v61 = vpop.f32.mrb[21].mxu1  ;;  %v4339_v6 = vpop.f32.mrb[20].mxu0 }
 0x1db   : > { %v4453_v44 = vadd.f32 %v4452_v61, %v4451_v53  ;;  %v4454_v7 = vpop.f32.mrb[22].mxu1  ;;  %v4340_v8 = vpop.f32.mrb[21].mxu0 }
 0x1dc   : > { %v4455_v9 = vpop.f32.mrb[23].mxu1  ;;  %v4341_v10 = vadd.f32 %v4340_v8, %v4339_v6  ;;  %v4342_v11 = vpop.f32.mrb[22].mxu0 }
 0x1dd   : > { %v4456_v48 = vadd.f32 %v4455_v9, %v4454_v7  ;;  %v4343_v14 = vpop.f32.mrb[23].mxu0 }
 0x1de   : > { %v6016_v5 = vadd.f32 %v4453_v44, %v4341_v10  ;;  %v4344_v51 = vadd.f32 %v4343_v14, %v4342_v11 }
 0x1e0   : > { %v6018_v24 = vadd.f32 %v4456_v48, %v4344_v51 }
 0x1e1   : > { %v4457_v15 = vpop.f32.mrb[24].mxu1 }
 0x1e2   : > { %v4458_v55 = vpop.f32.mrb[25].mxu1  ;;  %v4345_v50 = vpop.f32.mrb[24].mxu0 }
 0x1e3   : > { %v4459_v3 = vadd.f32 %v4458_v55, %v4457_v15  ;;  %v4460_v58 = vpop.f32.mrb[26].mxu1  ;;  %v4346_v28 = vpop.f32.mrb[25].mxu0 }
 0x1e4   : > { %v4461_v13 = vpop.f32.mrb[27].mxu1  ;;  %v4347_v49 = vadd.f32 %v4346_v28, %v4345_v50  ;;  %v4348_v40 = vpop.f32.mrb[26].mxu0 }
 0x1e5   : > { %v4462_v17 = vadd.f32 %v4461_v13, %v4460_v58  ;;  %v4349_v29 = vpop.f32.mrb[27].mxu0 }
 0x1e6   : > { %v6020_v54 = vadd.f32 %v4459_v3, %v4347_v49  ;;  %v4350_v63 = vadd.f32 %v4349_v29, %v4348_v40 }
 0x1e8   : > { %v6022_v21 = vadd.f32 %v4462_v17, %v4350_v63 }
 0x1e9   : > { %v4463_v33 = vpop.f32.mrb[28].mxu1 }
 0x1ea   : > { %v4464_v47 = vpop.f32.mrb[29].mxu1  ;;  %v4351_v27 = vpop.f32.mrb[28].mxu0 }
 0x1eb   : > { %v4465_v36 = vadd.f32 %v4464_v47, %v4463_v33  ;;  %v4466_v0 = vpop.f32.mrb[30].mxu1  ;;  %v4352_v35 = vpop.f32.mrb[29].mxu0 }
 0x1ec   : > { %v4467_v46 = vpop.f32.mrb[31].mxu1  ;;  %v4353_v4 = vadd.f32 %v4352_v35, %v4351_v27  ;;  %v4354_v22 = vpop.f32.mrb[30].mxu0 }
 0x1ed   : > { %v4468_v37 = vadd.f32 %v4467_v46, %v4466_v0  ;;  %v4355_v2 = vpop.f32.mrb[31].mxu0 }
 0x1ee   : > { %v6024_v39 = vadd.f32 %v4465_v36, %v4353_v4  ;;  %v4356_v41 = vadd.f32 %v4355_v2, %v4354_v22 }
 0x1f0   : > { %v6026_v34 = vadd.f32 %v4468_v37, %v4356_v41 }
 0x1f1   : > { %v4469_v26 = vpop.f32.mrb[32].mxu1 }
 0x1f2   : > { %v4470_v43 = vpop.f32.mrb[33].mxu1  ;;  %v4357_v45 = vpop.f32.mrb[32].mxu0 }
 0x1f3   : > { %v4471_v12 = vadd.f32 %v4470_v43, %v4469_v26  ;;  %v4472_v52 = vpop.f32.mrb[34].mxu1  ;;  %v4358_v32 = vpop.f32.mrb[33].mxu0 }
 0x1f4   : > { %v4473_v1 = vpop.f32.mrb[35].mxu1  ;;  %v4359_v60 = vadd.f32 %v4358_v32, %v4357_v45  ;;  %v4360_v30 = vpop.f32.mrb[34].mxu0 }
 0x1f5   : > { %v4474_v62 = vadd.f32 %v4473_v1, %v4472_v52  ;;  %v4361_v31 = vpop.f32.mrb[35].mxu0 }
 0x1f6   : > { %v6028_v57 = vadd.f32 %v4471_v12, %v4359_v60  ;;  %v4362_v53 = vadd.f32 %v4361_v31, %v4360_v30 }
 0x1f8   : > { %v6030_v61 = vadd.f32 %v4474_v62, %v4362_v53 }
 0x1f9   : > { %v4475_v6 = vpop.f32.mrb[36].mxu1 }
 0x1fa   : > { %v4476_v44 = vpop.f32.mrb[37].mxu1  ;;  %v4363_v7 = vpop.f32.mrb[36].mxu0 }
 0x1fb   : > { %v4477_v8 = vadd.f32 %v4476_v44, %v4475_v6  ;;  %v4478_v9 = vpop.f32.mrb[38].mxu1  ;;  %v4364_v10 = vpop.f32.mrb[37].mxu0 }
 0x1fc   : > { %v4479_v11 = vpop.f32.mrb[39].mxu1  ;;  %v4365_v48 = vadd.f32 %v4364_v10, %v4363_v7  ;;  %v4366_v14 = vpop.f32.mrb[38].mxu0 }
 0x1fd   : > { %v4480_v51 = vadd.f32 %v4479_v11, %v4478_v9  ;;  %v4367_v15 = vpop.f32.mrb[39].mxu0 }
 0x1fe   : > { %v6032_v55 = vadd.f32 %v4477_v8, %v4365_v48  ;;  %v4368_v50 = vadd.f32 %v4367_v15, %v4366_v14 }
 0x200   : > { %v6034_v3 = vadd.f32 %v4480_v51, %v4368_v50 }
 0x201   : > { %v4481_v58 = vpop.f32.mrb[40].mxu1 }
 0x202   : > { %v4482_v28 = vpop.f32.mrb[41].mxu1  ;;  %v4369_v13 = vpop.f32.mrb[40].mxu0 }
 0x203   : > { %v4483_v49 = vadd.f32 %v4482_v28, %v4481_v58  ;;  %v4484_v40 = vpop.f32.mrb[42].mxu1  ;;  %v4370_v17 = vpop.f32.mrb[41].mxu0 }
 0x204   : > { %v4485_v29 = vpop.f32.mrb[43].mxu1  ;;  %v4371_v63 = vadd.f32 %v4370_v17, %v4369_v13  ;;  %v4372_v33 = vpop.f32.mrb[42].mxu0 }
 0x205   : > { %v4486_v47 = vadd.f32 %v4485_v29, %v4484_v40  ;;  %v4373_v27 = vpop.f32.mrb[43].mxu0 }
 0x206   : > { %v6036_v36 = vadd.f32 %v4483_v49, %v4371_v63  ;;  %v4374_v0 = vadd.f32 %v4373_v27, %v4372_v33 }
 0x208   : > { %v6038_v35 = vadd.f32 %v4486_v47, %v4374_v0 }
 0x209   : > { %v4487_v46 = vpop.f32.mrb[44].mxu1 }
 0x20a   : > { %v4488_v4 = vpop.f32.mrb[45].mxu1  ;;  %v4375_v22 = vpop.f32.mrb[44].mxu0 }
 0x20b   : > { %v4489_v37 = vadd.f32 %v4488_v4, %v4487_v46  ;;  %v4490_v2 = vpop.f32.mrb[46].mxu1  ;;  %v4376_v41 = vpop.f32.mrb[45].mxu0 }
 0x20c   : > { %v4491_v26 = vpop.f32.mrb[47].mxu1  ;;  %v4377_v43 = vadd.f32 %v4376_v41, %v4375_v22  ;;  %v4378_v45 = vpop.f32.mrb[46].mxu0 }
 0x20d   : > { %v4492_v12 = vadd.f32 %v4491_v26, %v4490_v2  ;;  %v4379_v52 = vpop.f32.mrb[47].mxu0 }
 0x20e   : > { %v6040_v32 = vadd.f32 %v4489_v37, %v4377_v43  ;;  %v4380_v1 = vadd.f32 %v4379_v52, %v4378_v45 }
 0x210   : > { %v6042_v60 = vadd.f32 %v4492_v12, %v4380_v1 }
 0x211   : > { %v4493_v30 = vpop.f32.mrb[48].mxu1 }
 0x212   : > { %v4494_v62 = vpop.f32.mrb[49].mxu1  ;;  %v4381_v31 = vpop.f32.mrb[48].mxu0 }
 0x213   : > { %v4495_v53 = vadd.f32 %v4494_v62, %v4493_v30  ;;  %v4496_v6 = vpop.f32.mrb[50].mxu1  ;;  %v4382_v44 = vpop.f32.mrb[49].mxu0 }
 0x214   : > { %v4497_v7 = vpop.f32.mrb[51].mxu1  ;;  %v4383_v8 = vadd.f32 %v4382_v44, %v4381_v31  ;;  %v4384_v9 = vpop.f32.mrb[50].mxu0 }
 0x215   : > { %v4498_v10 = vadd.f32 %v4497_v7, %v4496_v6  ;;  %v4385_v11 = vpop.f32.mrb[51].mxu0 }
 0x216   : > { %v6044_v48 = vadd.f32 %v4495_v53, %v4383_v8  ;;  %v4386_v14 = vadd.f32 %v4385_v11, %v4384_v9 }
 0x218   : > { %v6046_v51 = vadd.f32 %v4498_v10, %v4386_v14 }
 0x219   : > { %v4499_v15 = vpop.f32.mrb[52].mxu1 }
 0x21a   : > { %v4500_v50 = vpop.f32.mrb[53].mxu1  ;;  %v4387_v58 = vpop.f32.mrb[52].mxu0 }
 0x21b   : > { %v4501_v28 = vadd.f32 %v4500_v50, %v4499_v15  ;;  %v4502_v13 = vpop.f32.mrb[54].mxu1  ;;  %v4388_v49 = vpop.f32.mrb[53].mxu0 }
 0x21c   : > { %v4503_v40 = vpop.f32.mrb[55].mxu1  ;;  %v4389_v17 = vadd.f32 %v4388_v49, %v4387_v58  ;;  %v4390_v29 = vpop.f32.mrb[54].mxu0 }
 0x21d   : > { %v4504_v63 = vadd.f32 %v4503_v40, %v4502_v13  ;;  %v4391_v33 = vpop.f32.mrb[55].mxu0 }
 0x21e   : > { %v6048_v47 = vadd.f32 %v4501_v28, %v4389_v17  ;;  %v4392_v27 = vadd.f32 %v4391_v33, %v4390_v29 }
 0x220   : > { %v6050_v0 = vadd.f32 %v4504_v63, %v4392_v27 }
 0x221   : > { %v4505_v46 = vpop.f32.mrb[56].mxu1 }
 0x222   : > { %v4506_v4 = vpop.f32.mrb[57].mxu1  ;;  %v4393_v22 = vpop.f32.mrb[56].mxu0 }
 0x223   : > { %v4507_v37 = vadd.f32 %v4506_v4, %v4505_v46  ;;  %v4508_v2 = vpop.f32.mrb[58].mxu1  ;;  %v4394_v41 = vpop.f32.mrb[57].mxu0 }
 0x224   : > { %v4509_v26 = vpop.f32.mrb[59].mxu1  ;;  %v4395_v43 = vadd.f32 %v4394_v41, %v4393_v22  ;;  %v4396_v45 = vpop.f32.mrb[58].mxu0 }
 0x225   : > { %v4510_v12 = vadd.f32 %v4509_v26, %v4508_v2  ;;  %v4397_v52 = vpop.f32.mrb[59].mxu0 }
 0x226   : > { %v6052_v1 = vadd.f32 %v4507_v37, %v4395_v43  ;;  %v4398_v30 = vadd.f32 %v4397_v52, %v4396_v45 }
 0x228   : > { %v6054_v62 = vadd.f32 %v4510_v12, %v4398_v30 }
 0x229   : > { %v4511_v31 = vpop.f32.mrb[60].mxu1 }
 0x22a   : > { %v4512_v53 = vpop.f32.mrb[61].mxu1  ;;  %v4399_v6 = vpop.f32.mrb[60].mxu0 }
 0x22b   : > { %v4513_v44 = vadd.f32 %v4512_v53, %v4511_v31  ;;  %v4514_v7 = vpop.f32.mrb[62].mxu1  ;;  %v4400_v8 = vpop.f32.mrb[61].mxu0 }
 0x22c   : > { %v4515_v9 = vpop.f32.mrb[63].mxu1  ;;  %v4401_v10 = vadd.f32 %v4400_v8, %v4399_v6  ;;  %v4402_v11 = vpop.f32.mrb[62].mxu0 }
 0x22d   : > { %v4516_v14 = vadd.f32 %v4515_v9, %v4514_v7  ;;  %v4403_v15 = vpop.f32.mrb[63].mxu0 }
 0x22e   : > { %v6056_v50 = vadd.f32 %v4513_v44, %v4401_v10  ;;  %v4404_v58 = vadd.f32 %v4403_v15, %v4402_v11 }
 0x230   : > { %v6058_v28 = vadd.f32 %v4516_v14, %v4404_v58 }
 0x231   : > { %v4645_v13 = vpop.f32.mrb[64].mxu1 }
 0x232   : > { %v4646_v49 = vpop.f32.mrb[65].mxu1  ;;  %v4533_v40 = vpop.f32.mrb[64].mxu0 }
 0x233   : > { %v4647_v17 = vadd.f32 %v4646_v49, %v4645_v13  ;;  %v4648_v29 = vpop.f32.mrb[66].mxu1  ;;  %v4534_v63 = vpop.f32.mrb[65].mxu0 }
 0x234   : > { %v4649_v33 = vpop.f32.mrb[67].mxu1  ;;  %v4535_v27 = vadd.f32 %v4534_v63, %v4533_v40  ;;  %v4536_v46 = vpop.f32.mrb[66].mxu0 }
 0x235   : > { %v4650_v4 = vadd.f32 %v4649_v33, %v4648_v29  ;;  %v4537_v22 = vpop.f32.mrb[67].mxu0 }
 0x236   : > { %v3043_v37 = vadd.f32 %v4535_v27, %v5984_v56  ;;  %v4538_v2 = vadd.f32 %v4537_v22, %v4536_v46 }
 0x238   : > { %v3204_v41 = vadd.f32 %v4647_v17, %v3043_v37  ;;  %v3046_v26 = vadd.f32 %v4538_v2, %v5986_v59 }
 0x239   : > { %v4651_v43 = vpop.f32.mrb[68].mxu1 }
 0x23a   : > { %v4652_v45 = vpop.f32.mrb[69].mxu1  ;;  %v3207_v12 = vadd.f32 %v4650_v4, %v3046_v26  ;;  %v4539_v52 = vpop.f32.mrb[68].mxu0  ;;  %v3527_v53 = vmul.f32 %v3204_v41, %v3204_v41 }
 0x23b   : > { %v4653_v30 = vadd.f32 %v4652_v45, %v4651_v43  ;;  %v4654_v31 = vpop.f32.mrb[70].mxu1  ;;  %v4540_v6 = vpop.f32.mrb[69].mxu0 }
 0x23c   : > { %v4655_v44 = vpop.f32.mrb[71].mxu1  ;;  %v4201_v7 = vpack.c.bf16 %v3207_v12, %v3204_v41  ;;  %v3490_v8 = vadd.f32 %v3207_v12, %v3204_v41  ;;  %v3528_v9 = vmul.f32 %v3207_v12, %v3207_v12  ;;  %v4541_v10 = vadd.f32 %v4540_v6, %v4539_v52  ;;  %v4542_v11 = vpop.f32.mrb[70].mxu0 }
 0x23d   : > { %v4543_v56 = vpop.f32.mrb[71].mxu0  ;;  %v4656_v14 = vadd.f32 %v4655_v44, %v4654_v31 }
 0x23e   : > { %4202 = vst [vmem:[%s6063_s25] sm:$0xff] %v4201_v7   ;;  %v3559_v59 = vadd.f32 %v3528_v9, %v3527_v53  ;;  %v3051_v15 = vadd.f32 %v4541_v10, %v5992_v19  ;;  %v4544_v58 = vadd.f32 %v4543_v56, %v4542_v11 }
 0x240   : > { %v3212_v13 = vadd.f32 %v4653_v30, %v3051_v15  ;;  %v3054_v49 = vadd.f32 %v4544_v58, %v5994_v38 }
 0x241   : > { %v4657_v40 = vpop.f32.mrb[72].mxu1 }
 0x242   : > { %v4658_v17 = vpop.f32.mrb[73].mxu1  ;;  %v3491_v29 = vadd.f32 %v3490_v8, %v3212_v13  ;;  %v3529_v63 = vmul.f32 %v3212_v13, %v3212_v13  ;;  %v3215_v33 = vadd.f32 %v4656_v14, %v3054_v49  ;;  %v4545_v27 = vpop.f32.mrb[72].mxu0 }
 0x243   : > { %v4659_v46 = vadd.f32 %v4658_v17, %v4657_v40  ;;  %v4660_v4 = vpop.f32.mrb[74].mxu1  ;;  %v4546_v22 = vpop.f32.mrb[73].mxu0 }
 0x244   : > { %v4661_v37 = vpop.f32.mrb[75].mxu1  ;;  %v3560_v2 = vadd.f32 %v3559_v59, %v3529_v63  ;;  %v4206_v41 = vpack.c.bf16 %v3215_v33, %v3212_v13  ;;  %v3492_v26 = vadd.f32 %v3491_v29, %v3215_v33  ;;  %v3530_v43 = vmul.f32 %v3215_v33, %v3215_v33  ;;  %v4548_v19 = vpop.f32.mrb[74].mxu0 }
 0x245   : > { %v4547_v45 = vadd.f32 %v4546_v22, %v4545_v27  ;;  %v4549_v12 = vpop.f32.mrb[75].mxu0  ;;  %v4662_v52 = vadd.f32 %v4661_v37, %v4660_v4 }
 0x246   : > { %4278 = vst [vmem:[%s6063_s25 + $0x8] sm:$0xff] %v4206_v41   ;;  %v3561_v38 = vadd.f32 %v3560_v2, %v3530_v43  ;;  %v4550_v30 = vadd.f32 %v4549_v12, %v4548_v19 }
 0x247   : > { %v3059_v31 = vadd.f32 %v4547_v45, %v6000_v18 }
 0x248   : > { %v3062_v53 = vadd.f32 %v4550_v30, %v6002_v20 }
 0x249   : > { %v4663_v6 = vpop.f32.mrb[76].mxu1  ;;  %v3220_v44 = vadd.f32 %v4659_v46, %v3059_v31 }
 0x24a   : > { %v4664_v7 = vpop.f32.mrb[77].mxu1  ;;  %v3223_v8 = vadd.f32 %v4662_v52, %v3062_v53  ;;  %v4551_v9 = vpop.f32.mrb[76].mxu0 }
 0x24b   : > { %v4665_v10 = vadd.f32 %v4664_v7, %v4663_v6  ;;  %v4666_v11 = vpop.f32.mrb[78].mxu1  ;;  %v3493_v56 = vadd.f32 %v3492_v26, %v3220_v44  ;;  %v3531_v14 = vmul.f32 %v3220_v44, %v3220_v44  ;;  %v4552_v59 = vpop.f32.mrb[77].mxu0 }
 0x24c   : > { %v4667_v15 = vpop.f32.mrb[79].mxu1  ;;  %v4211_v58 = vpack.c.bf16 %v3223_v8, %v3220_v44  ;;  %v3532_v13 = vmul.f32 %v3223_v8, %v3223_v8  ;;  %v4553_v49 = vadd.f32 %v4552_v59, %v4551_v9  ;;  %v4554_v40 = vpop.f32.mrb[78].mxu0 }
 0x24d   : > { %v4668_v17 = vadd.f32 %v4667_v15, %v4666_v11  ;;  %v3562_v18 = vadd.f32 %v3561_v38, %v3531_v14  ;;  %v3494_v29 = vadd.f32 %v3493_v56, %v3223_v8  ;;  %v4555_v20 = vpop.f32.mrb[79].mxu0 }
 0x24e   : > { %4279 = vst [vmem:[%s6063_s25 + $0x10] sm:$0xff] %v4211_v58   ;;  %v3067_v63 = vadd.f32 %v4553_v49, %v6008_v23  ;;  %v4556_v33 = vadd.f32 %v4555_v20, %v4554_v40 }
 0x24f   : > { %v3563_v27 = vadd.f32 %v3562_v18, %v3532_v13 }
 0x250   : > { %v3228_v46 = vadd.f32 %v4665_v10, %v3067_v63  ;;  %v3070_v4 = vadd.f32 %v4556_v33, %v6010_v42 }
 0x251   : > { %v4669_v22 = vpop.f32.mrb[80].mxu1 }
 0x252   : > { %v4670_v37 = vpop.f32.mrb[81].mxu1  ;;  %v3495_v2 = vadd.f32 %v3494_v29, %v3228_v46  ;;  %v3533_v41 = vmul.f32 %v3228_v46, %v3228_v46  ;;  %v3231_v26 = vadd.f32 %v4668_v17, %v3070_v4  ;;  %v4557_v43 = vpop.f32.mrb[80].mxu0 }
 0x253   : > { %v4671_v19 = vadd.f32 %v4670_v37, %v4669_v22  ;;  %v4672_v45 = vpop.f32.mrb[82].mxu1  ;;  %v4558_v12 = vpop.f32.mrb[81].mxu0 }
 0x254   : > { %v4673_v52 = vpop.f32.mrb[83].mxu1  ;;  %v3564_v38 = vadd.f32 %v3563_v27, %v3533_v41  ;;  %v4216_v30 = vpack.c.bf16 %v3231_v26, %v3228_v46  ;;  %v3496_v31 = vadd.f32 %v3495_v2, %v3231_v26  ;;  %v3534_v23 = vmul.f32 %v3231_v26, %v3231_v26  ;;  %v4560_v53 = vpop.f32.mrb[82].mxu0 }
 0x255   : > { %v4559_v6 = vadd.f32 %v4558_v12, %v4557_v43  ;;  %v4561_v44 = vpop.f32.mrb[83].mxu0  ;;  %v4674_v7 = vadd.f32 %v4673_v52, %v4672_v45 }
 0x256   : > { %4280 = vst [vmem:[%s6063_s25 + $0x18] sm:$0xff] %v4216_v30   ;;  %v3565_v42 = vadd.f32 %v3564_v38, %v3534_v23  ;;  %v4562_v8 = vadd.f32 %v4561_v44, %v4560_v53 }
 0x257   : > { %v3075_v9 = vadd.f32 %v4559_v6, %v6012_v16 }
 0x258   : > { %v3078_v10 = vadd.f32 %v4562_v8, %v6014_v25 }
 0x259   : > { %v4675_v11 = vpop.f32.mrb[84].mxu1  ;;  %v3236_v56 = vadd.f32 %v4671_v19, %v3075_v9 }
 0x25a   : > { %v4676_v14 = vpop.f32.mrb[85].mxu1  ;;  %v3239_v59 = vadd.f32 %v4674_v7, %v3078_v10  ;;  %v4563_v15 = vpop.f32.mrb[84].mxu0 }
 0x25b   : > { %v4677_v58 = vadd.f32 %v4676_v14, %v4675_v11  ;;  %v4678_v13 = vpop.f32.mrb[86].mxu1  ;;  %v3497_v49 = vadd.f32 %v3496_v31, %v3236_v56  ;;  %v3535_v40 = vmul.f32 %v3236_v56, %v3236_v56  ;;  %v4564_v17 = vpop.f32.mrb[85].mxu0 }
 0x25c   : > { %v4679_v18 = vpop.f32.mrb[87].mxu1  ;;  %v4221_v29 = vpack.c.bf16 %v3239_v59, %v3236_v56  ;;  %v3536_v20 = vmul.f32 %v3239_v59, %v3239_v59  ;;  %v4565_v63 = vadd.f32 %v4564_v17, %v4563_v15  ;;  %v4566_v33 = vpop.f32.mrb[86].mxu0 }
 0x25d   : > { %v4680_v27 = vadd.f32 %v4679_v18, %v4678_v13  ;;  %v3566_v16 = vadd.f32 %v3565_v42, %v3535_v40  ;;  %v3498_v46 = vadd.f32 %v3497_v49, %v3239_v59  ;;  %v4567_v25 = vpop.f32.mrb[87].mxu0 }
 0x25e   : > { %4281 = vst [vmem:[%s6063_s25 + $0x20] sm:$0xff] %v4221_v29   ;;  %v3083_v4 = vadd.f32 %v4565_v63, %v6016_v5  ;;  %v4568_v22 = vadd.f32 %v4567_v25, %v4566_v33 }
 0x25f   : > { %v3567_v37 = vadd.f32 %v3566_v16, %v3536_v20 }
 0x260   : > { %v3244_v2 = vadd.f32 %v4677_v58, %v3083_v4  ;;  %v3086_v41 = vadd.f32 %v4568_v22, %v6018_v24 }
 0x261   : > { %v4681_v26 = vpop.f32.mrb[88].mxu1 }
 0x262   : > { %v4682_v43 = vpop.f32.mrb[89].mxu1  ;;  %v3499_v19 = vadd.f32 %v3498_v46, %v3244_v2  ;;  %v3537_v45 = vmul.f32 %v3244_v2, %v3244_v2  ;;  %v3247_v12 = vadd.f32 %v4680_v27, %v3086_v41  ;;  %v4569_v52 = vpop.f32.mrb[88].mxu0 }
 0x263   : > { %v4683_v38 = vadd.f32 %v4682_v43, %v4681_v26  ;;  %v4684_v30 = vpop.f32.mrb[90].mxu1  ;;  %v4570_v31 = vpop.f32.mrb[89].mxu0 }
 0x264   : > { %v4685_v23 = vpop.f32.mrb[91].mxu1  ;;  %v3568_v53 = vadd.f32 %v3567_v37, %v3537_v45  ;;  %v4226_v6 = vpack.c.bf16 %v3247_v12, %v3244_v2  ;;  %v3500_v44 = vadd.f32 %v3499_v19, %v3247_v12  ;;  %v3538_v5 = vmul.f32 %v3247_v12, %v3247_v12  ;;  %v4572_v7 = vpop.f32.mrb[90].mxu0 }
 0x265   : > { %v4571_v42 = vadd.f32 %v4570_v31, %v4569_v52  ;;  %v4573_v8 = vpop.f32.mrb[91].mxu0  ;;  %v4686_v9 = vadd.f32 %v4685_v23, %v4684_v30 }
 0x266   : > { %4282 = vst [vmem:[%s6063_s25 + $0x28] sm:$0xff] %v4226_v6   ;;  %v3569_v24 = vadd.f32 %v3568_v53, %v3538_v5  ;;  %v4574_v10 = vadd.f32 %v4573_v8, %v4572_v7 }
 0x267   : > { %v3091_v11 = vadd.f32 %v4571_v42, %v6020_v54 }
 0x268   : > { %v3094_v56 = vadd.f32 %v4574_v10, %v6022_v21 }
 0x269   : > { %v4687_v14 = vpop.f32.mrb[92].mxu1  ;;  %v3252_v59 = vadd.f32 %v4683_v38, %v3091_v11 }
 0x26a   : > { %v4688_v15 = vpop.f32.mrb[93].mxu1  ;;  %v3255_v58 = vadd.f32 %v4686_v9, %v3094_v56  ;;  %v4575_v13 = vpop.f32.mrb[92].mxu0 }
 0x26b   : > { %v4689_v49 = vadd.f32 %v4688_v15, %v4687_v14  ;;  %v4690_v40 = vpop.f32.mrb[94].mxu1  ;;  %v3501_v17 = vadd.f32 %v3500_v44, %v3252_v59  ;;  %v3539_v18 = vmul.f32 %v3252_v59, %v3252_v59  ;;  %v4576_v29 = vpop.f32.mrb[93].mxu0 }
 0x26c   : > { %v4691_v20 = vpop.f32.mrb[95].mxu1  ;;  %v4231_v63 = vpack.c.bf16 %v3255_v58, %v3252_v59  ;;  %v3540_v33 = vmul.f32 %v3255_v58, %v3255_v58  ;;  %v4577_v27 = vadd.f32 %v4576_v29, %v4575_v13  ;;  %v4578_v16 = vpop.f32.mrb[94].mxu0 }
 0x26d   : > { %v4692_v46 = vadd.f32 %v4691_v20, %v4690_v40  ;;  %v3570_v54 = vadd.f32 %v3569_v24, %v3539_v18  ;;  %v3502_v25 = vadd.f32 %v3501_v17, %v3255_v58  ;;  %v4579_v21 = vpop.f32.mrb[95].mxu0 }
 0x26e   : > { %4283 = vst [vmem:[%s6063_s25 + $0x30] sm:$0xff] %v4231_v63   ;;  %v3099_v4 = vadd.f32 %v4577_v27, %v6024_v39  ;;  %v4580_v22 = vadd.f32 %v4579_v21, %v4578_v16 }
 0x26f   : > { %v3571_v37 = vadd.f32 %v3570_v54, %v3540_v33 }
 0x270   : > { %v3260_v2 = vadd.f32 %v4689_v49, %v3099_v4  ;;  %v3102_v41 = vadd.f32 %v4580_v22, %v6026_v34 }
 0x271   : > { %v4693_v26 = vpop.f32.mrb[96].mxu1 }
 0x272   : > { %v4694_v43 = vpop.f32.mrb[97].mxu1  ;;  %v3503_v19 = vadd.f32 %v3502_v25, %v3260_v2  ;;  %v3541_v45 = vmul.f32 %v3260_v2, %v3260_v2  ;;  %v3263_v12 = vadd.f32 %v4692_v46, %v3102_v41  ;;  %v4581_v52 = vpop.f32.mrb[96].mxu0 }
 0x273   : > { %v4695_v38 = vadd.f32 %v4694_v43, %v4693_v26  ;;  %v4696_v30 = vpop.f32.mrb[98].mxu1  ;;  %v4582_v31 = vpop.f32.mrb[97].mxu0 }
 0x274   : > { %v4697_v23 = vpop.f32.mrb[99].mxu1  ;;  %v3572_v53 = vadd.f32 %v3571_v37, %v3541_v45  ;;  %v4236_v6 = vpack.c.bf16 %v3263_v12, %v3260_v2  ;;  %v3504_v44 = vadd.f32 %v3503_v19, %v3263_v12  ;;  %v3542_v39 = vmul.f32 %v3263_v12, %v3263_v12  ;;  %v4584_v5 = vpop.f32.mrb[98].mxu0 }
 0x275   : > { %v4583_v7 = vadd.f32 %v4582_v31, %v4581_v52  ;;  %v4585_v42 = vpop.f32.mrb[99].mxu0  ;;  %v4698_v8 = vadd.f32 %v4697_v23, %v4696_v30 }
 0x276   : > { %4284 = vst [vmem:[%s6063_s25 + $0x38] sm:$0xff] %v4236_v6   ;;  %v3573_v34 = vadd.f32 %v3572_v53, %v3542_v39  ;;  %v4586_v9 = vadd.f32 %v4585_v42, %v4584_v5 }
 0x277   : > { %v3107_v24 = vadd.f32 %v4583_v7, %v6028_v57 }
 0x278   : > { %v3110_v10 = vadd.f32 %v4586_v9, %v6030_v61 }
 0x279   : > { %v4699_v11 = vpop.f32.mrb[100].mxu1  ;;  %v3268_v56 = vadd.f32 %v4695_v38, %v3107_v24 }
 0x27a   : > { %v4700_v14 = vpop.f32.mrb[101].mxu1  ;;  %v3271_v59 = vadd.f32 %v4698_v8, %v3110_v10  ;;  %v4587_v15 = vpop.f32.mrb[100].mxu0 }
 0x27b   : > { %v4701_v58 = vadd.f32 %v4700_v14, %v4699_v11  ;;  %v4702_v13 = vpop.f32.mrb[102].mxu1  ;;  %v3505_v49 = vadd.f32 %v3504_v44, %v3268_v56  ;;  %v3543_v40 = vmul.f32 %v3268_v56, %v3268_v56  ;;  %v4588_v17 = vpop.f32.mrb[101].mxu0 }
 0x27c   : > { %v4703_v18 = vpop.f32.mrb[103].mxu1  ;;  %v4241_v29 = vpack.c.bf16 %v3271_v59, %v3268_v56  ;;  %v3544_v20 = vmul.f32 %v3271_v59, %v3271_v59  ;;  %v4589_v63 = vadd.f32 %v4588_v17, %v4587_v15  ;;  %v4590_v33 = vpop.f32.mrb[102].mxu0 }
 0x27d   : > { %v4704_v27 = vadd.f32 %v4703_v18, %v4702_v13  ;;  %v3574_v57 = vadd.f32 %v3573_v34, %v3543_v40  ;;  %v3506_v16 = vadd.f32 %v3505_v49, %v3271_v59  ;;  %v4591_v61 = vpop.f32.mrb[103].mxu0 }
 0x27e   : > { %4285 = vst [vmem:[%s6063_s25 + $0x40] sm:$0xff] %v4241_v29   ;;  %v3115_v46 = vadd.f32 %v4589_v63, %v6032_v55  ;;  %v4592_v54 = vadd.f32 %v4591_v61, %v4590_v33 }
 0x27f   : > { %v3575_v25 = vadd.f32 %v3574_v57, %v3544_v20 }
 0x280   : > { %v3276_v21 = vadd.f32 %v4701_v58, %v3115_v46  ;;  %v3118_v4 = vadd.f32 %v4592_v54, %v6034_v3 }
 0x281   : > { %v4705_v22 = vpop.f32.mrb[104].mxu1 }
 0x282   : > { %v4706_v37 = vpop.f32.mrb[105].mxu1  ;;  %v3507_v2 = vadd.f32 %v3506_v16, %v3276_v21  ;;  %v3545_v41 = vmul.f32 %v3276_v21, %v3276_v21  ;;  %v3279_v26 = vadd.f32 %v4704_v27, %v3118_v4  ;;  %v4593_v43 = vpop.f32.mrb[104].mxu0 }
 0x283   : > { %v4707_v19 = vadd.f32 %v4706_v37, %v4705_v22  ;;  %v4708_v45 = vpop.f32.mrb[106].mxu1  ;;  %v4594_v12 = vpop.f32.mrb[105].mxu0 }
 0x284   : > { %v4709_v52 = vpop.f32.mrb[107].mxu1  ;;  %v3576_v38 = vadd.f32 %v3575_v25, %v3545_v41  ;;  %v4246_v30 = vpack.c.bf16 %v3279_v26, %v3276_v21  ;;  %v3508_v31 = vadd.f32 %v3507_v2, %v3279_v26  ;;  %v3546_v55 = vmul.f32 %v3279_v26, %v3279_v26  ;;  %v4596_v23 = vpop.f32.mrb[106].mxu0 }
 0x285   : > { %v4595_v53 = vadd.f32 %v4594_v12, %v4593_v43  ;;  %v4597_v6 = vpop.f32.mrb[107].mxu0  ;;  %v4710_v44 = vadd.f32 %v4709_v52, %v4708_v45 }
 0x286   : > { %4286 = vst [vmem:[%s6063_s25 + $0x48] sm:$0xff] %v4246_v30   ;;  %v3577_v3 = vadd.f32 %v3576_v38, %v3546_v55  ;;  %v4598_v39 = vadd.f32 %v4597_v6, %v4596_v23 }
 0x287   : > { %v3123_v5 = vadd.f32 %v4595_v53, %v6036_v36 }
 0x288   : > { %v3126_v7 = vadd.f32 %v4598_v39, %v6038_v35 }
 0x289   : > { %v4711_v42 = vpop.f32.mrb[108].mxu1  ;;  %v3284_v8 = vadd.f32 %v4707_v19, %v3123_v5 }
 0x28a   : > { %v4712_v34 = vpop.f32.mrb[109].mxu1  ;;  %v3287_v9 = vadd.f32 %v4710_v44, %v3126_v7  ;;  %v4599_v24 = vpop.f32.mrb[108].mxu0 }
 0x28b   : > { %v4713_v10 = vadd.f32 %v4712_v34, %v4711_v42  ;;  %v4714_v11 = vpop.f32.mrb[110].mxu1  ;;  %v3509_v56 = vadd.f32 %v3508_v31, %v3284_v8  ;;  %v3547_v14 = vmul.f32 %v3284_v8, %v3284_v8  ;;  %v4600_v59 = vpop.f32.mrb[109].mxu0 }
 0x28c   : > { %v4715_v15 = vpop.f32.mrb[111].mxu1  ;;  %v4251_v58 = vpack.c.bf16 %v3287_v9, %v3284_v8  ;;  %v3548_v13 = vmul.f32 %v3287_v9, %v3287_v9  ;;  %v4601_v49 = vadd.f32 %v4600_v59, %v4599_v24  ;;  %v4602_v40 = vpop.f32.mrb[110].mxu0 }
 0x28d   : > { %v4716_v17 = vadd.f32 %v4715_v15, %v4714_v11  ;;  %v3578_v36 = vadd.f32 %v3577_v3, %v3547_v14  ;;  %v3510_v18 = vadd.f32 %v3509_v56, %v3287_v9  ;;  %v4603_v35 = vpop.f32.mrb[111].mxu0 }
 0x28e   : > { %4287 = vst [vmem:[%s6063_s25 + $0x50] sm:$0xff] %v4251_v58   ;;  %v3131_v29 = vadd.f32 %v4601_v49, %v6040_v32  ;;  %v4604_v20 = vadd.f32 %v4603_v35, %v4602_v40 }
 0x28f   : > { %v3579_v63 = vadd.f32 %v3578_v36, %v3548_v13 }
 0x290   : > { %v3292_v33 = vadd.f32 %v4713_v10, %v3131_v29  ;;  %v3134_v27 = vadd.f32 %v4604_v20, %v6042_v60 }
 0x291   : > { %v4717_v57 = vpop.f32.mrb[112].mxu1 }
 0x292   : > { %v4718_v16 = vpop.f32.mrb[113].mxu1  ;;  %v3511_v61 = vadd.f32 %v3510_v18, %v3292_v33  ;;  %v3549_v46 = vmul.f32 %v3292_v33, %v3292_v33  ;;  %v3295_v54 = vadd.f32 %v4716_v17, %v3134_v27  ;;  %v4605_v25 = vpop.f32.mrb[112].mxu0 }
 0x293   : > { %v4719_v21 = vadd.f32 %v4718_v16, %v4717_v57  ;;  %v4720_v4 = vpop.f32.mrb[114].mxu1  ;;  %v4606_v22 = vpop.f32.mrb[113].mxu0 }
 0x294   : > { %v4721_v37 = vpop.f32.mrb[115].mxu1  ;;  %v3580_v2 = vadd.f32 %v3579_v63, %v3549_v46  ;;  %v4256_v41 = vpack.c.bf16 %v3295_v54, %v3292_v33  ;;  %v3512_v26 = vadd.f32 %v3511_v61, %v3295_v54  ;;  %v3550_v32 = vmul.f32 %v3295_v54, %v3295_v54  ;;  %v4608_v43 = vpop.f32.mrb[114].mxu0 }
 0x295   : > { %v4607_v19 = vadd.f32 %v4606_v22, %v4605_v25  ;;  %v4609_v45 = vpop.f32.mrb[115].mxu0  ;;  %v4722_v12 = vadd.f32 %v4721_v37, %v4720_v4 }
 0x296   : > { %4288 = vst [vmem:[%s6063_s25 + $0x58] sm:$0xff] %v4256_v41   ;;  %v3581_v60 = vadd.f32 %v3580_v2, %v3550_v32  ;;  %v4610_v52 = vadd.f32 %v4609_v45, %v4608_v43 }
 0x297   : > { %v3139_v38 = vadd.f32 %v4607_v19, %v6044_v48 }
 0x298   : > { %v3142_v30 = vadd.f32 %v4610_v52, %v6046_v51 }
 0x299   : > { %v4723_v31 = vpop.f32.mrb[116].mxu1  ;;  %v3300_v55 = vadd.f32 %v4719_v21, %v3139_v38 }
 0x29a   : > { %v4724_v23 = vpop.f32.mrb[117].mxu1  ;;  %v3303_v53 = vadd.f32 %v4722_v12, %v3142_v30  ;;  %v4611_v6 = vpop.f32.mrb[116].mxu0 }
 0x29b   : > { %v4725_v44 = vadd.f32 %v4724_v23, %v4723_v31  ;;  %v4726_v3 = vpop.f32.mrb[118].mxu1  ;;  %v3513_v39 = vadd.f32 %v3512_v26, %v3300_v55  ;;  %v3551_v5 = vmul.f32 %v3300_v55, %v3300_v55  ;;  %v4612_v7 = vpop.f32.mrb[117].mxu0 }
 0x29c   : > { %v4727_v42 = vpop.f32.mrb[119].mxu1  ;;  %v4261_v8 = vpack.c.bf16 %v3303_v53, %v3300_v55  ;;  %v3552_v34 = vmul.f32 %v3303_v53, %v3303_v53  ;;  %v4613_v9 = vadd.f32 %v4612_v7, %v4611_v6  ;;  %v4614_v24 = vpop.f32.mrb[118].mxu0 }
 0x29d   : > { %v4728_v10 = vadd.f32 %v4727_v42, %v4726_v3  ;;  %v3582_v48 = vadd.f32 %v3581_v60, %v3551_v5  ;;  %v3514_v11 = vadd.f32 %v3513_v39, %v3303_v53  ;;  %v4615_v51 = vpop.f32.mrb[119].mxu0 }
 0x29e   : > { %4289 = vst [vmem:[%s6063_s25 + $0x60] sm:$0xff] %v4261_v8   ;;  %v3147_v56 = vadd.f32 %v4613_v9, %v6048_v47  ;;  %v4616_v14 = vadd.f32 %v4615_v51, %v4614_v24 }
 0x29f   : > { %v3583_v59 = vadd.f32 %v3582_v48, %v3552_v34 }
 0x2a0   : > { %v3308_v15 = vadd.f32 %v4725_v44, %v3147_v56  ;;  %v3150_v58 = vadd.f32 %v4616_v14, %v6050_v0 }
 0x2a1   : > { %v4729_v13 = vpop.f32.mrb[120].mxu1 }
 0x2a2   : > { %v4730_v49 = vpop.f32.mrb[121].mxu1  ;;  %v3515_v40 = vadd.f32 %v3514_v11, %v3308_v15  ;;  %v3553_v17 = vmul.f32 %v3308_v15, %v3308_v15  ;;  %v3311_v36 = vadd.f32 %v4728_v10, %v3150_v58  ;;  %v4617_v18 = vpop.f32.mrb[120].mxu0 }
 0x2a3   : > { %v4731_v35 = vadd.f32 %v4730_v49, %v4729_v13  ;;  %v4732_v29 = vpop.f32.mrb[122].mxu1  ;;  %v4618_v20 = vpop.f32.mrb[121].mxu0 }
 0x2a4   : > { %v4733_v63 = vpop.f32.mrb[123].mxu1  ;;  %v3584_v33 = vadd.f32 %v3583_v59, %v3553_v17  ;;  %v4266_v27 = vpack.c.bf16 %v3311_v36, %v3308_v15  ;;  %v3516_v57 = vadd.f32 %v3515_v40, %v3311_v36  ;;  %v3554_v47 = vmul.f32 %v3311_v36, %v3311_v36  ;;  %v4620_v16 = vpop.f32.mrb[122].mxu0 }
 0x2a5   : > { %v4619_v61 = vadd.f32 %v4618_v20, %v4617_v18  ;;  %v4621_v46 = vpop.f32.mrb[123].mxu0  ;;  %v4734_v54 = vadd.f32 %v4733_v63, %v4732_v29 }
 0x2a6   : > { %4290 = vst [vmem:[%s6063_s25 + $0x68] sm:$0xff] %v4266_v27   ;;  %v3585_v0 = vadd.f32 %v3584_v33, %v3554_v47  ;;  %v4622_v25 = vadd.f32 %v4621_v46, %v4620_v16 }
 0x2a7   : > { %v3155_v21 = vadd.f32 %v4619_v61, %v6052_v1 }
 0x2a8   : > { %v3158_v4 = vadd.f32 %v4622_v25, %v6054_v62 }
 0x2a9   : > { %v4735_v22 = vpop.f32.mrb[124].mxu1  ;;  %v3316_v37 = vadd.f32 %v4731_v35, %v3155_v21 }
 0x2aa   : > { %v4736_v2 = vpop.f32.mrb[125].mxu1  ;;  %v3319_v41 = vadd.f32 %v4734_v54, %v3158_v4  ;;  %v4623_v26 = vpop.f32.mrb[124].mxu0 }
 0x2ab   : > { %v4737_v32 = vadd.f32 %v4736_v2, %v4735_v22  ;;  %v4738_v43 = vpop.f32.mrb[126].mxu1  ;;  %v3517_v19 = vadd.f32 %v3516_v57, %v3316_v37  ;;  %v3555_v45 = vmul.f32 %v3316_v37, %v3316_v37  ;;  %v4624_v12 = vpop.f32.mrb[125].mxu0 }
 0x2ac   : > { %v4739_v60 = vpop.f32.mrb[127].mxu1  ;;  %v4271_v52 = vpack.c.bf16 %v3319_v41, %v3316_v37  ;;  %v3556_v38 = vmul.f32 %v3319_v41, %v3319_v41  ;;  %v4625_v30 = vadd.f32 %v4624_v12, %v4623_v26  ;;  %v4626_v1 = vpop.f32.mrb[126].mxu0 }
 0x2ad   : > { %v4740_v31 = vadd.f32 %v4739_v60, %v4738_v43  ;;  %v3586_v62 = vadd.f32 %v3585_v0, %v3555_v45  ;;  %v3518_v55 = vadd.f32 %v3517_v19, %v3319_v41  ;;  %v4627_v23 = vpop.f32.mrb[127].mxu0 }
 0x2ae   : > { %4291 = vst [vmem:[%s6063_s25 + $0x70] sm:$0xff] %v4271_v52   ;;  %v3163_v53 = vadd.f32 %v4625_v30, %v6056_v50  ;;  %v4628_v6 = vadd.f32 %v4627_v23, %v4626_v1 }
 0x2af   : > { %v3587_v44 = vadd.f32 %v3586_v62, %v3556_v38 }
 0x2b0   : > { %v3324_v3 = vadd.f32 %v4737_v32, %v3163_v53  ;;  %v3166_v39 = vadd.f32 %v4628_v6, %v6058_v28 }
 0x2b2   : > { %v3519_v5 = vadd.f32 %v3518_v55, %v3324_v3  ;;  %v3557_v7 = vmul.f32 %v3324_v3, %v3324_v3  ;;  %v3327_v42 = vadd.f32 %v4740_v31, %v3166_v39 }
 0x2b4   : > { %v3588_v8 = vadd.f32 %v3587_v44, %v3557_v7  ;;  %v4276_v50 = vpack.c.bf16 %v3327_v42, %v3324_v3  ;;  %v3520_v34 = vadd.f32 %v3519_v5, %v3327_v42  ;;  %v3558_v9 = vmul.f32 %v3327_v42, %v3327_v42 }
 0x2b6   : > { %4292 = vst [vmem:[%s6063_s25 + $0x78] sm:$0xff] %v4276_v50   ;;  %v3521_v28 = vrot.slane %v3520_v34, 4  ;;  %v3589_v24 = vadd.f32 %v3588_v8, %v3558_v9 }
 0x2b7   : > { %5121 = shalt.err (!%p5118_p13)
}
 0x2b8   : > { %s5122_s10 = scalar_lea.hbm %s6115_s24, 2048  ;;  %s5126_s30 = scalar_lea.hbm %s6202_s2, 4096 }
 0x2b9   : > { %p5123_p1 = scmp.ne.s32.totalorder %s6115_s24, %s5122_s10  ;;  %p5127_p8 = scmp.lt.u32.totalorder %s6115_s24, %s6202_s2 }
 0x2ba   : > { %p5128_p9 = scmp.lt.u32.totalorder %s5126_s30, %s5122_s10  ;;  %p5130_p2 = scmp.lt.u32.totalorder %s5122_s10, %s6115_s24 }
 0x2bb   : > { %p5124_p4 = pnand %p5123_p1, %p6223_p0 }
 0x2bc   : > { %p5129_p11 = por %p5128_p9, %p5127_p8 }
 0x2bd   : > { %p5125_p5 = pneg %p5124_p4 }
 0x2be   : > { %p5131_p6 = por %p5130_p2, %p5129_p11 }
 0x2c0   : > { %p5132_p7 = pnand %p5131_p6, %p5125_p5 }
 0x2c2   : > { %5135 = shalt.err (!%p5132_p7)
}
 0x2c3   : > { %s5239_s29 = smov 4   ;;  %v3522_v10 = vadd.f32 %v3521_v28, %v3520_v34  ;;  %v3590_v48 = vrot.slane %v3589_v24, 4  ;;  %s3772_s18 = sshll.u32 %s5386_s11, 1  ;;  %vm3596_vm2 = vcmask 1040384  }
 0x2c4   : > { %4757 = dma.vmem_to_hbm [thread:$0]  (%p6223_p0), %s6117_s7, 2048, %s6115_s24, %s3600_s6, %s5237_s22, %s5237_s22, %s5239_s29  }
 0x2c5   : > { %v3523_v11 = vrot.slane %v3522_v10, 2  ;;  %v3591_v51 = vadd.f32 %v3590_v48, %v3589_v24  ;;  %s4162_s19 = sshll.u32 %s5218_s15, 5  ;;  %s262_s9 = scalar_lea.vmem [#allocation8], %s3772_s18 }
 0x2c6   : > { %s3636_s8 = sshll.u32 %s262_s9, 4  ;;  %s6151_s7 = scalar_lea.hbm %s6203_s3, %s4162_s19  ;;  %s6153_s8 = int_to_ptr.vmem [resolvable:$true] %s3636_s8 }
 0x2c7   : > { %v3524_v56 = vadd.f32 %v3523_v11, %v3522_v10  ;;  %v3592_v14 = vrot.slane %v3591_v51, 2  ;;  %s3605_s24 = scalar_lea.sflag [#allocation9], %s5386_s11  ;;  %s5136_s6 = scalar_lea.vmem %s6153_s8, 32 }
 0x2c8   : > { %p5137_p10 = scmp.ne.s32.totalorder %s6153_s8, %s5136_s6  ;;  %s5240_s15 = smov [#allocation8]  }
 0x2c9   : > { %v3525_v59 = vrot.slane %v3524_v56, 1  ;;  %v3593_v15 = vadd.f32 %v3592_v14, %v3591_v51  ;;  %s5140_s5 = sshll.u32 %s5240_s15, 4  ;;  %s5141_s5 = int_to_ptr.vmem [resolvable:$false] %s5140_s5 }
 0x2ca   : > { %p5138_p12 = pnand %p5137_p10, %p6223_p0  ;;  %s5142_s10 = scalar_lea.vmem %s5141_s5, 64 }
 0x2cb   : > { %v3594_v58 = vrot.slane %v3593_v15, 1  ;;  %v3526_v13 = vadd.f32 %v3525_v59, %v3524_v56  ;;  %p5143_p1 = scmp.lt.s32.totalorder %s6153_s8, %s5141_s5  ;;  %p5144_p4 = scmp.lt.s32.totalorder %s5142_s10, %s5136_s6 }
 0x2cc   : > { %p5139_p13 = pneg %p5138_p12 }
 0x2cd   : > { %v3595_v49 = vadd.f32 %v3594_v58, %v3593_v15  ;;  %p5145_p5 = por %p5144_p4, %p5143_p1 }
 0x2cf   : > { %v3597_v40 = vsel %vm3596_vm2, %v3526_v13, %v3595_v49  ;;  %p5146_p8 = pnand %p5145_p5, %p5139_p13 }
 0x2d0   : > { %3598 = vst [vmem:[%s262_s9] sm:$0x3] %v3597_v40 }
 0x2d1   : > { %5149 = shalt.err (!%p5146_p8)
}
 0x2d2   : > { %s5150_s11 = scalar_lea.hbm %s6151_s7, 32  ;;  %s5154_s30 = scalar_lea.hbm %s6203_s3, 64 }
 0x2d3   : > { %p5151_p9 = scmp.ne.s32.totalorder %s6151_s7, %s5150_s11  ;;  %p5155_p6 = scmp.lt.u32.totalorder %s6151_s7, %s6203_s3 }
 0x2d4   : > { %p5156_p7 = scmp.lt.u32.totalorder %s5154_s30, %s5150_s11  ;;  %p5158_p12 = scmp.lt.u32.totalorder %s5150_s11, %s6151_s7 }
 0x2d5   : > { %p5152_p11 = pnand %p5151_p9, %p6223_p0 }
 0x2d6   : > { %p5157_p10 = por %p5156_p7, %p5155_p6 }
 0x2d7   : > { %p5153_p2 = pneg %p5152_p11 }
 0x2d8   : > { %p5159_p13 = por %p5158_p12, %p5157_p10 }
 0x2da   : > { %p5160_p1 = pnand %p5159_p13, %p5153_p2 }
 0x2dc   : > { %5163 = shalt.err (!%p5160_p1)
}
 0x2dd   : > { %4758 = dma.vmem_to_hbm [thread:$0]  (%p6223_p0), %s6153_s8, 32, %s6151_s7, %s3605_s24  }
 0x2de PF: > { %s3648_s29 = sand.u32 1, %s5206_s12   ;;  %p6224_p4 = scmp.ne.s32.totalorder %s6215_s28, 0 }
 0x2df   : > { %s3649_s18 = scalar_lea.sflag [#allocation4], %s3648_s29 }
 0x2e0   : > { %p4766_p5 = pnand %p3765_p3, %p6224_p4 }
 0x2e2   : > { %5197 = dma.done.wait (!%p4766_p5), %s3649_s18, 2048  }
 0x2e3   : > { %5199 = vsyncadd (!%p4766_p5), %s3649_s18, 4294965248  ;;  %s3658_s19 = scalar_lea.sflag [#allocation9], %s3648_s29 }
 0x2e4   : > { %5201 = dma.done.wait (!%p4766_p5), %s3658_s19, 32  }
 0x2e5   : > { %5203 = vsyncadd (!%p4766_p5), %s3658_s19, 4294967264  ;;  %s24_s17 = sadd.s32 1, %s5226_s17   ;;  %s6225_s12 = smov %s5210_s13 }
 0x2e6   : > { %p21_p8 = scmp.ge.s32.totalorder %s24_s17, 4   ;;  %s6226_s13 = smov %s5214_s14 }
 0x2e7   : > { %s6227_s14 = smov %s5323_s27  ;;  %s6228_s15 = smov %s5222_s16 }
 0x2e8   : > { %s6229_s16 = smov %s6231_s20  ;;  %23 = sbr.rel (!%p21_p8) target bundleno = 11 (0xb), region = 103 }
 0x2ef   :  { %3663 = vsyncpa [#allocation3], 1 }
 0x2f0   :  { %3665 = vsyncpa [#allocation3 + $0x1], 1 }
 0x2f1   :  { %3666 = vsyncpa [#allocation6], 1 }
 0x2f2   :  { %3667 = vsyncpa [#allocation4], 1 }
 0x2f3   :  { %3669 = vsyncpa [#allocation4 + $0x1], 1 }
 0x2f4   :  { %3670 = vsyncpa [#allocation9], 1 }
 0x2f5   :  { %3672 = vsyncpa [#allocation9 + $0x1], 1 }

// kernel: discriminator_forward.14
= control target key start
LH: loop header
LB: loop body
LE: loop exit
PB: predicated region body
PF: predicated region fallthrough
CT: control target
= control target key end

     0   :  { %s1206_s0 = inlined_call_operand.hbm [shape: bf16[32,512], index: 0, kind: input, shape index: {}]   ;;  %s1207_s1 = inlined_call_operand.hbm [shape: f32[1,512], index: 1, kind: input, shape index: {}]   ;;  %s1208_s2 = inlined_call_operand.hbm [shape: f32[1,512], index: 2, kind: input, shape index: {}]   ;;  %s1209_s3 = inlined_call_operand.hbm [shape: bf16[32,512], index: 3, kind: output, shape index: {}]  }
   0x1   :  { %1224 = sst [smem:[#allocation20_spill]] %s1206_s0 }
   0x2   :  { %1225 = sst [smem:[#allocation21_spill]] %s1207_s1 }
   0x3   :  { %1226 = sst [smem:[#allocation22_spill]] %s1209_s3 }
   0x4   :  { %8 = vsyncpa [#allocation3], 0 }
   0x5   :  { %10 = vsyncpa [#allocation3 + $0x1], 0 }
   0x6   :  { %11 = vsyncpa [#allocation6], 0 }
   0x7   :  { %13 = vsyncpa [#allocation6 + $0x1], 0 }
   0x8   :  { %14 = vsyncpa [#allocation4], 0 }
   0x9   :  { %16 = vsyncpa [#allocation4 + $0x1], 0  ;;  %s855_s12 = smov 0   ;;  %s857_s13 = smov 0  }
   0xa   :  { %s859_s14 = smov 0   ;;  %s861_s15 = smov 0  }
   0xb   :  { %s863_s16 = smov 0   ;;  %s865_s17 = smov 0  }
   0xc   :  { %s867_s18 = smov 0   ;;  %s869_s19 = smov 0  }
   0xd   :  { %s871_s20 = smov 0   ;;  %s873_s21 = smov 0  }
   0xe   :  { %s875_s22 = smov 0  }
   0xf LB: > { %1227 = sst [smem:[#allocation12_spill]] %s795_s15  ;;  %s911_s23 = sadd.s32 4294967295, %s823_s22   ;;  %s823_s22 = sphi %s875_s22, %s22_s22   ;;  %s819_s21 = sphi %s873_s21, %s1264_s21   ;;  %s815_s20 = sphi %s871_s20, %s1273_s20   ;;  %s811_s19 = sphi %s869_s19, %s1272_s19   ;;  %s807_s18 = sphi %s867_s18, %s1271_s18   ;;  %s803_s17 = sphi %s865_s17, %s1270_s17   ;;  %s799_s16 = sphi %s863_s16, %s1269_s16   ;;  %s795_s15 = sphi %s861_s15, %s1268_s15   ;;  %s791_s14 = sphi %s859_s14, %s1267_s14   ;;  %s787_s13 = sphi %s857_s13, %s1266_s13   ;;  %s783_s12 = sphi %s855_s12, %s1265_s12  }
  0x10   : > { %1228 = sst [smem:[#allocation13_spill]] %s819_s21  ;;  %s454_s24 = sadd.s32 4294967294, %s823_s22  }
  0x11   : > { %s31_s25 = sadd.s32 1, %s815_s20  ;;  %s34_s26 = sadd.s32 1, %s819_s21 }
  0x12   : > { %p32_p0 = scmp.ge.s32.totalorder %s31_s25, 4  ;;  %s43_s27 = sadd.s32 1, %s803_s17 }
  0x13   : > { %p50_p1 = scmp.ne.s32.totalorder %s803_s17, %s799_s16  ;;  %p51_p2 = scmp.eq.s32.totalorder %s823_s22, 0 }
  0x14   : > { %s1275_s25 = smov (%p32_p0, %s31_s25), 0  ;;  %s1277_s26 = smov (!%p32_p0, %s34_s26), %s819_s21 }
  0x15   : > { %1229 = sst [smem:[#allocation14_spill]] %s1275_s25  ;;  %s39_s28 = ssub.s32 %s815_s20, %s1275_s25 }
  0x16   : > { %p930_p3 = por %p51_p2, %p50_p1  ;;  %p36_p4 = scmp.ge.s32.totalorder %s1277_s26, 2 }
  0x17   : > { %p1210_p5 = scmp.ne.s32.totalorder %s799_s16, %s795_s15  ;;  %p57_p6 = scmp.eq.s32.totalorder %s911_s23, 0 }
  0x18   : > { %p67_p7 = scmp.eq.s32.totalorder %s39_s28, 0  ;;  %s1279_s26 = smov (%p36_p4, %s1277_s26), 0 }
  0x19   : > { %1231 = sst [smem:[#allocation15_spill]] %s1279_s26  ;;  %p944_p8 = por %p57_p6, %p1210_p5 }
  0x1a   : > { %s69_s4 = sadd.s32 1, %s791_s14  ;;  %s38_s5 = ssub.s32 %s819_s21, %s1279_s26 }
  0x1b   : > { %s1232_s30 = scalar_select %p944_p8, 1, 0 }
  0x1c   : > { %p76_p9 = scmp.ne.s32.totalorder %s791_s14, %s787_s13  ;;  %s40_s6 = sor.u32 %s39_s28, %s38_s5 }
  0x1d   : > { %p82_p10 = scmp.ne.s32.totalorder %s787_s13, %s783_s12  ;;  %p41_p11 = scmp.eq.s32.totalorder %s40_s6, 0 }
  0x1e   : > { %p957_p12 = por %p76_p9, %p51_p2  ;;  %p134_p0 = scmp.eq.s32.totalorder %s911_s23, 7 }
  0x1f   : > { %s962_s8 = scalar_select %p67_p7, %s791_s14, %s69_s4  }
  0x20   : > { %s965_s9 = scalar_select %p41_p11, %s803_s17, %s43_s27  }
  0x21   : > { %1234 = sst [smem:[#allocation16_spill]] %s962_s8  ;;  %p969_p13 = por %p82_p10, %p57_p6 }
  0x22   : > { %1235 = sst [smem:[#allocation17_spill]] %s965_s9  ;;  %p140_p4 = scmp.eq.s32.totalorder %s454_s24, 7 }
  0x23   : > { %s1236_s10 = scalar_select %p969_p13, 1, 0 }
  0x24   : > { %p977_p5 = por %p134_p0, %p50_p1  ;;  %p511_p2 = scmp.lt.s32.totalorder %s823_s22, 8 }
  0x25   : > { %p1239_p9 = scmp.ne.s32.totalorder %s799_s16, %s795_s15  ;;  %s183_s27 = sand.u32 1, %s823_s22  }
  0x26   : > { %s1237_s11 = scalar_select %p977_p5, 1, 0 }
  0x27   : > { %p985_p7 = por %p140_p4, %p1239_p9  ;;  %p992_p6 = pnand %p511_p2, %p930_p3 }
  0x28   : > { %1238 = sst [smem:[#allocation18_spill]] %s1237_s11  ;;  %s1214_s4 = sand.u32 1, %s791_s14  }
  0x29   : > { %s1240_s12 = scalar_select %p985_p7, 1, 0 }
  0x2a   : > { %s461_s5 = sshll.u32 %s815_s20, 4  ;;  %s1243_s1 = sld [smem:[#allocation21_spill]] }
  0x2b   : > { %1241 = sst [smem:[#allocation19_spill]] %s1240_s12  ;;  %s186_s25 = scalar_lea.vmem [#allocation5], %s1214_s4 }
  0x2c   : > { %s193_s9 = sshll.u32 %s186_s25, 4  ;;  %p1009_p1 = pnand %p511_p2, %p957_p12  ;;  %s1005_s9 = int_to_ptr.vmem [resolvable:$true] %s193_s9 }
  0x2d   : > { %s1016_s24 = scalar_lea.hbm %s1208_s2, %s461_s5  ;;  %s1019_s6 = scalar_lea.sflag [#allocation6], %s183_s27 }
  0x2e   : > { %p1223_p11 = pneg %p1009_p1 }
  0x30   : > { %s1001_s26 = scalar_lea.hbm %s1243_s1, %s461_s5  ;;  %s612_s15 = scalar_lea.hbm %s1243_s1, 64 }
  0x31   : > { %s607_s4 = scalar_lea.hbm %s1001_s26, 16  ;;  %p613_p4 = scmp.lt.u32.totalorder %s1001_s26, %s1243_s1 }
  0x32   : > { %p608_p10 = scmp.ne.s32.totalorder %s1001_s26, %s607_s4  ;;  %p614_p2 = scmp.lt.u32.totalorder %s612_s15, %s607_s4 }
  0x33   : > { %p616_p3 = scmp.lt.u32.totalorder %s607_s4, %s1001_s26 }
  0x34   : > { %p610_p12 = pnand %p1223_p11, %p608_p10  ;;  %p615_p9 = por %p614_p2, %p613_p4 }
  0x36   : > { %p611_p0 = pneg %p610_p12  ;;  %p617_p7 = por %p616_p3, %p615_p9 }
  0x38   : > { %p618_p5 = pnand %p617_p7, %p611_p0 }
  0x3a   : > { %621 = shalt.err (!%p618_p5)
}
  0x3b   : > { %s622_s27 = scalar_lea.vmem %s1005_s9, 16  ;;  %s825_s5 = smov [#allocation5]  }
  0x3c   : > { %p623_p10 = scmp.ne.s32.totalorder %s1005_s9, %s622_s27  ;;  %s627_s25 = sshll.u32 %s825_s5, 4  ;;  %s628_s25 = int_to_ptr.vmem [resolvable:$false] %s627_s25 }
  0x3d   : > { %s629_s7 = scalar_lea.vmem %s628_s25, 32  ;;  %p630_p8 = scmp.lt.s32.totalorder %s1005_s9, %s628_s25 }
  0x3e   : > { %p625_p12 = pnand %p623_p10, %p1223_p11  ;;  %p631_p4 = scmp.lt.s32.totalorder %s629_s7, %s622_s27 }
  0x40   : > { %p626_p13 = pneg %p625_p12  ;;  %p632_p2 = por %p631_p4, %p630_p8 }
  0x42   : > { %p633_p3 = pnand %p632_p2, %p626_p13 }
  0x44   : > { %636 = shalt.err (!%p633_p3)
}
  0x45   : > { %503 = dma.hbm_to_vmem [thread:$0]  (!%p1009_p1), %s1001_s26, 16, %s1005_s9, %s1019_s6  }
  0x46   : > { %p215_p5 = scmp.lt.s32.totalorder %s823_s22, 9  ;;  %p1245_p7 = scmp.ge.s32.totalorder %s823_s22, 1 }
  0x47   : > { %s160_s4 = sand.u32 1, %s803_s17   ;;  %s476_s8 = sshll.u32 %s819_s21, 3 }
  0x48   : > { %p1050_p0 = pnand %p1245_p7, %p215_p5  ;;  %s457_s12 = sshll.u32 %s160_s4, 3 }
  0x49   : > { %s170_s27 = sadd.s32 %s815_s20, %s476_s8  ;;  %s164_s25 = scalar_lea.vmem [#allocation2], %s457_s12 }
  0x4a   : > { %s1246_s15 = scalar_select %p1050_p0, 1, 0 }
  0x4b   : > { %s460_s5 = sshll.u32 %s170_s27, 6  ;;  %s173_s7 = sshll.u32 %s164_s25, 4  ;;  %s1062_s7 = int_to_ptr.vmem [resolvable:$true] %s173_s7 }
  0x4c   : > { %s1247_s0 = sld [smem:[#allocation20_spill]]  ;;  %s1248_s26 = sand.u32 1, %s791_s14  }
  0x4d   : > { %s1066_s9 = scalar_lea.vmem [#allocation7], %s1248_s26  ;;  %s1069_s8 = scalar_lea.sflag [#allocation3], %s160_s4 }
  0x4e   : > { %s210_s21 = sshll.u32 %s1066_s9, 4  ;;  %p639_p13 = pneg %p992_p6  ;;  %s211_s21 = int_to_ptr.vmem [resolvable:$true] %s210_s21 }
  0x52   : > { %s1060_s11 = scalar_lea.hbm %s1247_s0, %s460_s5  ;;  %s642_s27 = scalar_lea.hbm %s1247_s0, 1024 }
  0x53   : > { %s637_s12 = scalar_lea.hbm %s1060_s11, 128  ;;  %p643_p12 = scmp.lt.u32.totalorder %s1060_s11, %s1247_s0 }
  0x54   : > { %p638_p8 = scmp.ne.s32.totalorder %s1060_s11, %s637_s12  ;;  %p644_p4 = scmp.lt.u32.totalorder %s642_s27, %s637_s12 }
  0x55   : > { %p646_p3 = scmp.lt.u32.totalorder %s637_s12, %s1060_s11 }
  0x56   : > { %p640_p9 = pnand %p639_p13, %p638_p8  ;;  %p645_p2 = por %p644_p4, %p643_p12 }
  0x58   : > { %p641_p10 = pneg %p640_p9  ;;  %p647_p5 = por %p646_p3, %p645_p2 }
  0x5a   : > { %p648_p7 = pnand %p647_p5, %p641_p10 }
  0x5c   : > { %651 = shalt.err (!%p648_p7)
}
  0x5d   : > { %s652_s4 = scalar_lea.vmem %s1062_s7, 128  ;;  %s826_s26 = smov [#allocation2]  }
  0x5e   : > { %p653_p8 = scmp.ne.s32.totalorder %s1062_s7, %s652_s4  ;;  %s657_s1 = sshll.u32 %s826_s26, 4  ;;  %s658_s1 = int_to_ptr.vmem [resolvable:$false] %s657_s1 }
  0x5f   : > { %s659_s3 = scalar_lea.vmem %s658_s1, 256  ;;  %p660_p0 = scmp.lt.s32.totalorder %s1062_s7, %s658_s1 }
  0x60   : > { %p655_p9 = pnand %p653_p8, %p639_p13  ;;  %p661_p12 = scmp.lt.s32.totalorder %s659_s3, %s652_s4 }
  0x62   : > { %p656_p11 = pneg %p655_p9  ;;  %p662_p4 = por %p661_p12, %p660_p0 }
  0x64   : > { %p663_p2 = pnand %p662_p4, %p656_p11 }
  0x66   : > { %666 = shalt.err (!%p663_p2)
}
  0x67   : > { %s827_s12 = smov 256   ;;  %s828_s27 = smov 64  }
  0x68   : > { %s829_s5 = smov 4   ;;  %s667_s25 = scalar_lea.hbm %s1016_s24, 16 }
  0x69   : > { %500 = dma.hbm_to_vmem [thread:$0]  (!%p992_p6), %s1060_s11, 128, %s1062_s7, %s1069_s8, %s827_s12, %s828_s27, %s829_s5  }
  0x6a   : > { %p668_p11 = scmp.ne.s32.totalorder %s1016_s24, %s667_s25  ;;  %p1249_p0 = pneg %p1009_p1 }
  0x6b   : > { %s672_s1 = scalar_lea.hbm %s1208_s2, 64  ;;  %p673_p3 = scmp.lt.u32.totalorder %s1016_s24, %s1208_s2 }
  0x6c   : > { %p670_p13 = pnand %p668_p11, %p1249_p0  ;;  %p674_p5 = scmp.lt.u32.totalorder %s672_s1, %s667_s25 }
  0x6d   : > { %p676_p8 = scmp.lt.u32.totalorder %s667_s25, %s1016_s24 }
  0x6e   : > { %p671_p10 = pneg %p670_p13  ;;  %p675_p7 = por %p674_p5, %p673_p3 }
  0x70   : > { %p677_p6 = por %p676_p8, %p675_p7 }
  0x72   : > { %p678_p9 = pnand %p677_p6, %p671_p10 }
  0x74   : > { %681 = shalt.err (!%p678_p9)
}
  0x75   : > { %s682_s11 = scalar_lea.vmem %s211_s21, 16  ;;  %p1250_p4 = pmov %p1249_p0 }
  0x76   : > { %p683_p12 = scmp.ne.s32.totalorder %s211_s21, %s682_s11  ;;  %s830_s28 = smov [#allocation7]  }
  0x77   : > { %s687_s7 = sshll.u32 %s830_s28, 4  ;;  %s688_s7 = int_to_ptr.vmem [resolvable:$false] %s687_s7 }
  0x78   : > { %p685_p2 = pnand %p683_p12, %p1250_p4  ;;  %s689_s9 = scalar_lea.vmem %s688_s7, 32 }
  0x79   : > { %p690_p0 = scmp.lt.s32.totalorder %s211_s21, %s688_s7  ;;  %p691_p13 = scmp.lt.s32.totalorder %s689_s9, %s682_s11 }
  0x7a   : > { %p686_p11 = pneg %p685_p2 }
  0x7b   : > { %p692_p3 = por %p691_p13, %p690_p0 }
  0x7d   : > { %p693_p5 = pnand %p692_p3, %p686_p11 }
  0x7f   : > { %696 = shalt.err (!%p693_p5)
}
  0x80   : > { %506 = dma.hbm_to_vmem [thread:$0]  (!%p1009_p1), %s1016_s24, 16, %s211_s21, %s1019_s6  }
  0x81   : > { %p1251_p10 = scmp.ne.s32.totalorder %s1246_s15, 0 }
  0x82   : > { %s1122_s0 = sand.u32 (!%p1251_p10), 1, %s799_s16   ;;  %p1252_p7 = scmp.ne.s32.totalorder (!%p1251_p10), %s1232_s30, 0 }
  0x83   : > { %219 = sbr.rel (%p1251_p10) target bundleno = 175 (0xaf), region = 32  ;;  %s464_s8 = sshll.u32 (!%p1251_p10), %s1122_s0, 3 }
  0x84   : > { %s222_s12 = scalar_lea.sflag (!%p1251_p10), [#allocation3], %s1122_s0  ;;  %s225_s27 = scalar_lea.vmem (!%p1251_p10), [#allocation2], %s464_s8 }
  0x8a   : > { %770 = dma.done.wait (%p1252_p7), %s222_s12, 128  }
  0x8b   : > { %772 = vsyncadd (%p1252_p7), %s222_s12, 4294967168  ;;  %s230_s21 = sand.u32 1, %s911_s23   ;;  %s232_s29 = sand.u32 1, %s787_s13  }
  0x8c   : > { %s231_s24 = scalar_lea.sflag [#allocation6], %s230_s21  ;;  %s233_s6 = scalar_lea.vmem [#allocation5], %s232_s29 }
  0x8d   : > { %p1253_p1 = scmp.ne.s32.totalorder %s1236_s10, 0 }
  0x8f   : > { %774 = dma.done.wait (%p1253_p1), %s231_s24, 32  }
  0x90   : > { %776 = vsyncadd (%p1253_p1), %s231_s24, 4294967264  ;;  %v481_v0 = vld [vmem:[%s225_s27] sm:$0xff]   ;;  %s479_s15 = sshll.u32 %s811_s19, 3  ;;  %s241_s30 = scalar_lea.vmem [#allocation7], %s232_s29 }
  0x91   : > { %v466_v1 = vld [vmem:[%s233_s6] ss:$0 sm:$0xff]  ;;  %v482_v2 = vunpack.c.l.bf16 %v481_v0  ;;  %v483_v3 = vunpack.c.h.bf16 %v481_v0  ;;  %s325_s23 = sadd.s32 %s807_s18, %s479_s15  ;;  %s271_s5 = scalar_lea.vmem [#allocation8], %s464_s8 }
  0x92   : > { %v467_v4 = vld [vmem:[%s241_s30] ss:$0 sm:$0xff]  ;;  %s1254_s25 = sld [smem:[#allocation18_spill]]  ;;  %s328_s4 = sshll.u32 %s271_s5, 4  ;;  %s1138_s4 = int_to_ptr.vmem [resolvable:$true] %s328_s4 }
  0x93   : > { %v285_v5 = vmul.f32 %v482_v2, %v466_v1  ;;  %v286_v6 = vmul.f32 %v483_v3, %v466_v1  ;;  %s473_s10 = sshll.u32 %s325_s23, 6  ;;  %s1255_s26 = sld [smem:[#allocation22_spill]] }
  0x94   : > { %s313_s3 = scalar_lea.sflag [#allocation4], %s1122_s0  ;;  %s697_s11 = scalar_lea.vmem %s1138_s4, 128 }
  0x95   : > { %v294_v7 = vadd.f32 %v467_v4, %v285_v5  ;;  %v295_v8 = vadd.f32 %v467_v4, %v286_v6  ;;  %p698_p8 = scmp.ne.s32.totalorder %s1138_s4, %s697_s11  ;;  %s831_s28 = smov [#allocation8]  }
  0x96   : > { %s701_s7 = sshll.u32 %s831_s28, 4  ;;  %s702_s7 = int_to_ptr.vmem [resolvable:$false] %s701_s7 }
  0x97   : > { %vm296_vm0 = vcmp.gt.f32.partialorder %v294_v7, 0.0  ;;  %vm297_vm1 = vcmp.gt.f32.partialorder %v295_v8, 0.0  ;;  %v298_v9 = vmul.f32 0.2, %v294_v7  ;;  %v299_v10 = vmul.f32 0.2, %v295_v8  ;;  %p704_p4 = scmp.lt.s32.totalorder %s1138_s4, %s702_s7 }
  0x98   : > { %p1256_p6 = scmp.ne.s32.totalorder %s1254_s25, 0  ;;  %s703_s9 = scalar_lea.vmem %s702_s7, 256 }
  0x99   : > { %v300_v11 = vsel %vm296_vm0, %v294_v7, %v298_v9  ;;  %v301_v12 = vsel %vm297_vm1, %v295_v8, %v299_v10  ;;  %s1143_s1 = scalar_lea.hbm %s1255_s26, %s473_s10  ;;  %p705_p2 = scmp.lt.s32.totalorder %s703_s9, %s697_s11 }
  0x9a   : > { %v487_v13 = vpack.c.bf16 %v301_v12, %v300_v11  ;;  %p699_p9 = pnand %p698_p8, %p1256_p6 }
  0x9b   : > { %p706_p11 = por %p705_p2, %p704_p4 }
  0x9c   : > { %488 = vst [vmem:[%s271_s5] sm:$0xff] %v487_v13   ;;  %p700_p12 = pneg %p699_p9 }
  0x9e   : > { %p707_p0 = pnand %p706_p11, %p700_p12 }
  0xa0   : > { %710 = shalt.err (!%p707_p0)
}
  0xa1   : > { %s711_s8 = scalar_lea.hbm %s1143_s1, 128  ;;  %s715_s21 = scalar_lea.hbm %s1255_s26, 1024 }
  0xa2   : > { %p712_p13 = scmp.ne.s32.totalorder %s1143_s1, %s711_s8  ;;  %p716_p10 = scmp.lt.u32.totalorder %s1143_s1, %s1255_s26 }
  0xa3   : > { %p717_p7 = scmp.lt.u32.totalorder %s715_s21, %s711_s8  ;;  %p719_p8 = scmp.lt.u32.totalorder %s711_s8, %s1143_s1 }
  0xa4   : > { %p713_p3 = pnand %p712_p13, %p1256_p6 }
  0xa5   : > { %p718_p1 = por %p717_p7, %p716_p10 }
  0xa6   : > { %p714_p5 = pneg %p713_p3 }
  0xa7   : > { %p720_p9 = por %p719_p8, %p718_p1 }
  0xa9   : > { %p721_p12 = pnand %p720_p9, %p714_p5 }
  0xab   : > { %724 = shalt.err (!%p721_p12)
}
  0xac   : > { %s832_s6 = smov 64   ;;  %s833_s15 = smov 256  }
  0xad   : > { %s834_s30 = smov 4  }
  0xae   : > { %495 = dma.vmem_to_hbm [thread:$0]  (%p1256_p6), %s1138_s4, 128, %s1143_s1, %s313_s3, %s832_s6, %s833_s15, %s834_s30  }
  0xaf PF: > { %s1257_s23 = sld [smem:[#allocation12_spill]]  ;;  %s1258_s5 = sld [smem:[#allocation19_spill]] }
  0xb0   : > { %p512_p4 = scmp.ge.s32.totalorder %s823_s22, 2 }
  0xb5   : > { %s343_s10 = sand.u32 1, %s1257_s23   ;;  %p1259_p2 = scmp.ne.s32.totalorder %s1258_s5, 0 }
  0xb6   : > { %s344_s18 = scalar_lea.sflag [#allocation4], %s343_s10 }
  0xb7   : > { %p508_p11 = pnand %p512_p4, %p1259_p2 }
  0xb9   : > { %778 = dma.done.wait (!%p508_p11), %s344_s18, 128  }
  0xba   : > { %780 = vsyncadd (!%p508_p11), %s344_s18, 4294967168  ;;  %s22_s22 = sadd.s32 1, %s823_s22   ;;  %s1260_s19 = sld [smem:[#allocation16_spill]] }
  0xbb   : > { %p19_p0 = scmp.ge.s32.totalorder %s22_s22, 10   ;;  %s1261_s0 = sld [smem:[#allocation17_spill]] }
  0xbc   : > { %s1262_s25 = sld [smem:[#allocation13_spill]]  ;;  %s1263_s4 = sld [smem:[#allocation14_spill]] }
  0xbd   : > { %s1264_s21 = sld [smem:[#allocation15_spill]]  ;;  %s1265_s12 = smov %s787_s13 }
  0xbe   : > { %s1266_s13 = smov %s791_s14  ;;  %s1268_s15 = smov %s799_s16 }
  0xbf   : > { %s1269_s16 = smov %s803_s17  ;;  %s1271_s18 = smov %s815_s20 }
  0xc0   : > { %s1267_s14 = smov %s1260_s19  ;;  %21 = sbr.rel (!%p19_p0) target bundleno = 15 (0xf), region = 101 }
  0xc1   : > { %s1270_s17 = smov %s1261_s0 }
  0xc2   : > { %s1272_s19 = smov %s1262_s25  ;;  %s1273_s20 = smov %s1263_s4 }
  0xc7   :  { %349 = vsyncpa [#allocation3], 1 }
  0xc8   :  { %351 = vsyncpa [#allocation3 + $0x1], 1 }
  0xc9   :  { %352 = vsyncpa [#allocation6], 1 }
  0xca   :  { %354 = vsyncpa [#allocation6 + $0x1], 1 }
  0xcb   :  { %355 = vsyncpa [#allocation4], 1 }
  0xcc   :  { %357 = vsyncpa [#allocation4 + $0x1], 1 }

// kernel: discriminator_forward.15
= control target key start
LH: loop header
LB: loop body
LE: loop exit
PB: predicated region body
PF: predicated region fallthrough
CT: control target
= control target key end

     0   :  { %v51_v0 = vlaneseq  ;;  %v1111_v50 = vmov 1983009808   ;;  %vm963_vm0 = vcmask 1041408   ;;  %vm1099_vm1 = vcmask 1024   ;;  %s1864_s1 = inlined_call_operand.vmem [shape: f32[1,8192], index: 1, kind: input, shape index: {}]   ;;  %s1865_s0 = inlined_call_operand.vmem [shape: bf16[2,8192], index: 0, kind: input, shape index: {}]   ;;  %s1866_s2 = inlined_call_operand.vmem [shape: f32[2,1], index: 2, kind: output, shape index: {}]  }
   0x1   :  { %v1132_v2 = vld [vmem:[%s1864_s1 + $0x20] sm:$0xff]  ;;  %v1149_v7 = vld [vmem:[%s1864_s1 + $0x28] sm:$0xff]  ;;  %v1174_v16 = vld [vmem:[%s1864_s1 + $0x30] sm:$0xff]  ;;  %v310_v51 = vunpack.c.l.s4 %v1111_v50 }
   0x2   :  { %v1127_v1 = vshrl.u32 %v51_v0, 7  ;;  %v1195_v25 = vld [vmem:[%s1864_s1 + $0x38] sm:$0xff]  ;;  %v1232_v42 = vld [vmem:[%s1865_s0 + $0x20] sm:$0xff]  ;;  %v1237_v43 = vld [vmem:[%s1865_s0 + $0x28] sm:$0xff] }
   0x3   :  { %v1250_v48 = vld [vmem:[%s1865_s0 + $0x30] sm:$0xff]  ;;  %v1255_v49 = vld [vmem:[%s1865_s0 + $0x38] sm:$0xff]  ;;  %v1260_v52 = vld [vmem:[%s1864_s1] sm:$0xff]  ;;  %v311_v0 = vunpack.c.0.s8 %v310_v51 }
   0x4   :  { %v1135_v3 = vsub.s32 0, %v1127_v1  ;;  %v1138_v4 = vsub.s32 1, %v1127_v1  ;;  %v1141_v5 = vsub.s32 2, %v1127_v1  ;;  %v1144_v6 = vsub.s32 3, %v1127_v1  ;;  %v1272_v60 = vld [vmem:[%s1864_s1 + $0x8] sm:$0xff]  ;;  %v1290_v61 = vld [vmem:[%s1864_s1 + $0x10] sm:$0xff] }
   0x5   :  { %v1152_v8 = vsub.s32 4, %v1127_v1  ;;  %v1155_v9 = vsub.s32 5, %v1127_v1  ;;  %v1158_v10 = vsub.s32 6, %v1127_v1  ;;  %v1161_v11 = vsub.s32 7, %v1127_v1 }
   0x6   :  { %v182_v12 = vrot.slane %v1132_v2, %v1135_v3  ;;  %v186_v13 = vrot.slane %v1132_v2, %v1138_v4  ;;  %v190_v14 = vrot.slane %v1132_v2, %v1141_v5  ;;  %v194_v15 = vrot.slane %v1132_v2, %v1144_v6 }
   0x7   :  { %v198_v17 = vrot.slane %v1132_v2, %v1152_v8  ;;  %v202_v18 = vrot.slane %v1132_v2, %v1155_v9  ;;  %v206_v19 = vrot.slane %v1132_v2, %v1158_v10  ;;  %v210_v20 = vrot.slane %v1132_v2, %v1161_v11 }
   0x8   :  { %v214_v21 = vrot.slane %v1149_v7, %v1135_v3  ;;  %v218_v22 = vrot.slane %v1149_v7, %v1138_v4  ;;  %v222_v23 = vrot.slane %v1149_v7, %v1141_v5  ;;  %v226_v24 = vrot.slane %v1149_v7, %v1144_v6 }
   0x9   :  { %v230_v26 = vrot.slane %v1149_v7, %v1152_v8  ;;  %v234_v27 = vrot.slane %v1149_v7, %v1155_v9  ;;  %v238_v28 = vrot.slane %v1149_v7, %v1158_v10  ;;  %v242_v29 = vrot.slane %v1149_v7, %v1161_v11 }
   0xa   :  { %v246_v30 = vrot.slane %v1174_v16, %v1135_v3  ;;  %v250_v31 = vrot.slane %v1174_v16, %v1138_v4  ;;  %v254_v32 = vrot.slane %v1174_v16, %v1141_v5  ;;  %v258_v33 = vrot.slane %v1174_v16, %v1144_v6 }
   0xb   :  { %v262_v34 = vrot.slane %v1174_v16, %v1152_v8  ;;  %v266_v35 = vrot.slane %v1174_v16, %v1155_v9  ;;  %v274_v37 = vrot.slane %v1174_v16, %v1161_v11  ;;  %v54_v62 = vrot.slane %v1260_v52, %v1135_v3 }
   0xc   :  { %v58_v63 = vrot.slane %v1260_v52, %v1138_v4  ;;  %v62_v50 = vrot.slane %v1260_v52, %v1141_v5  ;;  %v66_v59 = vrot.slane %v1260_v52, %v1144_v6  ;;  %v70_v58 = vrot.slane %v1260_v52, %v1152_v8 }
   0xd   :  { %v74_v57 = vrot.slane %v1260_v52, %v1155_v9  ;;  %v78_v51 = vrot.slane %v1260_v52, %v1158_v10  ;;  %v82_v56 = vrot.slane %v1260_v52, %v1161_v11  ;;  %v86_v55 = vrot.slane %v1272_v60, %v1135_v3 }
   0xe   :  { %v90_v54 = vrot.slane %v1272_v60, %v1138_v4  ;;  %v94_v53 = vrot.slane %v1272_v60, %v1141_v5  ;;  %v98_v46 = vrot.slane %v1272_v60, %v1144_v6  ;;  %v102_v47 = vrot.slane %v1272_v60, %v1152_v8 }
   0xf   :  { %v106_v44 = vrot.slane %v1272_v60, %v1155_v9  ;;  %v110_v52 = vrot.slane %v1272_v60, %v1158_v10  ;;  %v114_v45 = vrot.slane %v1272_v60, %v1161_v11  ;;  %v1313_v40 = vsub.s32 %v311_v0, %v1127_v1 }
  0x10   :  { %v443_v41 = vcombine.low %v182_v12, %v186_v13  ;;  %v118_v38 = vrot.slane %v1290_v61, %v1135_v3  ;;  %v122_v39 = vrot.slane %v1290_v61, %v1138_v4  ;;  %v126_v36 = vrot.slane %v1290_v61, %v1141_v5 }
  0x11   :  { %v444_v1 = vcombine.low %v190_v14, %v194_v15  ;;  %v130_v60 = vrot.slane %v1290_v61, %v1144_v6  ;;  %v460_v13 = vcombine.low %v198_v17, %v202_v18  ;;  %v461_v0 = vcombine.low %v206_v19, %v210_v20 }
  0x12   :  { %v451_v12 = vrot.slane %v443_v41, %v1313_v40  ;;  %v1348_v14 = vcombine.low %v54_v62, %v58_v63  ;;  %v477_v41 = vcombine.low %v214_v21, %v218_v22  ;;  %v478_v17 = vcombine.low %v222_v23, %v226_v24 }
  0x13   :  { %v458_v15 = vrot.slane %v444_v1, %v1313_v40  ;;  %v1363_v2 = vcombine.low %v62_v50, %v66_v59  ;;  %v468_v18 = vrot.slane %v460_v13, %v1313_v40  ;;  %v475_v19 = vrot.slane %v461_v0, %v1313_v40 }
  0x14   :  { %v494_v20 = vcombine.low %v230_v26, %v234_v27  ;;  %v485_v22 = vrot.slane %v477_v41, %v1313_v40  ;;  %v492_v62 = vrot.slane %v478_v17, %v1313_v40  ;;  %v495_v23 = vcombine.low %v238_v28, %v242_v29 }
  0x15   :  { %v459_v21 = vcombine.low %v451_v12, %v458_v15  ;;  %v476_v24 = vcombine.low %v468_v18, %v475_v19  ;;  %v511_v26 = vcombine.low %v246_v30, %v250_v31  ;;  %v512_v27 = vcombine.low %v254_v32, %v258_v33 }
  0x16   :  { %v502_v59 = vrot.slane %v494_v20, %v1313_v40  ;;  %v493_v63 = vcombine.low %v485_v22, %v492_v62  ;;  %v509_v7 = vrot.slane %v495_v23, %v1313_v40  ;;  %v528_v28 = vcombine.low %v262_v34, %v266_v35 }
  0x17   :  { %v1868_v29 = vrot.slane %v1174_v16, %v1158_v10  ;;  %v519_v31 = vrot.slane %v511_v26, %v1313_v40  ;;  %v526_v32 = vrot.slane %v512_v27, %v1313_v40  ;;  %v1869_v33 = vrot.slane %v1195_v25, %v1138_v4 }
  0x18   :  { %v1870_v50 = vrot.slane %v1195_v25, %v1135_v3  ;;  %v1871_v34 = vrot.slane %v1195_v25, %v1144_v6  ;;  %v1872_v35 = vrot.slane %v1195_v25, %v1141_v5  ;;  %v510_v16 = vcombine.low %v502_v59, %v509_v7 }
  0x19   :  { %v529_v30 = vcombine.low %v1868_v29, %v274_v37  ;;  %v536_v37 = vrot.slane %v528_v28, %v1313_v40  ;;  %v1873_v0 = vrot.slane %v1195_v25, %v1155_v9  ;;  %v1874_v15 = vrot.slane %v1195_v25, %v1152_v8 }
  0x1a   :  { %v545_v1 = vcombine.low %v1870_v50, %v1869_v33  ;;  %v546_v12 = vcombine.low %v1872_v35, %v1871_v34  ;;  %v527_v17 = vcombine.low %v519_v31, %v526_v32  ;;  %v1875_v20 = vrot.slane %v1195_v25, %v1161_v11  ;;  %v12_v35 = vld [vmem:[%s1865_s0 + $0x8] sm:$0xff] }
  0x1b   :  { %v543_v13 = vrot.slane %v529_v30, %v1313_v40  ;;  %v562_v41 = vcombine.low %v1874_v15, %v1873_v0  ;;  %v1876_v22 = vrot.slane %v1195_v25, %v1158_v10  ;;  %v324_v23 = vcombine.low %v70_v58, %v74_v57  ;;  %v1496_v0 = vld [vmem:[%s1865_s0 + $0x10] sm:$0xff] }
  0x1c   :  { %v553_v18 = vrot.slane %v545_v1, %v1313_v40  ;;  %v560_v19 = vrot.slane %v546_v12, %v1313_v40  ;;  %v325_v59 = vcombine.low %v78_v51, %v82_v56  ;;  %v341_v7 = vcombine.low %v86_v55, %v90_v54 }
  0x1d   :  { %v563_v62 = vcombine.low %v1876_v22, %v1875_v20  ;;  %v544_v26 = vcombine.low %v536_v37, %v543_v13  ;;  %v570_v27 = vrot.slane %v562_v41, %v1313_v40  ;;  %v342_v28 = vcombine.low %v94_v53, %v98_v46 }
  0x1e   :  { %v561_v29 = vcombine.low %v553_v18, %v560_v19  ;;  %v315_v31 = vrot.slane %v1348_v14, %v1313_v40  ;;  %v322_v32 = vrot.slane %v1363_v2, %v1313_v40  ;;  %v358_v33 = vcombine.low %v102_v47, %v106_v44 }
  0x1f   :  { %v577_v30 = vrot.slane %v563_v62, %v1313_v40  ;;  %v359_v50 = vcombine.low %v110_v52, %v114_v45  ;;  %v1877_v57 = vunpack.c.l.bf16 %v1232_v42  ;;  %v1878_v58 = vunpack.c.h.bf16 %v1232_v42  ;;  %v11_v42 = vld [vmem:[%s1865_s0] sm:$0xff] }
  0x20   :  { %v1879_v46 = vunpack.c.l.bf16 %v1237_v43  ;;  %v1880_v54 = vunpack.c.h.bf16 %v1237_v43  ;;  %v1881_v14 = vunpack.c.l.bf16 %v1250_v48  ;;  %v1882_v44 = vunpack.c.h.bf16 %v1250_v48 }
  0x21   :  { %v578_v25 = vcombine.low %v570_v27, %v577_v30  ;;  %v603_v56 = vmul.f32 %v459_v21, %v1877_v57  ;;  %v604_v51 = vmul.f32 %v476_v24, %v1878_v58  ;;  %v1883_v47 = vunpack.c.l.bf16 %v1255_v49 }
  0x22   :  { %v605_v53 = vmul.f32 %v493_v63, %v1879_v46  ;;  %v606_v55 = vmul.f32 %v510_v16, %v1880_v54  ;;  %v1453_v1 = vmul.f32 %v527_v17, %v1881_v14  ;;  %v1457_v45 = vmul.f32 %v544_v26, %v1882_v44 }
  0x23   :  { %v1461_v52 = vmul.f32 %v561_v29, %v1883_v47  ;;  %v332_v2 = vrot.slane %v324_v23, %v1313_v40  ;;  %v339_v43 = vrot.slane %v325_v59, %v1313_v40  ;;  %v1884_v21 = vunpack.c.h.bf16 %v1255_v49 }
  0x24   :  { %v349_v48 = vrot.slane %v341_v7, %v1313_v40  ;;  %v356_v63 = vrot.slane %v342_v28, %v1313_v40  ;;  %v375_v34 = vcombine.low %v118_v38, %v122_v39  ;;  %v376_v49 = vcombine.low %v126_v36, %v130_v60  ;;  %v1501_v36 = vld [vmem:[%s1864_s1 + $0x18] sm:$0xff] }
  0x25   :  { %v1470_v24 = vmul.f32 %v578_v25, %v1884_v21  ;;  %v366_v12 = vrot.slane %v358_v33, %v1313_v40  ;;  %v373_v16 = vrot.slane %v359_v50, %v1313_v40  ;;  %v19_v37 = vunpack.c.l.bf16 %v11_v42 }
  0x26   :  { %v20_v13 = vunpack.c.h.bf16 %v11_v42  ;;  %v134_v38 = vrot.slane %v1290_v61, %v1152_v8  ;;  %v323_v39 = vcombine.low %v315_v31, %v322_v32  ;;  %v138_v60 = vrot.slane %v1290_v61, %v1155_v9 }
  0x27   :  { %v142_v15 = vrot.slane %v1290_v61, %v1158_v10  ;;  %v146_v41 = vrot.slane %v1290_v61, %v1161_v11  ;;  %v340_v17 = vcombine.low %v332_v2, %v339_v43  ;;  %v21_v18 = vunpack.c.l.bf16 %v12_v35 }
  0x28   :  { %v357_v19 = vcombine.low %v349_v48, %v356_v63  ;;  %v383_v20 = vrot.slane %v375_v34, %v1313_v40  ;;  %v390_v22 = vrot.slane %v376_v49, %v1313_v40  ;;  %v22_v62 = vunpack.c.h.bf16 %v12_v35 }
  0x29   :  { %v374_v23 = vcombine.low %v366_v12, %v373_v16  ;;  %v23_v59 = vunpack.c.l.bf16 %v1496_v0  ;;  %v595_v7 = vmul.f32 %v323_v39, %v19_v37  ;;  %v1518_v28 = vcombine.low %v134_v38, %v138_v60 }
  0x2a   :  { %v1520_v29 = vcombine.low %v142_v15, %v146_v41  ;;  %v596_v30 = vmul.f32 %v340_v17, %v20_v13  ;;  %v391_v31 = vcombine.low %v383_v20, %v390_v22  ;;  %v597_v32 = vmul.f32 %v357_v19, %v21_v18 }
  0x2b   :  { %v627_v33 = vcombine.high %v595_v7, %v595_v7  ;;  %v763_v50 = vcombine.high %v603_v56, %v603_v56  ;;  %v598_v25 = vmul.f32 %v374_v23, %v22_v62  ;;  %v1523_v57 = vrot.slane %v603_v56, %v1313_v40 }
  0x2c   :  { %v780_v58 = vcombine.high %v604_v51, %v604_v51  ;;  %v1526_v46 = vrot.slane %v604_v51, %v1313_v40  ;;  %v634_v54 = vrot.slane %v595_v7, %v1313_v40  ;;  %v797_v44 = vcombine.high %v605_v53, %v605_v53 }
  0x2d   :  { %1885 = vst [vmem:[#allocation2_spill] sm:$0xff] %v1523_v57  ;;  %v1530_v14 = vrot.slane %v763_v50, %v1313_v40  ;;  %v1533_v47 = vrot.slane %v605_v53, %v1313_v40  ;;  %v644_v42 = vcombine.high %v596_v30, %v596_v30  ;;  %v651_v2 = vrot.slane %v596_v30, %v1313_v40 }
  0x2e   :  { %v1537_v43 = vrot.slane %v780_v58, %v1313_v40  ;;  %v814_v56 = vcombine.high %v606_v55, %v606_v55  ;;  %v641_v21 = vrot.slane %v627_v33, %v1313_v40  ;;  %v661_v51 = vcombine.high %v597_v32, %v597_v32 }
  0x2f   :  { %v1541_v48 = vrot.slane %v797_v44, %v1313_v40  ;;  %v1544_v63 = vrot.slane %v606_v55, %v1313_v40  ;;  %v668_v34 = vrot.slane %v597_v32, %v1313_v40  ;;  %v831_v49 = vcombine.high %v1453_v1, %v1453_v1 }
  0x30   :  { %v1548_v53 = vrot.slane %v814_v56, %v1313_v40  ;;  %v1554_v35 = vrot.slane %v1453_v1, %v1313_v40  ;;  %v642_v12 = vcombine.high %v634_v54, %v634_v54  ;;  %v678_v16 = vcombine.high %v598_v25, %v598_v25 }
  0x31   :  { %v848_v37 = vcombine.high %v1457_v45, %v1457_v45  ;;  %v1560_v55 = vrot.slane %v1457_v45, %v1313_v40  ;;  %v658_v13 = vrot.slane %v644_v42, %v1313_v40  ;;  %v1564_v38 = vrot.slane %v598_v25, %v1313_v40 }
  0x32   :  { %v1567_v39 = vrot.slane %v831_v49, %v1313_v40  ;;  %v865_v1 = vcombine.high %v1461_v52, %v1461_v52  ;;  %v643_v60 = vcombine.high %v641_v21, %v641_v21  ;;  %v1576_v41 = vrot.slane %v1461_v52, %v1313_v40 }
  0x33   :  { %v1572_v15 = vrot.slane %v848_v37, %v1313_v40  ;;  %v882_v45 = vcombine.high %v1470_v24, %v1470_v24  ;;  %v675_v17 = vrot.slane %v661_v51, %v1313_v40  ;;  %v1586_v19 = vrot.slane %v1470_v24, %v1313_v40 }
  0x34   :  { %v1582_v18 = vrot.slane %v865_v1, %v1313_v40  ;;  %v964_v20 = vsel %vm963_vm0, %v634_v54, 0.0  ;;  %v965_v23 = vsel %vm963_vm0, %v642_v12, 0.0  ;;  %v1599_v30 = vmul.f32 %v391_v31, %v23_v59 }
  0x35   :  { %v1594_v62 = vrot.slane %v882_v45, %v1313_v40  ;;  %v966_v24 = vadd.f32 %v965_v23, %v964_v20  ;;  %v967_v32 = vsel %vm963_vm0, %v641_v21, 0.0  ;;  %v659_v33 = vcombine.high %v651_v2, %v651_v2 }
  0x36   :  { %v676_v50 = vcombine.high %v668_v34, %v668_v34  ;;  %v1603_v25 = vrot.slane %v678_v16, %v1313_v40  ;;  %v969_v58 = vsel %vm963_vm0, %v643_v60, 0.0  ;;  %v660_v54 = vcombine.high %v658_v13, %v658_v13 }
  0x37   :  { %v677_v44 = vcombine.high %v675_v17, %v675_v17  ;;  %v968_v56 = vadd.f32 %v967_v32, %v966_v24  ;;  %v778_v59 = vcombine.high %v1523_v57, %v1523_v57  ;;  %v779_v31 = vcombine.high %v1530_v14, %v1530_v14 }
  0x38   :  { %v795_v21 = vcombine.high %v1526_v46, %v1526_v46  ;;  %v971_v51 = vsel %vm963_vm0, %v651_v2, 0.0  ;;  %v796_v49 = vcombine.high %v1537_v43, %v1537_v43  ;;  %v812_v12 = vcombine.high %v1533_v47, %v1533_v47 }
  0x39   :  { %v813_v16 = vcombine.high %v1541_v48, %v1541_v48  ;;  %v970_v37 = vadd.f32 %v969_v58, %v968_v56  ;;  %v829_v1 = vcombine.high %v1544_v63, %v1544_v63  ;;  %v830_v60 = vcombine.high %v1548_v53, %v1548_v53 }
  0x3a   :  { %v846_v45 = vcombine.high %v1554_v35, %v1554_v35  ;;  %v973_v2 = vsel %vm963_vm0, %v659_v33, 0.0  ;;  %v847_v20 = vcombine.high %v1567_v39, %v1567_v39  ;;  %v863_v23 = vcombine.high %v1560_v55, %v1560_v55 }
  0x3b   :  { %v864_v24 = vcombine.high %v1572_v15, %v1572_v15  ;;  %v972_v32 = vadd.f32 %v971_v51, %v970_v37  ;;  %v880_v58 = vcombine.high %v1576_v41, %v1576_v41  ;;  %v881_v56 = vcombine.high %v1582_v18, %v1582_v18 }
  0x3c   :  { %v897_v42 = vcombine.high %v1586_v19, %v1586_v19  ;;  %v975_v33 = vsel %vm963_vm0, %v658_v13, 0.0  ;;  %v898_v61 = vcombine.high %v1594_v62, %v1594_v62  ;;  %v977_v26 = vsel %vm963_vm0, %v660_v54, 0.0 }
  0x3d   :  { %v974_v22 = vadd.f32 %v973_v2, %v972_v32  ;;  %v979_v27 = vsel %vm963_vm0, %v668_v34, 0.0  ;;  %v981_v51 = vsel %vm963_vm0, %v676_v50, 0.0  ;;  %v983_v37 = vsel %vm963_vm0, %v675_v17, 0.0 }
  0x3e   :  { %v985_v52 = vsel %vm963_vm0, %v677_v44, 0.0  ;;  %v1649_v7 = vsel %vm963_vm0, %v778_v59, 0.0  ;;  %v1653_v13 = vsel %vm963_vm0, %v1530_v14, 0.0  ;;  %v1656_v2 = vsel %vm963_vm0, %v779_v31, 0.0 }
  0x3f   :  { %v976_v57 = vadd.f32 %v975_v33, %v974_v22  ;;  %v1660_v34 = vsel %vm963_vm0, %v1526_v46, 0.0  ;;  %v1663_v50 = vsel %vm963_vm0, %v795_v21, 0.0  ;;  %v1667_v17 = vsel %vm963_vm0, %v1537_v43, 0.0 }
  0x40   :  { %v1670_v22 = vsel %vm963_vm0, %v796_v49, 0.0  ;;  %v1674_v14 = vsel %vm963_vm0, %v1533_v47, 0.0  ;;  %v1677_v44 = vsel %vm963_vm0, %v812_v12, 0.0  ;;  %v1681_v46 = vsel %vm963_vm0, %v1541_v48, 0.0 }
  0x41   :  { %v978_v54 = vadd.f32 %v977_v26, %v976_v57  ;;  %v1684_v59 = vsel %vm963_vm0, %v813_v16, 0.0  ;;  %v1688_v43 = vsel %vm963_vm0, %v1544_v63, 0.0  ;;  %v1691_v31 = vsel %vm963_vm0, %v829_v1, 0.0 }
  0x42   :  { %v1695_v26 = vsel %vm963_vm0, %v1548_v53, 0.0  ;;  %v1698_v57 = vsel %vm963_vm0, %v830_v60, 0.0  ;;  %v1702_v48 = vsel %vm963_vm0, %v1554_v35, 0.0  ;;  %v1705_v21 = vsel %vm963_vm0, %v846_v45, 0.0 }
  0x43   :  { %v980_v47 = vadd.f32 %v979_v27, %v978_v54  ;;  %v1709_v63 = vsel %vm963_vm0, %v1567_v39, 0.0  ;;  %v1712_v49 = vsel %vm963_vm0, %v847_v20, 0.0  ;;  %v1716_v53 = vsel %vm963_vm0, %v1560_v55, 0.0 }
  0x44   :  { %v1719_v27 = vsel %vm963_vm0, %v863_v23, 0.0  ;;  %v1723_v35 = vsel %vm963_vm0, %v1572_v15, 0.0  ;;  %v1726_v16 = vsel %vm963_vm0, %v864_v24, 0.0  ;;  %v1730_v39 = vsel %vm963_vm0, %v1576_v41, 0.0 }
  0x45   :  { %v982_v12 = vadd.f32 %v981_v51, %v980_v47  ;;  %v1733_v1 = vsel %vm963_vm0, %v880_v58, 0.0  ;;  %v1737_v55 = vsel %vm963_vm0, %v1582_v18, 0.0  ;;  %v1740_v60 = vsel %vm963_vm0, %v881_v56, 0.0 }
  0x46   :  { %v1744_v15 = vsel %vm963_vm0, %v1586_v19, 0.0  ;;  %v1747_v45 = vsel %vm963_vm0, %v897_v42, 0.0  ;;  %v1751_v41 = vsel %vm963_vm0, %v1594_v62, 0.0  ;;  %v1754_v23 = vsel %vm963_vm0, %v898_v61, 0.0 }
  0x47   :  { %v984_v20 = vadd.f32 %v983_v37, %v982_v12  ;;  %v24_v18 = vunpack.c.h.bf16 %v1496_v0  ;;  %v987_v24 = vsel %vm963_vm0, %v1564_v38, 0.0  ;;  %v1886_v19 = vrot.slane %v1520_v29, %v1313_v40 }
  0x48   :  { %v1887_v42 = vrot.slane %v1518_v28, %v1313_v40  ;;  %v1888_v58 = vrot.slane %v1501_v36, %v1138_v4  ;;  %v1889_v62 = vrot.slane %v1501_v36, %v1135_v3  ;;  %v1890_v0 = vrot.slane %v1501_v36, %v1144_v6 }
  0x49   :  { %v1891_v56 = vrot.slane %v1501_v36, %v1141_v5  ;;  %v986_v51 = vadd.f32 %v985_v52, %v984_v20  ;;  %v694_v29 = vcombine.high %v1603_v25, %v1603_v25  ;;  %v695_v28 = vcombine.high %v1599_v30, %v1599_v30 }
  0x4a   :  { %v408_v32 = vcombine.low %v1887_v42, %v1886_v19  ;;  %v409_v61 = vcombine.low %v1889_v62, %v1888_v58  ;;  %v702_v4 = vrot.slane %v1599_v30, %v1313_v40  ;;  %v1892_v3 = vcombine.high %v1564_v38, %v1564_v38  ;;  %v14_v30 = vld [vmem:[%s1865_s0 + $0x18] sm:$0xff] }
  0x4b   :  { %v410_v33 = vcombine.low %v1891_v56, %v1890_v0  ;;  %v988_v6 = vadd.f32 %v987_v24, %v986_v51  ;;  %v166_v5 = vrot.slane %v1501_v36, %v1152_v8  ;;  %v170_v52 = vrot.slane %v1501_v36, %v1155_v9 }
  0x4c   :  { %v989_v37 = vsel %vm963_vm0, %v1892_v3, 0.0  ;;  %v174_v54 = vrot.slane %v1501_v36, %v1158_v10  ;;  %v991_v47 = vsel %vm963_vm0, %v1603_v25, 0.0  ;;  %v178_v38 = vrot.slane %v1501_v36, %v1161_v11 }
  0x4d   :  { %v417_v12 = vrot.slane %v409_v61, %v1313_v40  ;;  %v424_v8 = vrot.slane %v410_v33, %v1313_v40  ;;  %v990_v20 = vadd.f32 %v989_v37, %v988_v6  ;;  %v600_v24 = vmul.f32 %v408_v32, %v24_v18 }
  0x4e   :  { %v709_v9 = vrot.slane %v695_v28, %v1313_v40  ;;  %v710_v19 = vcombine.high %v702_v4, %v702_v4  ;;  %v993_v10 = vsel %vm963_vm0, %v694_v29, 0.0  ;;  %v25_v25 = vunpack.c.l.bf16 %v14_v30 }
  0x4f   :  { %v992_v42 = vadd.f32 %v991_v47, %v990_v20  ;;  %v995_v58 = vsel %vm963_vm0, %v702_v4, 0.0  ;;  %v425_v62 = vcombine.low %v417_v12, %v424_v8  ;;  %v426_v0 = vcombine.low %v166_v5, %v170_v52 }
  0x50   :  { %v427_v56 = vcombine.low %v174_v54, %v178_v38  ;;  %v711_v11 = vcombine.high %v709_v9, %v709_v9  ;;  %v712_v36 = vcombine.high %v600_v24, %v600_v24  ;;  %v719_v61 = vrot.slane %v600_v24, %v1313_v40 }
  0x51   :  { %v994_v51 = vadd.f32 %v993_v10, %v992_v42  ;;  %v997_v33 = vsel %vm963_vm0, %v710_v19, 0.0  ;;  %v999_v32 = vsel %vm963_vm0, %v709_v9, 0.0  ;;  %v434_v28 = vrot.slane %v426_v0, %v1313_v40 }
  0x52   :  { %v441_v29 = vrot.slane %v427_v56, %v1313_v40  ;;  %v601_v37 = vmul.f32 %v425_v62, %v25_v25  ;;  %v726_v4 = vrot.slane %v712_v36, %v1313_v40  ;;  %v727_v6 = vcombine.high %v719_v61, %v719_v61 }
  0x53   :  { %v996_v18 = vadd.f32 %v995_v58, %v994_v51  ;;  %v1001_v5 = vsel %vm963_vm0, %v711_v11, 0.0  ;;  %v1003_v54 = vsel %vm963_vm0, %v719_v61, 0.0  ;;  %v26_v47 = vunpack.c.h.bf16 %v14_v30 }
  0x54   :  { %v442_v38 = vcombine.low %v434_v28, %v441_v29  ;;  %v728_v8 = vcombine.high %v726_v4, %v726_v4  ;;  %v729_v20 = vcombine.high %v601_v37, %v601_v37  ;;  %v736_v24 = vrot.slane %v601_v37, %v1313_v40 }
  0x55   :  { %v998_v3 = vadd.f32 %v997_v33, %v996_v18  ;;  %v1005_v9 = vsel %vm963_vm0, %v727_v6, 0.0  ;;  %v1007_v10 = vsel %vm963_vm0, %v726_v4, 0.0 }
  0x56   :  { %v602_v25 = vmul.f32 %v442_v38, %v26_v47  ;;  %v743_v58 = vrot.slane %v729_v20, %v1313_v40  ;;  %v744_v62 = vcombine.high %v736_v24, %v736_v24  ;;  %v1009_v0 = vsel %vm963_vm0, %v728_v8, 0.0 }
  0x57   :  { %v1000_v52 = vadd.f32 %v999_v32, %v998_v3  ;;  %v1011_v30 = vsel %vm963_vm0, %v736_v24, 0.0  ;;  %v1893_v24 = vld [vmem:[#allocation2_spill] sm:$0xff] }
  0x58   :  { %v745_v11 = vcombine.high %v743_v58, %v743_v58  ;;  %v746_v36 = vcombine.high %v602_v25, %v602_v25  ;;  %v753_v61 = vrot.slane %v602_v25, %v1313_v40  ;;  %v1013_v33 = vsel %vm963_vm0, %v744_v62, 0.0 }
  0x59   :  { %v1002_v12 = vadd.f32 %v1001_v5, %v1000_v52  ;;  %v1015_v32 = vsel %vm963_vm0, %v743_v58, 0.0 }
  0x5a   :  { %v760_v29 = vrot.slane %v746_v36, %v1313_v40  ;;  %v761_v3 = vcombine.high %v753_v61, %v753_v61  ;;  %v1017_v37 = vsel %vm963_vm0, %v745_v11, 0.0  ;;  %v1019_v6 = vsel %vm963_vm0, %v753_v61, 0.0 }
  0x5b   :  { %v1004_v19 = vadd.f32 %v1003_v54, %v1002_v12  ;;  %v1027_v40 = vsel %vm963_vm0, %v1893_v24, 0.0 }
  0x5c   :  { %v762_v52 = vcombine.high %v760_v29, %v760_v29  ;;  %v1021_v54 = vsel %vm963_vm0, %v761_v3, 0.0  ;;  %v1023_v38 = vsel %vm963_vm0, %v760_v29, 0.0 }
  0x5d   :  { %v1006_v42 = vadd.f32 %v1005_v9, %v1004_v19 }
  0x5e   :  { %v1025_v8 = vsel %vm963_vm0, %v762_v52, 0.0 }
  0x5f   :  { %v1008_v56 = vadd.f32 %v1007_v10, %v1006_v42 }
  0x61   :  { %v1010_v51 = vadd.f32 %v1009_v0, %v1008_v56 }
  0x63   :  { %v1012_v18 = vadd.f32 %v1011_v30, %v1010_v51 }
  0x65   :  { %v1014_v28 = vadd.f32 %v1013_v33, %v1012_v18 }
  0x67   :  { %v1016_v4 = vadd.f32 %v1015_v32, %v1014_v28 }
  0x69   :  { %v1018_v5 = vadd.f32 %v1017_v37, %v1016_v4 }
  0x6b   :  { %v1020_v47 = vadd.f32 %v1019_v6, %v1018_v5 }
  0x6d   :  { %v1022_v12 = vadd.f32 %v1021_v54, %v1020_v47 }
  0x6f   :  { %v1024_v20 = vadd.f32 %v1023_v38, %v1022_v12 }
  0x71   :  { %v1026_v9 = vadd.f32 %v1025_v8, %v1024_v20 }
  0x73   :  { %v1028_v19 = vadd.f32 %v1027_v40, %v1026_v9 }
  0x75   :  { %v1030_v10 = vadd.f32 %v1649_v7, %v1028_v19 }
  0x77   :  { %v1032_v42 = vadd.f32 %v1653_v13, %v1030_v10 }
  0x79   :  { %v1034_v25 = vadd.f32 %v1656_v2, %v1032_v42 }
  0x7b   :  { %v1036_v58 = vadd.f32 %v1660_v34, %v1034_v25 }
  0x7d   :  { %v1038_v62 = vadd.f32 %v1663_v50, %v1036_v58 }
  0x7f   :  { %v1040_v0 = vadd.f32 %v1667_v17, %v1038_v62 }
  0x81   :  { %v1042_v56 = vadd.f32 %v1670_v22, %v1040_v0 }
  0x83   :  { %v1044_v30 = vadd.f32 %v1674_v14, %v1042_v56 }
  0x85   :  { %v1046_v51 = vadd.f32 %v1677_v44, %v1044_v30 }
  0x87   :  { %v1048_v11 = vadd.f32 %v1681_v46, %v1046_v51 }
  0x89   :  { %v1050_v7 = vadd.f32 %v1684_v59, %v1048_v11 }
  0x8b   :  { %v1052_v13 = vadd.f32 %v1688_v43, %v1050_v7 }
  0x8d   :  { %v1054_v2 = vadd.f32 %v1691_v31, %v1052_v13 }
  0x8f   :  { %v1056_v34 = vadd.f32 %v1695_v26, %v1054_v2 }
  0x91   :  { %v1058_v50 = vadd.f32 %v1698_v57, %v1056_v34 }
  0x93   :  { %v1060_v17 = vadd.f32 %v1702_v48, %v1058_v50 }
  0x95   :  { %v1062_v22 = vadd.f32 %v1705_v21, %v1060_v17 }
  0x97   :  { %v1064_v14 = vadd.f32 %v1709_v63, %v1062_v22 }
  0x99   :  { %v1066_v44 = vadd.f32 %v1712_v49, %v1064_v14 }
  0x9b   :  { %v1068_v46 = vadd.f32 %v1716_v53, %v1066_v44 }
  0x9d   :  { %v1070_v59 = vadd.f32 %v1719_v27, %v1068_v46 }
  0x9f   :  { %v1072_v43 = vadd.f32 %v1723_v35, %v1070_v59 }
  0xa1   :  { %v1074_v31 = vadd.f32 %v1726_v16, %v1072_v43 }
  0xa3   :  { %v1076_v26 = vadd.f32 %v1730_v39, %v1074_v31 }
  0xa5   :  { %v1078_v57 = vadd.f32 %v1733_v1, %v1076_v26 }
  0xa7   :  { %v1080_v48 = vadd.f32 %v1737_v55, %v1078_v57 }
  0xa9   :  { %v1082_v21 = vadd.f32 %v1740_v60, %v1080_v48 }
  0xab   :  { %v1084_v63 = vadd.f32 %v1744_v15, %v1082_v21 }
  0xad   :  { %v1086_v49 = vadd.f32 %v1747_v45, %v1084_v63 }
  0xaf   :  { %v1088_v53 = vadd.f32 %v1751_v41, %v1086_v49 }
  0xb1   :  { %v1090_v27 = vadd.f32 %v1754_v23, %v1088_v53 }
  0xb3   :  { %1091 = vadd.xlane.f32.xlu0 %v1090_v27 }
 0x140   :  { %v1092_v35 = vpop.xlane.xlu0 %1091 }
 0x141   :  { %v1105_v36 = vmul.f32 -1.442695, %v1092_v35 }
 0x143   :  { %1107 = vpow2.f32 %v1105_v36 }
 0x14d   :  { %v1108_v16 = vpop.eup %1107 }
 0x14e   :  { %v1096_v39 = vadd.f32 1.0, %v1108_v16 }
 0x150   :  { %1109 = vrcp.f32 %v1096_v39 }
 0x15a   :  { %v1110_v1 = vpop.eup %1109 }
 0x15b   :  { %1100 = vst.msk [vmem:[%s1866_s2] sm:$0x3] %vm1099_vm1, %v1110_v1 }

// kernel: discriminator_forward.13
= control target key start
LH: loop header
LB: loop body
LE: loop exit
PB: predicated region body
PF: predicated region fallthrough
CT: control target
= control target key end

     0   :  { %s6492_s0 = inlined_call_operand.hbm [shape: bf16[4,2,5,5,256], index: 0, kind: input, shape index: {}]   ;;  %s6493_s1 = inlined_call_operand.hbm [shape: bf16[4096,512], index: 1, kind: input, shape index: {}]   ;;  %s6494_s2 = inlined_call_operand.hbm [shape: bf16[32,512], index: 2, kind: output, shape index: {0}]   ;;  %s6495_s3 = inlined_call_operand.hbm [shape: f32[2,2,512], index: 3, kind: output, shape index: {1}]  }
   0x1   :  { %6507 = sst [smem:[#allocation27_spill]] %s6492_s0 }
   0x2   :  { %6508 = sst [smem:[#allocation28_spill]] %s6495_s3 }
   0x3   :  { %9 = vsyncpa [#allocation3], 0 }
   0x4   :  { %11 = vsyncpa [#allocation3 + $0x1], 0 }
   0x5   :  { %12 = vsyncpa [#allocation6], 0 }
   0x6   :  { %14 = vsyncpa [#allocation6 + $0x1], 0 }
   0x7   :  { %15 = vsyncpa [#allocation4], 0 }
   0x8   :  { %17 = vsyncpa [#allocation4 + $0x1], 0 }
   0x9   :  { %18 = vsyncpa [#allocation9], 0 }
   0xa   :  { %20 = vsyncpa [#allocation9 + $0x1], 0  ;;  %s5679_s12 = smov 0   ;;  %s5681_s13 = smov 0  }
   0xb   :  { %s5683_s14 = smov 0   ;;  %s5685_s15 = smov 0  }
   0xc   :  { %s5687_s16 = smov 0   ;;  %s5689_s17 = smov 0  }
   0xd   :  { %s5691_s18 = smov 0   ;;  %s5693_s19 = smov 0  }
   0xe   :  { %s5695_s20 = smov 0   ;;  %s5697_s21 = smov 0  }
   0xf   :  { %s5699_s22 = smov 0   ;;  %s5701_s23 = smov 0  }
  0x10   :  { %s5703_s24 = smov 0   ;;  %s5705_s25 = smov 0  }
  0x11 LB: > { %6509 = sst [smem:[#allocation17_spill]] %s5589_s12  ;;  %s6496_s26 = sadd.s32 4294967295, %s5641_s25   ;;  %s5641_s25 = sphi %s5705_s25, %s26_s25   ;;  %s5637_s24 = sphi %s5703_s24, %s6554_s24   ;;  %s5633_s23 = sphi %s5701_s23, %s6553_s23   ;;  %s5629_s22 = sphi %s5699_s22, %s6542_s22   ;;  %s5625_s21 = sphi %s5697_s21, %s6552_s21   ;;  %s5621_s20 = sphi %s5695_s20, %s6541_s20   ;;  %s5617_s19 = sphi %s5693_s19, %s6551_s19   ;;  %s5613_s18 = sphi %s5691_s18, %s6550_s18   ;;  %s5609_s17 = sphi %s5689_s17, %s6549_s17   ;;  %s5605_s16 = sphi %s5687_s16, %s6548_s16   ;;  %s5601_s15 = sphi %s5685_s15, %s6547_s15   ;;  %s5597_s14 = sphi %s5683_s14, %s6538_s14   ;;  %s5593_s13 = sphi %s5681_s13, %s6546_s13   ;;  %s5589_s12 = sphi %s5679_s12, %s6545_s12  }
  0x12   : > { %6510 = sst [smem:[#allocation18_spill]] %s5597_s14  ;;  %s35_s28 = sadd.s32 1, %s5633_s23 }
  0x13   : > { %6511 = sst [smem:[#allocation19_spill]] %s5621_s20  ;;  %s38_s29 = sadd.s32 1, %s5637_s24 }
  0x14   : > { %6512 = sst [smem:[#allocation20_spill]] %s5637_s24  ;;  %p36_p0 = scmp.ge.s32.totalorder %s35_s28, 4 }
  0x15   : > { %s45_s30 = sadd.s32 1, %s5621_s20  ;;  %p52_p1 = scmp.ne.s32.totalorder %s5621_s20, %s5617_s19 }
  0x16   : > { %p53_p2 = scmp.eq.s32.totalorder %s5641_s25, 0  ;;  %s6556_s28 = smov (%p36_p0, %s35_s28), 0 }
  0x17   : > { %6513 = sst [smem:[#allocation21_spill]] %s6556_s28  ;;  %s6558_s29 = smov (!%p36_p0, %s38_s29), %s5637_s24 }
  0x18   : > { %p5760_p3 = por %p53_p2, %p52_p1  ;;  %p58_p4 = scmp.ne.s32.totalorder %s5617_s19, %s5613_s18 }
  0x19   : > { %p40_p5 = scmp.ge.s32.totalorder %s6558_s29, 2  ;;  %p5767_p6 = scmp.eq.s32.totalorder %s6496_s26, 0 }
  0x1a   : > { %s68_s6 = ssub.s32 %s5633_s23, %s6556_s28  ;;  %s71_s7 = sadd.s32 1, %s5609_s17 }
  0x1b   : > { %s6560_s29 = smov (%p40_p5, %s6558_s29), 0  ;;  %p5778_p7 = por %p5767_p6, %p58_p4 }
  0x1c   : > { %6516 = sst [smem:[#allocation22_spill]] %s6560_s29  ;;  %p69_p8 = scmp.eq.s32.totalorder %s68_s6, 0 }
  0x1d   : > { %s42_s9 = ssub.s32 %s5637_s24, %s6560_s29  ;;  %p78_p9 = scmp.ne.s32.totalorder %s5609_s17, %s5605_s16 }
  0x1e   : > { %p43_p10 = scmp.eq.s32.totalorder %s42_s9, 0  ;;  %p84_p11 = scmp.ne.s32.totalorder %s5605_s16, %s5601_s15 }
  0x1f   : > { %s5789_s10 = scalar_select %p69_p8, %s5609_s17, %s71_s7  }
  0x20   : > { %s5792_s11 = scalar_select %p43_p10, %s5621_s20, %s45_s30  }
  0x21   : > { %6518 = sst [smem:[#allocation23_spill]] %s5789_s10  ;;  %p5796_p12 = por %p78_p9, %p53_p2 }
  0x22   : > { %6519 = sst [smem:[#allocation24_spill]] %s5792_s11  ;;  %p5802_p13 = por %p84_p11, %p5767_p6 }
  0x23   : > { %s96_s26 = sor.u32 %s68_s6, %s42_s9  ;;  %s99_s29 = sadd.s32 1, %s5597_s14 }
  0x24   : > { %s6521_s27 = scalar_select %p5802_p13, 1, 0 }
  0x25   : > { %p97_p0 = scmp.eq.s32.totalorder %s96_s26, 0  ;;  %p109_p1 = scmp.ne.s32.totalorder %s5597_s14, %s5593_s13 }
  0x26   : > { %s6522_s28 = sadd.s32 4294967295, %s5641_s25   ;;  %p115_p5 = scmp.ne.s32.totalorder %s5593_s13, %s5589_s12 }
  0x27   : > { %p110_p4 = scmp.eq.s32.totalorder %s6522_s28, 7  ;;  %s6525_s7 = sadd.s32 4294967294, %s5641_s25  }
  0x28   : > { %s5814_s15 = scalar_select %p97_p0, %s5597_s14, %s99_s29  }
  0x29   : > { %p5816_p8 = por %p110_p4, %p109_p1  ;;  %p116_p2 = scmp.eq.s32.totalorder %s6525_s7, 7 }
  0x2a   : > { %6523 = sst [smem:[#allocation25_spill]] %s5814_s15  ;;  %p4260_p6 = scmp.ge.s32.totalorder %s5641_s25, 8 }
  0x2b   : > { %s6524_s30 = scalar_select %p5816_p8, 1, 0 }
  0x2c   : > { %p5822_p9 = por %p116_p2, %p115_p5  ;;  %160 = sbr.rel (%p4260_p6) target bundleno = 92 (0x5c), region = 16 }
  0x2e   : > { %s6526_s5 = scalar_select %p5822_p9, 1, 0 }
  0x30   : > { %6527 = sst [smem:[#allocation26_spill]] %s6526_s5 }
  0x33   : > { %s164_s26 = sand.u32 1, %s5621_s20   ;;  %s4985_s28 = smul.u32 640, %s5637_s24 }
  0x34   : > { %s4984_s29 = smul.u32 160, %s164_s26  ;;  %s5643_s6 = smov 1280  }
  0x35   : > { %4988 = sst [smem:[#allocation11]] (%p5760_p3), %s5643_s6  ;;  %s5644_s12 = smov 640  }
  0x36   : > { %s4987_s9 = scalar_select %p5760_p3, [#allocation0], [#allocation12] }
  0x37   : > { %s6528_s0 = sld [smem:[#allocation27_spill]]  ;;  %s168_s14 = scalar_lea.vmem [#allocation2], %s4984_s29 }
  0x38   : > { %s179_s15 = sld [smem:[%s4987_s9]]   ;;  %s187_s5 = sshll.u32 %s168_s14, 4  ;;  %s188_s5 = int_to_ptr.vmem [resolvable:$true] %s187_s5 }
  0x39   : > { %4989 = sst [smem:[#allocation11 + $0x1]] (%p5760_p3), %s5644_s12  ;;  %s5645_s24 = smov 5  }
  0x3a   : > { %4990 = sst [smem:[#allocation11 + $0x2]] (%p5760_p3), %s5645_s24  ;;  %s5646_s20 = smov 128  }
  0x3b   : > { %4991 = sst [smem:[#allocation11 + $0x3]] (%p5760_p3), %s5646_s20  ;;  %s5647_s6 = smov 8  }
  0x3c   : > { %4992 = sst [smem:[#allocation11 + $0x4]] (%p5760_p3), %s5646_s20  ;;  %s165_s29 = scalar_lea.sflag [#allocation3], %s164_s26 }
  0x3d   : > { %s174_s10 = scalar_lea.hbm %s6528_s0, %s4985_s28  ;;  %4993 = sst [smem:[#allocation11 + $0x5]] (%p5760_p3), %s5647_s6 }
  0x3e   : > { %s4262_s11 = sshll.u32 %s179_s15, 26  ;;  %s5648_s9 = smov [#allocation10]  }
  0x3f   : > { %s4263_s28 = sadd.s32 134217728, %s4262_s11  ;;  %s210_s12 = sand.u32 1, %s5609_s17  }
  0x40   : > { %4994 = dma.general (%p5760_p3), %s174_s10, 2560, %s188_s5, %s165_s29, %s5648_s9, [#allocation11], %s4263_s28, 0  }
  0x41   : > { %s4265_s14 = sshll.u32 %s5633_s23, 6  ;;  %s4264_s24 = sshll.u32 %s210_s12, 11 }
  0x42   : > { %s5853_s3 = scalar_lea.hbm %s6493_s1, %s4265_s14  ;;  %s214_s20 = scalar_lea.vmem [#allocation5], %s4264_s24 }
  0x43   : > { %s220_s15 = sshll.u32 %s214_s20, 4  ;;  %s5857_s4 = scalar_lea.sflag [#allocation6], %s210_s12  ;;  %s5855_s15 = int_to_ptr.vmem [resolvable:$true] %s220_s15 }
  0x44   : > { %s5431_s10 = scalar_lea.hbm %s5853_s3, 32768  ;;  %s5435_s0 = scalar_lea.hbm %s6493_s1, 131072 }
  0x45   : > { %p5432_p3 = scmp.ne.s32.totalorder %s5853_s3, %s5431_s10  ;;  %p5436_p0 = scmp.lt.u32.totalorder %s5853_s3, %s6493_s1 }
  0x46   : > { %p5437_p1 = scmp.lt.u32.totalorder %s5435_s0, %s5431_s10  ;;  %p5439_p5 = scmp.lt.u32.totalorder %s5431_s10, %s5853_s3 }
  0x47   : > { %p5433_p10 = pnand %p5432_p3, %p5796_p12 }
  0x48   : > { %p5438_p4 = por %p5437_p1, %p5436_p0 }
  0x49   : > { %p5434_p11 = pneg %p5433_p10 }
  0x4a   : > { %p5440_p2 = por %p5439_p5, %p5438_p4 }
  0x4c   : > { %p5441_p6 = pnand %p5440_p2, %p5434_p11 }
  0x4e   : > { %5444 = shalt.err (!%p5441_p6)
}
  0x4f   : > { %s5445_s28 = scalar_lea.vmem %s5855_s15, 32768  ;;  %s5649_s29 = smov [#allocation5]  }
  0x50   : > { %p5446_p3 = scmp.ne.s32.totalorder %s5855_s15, %s5445_s28  ;;  %s5449_s9 = sshll.u32 %s5649_s29, 4  ;;  %s5450_s9 = int_to_ptr.vmem [resolvable:$false] %s5449_s9 }
  0x51   : > { %s5451_s12 = scalar_lea.vmem %s5450_s9, 65536  ;;  %p5452_p8 = scmp.lt.s32.totalorder %s5855_s15, %s5450_s9 }
  0x52   : > { %p5447_p10 = pnand %p5446_p3, %p5796_p12  ;;  %p5453_p13 = scmp.lt.s32.totalorder %s5451_s12, %s5445_s28 }
  0x54   : > { %p5448_p9 = pneg %p5447_p10  ;;  %p5454_p0 = por %p5453_p13, %p5452_p8 }
  0x56   : > { %p5455_p1 = pnand %p5454_p0, %p5448_p9 }
  0x58   : > { %5458 = shalt.err (!%p5455_p1)
}
  0x59   : > { %s5650_s14 = smov 256   ;;  %s5651_s24 = smov 64  }
  0x5a   : > { %s5652_s7 = smov 4  }
  0x5b   : > { %4995 = dma.hbm_to_vmem [thread:$0]  (%p5796_p12), %s5853_s3, 32768, %s5855_s15, %s5857_s4, %s5650_s14, %s5651_s24, %s5652_s7  }
  0x5c PF: > { %p4266_p11 = scmp.ge.s32.totalorder %s5641_s25, 1  ;;  %p228_p4 = scmp.lt.s32.totalorder %s5641_s25, 9 }
  0x5e   : > { %p229_p5 = pnand %p4266_p11, %p228_p4 }
  0x5f   : > { %s234_s20 = sand.u32 (!%p229_p5), 1, %s5617_s19  }
  0x60   : > { %232 = sbr.rel (%p229_p5) target bundleno = 639 (0x27f), region = 28  ;;  %s235_s5 = scalar_lea.sflag (!%p229_p5), [#allocation3], %s234_s20 }
  0x61   : > { %s4986_s10 = smul.u32 (!%p229_p5), 160, %s234_s20 }
  0x63   : > { %s5884_s26 = scalar_lea.vmem (!%p229_p5), [#allocation2], %s4986_s10 }
  0x67   : > { %5572 = dma.done.wait (%p5778_p7), %s235_s5, 2560  }
  0x68   : > { %5574 = vsyncadd (%p5778_p7), %s235_s5, 4294964736  ;;  %s243_s3 = sand.u32 1, %s5605_s16   ;;  %p6529_p12 = scmp.ne.s32.totalorder %s6521_s27, 0 }
  0x69   : > { %s4267_s18 = sshll.u32 %s243_s3, 11  ;;  %s244_s15 = scalar_lea.sflag [#allocation6], %s243_s3 }
  0x6a   : > { %s5891_s4 = scalar_lea.vmem [#allocation5], %s4267_s18 }
  0x6b   : > { %5576 = dma.done.wait (%p6529_p12), %s244_s15, 32768  }
  0x6c   : > { %5578 = vsyncadd (%p6529_p12), %s244_s15, 4294934528  ;;  %v5135_v0 = vld [vmem:[%s5891_s4 + $0x40] sm:$0xff]   ;;  %v5139_v4 = vld [vmem:[%s5891_s4 + $0x48] sm:$0xff]   ;;  %v5653_v24 = vmov 1983009808   ;;  %v690_v26 = vlaneseq  ;;  %s6372_s27 = sand.u32 1, %s5593_s13  }
  0x6d   : > { %v5136_v1 = vld [vmem:[%s5891_s4 + $0xc0] sm:$0xff]   ;;  %4632 = vmatprep.subr.bf16.mxu0 %v5135_v0  ;;  %v5140_v5 = vld [vmem:[%s5891_s4 + $0xc8] sm:$0xff]   ;;  %v5143_v8 = vld [vmem:[%s5891_s4 + $0x50] sm:$0xff]   ;;  %v688_v25 = vunpack.c.l.s4 %v5653_v24  ;;  %s4268_s8 = sshll.u32 %s6372_s27, 3  ;;  %s4626_s0 = sshll.u32 %s5629_s22, 3 }
  0x6e   : > { %v5137_v2 = vld [vmem:[%s5891_s4] sm:$0xff]   ;;  %4654 = vmatprep.subr.bf16.mxu1 %v5136_v1  ;;  %v5141_v6 = vld [vmem:[%s5891_s4 + $0x8] sm:$0xff]   ;;  %v5144_v9 = vld [vmem:[%s5891_s4 + $0xd0] sm:$0xff]   ;;  %v691_v32 = vshrl.u32 %v690_v26, 7  ;;  %s4096_s6 = sadd.s32 %s5625_s21, %s4626_s0  ;;  %s272_s11 = scalar_lea.vmem [#allocation7], %s4268_s8 }
  0x6f   : > { %v5138_v3 = vld [vmem:[%s5891_s4 + $0x80] sm:$0xff]   ;;  %4633 = vmatpush3.bf16.msra.mxu0 %v5137_v2  ;;  %v5142_v7 = vld [vmem:[%s5891_s4 + $0x88] sm:$0xff]   ;;  %v5145_v10 = vld [vmem:[%s5891_s4 + $0x10] sm:$0xff]   ;;  %v689_v31 = vunpack.c.0.s8 %v688_v25  ;;  %s4099_s28 = sshll.u32 %s272_s11, 4  ;;  %s4619_s29 = sshll.u32 %s4096_s6, 6  ;;  %s6377_s28 = int_to_ptr.vmem [resolvable:$true] %s4099_s28 }
  0x70   : > { %4655 = vmatpush3.bf16.msra.mxu1 %v5138_v3  ;;  %4634 = vmatprep.subr.bf16.mxu0 %v5139_v4  ;;  %v5146_v11 = vld [vmem:[%s5891_s4 + $0x90] sm:$0xff]   ;;  %v5147_v12 = vld [vmem:[%s5891_s4 + $0x58] sm:$0xff]   ;;  %v5151_v16 = vld [vmem:[%s5891_s4 + $0x60] sm:$0xff]   ;;  %s6382_s14 = scalar_lea.hbm %s6494_s2, %s4619_s29  ;;  %s4079_s24 = scalar_lea.sflag [#allocation4], %s6372_s27 }
  0x71   : > { %4656 = vmatprep.subr.bf16.mxu1 %v5140_v5  ;;  %v5148_v13 = vld [vmem:[%s5891_s4 + $0xd8] sm:$0xff]   ;;  %v5152_v17 = vld [vmem:[%s5891_s4 + $0xe0] sm:$0xff]   ;;  %v5155_v20 = vld [vmem:[%s5891_s4 + $0x68] sm:$0xff]   ;;  %v5929_v37 = vsub.s32 %v689_v31, %v691_v32  ;;  %s5459_s7 = scalar_lea.vmem %s6377_s28, 128  ;;  %p6530_p13 = scmp.ne.s32.totalorder %s6524_s30, 0 }
  0x72   : > { %v5149_v14 = vld [vmem:[%s5891_s4 + $0x18] sm:$0xff]   ;;  %v5153_v18 = vld [vmem:[%s5891_s4 + $0x20] sm:$0xff]   ;;  %v5156_v21 = vld [vmem:[%s5891_s4 + $0xe8] sm:$0xff]   ;;  %p5460_p7 = scmp.ne.s32.totalorder %s6377_s28, %s5459_s7  ;;  %s5654_s20 = smov [#allocation7]  }
  0x73   : > { %4635 = vmatpush3.bf16.msra.mxu0 %v5141_v6  ;;  %v5150_v15 = vld [vmem:[%s5891_s4 + $0x98] sm:$0xff]   ;;  %v5154_v19 = vld [vmem:[%s5891_s4 + $0xa0] sm:$0xff]   ;;  %v5157_v22 = vld [vmem:[%s5891_s4 + $0x28] sm:$0xff]   ;;  %s5463_s10 = sshll.u32 %s5654_s20, 4  ;;  %s5464_s10 = int_to_ptr.vmem [resolvable:$false] %s5463_s10 }
  0x74   : > { %4657 = vmatpush3.bf16.msra.mxu1 %v5142_v7  ;;  %4636 = vmatprep.subr.bf16.mxu0 %v5143_v8  ;;  %v5158_v23 = vld [vmem:[%s5891_s4 + $0xa8] sm:$0xff]   ;;  %v5159_v27 = vld [vmem:[%s5891_s4 + $0x70] sm:$0xff]   ;;  %v5163_v33 = vld [vmem:[%s5891_s4 + $0x78] sm:$0xff]   ;;  %p5461_p8 = pnand %p5460_p7, %p6530_p13  ;;  %s5465_s5 = scalar_lea.vmem %s5464_s10, 256 }
  0x75   : > { %4658 = vmatprep.subr.bf16.mxu1 %v5144_v9  ;;  %v5160_v28 = vld [vmem:[%s5891_s4 + $0xf0] sm:$0xff]   ;;  %v5164_v34 = vld [vmem:[%s5891_s4 + $0xf8] sm:$0xff]   ;;  %v282_v38 = vld [vmem:[%s5884_s26] sm:$0x77]  ;;  %p5466_p2 = scmp.lt.s32.totalorder %s6377_s28, %s5464_s10  ;;  %p5467_p6 = scmp.lt.s32.totalorder %s5465_s5, %s5459_s7 }
  0x76   : > { %v5161_v29 = vld [vmem:[%s5891_s4 + $0x30] sm:$0xff]   ;;  %v5165_v35 = vld [vmem:[%s5891_s4 + $0x38] sm:$0xff]   ;;  %v283_v39 = vld [vmem:[%s5884_s26 + $0x8] sm:$0x77]  ;;  %v4285_v42 = vcombine.low %v282_v38, %v282_v38  ;;  %v4286_v43 = vcombine.high %v282_v38, %v282_v38  ;;  %v693_v51 = vrot.slane %v282_v38, %v5929_v37  ;;  %p5462_p9 = pneg %p5461_p8 }
  0x77   : > { %4637 = vmatpush3.bf16.msra.mxu0 %v5145_v10  ;;  %v5162_v30 = vld [vmem:[%s5891_s4 + $0xb0] sm:$0xff]   ;;  %v5166_v36 = vld [vmem:[%s5891_s4 + $0xb8] sm:$0xff]   ;;  %v4287_v44 = vcombine.low %v283_v39, %v283_v39  ;;  %v4288_v45 = vcombine.high %v283_v39, %v283_v39  ;;  %v5175_v50 = vld [vmem:[%s5891_s4 + $0x140] sm:$0xff]   ;;  %v5938_v52 = vrot.slane %v283_v39, %v5929_v37  ;;  %p5468_p3 = por %p5467_p6, %p5466_p2 }
  0x78   : > { %4659 = vmatpush3.bf16.msra.mxu1 %v5146_v11  ;;  %4638 = vmatprep.subr.bf16.mxu0 %v5147_v12  ;;  %v284_v40 = vld [vmem:[%s5884_s26 + $0x10] sm:$0x77]  ;;  %v285_v41 = vld [vmem:[%s5884_s26 + $0x18] sm:$0x77]  ;;  %v5176_v55 = vld [vmem:[%s5891_s4 + $0x1c0] sm:$0xff]   ;;  %v326_v56 = vshrl.u32 %v4285_v42, 16 }
  0x79   : > { %4660 = vmatprep.subr.bf16.mxu1 %v5148_v13  ;;  %v4289_v46 = vcombine.low %v284_v40, %v284_v40  ;;  %v4290_v47 = vcombine.high %v284_v40, %v284_v40  ;;  %v4291_v48 = vcombine.low %v285_v41, %v285_v41  ;;  %v4292_v49 = vcombine.high %v285_v41, %v285_v41  ;;  %v5177_v24 = vld [vmem:[%s5891_s4 + $0x100] sm:$0xff]   ;;  %v5181_v38 = vld [vmem:[%s5891_s4 + $0x108] sm:$0xff]   ;;  %v5183_v39 = vld [vmem:[%s5891_s4 + $0x150] sm:$0xff]   ;;  %p5469_p10 = pnand %p5468_p3, %p5462_p9 }
  0x7a   : > { %v5941_v53 = vrot.slane %v284_v40, %v5929_v37  ;;  %v5944_v54 = vrot.slane %v285_v41, %v5929_v37  ;;  %v328_v57 = vshll.u32 %v4285_v42, 16  ;;  %v333_v58 = vshrl.u32 %v4286_v43, 16 }
  0x7b   : > { %4639 = vmatpush3.bf16.msra.mxu0 %v5149_v14  ;;  %v335_v59 = vshll.u32 %v4286_v43, 16  ;;  %v4325_v60 = vcombine.low %v693_v51, %v5938_v52  ;;  %v340_v62 = vshrl.u32 %v4287_v44, 16  ;;  %v342_v63 = vshll.u32 %v4287_v44, 16  ;;  %v5185_v44 = vld [vmem:[%s5891_s4 + $0x110] sm:$0xff]  }
  0x7c   : > { %4661 = vmatpush3.bf16.msra.mxu1 %v5150_v15  ;;  %4640 = vmatprep.subr.bf16.mxu0 %v5151_v16  ;;  %v4327_v61 = vcombine.low %v5941_v53, %v5944_v54  ;;  %v330_v0 = vrot.slane %v328_v57, 1  ;;  %v347_v2 = vshrl.u32 %v4288_v45, 16  ;;  %v349_v3 = vshll.u32 %v4288_v45, 16  ;;  %v5187_v45 = vld [vmem:[%s5891_s4 + $0x158] sm:$0xff]   ;;  %v5180_v57 = vld [vmem:[%s5891_s4 + $0x1c8] sm:$0xff]  }
  0x7d   : > { %4662 = vmatprep.subr.bf16.mxu1 %v5152_v17  ;;  %v337_v1 = vrot.slane %v335_v59, 1  ;;  %v1547_v4 = vrot.slane %v4325_v60, %v5929_v37  ;;  %v344_v6 = vrot.slane %v342_v63, 1  ;;  %v354_v7 = vshrl.u32 %v4289_v46, 16  ;;  %v5195_v59 = vld [vmem:[%s5891_s4 + $0x168] sm:$0xff]  }
  0x7e   : > { %v1561_v5 = vrot.slane %v4327_v61, %v5929_v37  ;;  %v331_v8 = vor.u32 %v330_v0, %v326_v56  ;;  %v351_v10 = vrot.slane %v349_v3, 1  ;;  %v356_v11 = vshll.u32 %v4289_v46, 16  ;;  %v5178_v56 = vld [vmem:[%s5891_s4 + $0x180] sm:$0xff]   ;;  %v5182_v60 = vld [vmem:[%s5891_s4 + $0x188] sm:$0xff]   ;;  %v5184_v61 = vld [vmem:[%s5891_s4 + $0x1d0] sm:$0xff]  }
  0x7f   : > { %4641 = vmatpush3.bf16.msra.mxu0 %v5153_v18  ;;  %v338_v9 = vor.u32 %v337_v1, %v333_v58  ;;  %v345_v13 = vor.u32 %v344_v6, %v340_v62  ;;  %v361_v14 = vshrl.u32 %v4290_v47, 16  ;;  %v363_v15 = vshll.u32 %v4290_v47, 16  ;;  %v5193_v58 = vld [vmem:[%s5891_s4 + $0x120] sm:$0xff]   ;;  %v5186_v62 = vld [vmem:[%s5891_s4 + $0x190] sm:$0xff]   ;;  %v5197_v63 = vld [vmem:[%s5891_s4 + $0x128] sm:$0xff]  }
  0x80   : > { %4663 = vmatpush3.bf16.msra.mxu1 %v5154_v19  ;;  %4642 = vmatprep.subr.bf16.mxu0 %v5155_v20  ;;  %v1570_v12 = vcombine.high %v1547_v4, %v1561_v5  ;;  %v352_v16 = vor.u32 %v351_v10, %v347_v2  ;;  %v358_v17 = vrot.slane %v356_v11, 1  ;;  %v368_v18 = vshrl.u32 %v4291_v48, 16  ;;  %v5199_v0 = vld [vmem:[%s5891_s4 + $0x170] sm:$0xff]   ;;  %v5188_v1 = vld [vmem:[%s5891_s4 + $0x1d8] sm:$0xff]   ;;  %v5192_v10 = vld [vmem:[%s5891_s4 + $0x1e0] sm:$0xff]  }
  0x81   : > { %4664 = vmatprep.subr.bf16.mxu1 %v5156_v21  ;;  %v370_v19 = vshll.u32 %v4291_v48, 16  ;;  %v365_v20 = vrot.slane %v363_v15, 1  ;;  %v375_v21 = vshrl.u32 %v4292_v49, 16  ;;  %v5201_v2 = vld [vmem:[%s5891_s4 + $0x130] sm:$0xff]   ;;  %v5203_v3 = vld [vmem:[%s5891_s4 + $0x178] sm:$0xff]  }
  0x82   : > { %3425 = vmatprep.mubr.bf16.mxu0 %v1570_v12  ;;  %v359_v25 = vor.u32 %v358_v17, %v354_v7  ;;  %v5190_v6 = vld [vmem:[%s5891_s4 + $0x198] sm:$0xff]   ;;  %v5194_v17 = vld [vmem:[%s5891_s4 + $0x1a0] sm:$0xff]  }
  0x83   : > { %4643 = vmatpush3.bf16.msra.mxu0 %v5157_v22  ;;  %v377_v22 = vshll.u32 %v4292_v49, 16  ;;  %v372_v26 = vrot.slane %v370_v19, 1  ;;  %v5189_v49 = vld [vmem:[%s5891_s4 + $0x118] sm:$0xff]  }
  0x84   : > { %4665 = vmatpush3.bf16.msra.mxu1 %v5158_v23  ;;  %4644 = vmatprep.subr.bf16.mxu0 %v5159_v27  ;;  %v686_v23 = vcombine.low %v331_v8, %v338_v9  ;;  %v703_v27 = vcombine.low %v345_v13, %v352_v16  ;;  %v5205_v11 = vld [vmem:[%s5891_s4 + $0x138] sm:$0xff]  }
  0x85   : > { %4666 = vmatprep.subr.bf16.mxu1 %v5160_v28  ;;  %v1569_v28 = vcombine.low %v1547_v4, %v1561_v5  ;;  %v379_v31 = vrot.slane %v377_v22, 1  ;;  %v4329_v4 = vcombine.low %v5938_v52, %v5941_v53  ;;  %v286_v5 = vld [vmem:[%s5884_s26 + $0x20] sm:$0x77] }
  0x86   : > { %v700_v32 = vrot.slane %v686_v23, %v5929_v37  ;;  %v4293_v7 = vcombine.low %v286_v5, %v286_v5  ;;  %v4294_v8 = vcombine.high %v286_v5, %v286_v5  ;;  %v965_v9 = vrot.slane %v286_v5, %v5929_v37 }
  0x87   : > { %4645 = vmatpush3.bf16.msra.mxu0 %v5161_v29  ;;  %v5179_v29 = vld [vmem:[%s5891_s4 + $0x148] sm:$0xff]   ;;  %v1583_v13 = vrot.slane %v4329_v4, %v5929_v37 }
  0x88   : > { %4667 = vmatpush3.bf16.msra.mxu1 %v5162_v30  ;;  %4646 = vmatprep.subr.bf16.mxu0 %v5163_v33  ;;  %v366_v30 = vor.u32 %v365_v20, %v361_v14  ;;  %v373_v33 = vor.u32 %v372_v26, %v368_v18  ;;  %v4331_v12 = vcombine.low %v5944_v54, %v965_v9  ;;  %v387_v52 = vshrl.u32 %v4293_v7, 16  ;;  %v5209_v14 = vld [vmem:[%s5891_s4 + $0x240] sm:$0xff]   ;;  %v5196_v20 = vld [vmem:[%s5891_s4 + $0x1e8] sm:$0xff]  }
  0x89   : > { %4668 = vmatprep.subr.bf16.mxu1 %v5164_v34  ;;  %v5956_v34 = vrot.slane %v703_v27, %v5929_v37  ;;  %v389_v53 = vshll.u32 %v4293_v7, 16  ;;  %v394_v15 = vshrl.u32 %v4294_v8, 16  ;;  %v396_v16 = vshll.u32 %v4294_v8, 16  ;;  %v5213_v26 = vld [vmem:[%s5891_s4 + $0x248] sm:$0xff]   ;;  %v5226_v7 = vld [vmem:[%s5891_s4 + $0x2e0] sm:$0xff]  }
  0x8a   : > { %v1597_v18 = vrot.slane %v4331_v12, %v5929_v37  ;;  %v5198_v27 = vld [vmem:[%s5891_s4 + $0x1a8] sm:$0xff]   ;;  %v5239_v12 = vld [vmem:[%s5891_s4 + $0x238] sm:$0xff]  }
  0x8b   : > { %4647 = vmatpush3.bf16.msra.mxu0 %v5165_v35  ;;  %v380_v35 = vor.u32 %v379_v31, %v375_v21  ;;  %v4326_v42 = vcombine.low %v700_v32, %v5956_v34  ;;  %v391_v19 = vrot.slane %v389_v53, 1  ;;  %v398_v54 = vrot.slane %v396_v16, 1  ;;  %v5215_v31 = vld [vmem:[%s5891_s4 + $0x208] sm:$0xff]  }
  0x8c   : > { %4669 = vmatpush3.bf16.msra.mxu1 %v5166_v36  ;;  %4676 = vmatprep.subr.bf16.mxu0 %v5175_v50  ;;  %v822_v36 = vcombine.low %v359_v25, %v366_v30  ;;  %v5191_v50 = vld [vmem:[%s5891_s4 + $0x160] sm:$0xff]   ;;  %v1606_v21 = vcombine.high %v1583_v13, %v1597_v18  ;;  %v1605_v23 = vcombine.low %v1583_v13, %v1597_v18 }
  0x8d   : > { %4698 = vmatprep.subr.bf16.mxu1 %v5176_v55  ;;  %v890_v41 = vcombine.low %v373_v33, %v380_v35  ;;  %v1554_v47 = vrot.slane %v4326_v42, %v5929_v37  ;;  %v392_v22 = vor.u32 %v391_v19, %v387_v52  ;;  %v399_v25 = vor.u32 %v398_v54, %v394_v15  ;;  %v5217_v33 = vld [vmem:[%s5891_s4 + $0x250] sm:$0xff]   ;;  %v5206_v42 = vld [vmem:[%s5891_s4 + $0x1b8] sm:$0xff]   ;;  %v5249_v19 = vld [vmem:[%s5891_s4 + $0x340] sm:$0xff]  }
  0x8e   : > { %3426 = vmatmul.mubr.bf16.vlgmr.msra.gmra.mrb[0].mxu0 %v1569_v28  ;;  %v5961_v40 = vrot.slane %v822_v36, %v5929_v37  ;;  %v5200_v28 = vld [vmem:[%s5891_s4 + $0x1f0] sm:$0xff]   ;;  %v5204_v36 = vld [vmem:[%s5891_s4 + $0x1f8] sm:$0xff]  }
  0x8f   : > { %4677 = vmatpush3.bf16.msra.mxu0 %v5177_v24  ;;  %v5965_v43 = vrot.slane %v890_v41, %v5929_v37  ;;  %v5211_v24 = vld [vmem:[%s5891_s4 + $0x200] sm:$0xff]   ;;  %3507 = vmatprep.mubr.bf16.mxu0 %v1606_v21  ;;  %v5202_v35 = vld [vmem:[%s5891_s4 + $0x1b0] sm:$0xff]   ;;  %v5221_v41 = vld [vmem:[%s5891_s4 + $0x258] sm:$0xff]  }
  0x90   : > { %4678 = vmatprep.subr.bf16.mxu0 %v5179_v29  ;;  %v958_v29 = vcombine.low %v392_v22, %v399_v25  ;;  %v4330_v30 = vcombine.low %v5956_v34, %v5961_v40  ;;  %v5219_v34 = vld [vmem:[%s5891_s4 + $0x210] sm:$0xff]  }
  0x91   : > { %v4328_v46 = vcombine.low %v5961_v40, %v5965_v43 }
  0x92   : > { %v972_v32 = vrot.slane %v958_v29, %v5929_v37  ;;  %v5232_v29 = vld [vmem:[%s5891_s4 + $0x2a8] sm:$0xff]  }
  0x93   : > { %4679 = vmatpush3.bf16.msra.mxu0 %v5181_v38  ;;  %v1568_v48 = vrot.slane %v4328_v46, %v5929_v37 }
  0x94   : > { %4680 = vmatprep.subr.bf16.mxu0 %v5183_v39  ;;  %v4332_v38 = vcombine.low %v5965_v43, %v972_v32  ;;  %v1590_v39 = vrot.slane %v4330_v30, %v5929_v37  ;;  %v5223_v43 = vld [vmem:[%s5891_s4 + $0x218] sm:$0xff]  }
  0x95   : > { %v1572_v51 = vcombine.high %v1554_v47, %v1568_v48  ;;  %v1571_v55 = vcombine.low %v1554_v47, %v1568_v48  ;;  %v5225_v47 = vld [vmem:[%s5891_s4 + $0x260] sm:$0xff]  }
  0x96   : > { %v1604_v40 = vrot.slane %v4332_v38, %v5929_v37  ;;  %v5212_v48 = vld [vmem:[%s5891_s4 + $0x280] sm:$0xff]  }
  0x97   : > { %4681 = vmatpush3.bf16.msra.mxu0 %v5185_v44  ;;  %3466 = vmatprep.mubr.bf16.mxu1 %v1572_v51  ;;  %v5229_v51 = vld [vmem:[%s5891_s4 + $0x268] sm:$0xff]  }
  0x98   : > { %4682 = vmatprep.subr.bf16.mxu0 %v5187_v45  ;;  %3467 = vmatmul.mubr.bf16.vlgmr.msra.gmra.mrb[0].mxu1 %v1571_v55  ;;  %v1608_v44 = vcombine.high %v1590_v39, %v1604_v40  ;;  %v5210_v45 = vld [vmem:[%s5891_s4 + $0x2c0] sm:$0xff]   ;;  %v1607_v46 = vcombine.low %v1590_v39, %v1604_v40  ;;  %v5216_v55 = vld [vmem:[%s5891_s4 + $0x288] sm:$0xff]  }
  0x99   : > { %4699 = vmatpush3.bf16.msra.mxu1 %v5178_v56  ;;  %v5218_v56 = vld [vmem:[%s5891_s4 + $0x2d0] sm:$0xff]  }
  0x9a   : > { %4700 = vmatprep.subr.bf16.mxu1 %v5180_v57  ;;  %3548 = vmatprep.mubr.bf16.mxu1 %v1608_v44  ;;  %v5231_v57 = vld [vmem:[%s5891_s4 + $0x228] sm:$0xff]  }
  0x9b   : > { %4683 = vmatpush3.bf16.msra.mxu0 %v5189_v49  ;;  %v5214_v49 = vld [vmem:[%s5891_s4 + $0x2c8] sm:$0xff]  }
  0x9c   : > { %4684 = vmatprep.subr.bf16.mxu0 %v5191_v50  ;;  %v5227_v50 = vld [vmem:[%s5891_s4 + $0x220] sm:$0xff]  }
  0x9d   : > { %4701 = vmatpush3.bf16.msra.mxu1 %v5182_v60  ;;  %v5222_v60 = vld [vmem:[%s5891_s4 + $0x2d8] sm:$0xff]  }
  0x9e   : > { %4702 = vmatprep.subr.bf16.mxu1 %v5184_v61  ;;  %v5224_v61 = vld [vmem:[%s5891_s4 + $0x298] sm:$0xff]  }
  0x9f   : > { %4685 = vmatpush3.bf16.msra.mxu0 %v5193_v58  ;;  %v5233_v58 = vld [vmem:[%s5891_s4 + $0x270] sm:$0xff]  }
  0xa0   : > { %4686 = vmatprep.subr.bf16.mxu0 %v5195_v59  ;;  %v5220_v59 = vld [vmem:[%s5891_s4 + $0x290] sm:$0xff]  }
  0xa1   : > { %4703 = vmatpush3.bf16.msra.mxu1 %v5186_v62  ;;  %v5235_v62 = vld [vmem:[%s5891_s4 + $0x230] sm:$0xff]  }
  0xa2   : > { %4704 = vmatprep.subr.bf16.mxu1 %v5188_v1  ;;  %v4271_v1 = vld [vmem:[%s5884_s26 + $0x30] sm:$0x77] }
  0xa3   : > { %4687 = vmatpush3.bf16.msra.mxu0 %v5197_v63  ;;  %v5237_v63 = vld [vmem:[%s5891_s4 + $0x278] sm:$0xff]   ;;  %v4297_v8 = vcombine.low %v4271_v1, %v4271_v1  ;;  %v4298_v9 = vcombine.high %v4271_v1, %v4271_v1  ;;  %v6045_v53 = vrot.slane %v4271_v1, %v5929_v37 }
  0xa4   : > { %4688 = vmatprep.subr.bf16.mxu0 %v5199_v0  ;;  %v4270_v0 = vld [vmem:[%s5884_s26 + $0x28] sm:$0x77] }
  0xa5   : > { %4705 = vmatpush3.bf16.msra.mxu1 %v5190_v6  ;;  %v4295_v4 = vcombine.low %v4270_v0, %v4270_v0  ;;  %v4296_v5 = vcombine.high %v4270_v0, %v4270_v0  ;;  %v727_v6 = vrot.slane %v4270_v0, %v5929_v37  ;;  %v435_v22 = vshrl.u32 %v4297_v8, 16 }
  0xa6   : > { %4706 = vmatprep.subr.bf16.mxu1 %v5192_v10 }
  0xa7   : > { %4689 = vmatpush3.bf16.msra.mxu0 %v5201_v2  ;;  %v4272_v2 = vld [vmem:[%s5884_s26 + $0x38] sm:$0x77]  ;;  %v421_v16 = vshrl.u32 %v4295_v4, 16  ;;  %v428_v18 = vshrl.u32 %v4296_v5, 16  ;;  %v4333_v54 = vcombine.low %v727_v6, %v6045_v53  ;;  %v430_v21 = vshll.u32 %v4296_v5, 16 }
  0xa8   : > { %4690 = vmatprep.subr.bf16.mxu0 %v5203_v3  ;;  %v4273_v3 = vld [vmem:[%s5884_s26 + $0x40] sm:$0x77]  ;;  %v4299_v10 = vcombine.low %v4272_v2, %v4272_v2 }
  0xa9   : > { %4707 = vmatpush3.bf16.msra.mxu1 %v5194_v17  ;;  %v6040_v13 = vcombine.low %v4273_v3, %v4273_v3  ;;  %v6042_v52 = vcombine.high %v4273_v3, %v4273_v3  ;;  %v6051_v15 = vrot.slane %v4273_v3, %v5929_v37  ;;  %v423_v17 = vshll.u32 %v4295_v4, 16 }
  0xaa   : > { %4708 = vmatprep.subr.bf16.mxu1 %v5196_v20  ;;  %v5228_v20 = vld [vmem:[%s5891_s4 + $0x2a0] sm:$0xff]   ;;  %v1619_v30 = vrot.slane %v4333_v54, %v5929_v37  ;;  %v5263_v54 = vld [vmem:[%s5891_s4 + $0x318] sm:$0xff]  }
  0xab   : > { %4691 = vmatpush3.bf16.msra.mxu0 %v5205_v11  ;;  %v4300_v11 = vcombine.high %v4272_v2, %v4272_v2 }
  0xac   : > { %4720 = vmatprep.subr.bf16.mxu0 %v5209_v14  ;;  %v6048_v14 = vrot.slane %v4272_v2, %v5929_v37 }
  0xad   : > { %4709 = vmatpush3.bf16.msra.mxu1 %v5198_v27  ;;  %v442_v27 = vshrl.u32 %v4298_v9, 16  ;;  %v458_v44 = vshll.u32 %v4300_v11, 16 }
  0xae   : > { %3508 = vmatmul.mubr.bf16.vlgmr.msra.gmra.mrb[4].mxu0 %v1605_v23  ;;  %4710 = vmatprep.subr.bf16.mxu1 %v5200_v28  ;;  %v437_v23 = vshll.u32 %v4297_v8, 16  ;;  %v4335_v25 = vcombine.low %v6048_v14, %v6051_v15  ;;  %v444_v28 = vshll.u32 %v4298_v9, 16  ;;  %v5257_v8 = vld [vmem:[%s5891_s4 + $0x350] sm:$0xff]   ;;  %v5240_v9 = vld [vmem:[%s5891_s4 + $0x2b8] sm:$0xff]  }
  0xaf   : > { %4721 = vmatpush3.bf16.msra.mxu0 %v5211_v24  ;;  %v5230_v24 = vld [vmem:[%s5891_s4 + $0x2e8] sm:$0xff]  }
  0xb0   : > { %4722 = vmatprep.subr.bf16.mxu0 %v5213_v26  ;;  %v425_v26 = vrot.slane %v423_v17, 1  ;;  %v439_v32 = vrot.slane %v437_v23, 1  ;;  %v446_v39 = vrot.slane %v444_v28, 1  ;;  %v5261_v17 = vld [vmem:[%s5891_s4 + $0x358] sm:$0xff]   ;;  %v5256_v28 = vld [vmem:[%s5891_s4 + $0x388] sm:$0xff]  }
  0xb1   : > { %4711 = vmatpush3.bf16.msra.mxu1 %v5202_v35  ;;  %v5234_v35 = vld [vmem:[%s5891_s4 + $0x2f0] sm:$0xff]  }
  0xb2   : > { %4712 = vmatprep.subr.bf16.mxu1 %v5204_v36  ;;  %v1633_v36 = vrot.slane %v4335_v25, %v5929_v37  ;;  %v426_v38 = vor.u32 %v425_v26, %v421_v16  ;;  %v5259_v16 = vld [vmem:[%s5891_s4 + $0x310] sm:$0xff]   ;;  %v5254_v25 = vld [vmem:[%s5891_s4 + $0x3c8] sm:$0xff]   ;;  %v5267_v26 = vld [vmem:[%s5891_s4 + $0x320] sm:$0xff]  }
  0xb3   : > { %4723 = vmatpush3.bf16.msra.mxu0 %v5215_v31  ;;  %v432_v31 = vrot.slane %v430_v21, 1  ;;  %v5265_v21 = vld [vmem:[%s5891_s4 + $0x360] sm:$0xff]  }
  0xb4   : > { %4724 = vmatprep.subr.bf16.mxu0 %v5217_v33  ;;  %v449_v33 = vshrl.u32 %v4299_v10, 16 }
  0xb5   : > { %4713 = vmatpush3.bf16.msra.mxu1 %v5206_v42  ;;  %v433_v40 = vor.u32 %v432_v31, %v428_v18  ;;  %v456_v42 = vshrl.u32 %v4300_v11, 16  ;;  %v5273_v31 = vld [vmem:[%s5891_s4 + $0x370] sm:$0xff]  }
  0xb6   : > { %4742 = vmatprep.subr.bf16.mxu1 %v5210_v45  ;;  %v1642_v45 = vcombine.high %v1619_v30, %v1633_v36 }
  0xb7   : > { %4725 = vmatpush3.bf16.msra.mxu0 %v5219_v34  ;;  %v451_v34 = vshll.u32 %v4299_v10, 16 }
  0xb8   : > { %4726 = vmatprep.subr.bf16.mxu0 %v5221_v41  ;;  %3549 = vmatmul.mubr.bf16.vlgmr.msra.gmra.mrb[4].mxu1 %v1607_v46  ;;  %v440_v41 = vor.u32 %v439_v32, %v435_v22  ;;  %v5260_v32 = vld [vmem:[%s5891_s4 + $0x390] sm:$0xff]  }
  0xb9   : > { %4743 = vmatpush3.bf16.msra.mxu1 %v5212_v48  ;;  %v453_v46 = vrot.slane %v451_v34, 1  ;;  %v460_v48 = vrot.slane %v458_v44, 1  ;;  %3589 = vmatprep.mubr.bf16.mxu0 %v1642_v45  ;;  %v5264_v34 = vld [vmem:[%s5891_s4 + $0x398] sm:$0xff]   ;;  %v5266_v44 = vld [vmem:[%s5891_s4 + $0x3e0] sm:$0xff]  }
  0xba   : > { %4744 = vmatprep.subr.bf16.mxu1 %v5214_v49  ;;  %v465_v49 = vshll.u32 %v6040_v13, 16  ;;  %v5268_v45 = vld [vmem:[%s5891_s4 + $0x3a0] sm:$0xff]  }
  0xbb   : > { %4727 = vmatpush3.bf16.msra.mxu0 %v5223_v43  ;;  %v447_v43 = vor.u32 %v446_v39, %v442_v27  ;;  %v5269_v27 = vld [vmem:[%s5891_s4 + $0x368] sm:$0xff]  }
  0xbc   : > { %4728 = vmatprep.subr.bf16.mxu0 %v5225_v47  ;;  %v463_v47 = vshrl.u32 %v6040_v13, 16  ;;  %v467_v0 = vrot.slane %v465_v49, 1  ;;  %v5250_v13 = vld [vmem:[%s5891_s4 + $0x3c0] sm:$0xff]   ;;  %v4274_v39 = vld [vmem:[%s5884_s26 + $0x48] sm:$0x77] }
  0xbd   : > { %4745 = vmatpush3.bf16.msra.mxu1 %v5216_v55  ;;  %v5251_v55 = vld [vmem:[%s5891_s4 + $0x300] sm:$0xff]  }
  0xbe   : > { %4746 = vmatprep.subr.bf16.mxu1 %v5218_v56  ;;  %v5253_v56 = vld [vmem:[%s5891_s4 + $0x348] sm:$0xff]   ;;  %v468_v4 = vor.u32 %v467_v0, %v463_v47  ;;  %v5274_v0 = vld [vmem:[%s5891_s4 + $0x3f0] sm:$0xff]  }
  0xbf   : > { %4729 = vmatpush3.bf16.msra.mxu0 %v5227_v50  ;;  %v470_v50 = vshrl.u32 %v6042_v52, 16 }
  0xc0   : > { %4730 = vmatprep.subr.bf16.mxu0 %v5229_v51  ;;  %v472_v51 = vshll.u32 %v6042_v52, 16 }
  0xc1   : > { %4747 = vmatpush3.bf16.msra.mxu1 %v5220_v59  ;;  %v737_v59 = vcombine.low %v440_v41, %v447_v43  ;;  %v4304_v41 = vcombine.high %v4274_v39, %v4274_v39  ;;  %v5279_v43 = vld [vmem:[%s5891_s4 + $0x338] sm:$0xff]  }
  0xc2   : > { %4748 = vmatprep.subr.bf16.mxu1 %v5222_v60  ;;  %v1641_v60 = vcombine.low %v1619_v30, %v1633_v36  ;;  %v474_v1 = vrot.slane %v472_v51, 1  ;;  %v5271_v30 = vld [vmem:[%s5891_s4 + $0x328] sm:$0xff]   ;;  %v4337_v36 = vcombine.low %v6045_v53, %v6048_v14 }
  0xc3   : > { %4731 = vmatpush3.bf16.msra.mxu0 %v5231_v57  ;;  %v454_v57 = vor.u32 %v453_v46, %v449_v33  ;;  %v6073_v3 = vrot.slane %v737_v59, %v5929_v37  ;;  %v5262_v33 = vld [vmem:[%s5891_s4 + $0x3d8] sm:$0xff]   ;;  %v489_v49 = vshrl.u32 %v4304_v41, 16  ;;  %v5270_v51 = vld [vmem:[%s5891_s4 + $0x3e8] sm:$0xff]  }
  0xc4   : > { %4732 = vmatprep.subr.bf16.mxu0 %v5233_v58  ;;  %v720_v58 = vcombine.low %v426_v38, %v433_v40  ;;  %v475_v5 = vor.u32 %v474_v1, %v470_v50  ;;  %v5277_v38 = vld [vmem:[%s5891_s4 + $0x378] sm:$0xff]   ;;  %v4303_v40 = vcombine.low %v4274_v39, %v4274_v39  ;;  %v1655_v53 = vrot.slane %v4337_v36, %v5929_v37  ;;  %v4277_v36 = vld [vmem:[%s5884_s26 + $0x60] sm:$0x77] }
  0xc5   : > { %4749 = vmatpush3.bf16.msra.mxu1 %v5224_v61  ;;  %v5236_v61 = vld [vmem:[%s5891_s4 + $0x2b0] sm:$0xff]   ;;  %v491_v50 = vshll.u32 %v4304_v41, 16 }
  0xc6   : > { %4750 = vmatprep.subr.bf16.mxu1 %v5226_v7  ;;  %v734_v2 = vrot.slane %v720_v58, %v5929_v37  ;;  %v5255_v7 = vld [vmem:[%s5891_s4 + $0x308] sm:$0xff]   ;;  %v907_v11 = vcombine.low %v468_v4, %v475_v5  ;;  %v482_v14 = vshrl.u32 %v4303_v40, 16  ;;  %v484_v47 = vshll.u32 %v4303_v40, 16  ;;  %v5285_v58 = vld [vmem:[%s5891_s4 + $0x400] sm:$0xff]  }
  0xc7   : > { %4733 = vmatpush3.bf16.msra.mxu0 %v5235_v62  ;;  %v5238_v62 = vld [vmem:[%s5891_s4 + $0x2f8] sm:$0xff]   ;;  %v5289_v4 = vld [vmem:[%s5891_s4 + $0x408] sm:$0xff]  }
  0xc8   : > { %4734 = vmatprep.subr.bf16.mxu0 %v5237_v63  ;;  %v461_v63 = vor.u32 %v460_v48, %v456_v42  ;;  %v6084_v52 = vrot.slane %v907_v11, %v5929_v37  ;;  %v982_v42 = vrot.slane %v4274_v39, %v5929_v37  ;;  %v5283_v48 = vld [vmem:[%s5891_s4 + $0x440] sm:$0xff]  }
  0xc9   : > { %4751 = vmatpush3.bf16.msra.mxu1 %v5228_v20 }
  0xca   : > { %4752 = vmatprep.subr.bf16.mxu1 %v5230_v24  ;;  %v839_v6 = vcombine.low %v454_v57, %v461_v63  ;;  %v5252_v24 = vld [vmem:[%s5891_s4 + $0x380] sm:$0xff]   ;;  %v4339_v46 = vcombine.low %v6051_v15, %v982_v42  ;;  %v493_v57 = vrot.slane %v491_v50, 1  ;;  %v5272_v63 = vld [vmem:[%s5891_s4 + $0x3a8] sm:$0xff]  }
  0xcb   : > { %4735 = vmatpush3.bf16.msra.mxu0 %v5239_v12  ;;  %v4334_v12 = vcombine.low %v734_v2, %v6073_v3  ;;  %v5302_v42 = vld [vmem:[%s5891_s4 + $0x4a0] sm:$0xff]  }
  0xcc   : > { %4764 = vmatprep.subr.bf16.mxu0 %v5249_v19  ;;  %v6079_v10 = vrot.slane %v839_v6, %v5929_v37  ;;  %v5291_v6 = vld [vmem:[%s5891_s4 + $0x450] sm:$0xff]   ;;  %v5323_v50 = vld [vmem:[%s5891_s4 + $0x540] sm:$0xff]  }
  0xcd   : > { %4753 = vmatpush3.bf16.msra.mxu1 %v5232_v29  ;;  %v1626_v19 = vrot.slane %v4334_v12, %v5929_v37  ;;  %v5258_v29 = vld [vmem:[%s5891_s4 + $0x3d0] sm:$0xff]   ;;  %v5295_v12 = vld [vmem:[%s5891_s4 + $0x458] sm:$0xff]  }
  0xce   : > { %4754 = vmatprep.subr.bf16.mxu1 %v5234_v35  ;;  %3590 = vmatmul.mubr.bf16.vlgmr.msra.gmra.mrb[8].mxu0 %v1641_v60  ;;  %v4336_v18 = vcombine.low %v6079_v10, %v6084_v52  ;;  %v5275_v35 = vld [vmem:[%s5891_s4 + $0x330] sm:$0xff]   ;;  %v4338_v2 = vcombine.low %v6073_v3, %v6079_v10 }
  0xcf   : > { %4765 = vmatpush3.bf16.msra.mxu0 %v5251_v55  ;;  %v1669_v55 = vrot.slane %v4339_v46, %v5929_v37  ;;  %v5293_v3 = vld [vmem:[%s5891_s4 + $0x410] sm:$0xff]  }
  0xd0   : > { %4766 = vmatprep.subr.bf16.mxu0 %v5253_v56  ;;  %v1640_v20 = vrot.slane %v4336_v18, %v5929_v37  ;;  %v486_v56 = vrot.slane %v484_v47, 1  ;;  %v1662_v11 = vrot.slane %v4338_v2, %v5929_v37 }
  0xd1   : > { %4755 = vmatpush3.bf16.msra.mxu1 %v5236_v61  ;;  %v1678_v15 = vcombine.high %v1655_v53, %v1669_v55  ;;  %v1677_v60 = vcombine.low %v1655_v53, %v1669_v55  ;;  %v494_v61 = vor.u32 %v493_v57, %v489_v49 }
  0xd2   : > { %4756 = vmatprep.subr.bf16.mxu1 %v5238_v62  ;;  %v1644_v22 = vcombine.high %v1626_v19, %v1640_v20  ;;  %v1643_v23 = vcombine.low %v1626_v19, %v1640_v20  ;;  %v487_v59 = vor.u32 %v486_v56, %v482_v14  ;;  %v5287_v62 = vld [vmem:[%s5891_s4 + $0x448] sm:$0xff]   ;;  %v5299_v19 = vld [vmem:[%s5891_s4 + $0x460] sm:$0xff]  }
  0xd3   : > { %4767 = vmatpush3.bf16.msra.mxu0 %v5255_v7  ;;  %3671 = vmatprep.mubr.bf16.mxu0 %v1678_v15  ;;  %v5276_v7 = vld [vmem:[%s5891_s4 + $0x3b0] sm:$0xff]   ;;  %v5286_v20 = vld [vmem:[%s5891_s4 + $0x480] sm:$0xff]  }
  0xd4   : > { %4768 = vmatprep.subr.bf16.mxu0 %v5257_v8  ;;  %3630 = vmatprep.mubr.bf16.mxu1 %v1644_v22  ;;  %v975_v1 = vcombine.low %v487_v59, %v494_v61  ;;  %v5278_v8 = vld [vmem:[%s5891_s4 + $0x3f8] sm:$0xff]   ;;  %v5303_v22 = vld [vmem:[%s5891_s4 + $0x468] sm:$0xff]  }
  0xd5   : > { %4757 = vmatpush3.bf16.msra.mxu1 %v5240_v9 }
  0xd6   : > { %4786 = vmatprep.subr.bf16.mxu1 %v5250_v13  ;;  %v989_v5 = vrot.slane %v975_v1, %v5929_v37  ;;  %v5280_v13 = vld [vmem:[%s5891_s4 + $0x3b8] sm:$0xff]  }
  0xd7   : > { %4769 = vmatpush3.bf16.msra.mxu0 %v5259_v16 }
  0xd8   : > { %4770 = vmatprep.subr.bf16.mxu0 %v5261_v17  ;;  %3631 = vmatmul.mubr.bf16.vlgmr.msra.gmra.mrb[8].mxu1 %v1643_v23  ;;  %v4340_v9 = vcombine.low %v6084_v52, %v989_v5  ;;  %v5284_v17 = vld [vmem:[%s5891_s4 + $0x4c0] sm:$0xff]   ;;  %v5297_v52 = vld [vmem:[%s5891_s4 + $0x418] sm:$0xff]   ;;  %v5290_v23 = vld [vmem:[%s5891_s4 + $0x488] sm:$0xff]  }
  0xd9   : > { %4787 = vmatpush3.bf16.msra.mxu1 %v5252_v24  ;;  %v5292_v24 = vld [vmem:[%s5891_s4 + $0x4d0] sm:$0xff]  }
  0xda   : > { %4788 = vmatprep.subr.bf16.mxu1 %v5254_v25  ;;  %v1676_v10 = vrot.slane %v4340_v9, %v5929_v37  ;;  %v5305_v25 = vld [vmem:[%s5891_s4 + $0x428] sm:$0xff]  }
  0xdb   : > { %4771 = vmatpush3.bf16.msra.mxu0 %v5263_v54  ;;  %v5288_v54 = vld [vmem:[%s5891_s4 + $0x4c8] sm:$0xff]  }
  0xdc   : > { %4772 = vmatprep.subr.bf16.mxu0 %v5265_v21  ;;  %v1680_v16 = vcombine.high %v1662_v11, %v1676_v10  ;;  %v1679_v18 = vcombine.low %v1662_v11, %v1676_v10  ;;  %v5301_v21 = vld [vmem:[%s5891_s4 + $0x420] sm:$0xff]  }
  0xdd   : > { %4789 = vmatpush3.bf16.msra.mxu1 %v5256_v28  ;;  %v5296_v28 = vld [vmem:[%s5891_s4 + $0x4d8] sm:$0xff]  }
  0xde   : > { %4790 = vmatprep.subr.bf16.mxu1 %v5258_v29  ;;  %3712 = vmatprep.mubr.bf16.mxu1 %v1680_v16  ;;  %v5298_v29 = vld [vmem:[%s5891_s4 + $0x498] sm:$0xff]  }
  0xdf   : > { %4773 = vmatpush3.bf16.msra.mxu0 %v5267_v26  ;;  %v5307_v26 = vld [vmem:[%s5891_s4 + $0x470] sm:$0xff]  }
  0xe0   : > { %4774 = vmatprep.subr.bf16.mxu0 %v5269_v27  ;;  %v5294_v27 = vld [vmem:[%s5891_s4 + $0x490] sm:$0xff]  }
  0xe1   : > { %4791 = vmatpush3.bf16.msra.mxu1 %v5260_v32  ;;  %v5300_v32 = vld [vmem:[%s5891_s4 + $0x4e0] sm:$0xff]  }
  0xe2   : > { %4792 = vmatprep.subr.bf16.mxu1 %v5262_v33  ;;  %v4275_v33 = vld [vmem:[%s5884_s26 + $0x50] sm:$0x77] }
  0xe3   : > { %4775 = vmatpush3.bf16.msra.mxu0 %v5271_v30  ;;  %v5309_v30 = vld [vmem:[%s5891_s4 + $0x430] sm:$0xff]   ;;  %v4305_v39 = vcombine.low %v4275_v33, %v4275_v33  ;;  %v761_v14 = vrot.slane %v4275_v33, %v5929_v37 }
  0xe4   : > { %4776 = vmatprep.subr.bf16.mxu0 %v5273_v31  ;;  %v5311_v31 = vld [vmem:[%s5891_s4 + $0x478] sm:$0xff]  }
  0xe5   : > { %4793 = vmatpush3.bf16.msra.mxu1 %v5264_v34  ;;  %v4306_v34 = vcombine.high %v4275_v33, %v4275_v33  ;;  %v518_v55 = vshll.u32 %v4305_v39, 16 }
  0xe6   : > { %4794 = vmatprep.subr.bf16.mxu1 %v5266_v44  ;;  %v5313_v44 = vld [vmem:[%s5891_s4 + $0x438] sm:$0xff]  }
  0xe7   : > { %4777 = vmatpush3.bf16.msra.mxu0 %v5275_v35  ;;  %v4276_v35 = vld [vmem:[%s5884_s26 + $0x58] sm:$0x77]  ;;  %v523_v56 = vshrl.u32 %v4306_v34, 16  ;;  %v525_v57 = vshll.u32 %v4306_v34, 16 }
  0xe8   : > { %4778 = vmatprep.subr.bf16.mxu0 %v5277_v38  ;;  %v4278_v38 = vld [vmem:[%s5884_s26 + $0x68] sm:$0x77]  ;;  %v4307_v40 = vcombine.low %v4276_v35, %v4276_v35  ;;  %v4308_v41 = vcombine.high %v4276_v35, %v4276_v35  ;;  %v6165_v47 = vrot.slane %v4276_v35, %v5929_v37 }
  0xe9   : > { %4795 = vmatpush3.bf16.msra.mxu1 %v5268_v45  ;;  %v4309_v45 = vcombine.low %v4277_v36, %v4277_v36  ;;  %v6159_v46 = vcombine.low %v4278_v38, %v4278_v38  ;;  %v6161_v53 = vcombine.high %v4278_v38, %v4278_v38  ;;  %v6171_v49 = vrot.slane %v4278_v38, %v5929_v37 }
  0xea   : > { %4796 = vmatprep.subr.bf16.mxu1 %v5270_v51  ;;  %v516_v51 = vshrl.u32 %v4305_v39, 16  ;;  %v4341_v15 = vcombine.low %v761_v14, %v6165_v47  ;;  %v532_v61 = vshll.u32 %v4307_v40, 16  ;;  %v539_v1 = vshll.u32 %v4308_v41, 16  ;;  %v5333_v14 = vld [vmem:[%s5891_s4 + $0x510] sm:$0xff]  }
  0xeb   : > { %4779 = vmatpush3.bf16.msra.mxu0 %v5279_v43  ;;  %v4310_v43 = vcombine.high %v4277_v36, %v4277_v36  ;;  %v546_v10 = vshll.u32 %v4309_v45, 16 }
  0xec   : > { %4808 = vmatprep.subr.bf16.mxu0 %v5283_v48  ;;  %v6168_v48 = vrot.slane %v4277_v36, %v5929_v37  ;;  %v1691_v2 = vrot.slane %v4341_v15, %v5929_v37  ;;  %v534_v5 = vrot.slane %v532_v61, 1  ;;  %v5314_v36 = vld [vmem:[%s5891_s4 + $0x4b8] sm:$0xff]   ;;  %v5328_v61 = vld [vmem:[%s5891_s4 + $0x5c8] sm:$0xff]  }
  0xed   : > { %4797 = vmatpush3.bf16.msra.mxu1 %v5272_v63  ;;  %v527_v63 = vrot.slane %v525_v57, 1  ;;  %v551_v16 = vshrl.u32 %v4310_v43, 16  ;;  %v5337_v57 = vld [vmem:[%s5891_s4 + $0x518] sm:$0xff]  }
  0xee   : > { %3672 = vmatmul.mubr.bf16.vlgmr.msra.gmra.mrb[12].mxu0 %v1677_v60  ;;  %4798 = vmatprep.subr.bf16.mxu1 %v5274_v0  ;;  %v4343_v59 = vcombine.low %v6168_v48, %v6171_v49  ;;  %v530_v60 = vshrl.u32 %v4307_v40, 16  ;;  %v537_v0 = vshrl.u32 %v4308_v41, 16  ;;  %v5329_v41 = vld [vmem:[%s5891_s4 + $0x508] sm:$0xff]  }
  0xef   : > { %4809 = vmatpush3.bf16.msra.mxu0 %v5285_v58  ;;  %v5304_v58 = vld [vmem:[%s5891_s4 + $0x4e8] sm:$0xff]   ;;  %v528_v11 = vor.u32 %v527_v63, %v523_v56 }
  0xf0   : > { %4810 = vmatprep.subr.bf16.mxu0 %v5287_v62  ;;  %v520_v62 = vrot.slane %v518_v55, 1  ;;  %v5343_v63 = vld [vmem:[%s5891_s4 + $0x568] sm:$0xff]  }
  0xf1   : > { %4799 = vmatpush3.bf16.msra.mxu1 %v5276_v7  ;;  %v5306_v7 = vld [vmem:[%s5891_s4 + $0x4a8] sm:$0xff]  }
  0xf2   : > { %4800 = vmatprep.subr.bf16.mxu1 %v5278_v8  ;;  %v5308_v8 = vld [vmem:[%s5891_s4 + $0x4f0] sm:$0xff]   ;;  %v521_v9 = vor.u32 %v520_v62, %v516_v51  ;;  %v5341_v62 = vld [vmem:[%s5891_s4 + $0x520] sm:$0xff]  }
  0xf3   : > { %4811 = vmatpush3.bf16.msra.mxu0 %v5289_v4  ;;  %v1705_v4 = vrot.slane %v4343_v59, %v5929_v37 }
  0xf4   : > { %4812 = vmatprep.subr.bf16.mxu0 %v5291_v6  ;;  %v544_v6 = vshrl.u32 %v4309_v45, 16 }
  0xf5   : > { %4801 = vmatpush3.bf16.msra.mxu1 %v5280_v13  ;;  %v535_v13 = vor.u32 %v534_v5, %v530_v60  ;;  %v5326_v60 = vld [vmem:[%s5891_s4 + $0x580] sm:$0xff]   ;;  %v5334_v5 = vld [vmem:[%s5891_s4 + $0x590] sm:$0xff]  }
  0xf6   : > { %4830 = vmatprep.subr.bf16.mxu1 %v5284_v17  ;;  %v553_v17 = vshll.u32 %v4310_v43, 16 }
  0xf7   : > { %4813 = vmatpush3.bf16.msra.mxu0 %v5293_v3  ;;  %v541_v3 = vrot.slane %v539_v1, 1  ;;  %v5332_v1 = vld [vmem:[%s5891_s4 + $0x5d0] sm:$0xff]  }
  0xf8   : > { %4814 = vmatprep.subr.bf16.mxu0 %v5295_v12  ;;  %3713 = vmatmul.mubr.bf16.vlgmr.msra.gmra.mrb[12].mxu1 %v1679_v18  ;;  %v1714_v12 = vcombine.high %v1691_v2, %v1705_v4 }
  0xf9   : > { %4831 = vmatpush3.bf16.msra.mxu1 %v5286_v20  ;;  %v542_v18 = vor.u32 %v541_v3, %v537_v0  ;;  %v558_v20 = vshrl.u32 %v6159_v46, 16  ;;  %v5330_v0 = vld [vmem:[%s5891_s4 + $0x588] sm:$0xff]   ;;  %v5338_v3 = vld [vmem:[%s5891_s4 + $0x598] sm:$0xff]  }
  0xfa   : > { %4832 = vmatprep.subr.bf16.mxu1 %v5288_v54  ;;  %v560_v54 = vshll.u32 %v6159_v46, 16  ;;  %3753 = vmatprep.mubr.bf16.mxu0 %v1714_v12  ;;  %v5324_v46 = vld [vmem:[%s5891_s4 + $0x5c0] sm:$0xff]  }
  0xfb   : > { %4815 = vmatpush3.bf16.msra.mxu0 %v5297_v52  ;;  %v5310_v52 = vld [vmem:[%s5891_s4 + $0x4b0] sm:$0xff]  }
  0xfc   : > { %4816 = vmatprep.subr.bf16.mxu0 %v5299_v19  ;;  %v548_v19 = vrot.slane %v546_v10, 1 }
  0xfd   : > { %4833 = vmatpush3.bf16.msra.mxu1 %v5290_v23  ;;  %v567_v23 = vshll.u32 %v6161_v53, 16 }
  0xfe   : > { %4834 = vmatprep.subr.bf16.mxu1 %v5292_v24  ;;  %v754_v24 = vcombine.low %v521_v9, %v528_v11  ;;  %v5351_v9 = vld [vmem:[%s5891_s4 + $0x578] sm:$0xff]   ;;  %v4279_v11 = vld [vmem:[%s5884_s26 + $0x70] sm:$0x77] }
  0xff   : > { %4817 = vmatpush3.bf16.msra.mxu0 %v5301_v21  ;;  %v555_v21 = vrot.slane %v553_v17, 1  ;;  %v569_v33 = vrot.slane %v567_v23, 1  ;;  %v4313_v10 = vcombine.low %v4279_v11, %v4279_v11  ;;  %v4314_v12 = vcombine.high %v4279_v11, %v4279_v11  ;;  %v5353_v17 = vld [vmem:[%s5891_s4 + $0x538] sm:$0xff]  }
 0x100   : > { %4818 = vmatprep.subr.bf16.mxu0 %v5303_v22  ;;  %v565_v22 = vshrl.u32 %v6161_v53, 16  ;;  %v768_v35 = vrot.slane %v754_v24, %v5929_v37  ;;  %v5344_v24 = vld [vmem:[%s5891_s4 + $0x5e8] sm:$0xff]  }
 0x101   : > { %4835 = vmatpush3.bf16.msra.mxu1 %v5294_v27  ;;  %v562_v27 = vrot.slane %v560_v54, 1  ;;  %v586_v54 = vshll.u32 %v4314_v12, 16 }
 0x102   : > { %4836 = vmatprep.subr.bf16.mxu1 %v5296_v28  ;;  %v771_v28 = vcombine.low %v535_v13, %v542_v18  ;;  %v570_v34 = vor.u32 %v569_v33, %v565_v22  ;;  %v999_v13 = vrot.slane %v4279_v11, %v5929_v37  ;;  %v579_v18 = vshll.u32 %v4313_v10, 16 }
 0x103   : > { %4819 = vmatpush3.bf16.msra.mxu0 %v5305_v25  ;;  %v5325_v25 = vld [vmem:[%s5891_s4 + $0x500] sm:$0xff]   ;;  %v563_v38 = vor.u32 %v562_v27, %v558_v20  ;;  %v584_v20 = vshrl.u32 %v4314_v12, 16 }
 0x104   : > { %4820 = vmatprep.subr.bf16.mxu0 %v5307_v26  ;;  %v549_v26 = vor.u32 %v548_v19, %v544_v6  ;;  %v6193_v39 = vrot.slane %v771_v28, %v5929_v37  ;;  %v5336_v6 = vld [vmem:[%s5891_s4 + $0x5d8] sm:$0xff]   ;;  %v5357_v19 = vld [vmem:[%s5891_s4 + $0x640] sm:$0xff]   ;;  %v581_v23 = vrot.slane %v579_v18, 1 }
 0x105   : > { %4837 = vmatpush3.bf16.msra.mxu1 %v5298_v29  ;;  %v1713_v29 = vcombine.low %v1691_v2, %v1705_v4  ;;  %v924_v45 = vcombine.low %v563_v38, %v570_v34  ;;  %v5345_v2 = vld [vmem:[%s5891_s4 + $0x528] sm:$0xff]   ;;  %v5347_v4 = vld [vmem:[%s5891_s4 + $0x570] sm:$0xff]   ;;  %v5359_v28 = vld [vmem:[%s5891_s4 + $0x600] sm:$0xff]  }
 0x106   : > { %4838 = vmatprep.subr.bf16.mxu1 %v5300_v32  ;;  %v556_v32 = vor.u32 %v555_v21, %v551_v16  ;;  %v4342_v43 = vcombine.low %v768_v35, %v6193_v39  ;;  %v5340_v16 = vld [vmem:[%s5891_s4 + $0x5e0] sm:$0xff]   ;;  %v5365_v34 = vld [vmem:[%s5891_s4 + $0x650] sm:$0xff]  }
 0x107   : > { %4821 = vmatpush3.bf16.msra.mxu0 %v5309_v30  ;;  %v5327_v30 = vld [vmem:[%s5891_s4 + $0x548] sm:$0xff]   ;;  %v6203_v53 = vrot.slane %v924_v45, %v5929_v37  ;;  %v5342_v21 = vld [vmem:[%s5891_s4 + $0x5a0] sm:$0xff]  }
 0x108   : > { %4822 = vmatprep.subr.bf16.mxu0 %v5311_v31  ;;  %v5312_v31 = vld [vmem:[%s5891_s4 + $0x4f8] sm:$0xff]   ;;  %v856_v40 = vcombine.low %v549_v26, %v556_v32  ;;  %v1698_v55 = vrot.slane %v4342_v43, %v5929_v37  ;;  %v5348_v32 = vld [vmem:[%s5891_s4 + $0x5f0] sm:$0xff]  }
 0x109   : > { %4839 = vmatpush3.bf16.msra.mxu1 %v5302_v42  ;;  %v5331_v42 = vld [vmem:[%s5891_s4 + $0x550] sm:$0xff]   ;;  %v5369_v43 = vld [vmem:[%s5891_s4 + $0x658] sm:$0xff]  }
 0x10a   : > { %4840 = vmatprep.subr.bf16.mxu1 %v5304_v58  ;;  %v5339_v58 = vld [vmem:[%s5891_s4 + $0x560] sm:$0xff]  }
 0x10b   : > { %4823 = vmatpush3.bf16.msra.mxu0 %v5313_v44  ;;  %v6198_v44 = vrot.slane %v856_v40, %v5929_v37  ;;  %v5350_v40 = vld [vmem:[%s5891_s4 + $0x5b0] sm:$0xff]  }
 0x10c   : > { %4852 = vmatprep.subr.bf16.mxu0 %v5323_v50  ;;  %v5335_v50 = vld [vmem:[%s5891_s4 + $0x558] sm:$0xff]  }
 0x10d   : > { %4841 = vmatpush3.bf16.msra.mxu1 %v5306_v7  ;;  %v4344_v51 = vcombine.low %v6198_v44, %v6203_v53  ;;  %v5349_v7 = vld [vmem:[%s5891_s4 + $0x530] sm:$0xff]   ;;  %v4346_v35 = vcombine.low %v6193_v39, %v6198_v44 }
 0x10e   : > { %4842 = vmatprep.subr.bf16.mxu1 %v5308_v8  ;;  %3754 = vmatmul.mubr.bf16.vlgmr.msra.gmra.mrb[16].mxu0 %v1713_v29  ;;  %v4345_v8 = vcombine.low %v6165_v47, %v6168_v48  ;;  %v577_v48 = vshrl.u32 %v4313_v10, 16  ;;  %v5367_v39 = vld [vmem:[%s5891_s4 + $0x610] sm:$0xff]  }
 0x10f   : > { %4853 = vmatpush3.bf16.msra.mxu0 %v5325_v25  ;;  %v1712_v56 = vrot.slane %v4344_v51, %v5929_v37  ;;  %v1734_v45 = vrot.slane %v4346_v35, %v5929_v37  ;;  %v5380_v35 = vld [vmem:[%s5891_s4 + $0x6a8] sm:$0xff]  }
 0x110   : > { %4854 = vmatprep.subr.bf16.mxu0 %v5327_v30  ;;  %v1727_v47 = vrot.slane %v4345_v8, %v5929_v37  ;;  %v582_v26 = vor.u32 %v581_v23, %v577_v48  ;;  %v5361_v30 = vld [vmem:[%s5891_s4 + $0x648] sm:$0xff]  }
 0x111   : > { %4843 = vmatpush3.bf16.msra.mxu1 %v5310_v52  ;;  %v1716_v15 = vcombine.high %v1698_v55, %v1712_v56  ;;  %v1715_v59 = vcombine.low %v1698_v55, %v1712_v56  ;;  %v4347_v52 = vcombine.low %v6171_v49, %v999_v13  ;;  %v588_v49 = vrot.slane %v586_v54, 1  ;;  %v5373_v55 = vld [vmem:[%s5891_s4 + $0x660] sm:$0xff]   ;;  %v4282_v8 = vld [vmem:[%s5884_s26 + $0x88] sm:$0x77]  ;;  %v5387_v13 = vld [vmem:[%s5891_s4 + $0x638] sm:$0xff]  }
 0x112   : > { %4844 = vmatprep.subr.bf16.mxu1 %v5312_v31  ;;  %v5346_v31 = vld [vmem:[%s5891_s4 + $0x5a8] sm:$0xff]   ;;  %v5360_v56 = vld [vmem:[%s5891_s4 + $0x680] sm:$0xff]  }
 0x113   : > { %4855 = vmatpush3.bf16.msra.mxu0 %v5329_v41  ;;  %3794 = vmatprep.mubr.bf16.mxu1 %v1716_v15  ;;  %v1741_v22 = vrot.slane %v4347_v52, %v5929_v37  ;;  %v589_v29 = vor.u32 %v588_v49, %v584_v20  ;;  %v5352_v41 = vld [vmem:[%s5891_s4 + $0x5f8] sm:$0xff]   ;;  %v5377_v15 = vld [vmem:[%s5891_s4 + $0x668] sm:$0xff]   ;;  %v5397_v54 = vld [vmem:[%s5891_s4 + $0x740] sm:$0xff]  }
 0x114   : > { %4856 = vmatprep.subr.bf16.mxu0 %v5331_v42 }
 0x115   : > { %4845 = vmatpush3.bf16.msra.mxu1 %v5314_v36  ;;  %v1750_v25 = vcombine.high %v1727_v47, %v1741_v22  ;;  %v1749_v27 = vcombine.low %v1727_v47, %v1741_v22  ;;  %v992_v33 = vcombine.low %v582_v26, %v589_v29  ;;  %v5363_v36 = vld [vmem:[%s5891_s4 + $0x608] sm:$0xff]  }
 0x116   : > { %4874 = vmatprep.subr.bf16.mxu1 %v5324_v46  ;;  %v5354_v46 = vld [vmem:[%s5891_s4 + $0x5b8] sm:$0xff]   ;;  %v5378_v22 = vld [vmem:[%s5891_s4 + $0x6e8] sm:$0xff]  }
 0x117   : > { %4857 = vmatpush3.bf16.msra.mxu0 %v5333_v14  ;;  %3835 = vmatprep.mubr.bf16.mxu0 %v1750_v25  ;;  %v1006_v38 = vrot.slane %v992_v33, %v5929_v37 }
 0x118   : > { %4858 = vmatprep.subr.bf16.mxu0 %v5335_v50  ;;  %3795 = vmatmul.mubr.bf16.vlgmr.msra.gmra.mrb[16].mxu1 %v1715_v59  ;;  %v5358_v50 = vld [vmem:[%s5891_s4 + $0x6c0] sm:$0xff]   ;;  %v5364_v59 = vld [vmem:[%s5891_s4 + $0x688] sm:$0xff]  }
 0x119   : > { %4875 = vmatpush3.bf16.msra.mxu1 %v5326_v60  ;;  %v4348_v42 = vcombine.low %v6203_v53, %v1006_v38  ;;  %v5371_v53 = vld [vmem:[%s5891_s4 + $0x618] sm:$0xff]   ;;  %v5366_v60 = vld [vmem:[%s5891_s4 + $0x6d0] sm:$0xff]  }
 0x11a   : > { %4876 = vmatprep.subr.bf16.mxu1 %v5328_v61  ;;  %v5379_v61 = vld [vmem:[%s5891_s4 + $0x628] sm:$0xff]  }
 0x11b   : > { %4859 = vmatpush3.bf16.msra.mxu0 %v5337_v57  ;;  %v1748_v44 = vrot.slane %v4348_v42, %v5929_v37  ;;  %v5362_v57 = vld [vmem:[%s5891_s4 + $0x6c8] sm:$0xff]  }
 0x11c   : > { %4860 = vmatprep.subr.bf16.mxu0 %v5339_v58  ;;  %v5375_v58 = vld [vmem:[%s5891_s4 + $0x620] sm:$0xff]  }
 0x11d   : > { %4877 = vmatpush3.bf16.msra.mxu1 %v5330_v0  ;;  %v1752_v14 = vcombine.high %v1734_v45, %v1748_v44  ;;  %v1751_v51 = vcombine.low %v1734_v45, %v1748_v44  ;;  %v5370_v0 = vld [vmem:[%s5891_s4 + $0x6d8] sm:$0xff]  }
 0x11e   : > { %4878 = vmatprep.subr.bf16.mxu1 %v5332_v1  ;;  %v5372_v1 = vld [vmem:[%s5891_s4 + $0x698] sm:$0xff]  }
 0x11f   : > { %4861 = vmatpush3.bf16.msra.mxu0 %v5341_v62  ;;  %3876 = vmatprep.mubr.bf16.mxu1 %v1752_v14  ;;  %v5381_v62 = vld [vmem:[%s5891_s4 + $0x670] sm:$0xff]  }
 0x120   : > { %4862 = vmatprep.subr.bf16.mxu0 %v5343_v63  ;;  %v5368_v63 = vld [vmem:[%s5891_s4 + $0x690] sm:$0xff]  }
 0x121   : > { %4879 = vmatpush3.bf16.msra.mxu1 %v5334_v5  ;;  %v5385_v5 = vld [vmem:[%s5891_s4 + $0x678] sm:$0xff]  }
 0x122   : > { %4880 = vmatprep.subr.bf16.mxu1 %v5336_v6  ;;  %v4280_v6 = vld [vmem:[%s5884_s26 + $0x78] sm:$0x77] }
 0x123   : > { %4863 = vmatpush3.bf16.msra.mxu0 %v5345_v2  ;;  %v5383_v2 = vld [vmem:[%s5891_s4 + $0x630] sm:$0xff]   ;;  %v4315_v11 = vcombine.low %v4280_v6, %v4280_v6  ;;  %v795_v48 = vrot.slane %v4280_v6, %v5929_v37 }
 0x124   : > { %4864 = vmatprep.subr.bf16.mxu0 %v5347_v4  ;;  %v5374_v4 = vld [vmem:[%s5891_s4 + $0x6e0] sm:$0xff]  }
 0x125   : > { %4881 = vmatpush3.bf16.msra.mxu1 %v5338_v3  ;;  %v4316_v3 = vcombine.high %v4280_v6, %v4280_v6  ;;  %v611_v23 = vshrl.u32 %v4315_v11, 16 }
 0x126   : > { %4882 = vmatprep.subr.bf16.mxu1 %v5340_v16  ;;  %v4319_v16 = vcombine.low %v4282_v8, %v4282_v8 }
 0x127   : > { %4865 = vmatpush3.bf16.msra.mxu0 %v5349_v7  ;;  %v4281_v7 = vld [vmem:[%s5884_s26 + $0x80] sm:$0x77]  ;;  %v618_v49 = vshrl.u32 %v4316_v3, 16  ;;  %v620_v25 = vshll.u32 %v4316_v3, 16 }
 0x128   : > { %4866 = vmatprep.subr.bf16.mxu0 %v5351_v9  ;;  %v4283_v9 = vld [vmem:[%s5884_s26 + $0x90] sm:$0x77]  ;;  %v4317_v10 = vcombine.low %v4281_v7, %v4281_v7  ;;  %v4318_v12 = vcombine.high %v4281_v7, %v4281_v7  ;;  %v6285_v18 = vrot.slane %v4281_v7, %v5929_v37  ;;  %v641_v44 = vshll.u32 %v4319_v16, 16 }
 0x129   : > { %4883 = vmatpush3.bf16.msra.mxu1 %v5342_v21  ;;  %v6279_v52 = vcombine.low %v4283_v9, %v4283_v9  ;;  %v6281_v47 = vcombine.high %v4283_v9, %v4283_v9  ;;  %v6291_v20 = vrot.slane %v4283_v9, %v5929_v37  ;;  %v5376_v21 = vld [vmem:[%s5891_s4 + $0x6a0] sm:$0xff]  }
 0x12a   : > { %4884 = vmatprep.subr.bf16.mxu1 %v5344_v24  ;;  %v613_v24 = vshll.u32 %v4315_v11, 16  ;;  %v4349_v26 = vcombine.low %v795_v48, %v6285_v18  ;;  %v627_v29 = vshll.u32 %v4317_v10, 16  ;;  %v634_v33 = vshll.u32 %v4318_v12, 16 }
 0x12b   : > { %4867 = vmatpush3.bf16.msra.mxu0 %v5353_v17  ;;  %v6277_v17 = vcombine.high %v4282_v8, %v4282_v8 }
 0x12c   : > { %4896 = vmatprep.subr.bf16.mxu0 %v5357_v19  ;;  %v6288_v19 = vrot.slane %v4282_v8, %v5929_v37  ;;  %v1763_v38 = vrot.slane %v4349_v26, %v5929_v37  ;;  %v5388_v8 = vld [vmem:[%s5891_s4 + $0x6b8] sm:$0xff]  }
 0x12d   : > { %4885 = vmatpush3.bf16.msra.mxu1 %v5346_v31  ;;  %v622_v31 = vrot.slane %v620_v25, 1  ;;  %v646_v14 = vshrl.u32 %v6277_v17, 16 }
 0x12e   : > { %3836 = vmatmul.mubr.bf16.vlgmr.msra.gmra.mrb[20].mxu0 %v1749_v27  ;;  %4886 = vmatprep.subr.bf16.mxu1 %v5348_v32  ;;  %v4351_v27 = vcombine.low %v6288_v19, %v6291_v20  ;;  %v632_v32 = vshrl.u32 %v4318_v12, 16  ;;  %v5403_v12 = vld [vmem:[%s5891_s4 + $0x708] sm:$0xff]  }
 0x12f   : > { %4897 = vmatpush3.bf16.msra.mxu0 %v5359_v28  ;;  %v625_v28 = vshrl.u32 %v4317_v10, 16  ;;  %v623_v45 = vor.u32 %v622_v31, %v618_v49  ;;  %v5413_v31 = vld [vmem:[%s5891_s4 + $0x760] sm:$0xff]  }
 0x130   : > { %4898 = vmatprep.subr.bf16.mxu0 %v5361_v30  ;;  %v615_v30 = vrot.slane %v613_v24, 1 }
 0x131   : > { %4887 = vmatpush3.bf16.msra.mxu1 %v5350_v40  ;;  %v629_v40 = vrot.slane %v627_v29, 1  ;;  %v5411_v29 = vld [vmem:[%s5891_s4 + $0x718] sm:$0xff]  }
 0x132   : > { %4888 = vmatprep.subr.bf16.mxu1 %v5352_v41  ;;  %v639_v41 = vshrl.u32 %v4319_v16, 16  ;;  %v616_v42 = vor.u32 %v615_v30, %v611_v23 }
 0x133   : > { %4899 = vmatpush3.bf16.msra.mxu0 %v5363_v36  ;;  %v5382_v36 = vld [vmem:[%s5891_s4 + $0x6f0] sm:$0xff]  }
 0x134   : > { %4900 = vmatprep.subr.bf16.mxu0 %v5365_v34  ;;  %v1777_v34 = vrot.slane %v4351_v27, %v5929_v37 }
 0x135   : > { %4889 = vmatpush3.bf16.msra.mxu1 %v5354_v46  ;;  %v630_v46 = vor.u32 %v629_v40, %v625_v28  ;;  %v5404_v40 = vld [vmem:[%s5891_s4 + $0x788] sm:$0xff]  }
 0x136   : > { %4918 = vmatprep.subr.bf16.mxu1 %v5358_v50  ;;  %v648_v50 = vshll.u32 %v6277_v17, 16 }
 0x137   : > { %4901 = vmatpush3.bf16.msra.mxu0 %v5367_v39  ;;  %v636_v39 = vrot.slane %v634_v33, 1 }
 0x138   : > { %4902 = vmatprep.subr.bf16.mxu0 %v5369_v43  ;;  %3877 = vmatmul.mubr.bf16.vlgmr.msra.gmra.mrb[20].mxu1 %v1751_v51  ;;  %v1786_v43 = vcombine.high %v1763_v38, %v1777_v34 }
 0x139   : > { %4919 = vmatpush3.bf16.msra.mxu1 %v5360_v56  ;;  %v637_v51 = vor.u32 %v636_v39, %v632_v32  ;;  %v653_v56 = vshrl.u32 %v6279_v52, 16  ;;  %v5408_v39 = vld [vmem:[%s5891_s4 + $0x790] sm:$0xff]  }
 0x13a   : > { %4920 = vmatprep.subr.bf16.mxu1 %v5362_v57  ;;  %v655_v57 = vshll.u32 %v6279_v52, 16  ;;  %3917 = vmatprep.mubr.bf16.mxu0 %v1786_v43  ;;  %v5410_v43 = vld [vmem:[%s5891_s4 + $0x7d8] sm:$0xff]  }
 0x13b   : > { %4903 = vmatpush3.bf16.msra.mxu0 %v5371_v53  ;;  %v5384_v53 = vld [vmem:[%s5891_s4 + $0x6b0] sm:$0xff]  }
 0x13c   : > { %4904 = vmatprep.subr.bf16.mxu0 %v5373_v55  ;;  %v643_v55 = vrot.slane %v641_v44, 1 }
 0x13d   : > { %4921 = vmatpush3.bf16.msra.mxu1 %v5364_v59  ;;  %v662_v59 = vshll.u32 %v6281_v47, 16 }
 0x13e   : > { %4922 = vmatprep.subr.bf16.mxu1 %v5366_v60  ;;  %v788_v60 = vcombine.low %v616_v42, %v623_v45  ;;  %v5419_v42 = vld [vmem:[%s5891_s4 + $0x728] sm:$0xff]   ;;  %v5421_v45 = vld [vmem:[%s5891_s4 + $0x770] sm:$0xff]  }
 0x13f   : > { %4905 = vmatpush3.bf16.msra.mxu0 %v5375_v58  ;;  %v650_v58 = vrot.slane %v648_v50, 1  ;;  %v664_v6 = vrot.slane %v662_v59, 1 }
 0x140   : > { %4906 = vmatprep.subr.bf16.mxu0 %v5377_v15  ;;  %v660_v15 = vshrl.u32 %v6281_v47, 16  ;;  %v802_v7 = vrot.slane %v788_v60, %v5929_v37  ;;  %v5398_v47 = vld [vmem:[%s5891_s4 + $0x7c0] sm:$0xff]  }
 0x141   : > { %4923 = vmatpush3.bf16.msra.mxu1 %v5368_v63  ;;  %v657_v63 = vrot.slane %v655_v57, 1  ;;  %v4353_v57 = vcombine.low %v6285_v18, %v6288_v19 }
 0x142   : > { %4924 = vmatprep.subr.bf16.mxu1 %v5370_v0  ;;  %v805_v0 = vcombine.low %v630_v46, %v637_v51  ;;  %v665_v3 = vor.u32 %v664_v6, %v660_v15 }
 0x143   : > { %4907 = vmatpush3.bf16.msra.mxu0 %v5379_v61  ;;  %v5399_v61 = vld [vmem:[%s5891_s4 + $0x700] sm:$0xff]   ;;  %v658_v9 = vor.u32 %v657_v63, %v653_v56  ;;  %v4284_v56 = vld [vmem:[%s5884_s26 + $0x98] sm:$0x77]  ;;  %v1799_v19 = vrot.slane %v4353_v57, %v5929_v37 }
 0x144   : > { %4908 = vmatprep.subr.bf16.mxu0 %v5381_v62  ;;  %v644_v62 = vor.u32 %v643_v55, %v639_v41  ;;  %v6316_v11 = vrot.slane %v805_v0, %v5929_v37  ;;  %v5406_v41 = vld [vmem:[%s5891_s4 + $0x7d0] sm:$0xff]   ;;  %v5425_v55 = vld [vmem:[%s5891_s4 + $0x778] sm:$0xff]   ;;  %v4323_v60 = vcombine.low %v4284_v56, %v4284_v56  ;;  %v1016_v63 = vrot.slane %v4284_v56, %v5929_v37 }
 0x145   : > { %4925 = vmatpush3.bf16.msra.mxu1 %v5372_v1  ;;  %v1785_v1 = vcombine.low %v1763_v38, %v1777_v34  ;;  %v941_v17 = vcombine.low %v658_v9, %v665_v3  ;;  %v5415_v38 = vld [vmem:[%s5891_s4 + $0x720] sm:$0xff]   ;;  %v5417_v34 = vld [vmem:[%s5891_s4 + $0x768] sm:$0xff]  }
 0x146   : > { %4926 = vmatprep.subr.bf16.mxu1 %v5374_v4  ;;  %v5386_v4 = vld [vmem:[%s5891_s4 + $0x6f8] sm:$0xff]   ;;  %v4350_v52 = vcombine.low %v802_v7, %v6316_v11  ;;  %v4355_v18 = vcombine.low %v6291_v20, %v1016_v63  ;;  %v5416_v7 = vld [vmem:[%s5891_s4 + $0x7a0] sm:$0xff]   ;;  %v5418_v9 = vld [vmem:[%s5891_s4 + $0x7e8] sm:$0xff]  }
 0x147   : > { %4909 = vmatpush3.bf16.msra.mxu0 %v5383_v2  ;;  %v5401_v2 = vld [vmem:[%s5891_s4 + $0x748] sm:$0xff]   ;;  %v6326_v48 = vrot.slane %v941_v17, %v5929_v37 }
 0x148   : > { %4910 = vmatprep.subr.bf16.mxu0 %v5385_v5  ;;  %v651_v5 = vor.u32 %v650_v58, %v646_v14  ;;  %v1770_v49 = vrot.slane %v4350_v52, %v5929_v37  ;;  %v5412_v58 = vld [vmem:[%s5891_s4 + $0x798] sm:$0xff]   ;;  %v1813_v3 = vrot.slane %v4355_v18, %v5929_v37  ;;  %v5420_v52 = vld [vmem:[%s5891_s4 + $0x7a8] sm:$0xff]  }
 0x149   : > { %4927 = vmatpush3.bf16.msra.mxu1 %v5376_v21 }
 0x14a   : > { %4928 = vmatprep.subr.bf16.mxu1 %v5378_v22  ;;  %v873_v10 = vcombine.low %v644_v62, %v651_v5  ;;  %v5409_v22 = vld [vmem:[%s5891_s4 + $0x758] sm:$0xff]   ;;  %v5414_v62 = vld [vmem:[%s5891_s4 + $0x7e0] sm:$0xff]   ;;  %v1821_v17 = vcombine.low %v1799_v19, %v1813_v3 }
 0x14b   : > { %4911 = vmatpush3.bf16.msra.mxu0 %v5387_v13  ;;  %v5405_v13 = vld [vmem:[%s5891_s4 + $0x750] sm:$0xff]  }
 0x14c   : > { %4940 = vmatprep.subr.bf16.mxu0 %v5397_v54  ;;  %v6321_v16 = vrot.slane %v873_v10, %v5929_v37  ;;  %v5407_v54 = vld [vmem:[%s5891_s4 + $0x710] sm:$0xff]  }
 0x14d   : > { %4929 = vmatpush3.bf16.msra.mxu1 %v5380_v35  ;;  %v5400_v35 = vld [vmem:[%s5891_s4 + $0x780] sm:$0xff]  }
 0x14e   : > { %4930 = vmatprep.subr.bf16.mxu1 %v5382_v36  ;;  %3918 = vmatmul.mubr.bf16.vlgmr.msra.gmra.mrb[24].mxu0 %v1785_v1  ;;  %v4352_v24 = vcombine.low %v6321_v16, %v6326_v48  ;;  %v5402_v36 = vld [vmem:[%s5891_s4 + $0x7c8] sm:$0xff]   ;;  %v5427_v1 = vld [vmem:[%s5891_s4 + $0x738] sm:$0xff]  }
 0x14f   : > { %4941 = vmatpush3.bf16.msra.mxu0 %v5399_v61  ;;  %v4324_v61 = vcombine.high %v4284_v56, %v4284_v56 }
 0x150   : > { %4942 = vmatprep.subr.bf16.mxu0 %v5401_v2  ;;  %v1784_v28 = vrot.slane %v4352_v24, %v5929_v37  ;;  %v672_v2 = vshrl.u32 %v4323_v60, 16  ;;  %v5426_v24 = vld [vmem:[%s5891_s4 + $0x7f8] sm:$0xff]  }
 0x151   : > { %4931 = vmatpush3.bf16.msra.mxu1 %v5384_v53  ;;  %v5423_v53 = vld [vmem:[%s5891_s4 + $0x730] sm:$0xff]   ;;  %v679_v5 = vshrl.u32 %v4324_v61, 16  ;;  %v681_v6 = vshll.u32 %v4324_v61, 16 }
 0x152   : > { %4932 = vmatprep.subr.bf16.mxu1 %v5386_v4  ;;  %v1788_v32 = vcombine.high %v1770_v49, %v1784_v28  ;;  %v1787_v33 = vcombine.low %v1770_v49, %v1784_v28  ;;  %v674_v4 = vshll.u32 %v4323_v60, 16 }
 0x153   : > { %4943 = vmatpush3.bf16.msra.mxu0 %v5403_v12  ;;  %v683_v10 = vrot.slane %v681_v6, 1 }
 0x154   : > { %4944 = vmatprep.subr.bf16.mxu0 %v5405_v13  ;;  %3958 = vmatprep.mubr.bf16.mxu1 %v1788_v32  ;;  %v1822_v13 = vcombine.high %v1799_v19, %v1813_v3 }
 0x155   : > { %4933 = vmatpush3.bf16.msra.mxu1 %v5388_v8  ;;  %v676_v8 = vrot.slane %v674_v4, 1  ;;  %v684_v20 = vor.u32 %v683_v10, %v679_v5 }
 0x156   : > { %4962 = vmatprep.subr.bf16.mxu1 %v5398_v47  ;;  %v5422_v47 = vld [vmem:[%s5891_s4 + $0x7f0] sm:$0xff]   ;;  %3999 = vmatprep.mubr.bf16.mxu0 %v1822_v13 }
 0x157   : > { %4945 = vmatpush3.bf16.msra.mxu0 %v5407_v54  ;;  %v677_v12 = vor.u32 %v676_v8, %v672_v2 }
 0x158   : > { %4946 = vmatprep.subr.bf16.mxu0 %v5409_v22  ;;  %3959 = vmatmul.mubr.bf16.vlgmr.msra.gmra.mrb[24].mxu1 %v1787_v33 }
 0x159   : > { %4963 = vmatpush3.bf16.msra.mxu1 %v5400_v35  ;;  %v1009_v54 = vcombine.low %v677_v12, %v684_v20 }
 0x15a   : > { %4964 = vmatprep.subr.bf16.mxu1 %v5402_v36 }
 0x15b   : > { %4947 = vmatpush3.bf16.msra.mxu0 %v5411_v29  ;;  %v1023_v22 = vrot.slane %v1009_v54, %v5929_v37  ;;  %v5428_v29 = vld [vmem:[%s5891_s4 + $0x7b8] sm:$0xff]  }
 0x15c   : > { %4948 = vmatprep.subr.bf16.mxu0 %v5413_v31 }
 0x15d   : > { %4965 = vmatpush3.bf16.msra.mxu1 %v5404_v40  ;;  %v4356_v49 = vcombine.low %v6326_v48, %v1023_v22 }
 0x15e   : > { %4966 = vmatprep.subr.bf16.mxu1 %v5406_v41 }
 0x15f   : > { %4949 = vmatpush3.bf16.msra.mxu0 %v5415_v38 }
 0x160   : > { %4950 = vmatprep.subr.bf16.mxu0 %v5417_v34 }
 0x161   : > { %v4648_v21 = vpop.f32.mrb[0].mxu0  ;;  %4967 = vmatpush3.bf16.msra.mxu1 %v5408_v39 }
 0x162   : > { %v4649_v23 = vpop.f32.mrb[1].mxu0  ;;  %4968 = vmatprep.subr.bf16.mxu1 %v5410_v43 }
 0x163   : > { %v4650_v25 = vadd.f32 %v4649_v23, %v4648_v21  ;;  %v4651_v26 = vpop.f32.mrb[2].mxu0  ;;  %4951 = vmatpush3.bf16.msra.mxu0 %v5419_v42  ;;  %v4354_v21 = vcombine.low %v6316_v11, %v6321_v16  ;;  %v5424_v23 = vld [vmem:[%s5891_s4 + $0x7b0] sm:$0xff]  }
 0x164   : > { %v4652_v27 = vpop.f32.mrb[3].mxu0  ;;  %4952 = vmatprep.subr.bf16.mxu0 %v5421_v45 }
 0x165   : > { %v4653_v30 = vadd.f32 %v4652_v27, %v4651_v26  ;;  %4969 = vmatpush3.bf16.msra.mxu1 %v5412_v58  ;;  %v1820_v27 = vrot.slane %v4356_v49, %v5929_v37 }
 0x166   : > { %4970 = vmatprep.subr.bf16.mxu1 %v5414_v62 }
 0x167   : > { %4953 = vmatpush3.bf16.msra.mxu0 %v5423_v53 }
 0x168   : > { %4954 = vmatprep.subr.bf16.mxu0 %v5425_v55 }
 0x169   : > { %4971 = vmatpush3.bf16.msra.mxu1 %v5416_v7 }
 0x16a   : > { %4972 = vmatprep.subr.bf16.mxu1 %v5418_v9 }
 0x16b   : > { %v4670_v44 = vpop.f32.mrb[0].mxu1  ;;  %4955 = vmatpush3.bf16.msra.mxu0 %v5427_v1 }
 0x16c   : > { %v4671_v46 = vpop.f32.mrb[1].mxu1 }
 0x16d   : > { %v4672_v14 = vadd.f32 %v4671_v46, %v4670_v44  ;;  %v4673_v50 = vpop.f32.mrb[2].mxu1  ;;  %4973 = vmatpush3.bf16.msra.mxu1 %v5420_v52 }
 0x16e   : > { %v4674_v51 = vpop.f32.mrb[3].mxu1  ;;  %4000 = vmatmul.mubr.bf16.vlgmr.msra.gmra.mrb[28].mxu0 %v1821_v17  ;;  %4974 = vmatprep.subr.bf16.mxu1 %v5422_v47 }
 0x16f   : > { %v3469_v15 = vadd.f32 %v4672_v14, %v4650_v25  ;;  %v4675_v59 = vadd.f32 %v4674_v51, %v4673_v50  ;;  %v1806_v25 = vrot.slane %v4354_v21, %v5929_v37 }
 0x171   : > { %v3472_v0 = vadd.f32 %v4675_v59, %v4653_v30  ;;  %4975 = vmatpush3.bf16.msra.mxu1 %v5424_v23  ;;  %v1824_v11 = vcombine.high %v1806_v25, %v1820_v27  ;;  %v1823_v35 = vcombine.low %v1806_v25, %v1820_v27 }
 0x172   : > { %4976 = vmatprep.subr.bf16.mxu1 %v5426_v24 }
 0x173   : > { %4040 = vmatprep.mubr.bf16.mxu1 %v1824_v11 }
 0x175   : > { %4977 = vmatpush3.bf16.msra.mxu1 %v5428_v29 }
 0x178   : > { %4041 = vmatmul.mubr.bf16.vlgmr.msra.gmra.mrb[28].mxu1 %v1823_v35 }
 0x181   : > { %v4692_v26 = vpop.f32.mrb[4].mxu0 }
 0x182   : > { %v4693_v28 = vpop.f32.mrb[5].mxu0 }
 0x183   : > { %v4694_v30 = vadd.f32 %v4693_v28, %v4692_v26  ;;  %v4695_v31 = vpop.f32.mrb[6].mxu0 }
 0x184   : > { %v4696_v16 = vpop.f32.mrb[7].mxu0 }
 0x185   : > { %v3510_v32 = vadd.f32 %v4694_v30, %v3469_v15  ;;  %v4697_v33 = vadd.f32 %v4696_v16, %v4695_v31 }
 0x187   : > { %v3513_v36 = vadd.f32 %v4697_v33, %v3472_v0 }
 0x18b   : > { %v4714_v48 = vpop.f32.mrb[4].mxu1 }
 0x18c   : > { %v4715_v38 = vpop.f32.mrb[5].mxu1 }
 0x18d   : > { %v4716_v34 = vadd.f32 %v4715_v38, %v4714_v48  ;;  %v4717_v40 = vpop.f32.mrb[6].mxu1 }
 0x18e   : > { %v4718_v37 = vpop.f32.mrb[7].mxu1 }
 0x18f   : > { %v3551_v41 = vadd.f32 %v4716_v34, %v3510_v32  ;;  %v4719_v42 = vadd.f32 %v4718_v37, %v4717_v40 }
 0x191   : > { %v3554_v45 = vadd.f32 %v4719_v42, %v3513_v36 }
 0x1a1   : > { %v4736_v39 = vpop.f32.mrb[8].mxu0 }
 0x1a2   : > { %v4737_v44 = vpop.f32.mrb[9].mxu0 }
 0x1a3   : > { %v4738_v43 = vadd.f32 %v4737_v44, %v4736_v39  ;;  %v4739_v46 = vpop.f32.mrb[10].mxu0 }
 0x1a4   : > { %v4740_v14 = vpop.f32.mrb[11].mxu0 }
 0x1a5   : > { %v3592_v50 = vadd.f32 %v4738_v43, %v3551_v41  ;;  %v4741_v53 = vadd.f32 %v4740_v14, %v4739_v46 }
 0x1a7   : > { %v3595_v51 = vadd.f32 %v4741_v53, %v3554_v45 }
 0x1ab   : > { %v4758_v55 = vpop.f32.mrb[8].mxu1 }
 0x1ac   : > { %v4759_v56 = vpop.f32.mrb[9].mxu1 }
 0x1ad   : > { %v4760_v57 = vadd.f32 %v4759_v56, %v4758_v55  ;;  %v4761_v58 = vpop.f32.mrb[10].mxu1 }
 0x1ae   : > { %v4762_v15 = vpop.f32.mrb[11].mxu1 }
 0x1af   : > { %v3633_v59 = vadd.f32 %v4760_v57, %v3592_v50  ;;  %v4763_v60 = vadd.f32 %v4762_v15, %v4761_v58 }
 0x1b1   : > { %v3636_v61 = vadd.f32 %v4763_v60, %v3595_v51 }
 0x1c1   : > { %v4780_v62 = vpop.f32.mrb[12].mxu0 }
 0x1c2   : > { %v4781_v63 = vpop.f32.mrb[13].mxu0 }
 0x1c3   : > { %v4782_v0 = vadd.f32 %v4781_v63, %v4780_v62  ;;  %v4783_v1 = vpop.f32.mrb[14].mxu0 }
 0x1c4   : > { %v4784_v2 = vpop.f32.mrb[15].mxu0 }
 0x1c5   : > { %v3674_v4 = vadd.f32 %v4782_v0, %v3633_v59  ;;  %v4785_v18 = vadd.f32 %v4784_v2, %v4783_v1 }
 0x1c7   : > { %v3677_v19 = vadd.f32 %v4785_v18, %v3636_v61 }
 0x1cb   : > { %v4802_v5 = vpop.f32.mrb[12].mxu1 }
 0x1cc   : > { %v4803_v6 = vpop.f32.mrb[13].mxu1 }
 0x1cd   : > { %v4804_v7 = vadd.f32 %v4803_v6, %v4802_v5  ;;  %v4805_v8 = vpop.f32.mrb[14].mxu1 }
 0x1ce   : > { %v4806_v9 = vpop.f32.mrb[15].mxu1 }
 0x1cf   : > { %v3715_v3 = vadd.f32 %v4804_v7, %v3674_v4  ;;  %v4807_v10 = vadd.f32 %v4806_v9, %v4805_v8 }
 0x1d1   : > { %v3718_v12 = vadd.f32 %v4807_v10, %v3677_v19 }
 0x1e1   : > { %v4824_v13 = vpop.f32.mrb[16].mxu0 }
 0x1e2   : > { %v4825_v20 = vpop.f32.mrb[17].mxu0 }
 0x1e3   : > { %v4826_v17 = vadd.f32 %v4825_v20, %v4824_v13  ;;  %v4827_v52 = vpop.f32.mrb[18].mxu0 }
 0x1e4   : > { %v4828_v47 = vpop.f32.mrb[19].mxu0 }
 0x1e5   : > { %v3756_v54 = vadd.f32 %v4826_v17, %v3715_v3  ;;  %v4829_v21 = vadd.f32 %v4828_v47, %v4827_v52 }
 0x1e7   : > { %v3759_v22 = vadd.f32 %v4829_v21, %v3718_v12 }
 0x1eb   : > { %v4846_v23 = vpop.f32.mrb[16].mxu1 }
 0x1ec   : > { %v4847_v24 = vpop.f32.mrb[17].mxu1 }
 0x1ed   : > { %v4848_v49 = vadd.f32 %v4847_v24, %v4846_v23  ;;  %v4849_v25 = vpop.f32.mrb[18].mxu1 }
 0x1ee   : > { %v4850_v26 = vpop.f32.mrb[19].mxu1 }
 0x1ef   : > { %v3797_v27 = vadd.f32 %v4848_v49, %v3756_v54  ;;  %v4851_v28 = vadd.f32 %v4850_v26, %v4849_v25 }
 0x1f1   : > { %v3800_v29 = vadd.f32 %v4851_v28, %v3759_v22 }
 0x201   : > { %v4868_v30 = vpop.f32.mrb[20].mxu0 }
 0x202   : > { %v4869_v31 = vpop.f32.mrb[21].mxu0 }
 0x203   : > { %v4870_v11 = vadd.f32 %v4869_v31, %v4868_v30  ;;  %v4871_v16 = vpop.f32.mrb[22].mxu0 }
 0x204   : > { %v4872_v32 = vpop.f32.mrb[23].mxu0 }
 0x205   : > { %v3838_v33 = vadd.f32 %v4870_v11, %v3797_v27  ;;  %v4873_v35 = vadd.f32 %v4872_v32, %v4871_v16 }
 0x207   : > { %v3841_v36 = vadd.f32 %v4873_v35, %v3800_v29 }
 0x20b   : > { %v4890_v48 = vpop.f32.mrb[20].mxu1 }
 0x20c   : > { %v4891_v38 = vpop.f32.mrb[21].mxu1 }
 0x20d   : > { %v4892_v34 = vadd.f32 %v4891_v38, %v4890_v48  ;;  %v4893_v40 = vpop.f32.mrb[22].mxu1 }
 0x20e   : > { %v4894_v37 = vpop.f32.mrb[23].mxu1 }
 0x20f   : > { %v3879_v41 = vadd.f32 %v4892_v34, %v3838_v33  ;;  %v4895_v42 = vadd.f32 %v4894_v37, %v4893_v40 }
 0x211   : > { %v3882_v45 = vadd.f32 %v4895_v42, %v3841_v36 }
 0x221   : > { %v4912_v39 = vpop.f32.mrb[24].mxu0 }
 0x222   : > { %v4913_v44 = vpop.f32.mrb[25].mxu0 }
 0x223   : > { %v4914_v43 = vadd.f32 %v4913_v44, %v4912_v39  ;;  %v4915_v46 = vpop.f32.mrb[26].mxu0 }
 0x224   : > { %v4916_v14 = vpop.f32.mrb[27].mxu0 }
 0x225   : > { %v3920_v50 = vadd.f32 %v4914_v43, %v3879_v41  ;;  %v4917_v53 = vadd.f32 %v4916_v14, %v4915_v46 }
 0x227   : > { %v3923_v51 = vadd.f32 %v4917_v53, %v3882_v45 }
 0x22b   : > { %v4934_v55 = vpop.f32.mrb[24].mxu1 }
 0x22c   : > { %v4935_v56 = vpop.f32.mrb[25].mxu1 }
 0x22d   : > { %v4936_v57 = vadd.f32 %v4935_v56, %v4934_v55  ;;  %v4937_v58 = vpop.f32.mrb[26].mxu1 }
 0x22e   : > { %v4938_v15 = vpop.f32.mrb[27].mxu1 }
 0x22f   : > { %v3961_v59 = vadd.f32 %v4936_v57, %v3920_v50  ;;  %v4939_v60 = vadd.f32 %v4938_v15, %v4937_v58 }
 0x231   : > { %v3964_v61 = vadd.f32 %v4939_v60, %v3923_v51 }
 0x241   : > { %v4956_v62 = vpop.f32.mrb[28].mxu0 }
 0x242   : > { %v4957_v63 = vpop.f32.mrb[29].mxu0 }
 0x243   : > { %v4958_v0 = vadd.f32 %v4957_v63, %v4956_v62  ;;  %v4959_v1 = vpop.f32.mrb[30].mxu0 }
 0x244   : > { %v4960_v2 = vpop.f32.mrb[31].mxu0 }
 0x245   : > { %v4002_v4 = vadd.f32 %v4958_v0, %v3961_v59  ;;  %v4961_v18 = vadd.f32 %v4960_v2, %v4959_v1 }
 0x247   : > { %v4005_v19 = vadd.f32 %v4961_v18, %v3964_v61 }
 0x24b   : > { %v4978_v5 = vpop.f32.mrb[28].mxu1 }
 0x24c   : > { %v4979_v6 = vpop.f32.mrb[29].mxu1 }
 0x24d   : > { %v4980_v7 = vadd.f32 %v4979_v6, %v4978_v5  ;;  %v4981_v8 = vpop.f32.mrb[30].mxu1 }
 0x24e   : > { %v4982_v9 = vpop.f32.mrb[31].mxu1 }
 0x24f   : > { %v4043_v3 = vadd.f32 %v4980_v7, %v4002_v4  ;;  %v4983_v10 = vadd.f32 %v4982_v9, %v4981_v8 }
 0x251   : > { %v4046_v12 = vadd.f32 %v4983_v10, %v4005_v19  ;;  %v4066_v13 = vmul.f32 %v4043_v3, %v4043_v3 }
 0x253   : > { %v4630_v20 = vpack.c.bf16 %v4046_v12, %v4043_v3  ;;  %v4059_v17 = vadd.f32 %v4046_v12, %v4043_v3  ;;  %v4067_v52 = vmul.f32 %v4046_v12, %v4046_v12 }
 0x255   : > { %4631 = vst [vmem:[%s272_s11] sm:$0xff] %v4630_v20   ;;  %v4060_v47 = vrot.slane %v4059_v17, 4  ;;  %v4068_v54 = vadd.f32 %v4067_v52, %v4066_v13 }
 0x256   : > { %5472 = shalt.err (!%p5469_p10)
}
 0x257   : > { %s5473_s26 = scalar_lea.hbm %s6382_s14, 128  ;;  %s5477_s15 = scalar_lea.hbm %s6494_s2, 1024 }
 0x258   : > { %p5474_p0 = scmp.ne.s32.totalorder %s6382_s14, %s5473_s26  ;;  %p5478_p4 = scmp.lt.u32.totalorder %s6382_s14, %s6494_s2 }
 0x259   : > { %p5479_p5 = scmp.lt.u32.totalorder %s5477_s15, %s5473_s26  ;;  %p5481_p7 = scmp.lt.u32.totalorder %s5473_s26, %s6382_s14 }
 0x25a   : > { %p5475_p1 = pnand %p5474_p0, %p6530_p13 }
 0x25b   : > { %p5480_p12 = por %p5479_p5, %p5478_p4 }
 0x25c   : > { %p5476_p11 = pneg %p5475_p1 }
 0x25d   : > { %p5482_p8 = por %p5481_p7, %p5480_p12 }
 0x25f   : > { %p5483_p9 = pnand %p5482_p8, %p5476_p11 }
 0x261   : > { %5486 = shalt.err (!%p5483_p9)
}
 0x262   : > { %s5655_s0 = smov 64   ;;  %s5656_s6 = smov 256   ;;  %v4061_v21 = vadd.f32 %v4060_v47, %v4059_v17  ;;  %v4069_v22 = vrot.slane %v4068_v54, 4  ;;  %vm4075_vm0 = vcmask 1040384  }
 0x263   : > { %s5657_s11 = smov 4   ;;  %s4269_s29 = sshll.u32 %s6372_s27, 1 }
 0x264   : > { %4998 = dma.vmem_to_hbm [thread:$0]  (%p6530_p13), %s6377_s28, 128, %s6382_s14, %s4079_s24, %s5655_s0, %s5656_s6, %s5657_s11   ;;  %v4062_v23 = vrot.slane %v4061_v21, 2  ;;  %v4070_v24 = vadd.f32 %v4069_v22, %v4068_v54 }
 0x265   : > { %s4620_s9 = sshll.u32 %s5629_s22, 2  ;;  %s279_s20 = scalar_lea.vmem [#allocation8], %s4269_s29 }
 0x266   : > { %v4063_v49 = vadd.f32 %v4062_v23, %v4061_v21  ;;  %v4071_v25 = vrot.slane %v4070_v24, 2  ;;  %s4113_s12 = sadd.s32 %s5625_s21, %s4620_s9  ;;  %s4117_s10 = sshll.u32 %s279_s20, 4  ;;  %s6416_s10 = int_to_ptr.vmem [resolvable:$true] %s4117_s10 }
 0x267   : > { %s4621_s7 = sshll.u32 %s4113_s12, 5  ;;  %s6531_s24 = sld [smem:[#allocation28_spill]] }
 0x268   : > { %v4064_v26 = vrot.slane %v4063_v49, 1  ;;  %v4072_v27 = vadd.f32 %v4071_v25, %v4070_v24  ;;  %s4084_s21 = scalar_lea.sflag [#allocation9], %s6372_s27  ;;  %s5487_s22 = scalar_lea.vmem %s6416_s10, 32 }
 0x269   : > { %p5488_p2 = scmp.ne.s32.totalorder %s6416_s10, %s5487_s22  ;;  %s5658_s3 = smov [#allocation8]  }
 0x26a   : > { %v4073_v28 = vrot.slane %v4072_v27, 1  ;;  %v4065_v29 = vadd.f32 %v4064_v26, %v4063_v49  ;;  %s5491_s18 = sshll.u32 %s5658_s3, 4  ;;  %s5492_s18 = int_to_ptr.vmem [resolvable:$false] %s5491_s18 }
 0x26b   : > { %p5489_p6 = pnand %p5488_p2, %p6530_p13  ;;  %s5493_s15 = scalar_lea.vmem %s5492_s18, 64 }
 0x26c   : > { %v4074_v30 = vadd.f32 %v4073_v28, %v4072_v27  ;;  %p5494_p10 = scmp.lt.s32.totalorder %s6416_s10, %s5492_s18  ;;  %p5495_p0 = scmp.lt.s32.totalorder %s5493_s15, %s5487_s22 }
 0x26d   : > { %s6532_s5 = smov %s6531_s24  ;;  %s6414_s26 = scalar_lea.hbm %s6531_s24, %s4621_s7 }
 0x26e   : > { %v4076_v31 = vsel %vm4075_vm0, %v4065_v29, %v4074_v30  ;;  %p5490_p3 = pneg %p5489_p6  ;;  %p5496_p1 = por %p5495_p0, %p5494_p10 }
 0x26f   : > { %4077 = vst [vmem:[%s279_s20] sm:$0x3] %v4076_v31 }
 0x270   : > { %p5497_p11 = pnand %p5496_p1, %p5490_p3 }
 0x272   : > { %5500 = shalt.err (!%p5497_p11)
}
 0x273   : > { %s5501_s27 = scalar_lea.hbm %s6414_s26, 32  ;;  %s5505_s0 = scalar_lea.hbm %s6532_s5, 256 }
 0x274   : > { %p5502_p4 = scmp.ne.s32.totalorder %s6414_s26, %s5501_s27  ;;  %p5506_p7 = scmp.lt.u32.totalorder %s6414_s26, %s6532_s5 }
 0x275   : > { %p5507_p8 = scmp.lt.u32.totalorder %s5505_s0, %s5501_s27  ;;  %p5509_p2 = scmp.lt.u32.totalorder %s5501_s27, %s6414_s26 }
 0x276   : > { %p5503_p5 = pnand %p5502_p4, %p6530_p13 }
 0x277   : > { %p5508_p9 = por %p5507_p8, %p5506_p7 }
 0x278   : > { %p5504_p12 = pneg %p5503_p5 }
 0x279   : > { %p5510_p6 = por %p5509_p2, %p5508_p9 }
 0x27b   : > { %p5511_p3 = pnand %p5510_p6, %p5504_p12 }
 0x27d   : > { %5514 = shalt.err (!%p5511_p3)
}
 0x27e   : > { %4999 = dma.vmem_to_hbm [thread:$0]  (%p6530_p13), %s6416_s10, 32, %s6414_s26, %s4084_s21  }
 0x27f PF: > { %s6533_s29 = sld [smem:[#allocation17_spill]]  ;;  %s6534_s9 = sld [smem:[#allocation26_spill]] }
 0x280   : > { %p5009_p10 = scmp.ge.s32.totalorder %s5641_s25, 2 }
 0x285   : > { %s4129_s12 = sand.u32 1, %s6533_s29   ;;  %p6535_p0 = scmp.ne.s32.totalorder %s6534_s9, 0 }
 0x286   : > { %s4130_s7 = scalar_lea.sflag [#allocation4], %s4129_s12 }
 0x287   : > { %p5003_p1 = pnand %p5009_p10, %p6535_p0 }
 0x289   : > { %5580 = dma.done.wait (!%p5003_p1), %s4130_s7, 128  }
 0x28a   : > { %5582 = vsyncadd (!%p5003_p1), %s4130_s7, 4294967168  ;;  %s4139_s20 = scalar_lea.sflag [#allocation9], %s4129_s12 }
 0x28b   : > { %5584 = dma.done.wait (!%p5003_p1), %s4139_s20, 32  }
 0x28c   : > { %5586 = vsyncadd (!%p5003_p1), %s4139_s20, 4294967264  ;;  %s26_s25 = sadd.s32 1, %s5641_s25   ;;  %s6537_s10 = sld [smem:[#allocation18_spill]] }
 0x28d   : > { %p6445_p11 = scmp.ge.s32.totalorder %s26_s25, 10   ;;  %s6538_s14 = sld [smem:[#allocation25_spill]] }
 0x28e   : > { %s6539_s28 = sld [smem:[#allocation23_spill]]  ;;  %s6540_s24 = sld [smem:[#allocation19_spill]] }
 0x28f   : > { %s6541_s20 = sld [smem:[#allocation24_spill]]  ;;  %s6542_s22 = sld [smem:[#allocation20_spill]] }
 0x290   : > { %s6543_s26 = sld [smem:[#allocation21_spill]]  ;;  %s6544_s3 = sld [smem:[#allocation22_spill]] }
 0x291   : > { %s6545_s12 = smov %s5593_s13  ;;  %s6547_s15 = smov %s5605_s16 }
 0x292   : > { %s6546_s13 = smov %s6537_s10  ;;  %s6548_s16 = smov %s5609_s17 }
 0x293   : > { %s6550_s18 = smov %s5617_s19  ;;  %s6552_s21 = smov %s5633_s23 }
 0x294   : > { %s6549_s17 = smov %s6539_s28  ;;  %s6551_s19 = smov %s6540_s24 }
 0x295   :  { %25 = sbr.rel (!%p6445_p11) target bundleno = 17 (0x11), region = 111 }
 0x296   : > { %s6553_s23 = smov %s6543_s26  ;;  %s6554_s24 = smov %s6544_s3 }
 0x29c   :  { %4144 = vsyncpa [#allocation3], 1 }
 0x29d   :  { %4146 = vsyncpa [#allocation3 + $0x1], 1 }
 0x29e   :  { %4147 = vsyncpa [#allocation6], 1 }
 0x29f   :  { %4149 = vsyncpa [#allocation6 + $0x1], 1 }
 0x2a0   :  { %4150 = vsyncpa [#allocation4], 1 }
 0x2a1   :  { %4152 = vsyncpa [#allocation4 + $0x1], 1 }
 0x2a2   :  { %4153 = vsyncpa [#allocation9], 1 }
 0x2a3   :  { %4155 = vsyncpa [#allocation9 + $0x1], 1 }

</bundles_post_ra>
